<compile_context>
chip_gen: v5e
topology: v5e:2x2
jax: 0.10.0
libtpu: 0.0.40
codegen_flags: <defaults>
</compile_context>

<pallas_src>
import functools

import jax
import jax.numpy as jnp
from jax.experimental import pallas as pl
from jax.experimental.pallas import tpu as pltpu

EMB_DIM = 768
OUT_CH = 100            # logical conv output channels (torch)
CPAD = 128              # lane-padded conv channels
KS = (3, 4, 5)
KMAX = max(KS)
FEAT_PAD = len(KS) * CPAD   # 384
IMG_DIM = 256
C1_DIM = 512
C2_DIM = 256
CLASS_NUM = 14
CLASS_PAD = 128
LEAKY_SLOPE = 0.01      # nn.LeakyReLU default
LN_EPS = 1e-5           # nn.LayerNorm default


# ---------------------------------------------------------------------------
# One fused kernel: conv+pool text head, image head, classifier
# ---------------------------------------------------------------------------
def _fused_kernel(hsh_ref, frt_ref,
                  wconv_ref, bconv_ref,
                  wimg_ref, bimg_ref, gimg_ref, btimg_ref,
                  wc1f_ref, wc1i_ref, bc1_ref, gc1_ref, btc1_ref,
                  wc2_ref, bc2_ref, gc2_ref, btc2_ref,
                  wc3_ref, bc3_ref,
                  o_ref, *, seq_len, blk_b):
    L = seq_len
    Bblk = blk_b

    # ---- text conv head: KMAX shifted, channel-concatenated matmuls -------
    # hsh_ref[k] is hidden[:, k:k+L, :] flattened to (Bblk*L, 768) bf16;
    # padded weight rows (k >= K) and padded sequence rows are zero, so the
    # accumulation equals the valid-padding convolution for every valid t.
    acc = jnp.dot(hsh_ref[0], wconv_ref[0], preferred_element_type=jnp.float32)
    for k in range(1, KMAX):
        acc = acc + jnp.dot(hsh_ref[k], wconv_ref[k],
                            preferred_element_type=jnp.float32)
    r = jnp.maximum(acc + bconv_ref[...], 0.0)            # (Bblk*L, 384) f32

    # validity mask over t (per conv width) and 1/T divisors, lane layout
    t_idx = jax.lax.broadcasted_iota(jnp.int32, (L, CPAD), 0)
    mask = jnp.concatenate(
        [(t_idx <= (L - K)).astype(jnp.float32) for K in KS], axis=1)
    inv_cnt = jnp.concatenate(
        [jnp.full((1, CPAD), 1.0 / (L - K + 1), jnp.float32) for K in KS],
        axis=1)

    rows = []
    for b in range(Bblk):                                  # static unroll
        blk = r[b * L:(b + 1) * L, :] * mask               # (L, 384)
        rows.append(jnp.max(blk, axis=0, keepdims=True)            # max_pool1d
                    + jnp.sum(blk, axis=0, keepdims=True) * inv_cnt)  # avg_pool1d
    feat = jnp.concatenate(rows, axis=0)                   # (Bblk, 384)

    def lrelu(y):
        return jnp.where(y > 0, y, LEAKY_SLOPE * y)

    def layernorm(y, g_ref, bt_ref):
        mu = jnp.mean(y, axis=-1, keepdims=True)
        var = jnp.mean(jnp.square(y - mu), axis=-1, keepdims=True)
        return (y - mu) * jax.lax.rsqrt(var + LN_EPS) * g_ref[...] + bt_ref[...]

    # ---- image head: Linear(2048,256) + LeakyReLU + LayerNorm -------------
    x_img = jnp.dot(frt_ref[...], wimg_ref[...],
                    preferred_element_type=jnp.float32) + bimg_ref[...]
    x_img = layernorm(lrelu(x_img), gimg_ref, btimg_ref)   # (Bblk, 256)

    # ---- classifier; torch.cat([feat, x_img]) realized as split matmul ----
    h1 = (jnp.dot(feat.astype(jnp.bfloat16), wc1f_ref[...],
                  preferred_element_type=jnp.float32)
          + jnp.dot(x_img.astype(jnp.bfloat16), wc1i_ref[...],
                    preferred_element_type=jnp.float32)
          + bc1_ref[...])
    h1 = layernorm(lrelu(h1), gc1_ref, btc1_ref)            # (Bblk, 512)

    h2 = jnp.dot(h1.astype(jnp.bfloat16), wc2_ref[...],
                 preferred_element_type=jnp.float32) + bc2_ref[...]
    h2 = layernorm(lrelu(h2), gc2_ref, btc2_ref)            # (Bblk, 256)

    o_ref[...] = (jnp.dot(h2.astype(jnp.bfloat16), wc3_ref[...],
                          preferred_element_type=jnp.float32)
                  + bc3_ref[...])                           # (Bblk, 128) padded


def _fused_forward(hshift, frt_bf, p, *, Bblk, L):
    _, MB, D = hshift.shape        # MB = B_pad * L
    B_pad = MB // L
    nblk = B_pad // Bblk
    kern = functools.partial(_fused_kernel, seq_len=L, blk_b=Bblk)

    def const2(shape):
        return pl.BlockSpec(shape, lambda b: (0, 0))

    return pl.pallas_call(
        kern,
        out_shape=jax.ShapeDtypeStruct((B_pad, CLASS_PAD), jnp.float32),
        grid=(nblk,),
        in_specs=[
            pl.BlockSpec((KMAX, Bblk * L, D), lambda b: (0, b, 0)),
            pl.BlockSpec((Bblk, 2048), lambda b: (b, 0)),
            pl.BlockSpec((KMAX, D, FEAT_PAD), lambda b: (0, 0, 0)),
            const2((1, FEAT_PAD)),
            const2((2048, IMG_DIM)),
            const2((1, IMG_DIM)),
            const2((1, IMG_DIM)),
            const2((1, IMG_DIM)),
            const2((FEAT_PAD, C1_DIM)),
            const2((IMG_DIM, C1_DIM)),
            const2((1, C1_DIM)),
            const2((1, C1_DIM)),
            const2((1, C1_DIM)),
            const2((C1_DIM, C2_DIM)),
            const2((1, C2_DIM)),
            const2((1, C2_DIM)),
            const2((1, C2_DIM)),
            const2((C2_DIM, CLASS_PAD)),
            const2((1, CLASS_PAD)),
        ],
        out_specs=pl.BlockSpec((Bblk, CLASS_PAD), lambda b: (b, 0)),
        compiler_params=pltpu.CompilerParams(
            dimension_semantics=("parallel",),
            vmem_limit_bytes=32 * 1024 * 1024),
    )(hshift, frt_bf,
      p["wconv"], p["bconv"],
      p["w_img"], p["b_img"], p["g_img"], p["bt_img"],
      p["w_c1f"], p["w_c1i"], p["b_c1"], p["g_c1"], p["bt_c1"],
      p["w_c2"], p["b_c2"], p["g_c2"], p["bt_c2"],
      p["w_c3"], p["b_c3"])


# ---------------------------------------------------------------------------
# Parameters (deterministic synthetic init, pre-packed into kernel layout)
# ---------------------------------------------------------------------------
def init_params(key):
    ks = jax.random.split(key, 12)

    def dense(k, din, dout, scale=0.02):
        kw, kb = jax.random.split(k)
        return (jax.random.normal(kw, (din, dout), jnp.float32) * scale,
                jax.random.normal(kb, (1, dout), jnp.float32) * scale)

    p = {}

    # Conv2d(1,100,(K,768)) weights, stored transposed (K,768,100) and packed
    # lane-dense into one (KMAX,768,3*128) slab; pad rows/lanes are zero.
    wconv = jnp.zeros((KMAX, EMB_DIM, FEAT_PAD), jnp.float32)
    bconv = jnp.zeros((1, FEAT_PAD), jnp.float32)
    for i, K in enumerate(KS):
        w = jax.random.normal(ks[i], (K, EMB_DIM, OUT_CH), jnp.float32) * 0.02
        b = jax.random.normal(ks[3 + i], (1, OUT_CH), jnp.float32) * 0.02
        c0 = i * CPAD
        wconv = wconv.at[:K, :, c0:c0 + OUT_CH].set(w)
        bconv = bconv.at[:, c0:c0 + OUT_CH].set(b)
    p["wconv"] = wconv.astype(jnp.bfloat16)
    p["bconv"] = bconv

    # img_head: Linear(2048,256) + LeakyReLU + Dropout + LayerNorm(256)
    w, b = dense(ks[6], 2048, IMG_DIM)
    p["w_img"], p["b_img"] = w.astype(jnp.bfloat16), b
    p["g_img"] = jnp.ones((1, IMG_DIM), jnp.float32)
    p["bt_img"] = jnp.zeros((1, IMG_DIM), jnp.float32)

    # classify[0]: Linear(556,512) split into conv-feature part (rows mapped
    # into the lane-padded 384 layout) and image part (256 rows).
    w1, b1 = dense(ks[7], len(KS) * OUT_CH + IMG_DIM, C1_DIM)   # (556, 512)
    w1f = jnp.zeros((FEAT_PAD, C1_DIM), jnp.float32)
    for i in range(len(KS)):
        w1f = w1f.at[i * CPAD:i * CPAD + OUT_CH, :].set(
            w1[i * OUT_CH:(i + 1) * OUT_CH, :])
    p["w_c1f"] = w1f.astype(jnp.bfloat16)
    p["w_c1i"] = w1[len(KS) * OUT_CH:, :].astype(jnp.bfloat16)
    p["b_c1"] = b1
    p["g_c1"] = jnp.ones((1, C1_DIM), jnp.float32)
    p["bt_c1"] = jnp.zeros((1, C1_DIM), jnp.float32)

    # classify: Linear(512,256) + LeakyReLU + Dropout + LayerNorm(256)
    w2, b2 = dense(ks[8], C1_DIM, C2_DIM)
    p["w_c2"], p["b_c2"] = w2.astype(jnp.bfloat16), b2
    p["g_c2"] = jnp.ones((1, C2_DIM), jnp.float32)
    p["bt_c2"] = jnp.zeros((1, C2_DIM), jnp.float32)

    # classify[-1]: Linear(256, class_num), lane-padded to 128 output columns
    w3, b3 = dense(ks[9], C2_DIM, CLASS_NUM)
    p["w_c3"] = (jnp.zeros((C2_DIM, CLASS_PAD), jnp.float32)
                 .at[:, :CLASS_NUM].set(w3)).astype(jnp.bfloat16)
    p["b_c3"] = jnp.zeros((1, CLASS_PAD), jnp.float32).at[:, :CLASS_NUM].set(b3)

    # TODO(synk): external pretrained `bert_model` has no in-script equivalent;
    # replaced by a deterministic embedding-table stub producing last_hidden_state.
    p["emb"] = jax.random.normal(ks[10], (1000, EMB_DIM), jnp.float32) * 0.02
    return p


# ---------------------------------------------------------------------------
# Forward
# ---------------------------------------------------------------------------
def forward(params, x_tokens, attention, frt):
    # --- BERT stub (plain JAX glue): last_hidden_state ~ (B, L, 768) ---
    hidden = params["emb"][x_tokens] * attention[..., None].astype(jnp.float32)
    B, L, _ = hidden.shape
    assert L >= KMAX, "sequence must be at least as long as the widest conv"

    Bblk = B if B <= 8 else 8                    # batch block -> M = Bblk*L rows
    B_pad = ((B + Bblk - 1) // Bblk) * Bblk

    # bf16 MXU operands; pad seq with KMAX-1 zero rows so shifted windows never
    # run off the end, pad batch to a multiple of the batch block.
    hidden_bf = hidden.astype(jnp.bfloat16)
    hidden_bf = jnp.pad(hidden_bf, ((0, B_pad - B), (0, KMAX - 1), (0, 0)))
    # pre-shifted, batch-flattened views: hshift[k] == hidden[:, k:k+L, :]
    hshift = jnp.stack(
        [hidden_bf[:, k:k + L, :].reshape(B_pad * L, EMB_DIM)
         for k in range(KMAX)], axis=0)                      # (5, B_pad*L, 768)

    frt_bf = jnp.pad(frt.astype(jnp.bfloat16), ((0, B_pad - B), (0, 0)))

    logits = _fused_forward(hshift, frt_bf, params, Bblk=Bblk, L=L)
    return logits[:B, :CLASS_NUM]


if __name__ == "__main__":
    key = jax.random.PRNGKey(0)
    kp, kx, kf = jax.random.split(key, 3)
    params = init_params(kp)

    B, L = 2, 16
    x_tokens = jax.random.randint(kx, (B, L), 0, 1000)       # token ids
    attention = jnp.ones((B, L), jnp.int32)                  # attention mask
    frt = jax.random.normal(kf, (B, 2048), jnp.float32)      # image features

    logits = jax.jit(forward)(params, x_tokens, attention, frt)
    jax.block_until_ready(logits)
    assert logits.shape == (B, CLASS_NUM) and logits.dtype == jnp.float32
    print("KERNEL_OK")
</pallas_src>

<mosaic_0001>
module attributes {stable_mosaic.version = 11 : i64} {
  func.func @_fused_kernel(%arg0: i32, %arg1: memref<5x32x768xbf16, #tpu.memory_space<vmem>>, %arg2: memref<2x2048xbf16, #tpu.memory_space<vmem>>, %arg3: memref<5x768x384xbf16, #tpu.memory_space<vmem>>, %arg4: memref<1x384xf32, #tpu.memory_space<vmem>>, %arg5: memref<2048x256xbf16, #tpu.memory_space<vmem>>, %arg6: memref<1x256xf32, #tpu.memory_space<vmem>>, %arg7: memref<1x256xf32, #tpu.memory_space<vmem>>, %arg8: memref<1x256xf32, #tpu.memory_space<vmem>>, %arg9: memref<384x512xbf16, #tpu.memory_space<vmem>>, %arg10: memref<256x512xbf16, #tpu.memory_space<vmem>>, %arg11: memref<1x512xf32, #tpu.memory_space<vmem>>, %arg12: memref<1x512xf32, #tpu.memory_space<vmem>>, %arg13: memref<1x512xf32, #tpu.memory_space<vmem>>, %arg14: memref<512x256xbf16, #tpu.memory_space<vmem>>, %arg15: memref<1x256xf32, #tpu.memory_space<vmem>>, %arg16: memref<1x256xf32, #tpu.memory_space<vmem>>, %arg17: memref<1x256xf32, #tpu.memory_space<vmem>>, %arg18: memref<256x128xbf16, #tpu.memory_space<vmem>>, %arg19: memref<1x128xf32, #tpu.memory_space<vmem>>, %arg20: memref<2x128xf32, #tpu.memory_space<vmem>>) attributes {dimension_semantics = [#tpu.dimension_semantics<parallel>], iteration_bounds = array<i64: 1>, scalar_prefetch = 0 : i64, scratch_operands = 0 : i64, tpu.core_type = #tpu.core_type<tc>, window_params = [{transform_indices = @transform_0, window_bounds = array<i64: 5, 32, 768>}, {transform_indices = @transform_1, window_bounds = array<i64: 2, 2048>}, {pipeline_mode = #tpu.pipeline_mode<synchronous>, transform_indices = @transform_2, window_bounds = array<i64: 5, 768, 384>}, {pipeline_mode = #tpu.pipeline_mode<synchronous>, transform_indices = @transform_3, window_bounds = array<i64: 1, 384>}, {pipeline_mode = #tpu.pipeline_mode<synchronous>, transform_indices = @transform_4, window_bounds = array<i64: 2048, 256>}, {pipeline_mode = #tpu.pipeline_mode<synchronous>, transform_indices = @transform_5, window_bounds = array<i64: 1, 256>}, {pipeline_mode = #tpu.pipeline_mode<synchronous>, transform_indices = @transform_6, window_bounds = array<i64: 1, 256>}, {pipeline_mode = #tpu.pipeline_mode<synchronous>, transform_indices = @transform_7, window_bounds = array<i64: 1, 256>}, {pipeline_mode = #tpu.pipeline_mode<synchronous>, transform_indices = @transform_8, window_bounds = array<i64: 384, 512>}, {pipeline_mode = #tpu.pipeline_mode<synchronous>, transform_indices = @transform_9, window_bounds = array<i64: 256, 512>}, {pipeline_mode = #tpu.pipeline_mode<synchronous>, transform_indices = @transform_10, window_bounds = array<i64: 1, 512>}, {pipeline_mode = #tpu.pipeline_mode<synchronous>, transform_indices = @transform_11, window_bounds = array<i64: 1, 512>}, {pipeline_mode = #tpu.pipeline_mode<synchronous>, transform_indices = @transform_12, window_bounds = array<i64: 1, 512>}, {pipeline_mode = #tpu.pipeline_mode<synchronous>, transform_indices = @transform_13, window_bounds = array<i64: 512, 256>}, {pipeline_mode = #tpu.pipeline_mode<synchronous>, transform_indices = @transform_14, window_bounds = array<i64: 1, 256>}, {pipeline_mode = #tpu.pipeline_mode<synchronous>, transform_indices = @transform_15, window_bounds = array<i64: 1, 256>}, {pipeline_mode = #tpu.pipeline_mode<synchronous>, transform_indices = @transform_16, window_bounds = array<i64: 1, 256>}, {pipeline_mode = #tpu.pipeline_mode<synchronous>, transform_indices = @transform_17, window_bounds = array<i64: 256, 128>}, {pipeline_mode = #tpu.pipeline_mode<synchronous>, transform_indices = @transform_18, window_bounds = array<i64: 1, 128>}, {transform_indices = @transform_19, window_bounds = array<i64: 2, 128>}]} {
    %c0 = arith.constant 0 : index
    %c0_0 = arith.constant 0 : index
    %c0_1 = arith.constant 0 : index
    %0 = vector.load %arg1[%c0, %c0_0, %c0_1] : memref<5x32x768xbf16, #tpu.memory_space<vmem>>, vector<1x32x768xbf16>
    %1 = vector.shape_cast %0 : vector<1x32x768xbf16> to vector<32x768xbf16>
    %c0_2 = arith.constant 0 : index
    %c0_3 = arith.constant 0 : index
    %c0_4 = arith.constant 0 : index
    %2 = vector.load %arg3[%c0_2, %c0_3, %c0_4] : memref<5x768x384xbf16, #tpu.memory_space<vmem>>, vector<1x768x384xbf16>
    %3 = vector.shape_cast %2 : vector<1x768x384xbf16> to vector<768x384xbf16>
    %cst = arith.constant dense<0.000000e+00> : vector<32x384xf32>
    %4 = tpu.matmul %1, %3, %cst {dimension_numbers = #tpu.dot_dimension_numbers<[1], [0], [0], [1], [0, 0, 1, 1], [], []>} : vector<32x768xbf16>, vector<768x384xbf16>, vector<32x384xf32> -> vector<32x384xf32>
    %c1 = arith.constant 1 : index
    %c0_5 = arith.constant 0 : index
    %c0_6 = arith.constant 0 : index
    %5 = vector.load %arg1[%c1, %c0_5, %c0_6] : memref<5x32x768xbf16, #tpu.memory_space<vmem>>, vector<1x32x768xbf16>
    %6 = vector.shape_cast %5 : vector<1x32x768xbf16> to vector<32x768xbf16>
    %c1_7 = arith.constant 1 : index
    %c0_8 = arith.constant 0 : index
    %c0_9 = arith.constant 0 : index
    %7 = vector.load %arg3[%c1_7, %c0_8, %c0_9] : memref<5x768x384xbf16, #tpu.memory_space<vmem>>, vector<1x768x384xbf16>
    %8 = vector.shape_cast %7 : vector<1x768x384xbf16> to vector<768x384xbf16>
    %cst_10 = arith.constant dense<0.000000e+00> : vector<32x384xf32>
    %9 = tpu.matmul %6, %8, %cst_10 {dimension_numbers = #tpu.dot_dimension_numbers<[1], [0], [0], [1], [0, 0, 1, 1], [], []>} : vector<32x768xbf16>, vector<768x384xbf16>, vector<32x384xf32> -> vector<32x384xf32>
    %10 = arith.addf %4, %9 : vector<32x384xf32>
    %c2 = arith.constant 2 : index
    %c0_11 = arith.constant 0 : index
    %c0_12 = arith.constant 0 : index
    %11 = vector.load %arg1[%c2, %c0_11, %c0_12] : memref<5x32x768xbf16, #tpu.memory_space<vmem>>, vector<1x32x768xbf16>
    %12 = vector.shape_cast %11 : vector<1x32x768xbf16> to vector<32x768xbf16>
    %c2_13 = arith.constant 2 : index
    %c0_14 = arith.constant 0 : index
    %c0_15 = arith.constant 0 : index
    %13 = vector.load %arg3[%c2_13, %c0_14, %c0_15] : memref<5x768x384xbf16, #tpu.memory_space<vmem>>, vector<1x768x384xbf16>
    %14 = vector.shape_cast %13 : vector<1x768x384xbf16> to vector<768x384xbf16>
    %cst_16 = arith.constant dense<0.000000e+00> : vector<32x384xf32>
    %15 = tpu.matmul %12, %14, %cst_16 {dimension_numbers = #tpu.dot_dimension_numbers<[1], [0], [0], [1], [0, 0, 1, 1], [], []>} : vector<32x768xbf16>, vector<768x384xbf16>, vector<32x384xf32> -> vector<32x384xf32>
    %16 = arith.addf %10, %15 : vector<32x384xf32>
    %c3 = arith.constant 3 : index
    %c0_17 = arith.constant 0 : index
    %c0_18 = arith.constant 0 : index
    %17 = vector.load %arg1[%c3, %c0_17, %c0_18] : memref<5x32x768xbf16, #tpu.memory_space<vmem>>, vector<1x32x768xbf16>
    %18 = vector.shape_cast %17 : vector<1x32x768xbf16> to vector<32x768xbf16>
    %c3_19 = arith.constant 3 : index
    %c0_20 = arith.constant 0 : index
    %c0_21 = arith.constant 0 : index
    %19 = vector.load %arg3[%c3_19, %c0_20, %c0_21] : memref<5x768x384xbf16, #tpu.memory_space<vmem>>, vector<1x768x384xbf16>
    %20 = vector.shape_cast %19 : vector<1x768x384xbf16> to vector<768x384xbf16>
    %cst_22 = arith.constant dense<0.000000e+00> : vector<32x384xf32>
    %21 = tpu.matmul %18, %20, %cst_22 {dimension_numbers = #tpu.dot_dimension_numbers<[1], [0], [0], [1], [0, 0, 1, 1], [], []>} : vector<32x768xbf16>, vector<768x384xbf16>, vector<32x384xf32> -> vector<32x384xf32>
    %22 = arith.addf %16, %21 : vector<32x384xf32>
    %c4 = arith.constant 4 : index
    %c0_23 = arith.constant 0 : index
    %c0_24 = arith.constant 0 : index
    %23 = vector.load %arg1[%c4, %c0_23, %c0_24] : memref<5x32x768xbf16, #tpu.memory_space<vmem>>, vector<1x32x768xbf16>
    %24 = vector.shape_cast %23 : vector<1x32x768xbf16> to vector<32x768xbf16>
    %c4_25 = arith.constant 4 : index
    %c0_26 = arith.constant 0 : index
    %c0_27 = arith.constant 0 : index
    %25 = vector.load %arg3[%c4_25, %c0_26, %c0_27] : memref<5x768x384xbf16, #tpu.memory_space<vmem>>, vector<1x768x384xbf16>
    %26 = vector.shape_cast %25 : vector<1x768x384xbf16> to vector<768x384xbf16>
    %cst_28 = arith.constant dense<0.000000e+00> : vector<32x384xf32>
    %27 = tpu.matmul %24, %26, %cst_28 {dimension_numbers = #tpu.dot_dimension_numbers<[1], [0], [0], [1], [0, 0, 1, 1], [], []>} : vector<32x768xbf16>, vector<768x384xbf16>, vector<32x384xf32> -> vector<32x384xf32>
    %28 = arith.addf %22, %27 : vector<32x384xf32>
    %c0_29 = arith.constant 0 : index
    %c0_30 = arith.constant 0 : index
    %29 = vector.load %arg4[%c0_29, %c0_30] : memref<1x384xf32, #tpu.memory_space<vmem>>, vector<1x384xf32>
    %30 = vector.broadcast %29 : vector<1x384xf32> to vector<32x384xf32>
    %31 = arith.addf %28, %30 : vector<32x384xf32>
    %cst_31 = arith.constant 0.000000e+00 : f32
    %32 = vector.broadcast %cst_31 : f32 to vector<32x384xf32>
    %33 = arith.maximumf %31, %32 : vector<32x384xf32>
    %34 = tpu.iota {dimensions = array<i32: 0>} : vector<16x128xi32>
    %c13_i32 = arith.constant 13 : i32
    %35 = vector.broadcast %c13_i32 : i32 to vector<16x128xi32>
    %36 = arith.cmpi sle, %34, %35 : vector<16x128xi32>
    %37 = arith.extui %36 : vector<16x128xi1> to vector<16x128xi32>
    %38 = arith.sitofp %37 : vector<16x128xi32> to vector<16x128xf32>
    %c12_i32 = arith.constant 12 : i32
    %39 = vector.broadcast %c12_i32 : i32 to vector<16x128xi32>
    %40 = arith.cmpi sle, %34, %39 : vector<16x128xi32>
    %41 = arith.extui %40 : vector<16x128xi1> to vector<16x128xi32>
    %42 = arith.sitofp %41 : vector<16x128xi32> to vector<16x128xf32>
    %c11_i32 = arith.constant 11 : i32
    %43 = vector.broadcast %c11_i32 : i32 to vector<16x128xi32>
    %44 = arith.cmpi sle, %34, %43 : vector<16x128xi32>
    %45 = arith.extui %44 : vector<16x128xi1> to vector<16x128xi32>
    %46 = arith.sitofp %45 : vector<16x128xi32> to vector<16x128xf32>
    %47 = tpu.concatenate %38, %42, %46 in 1 : vector<16x128xf32>, vector<16x128xf32>, vector<16x128xf32> -> vector<16x384xf32>
    %cst_32 = arith.constant 0.0714285746 : f32
    %48 = vector.broadcast %cst_32 : f32 to vector<1x128xf32>
    %cst_33 = arith.constant 0.0769230798 : f32
    %49 = vector.broadcast %cst_33 : f32 to vector<1x128xf32>
    %cst_34 = arith.constant 0.0833333358 : f32
    %50 = vector.broadcast %cst_34 : f32 to vector<1x128xf32>
    %51 = tpu.concatenate %48, %49, %50 in 1 : vector<1x128xf32>, vector<1x128xf32>, vector<1x128xf32> -> vector<1x384xf32>
    %52 = vector.extract_strided_slice %33 {offsets = [0, 0], sizes = [16, 384], strides = [1, 1]} : vector<32x384xf32> to vector<16x384xf32>
    %53 = arith.mulf %52, %47 : vector<16x384xf32>
    %cst_35 = arith.constant dense<0xFF800000> : vector<384xf32>
    %54 = vector.multi_reduction <maximumf>, %53, %cst_35 [0] : vector<16x384xf32> to vector<384xf32>
    %55 = vector.shape_cast %54 : vector<384xf32> to vector<1x384xf32>
    %cst_36 = arith.constant dense<0.000000e+00> : vector<384xf32>
    %56 = vector.multi_reduction <add>, %53, %cst_36 [0] : vector<16x384xf32> to vector<384xf32>
    %57 = vector.shape_cast %56 : vector<384xf32> to vector<1x384xf32>
    %58 = arith.mulf %57, %51 : vector<1x384xf32>
    %59 = arith.addf %55, %58 : vector<1x384xf32>
    %60 = vector.extract_strided_slice %33 {offsets = [16, 0], sizes = [16, 384], strides = [1, 1]} : vector<32x384xf32> to vector<16x384xf32>
    %61 = arith.mulf %60, %47 : vector<16x384xf32>
    %cst_37 = arith.constant dense<0xFF800000> : vector<384xf32>
    %62 = vector.multi_reduction <maximumf>, %61, %cst_37 [0] : vector<16x384xf32> to vector<384xf32>
    %63 = vector.shape_cast %62 : vector<384xf32> to vector<1x384xf32>
    %cst_38 = arith.constant dense<0.000000e+00> : vector<384xf32>
    %64 = vector.multi_reduction <add>, %61, %cst_38 [0] : vector<16x384xf32> to vector<384xf32>
    %65 = vector.shape_cast %64 : vector<384xf32> to vector<1x384xf32>
    %66 = arith.mulf %65, %51 : vector<1x384xf32>
    %67 = arith.addf %63, %66 : vector<1x384xf32>
    %68 = tpu.concatenate %59, %67 in 0 : vector<1x384xf32>, vector<1x384xf32> -> vector<2x384xf32>
    %c0_39 = arith.constant 0 : index
    %c0_40 = arith.constant 0 : index
    %69 = vector.load %arg2[%c0_39, %c0_40] : memref<2x2048xbf16, #tpu.memory_space<vmem>>, vector<2x2048xbf16>
    %c0_41 = arith.constant 0 : index
    %c0_42 = arith.constant 0 : index
    %70 = vector.load %arg5[%c0_41, %c0_42] : memref<2048x256xbf16, #tpu.memory_space<vmem>>, vector<2048x256xbf16>
    %cst_43 = arith.constant dense<0.000000e+00> : vector<2x256xf32>
    %71 = tpu.matmul %69, %70, %cst_43 {dimension_numbers = #tpu.dot_dimension_numbers<[1], [0], [0], [1], [0, 0, 1, 1], [], []>} : vector<2x2048xbf16>, vector<2048x256xbf16>, vector<2x256xf32> -> vector<2x256xf32>
    %c0_44 = arith.constant 0 : index
    %c0_45 = arith.constant 0 : index
    %72 = vector.load %arg6[%c0_44, %c0_45] : memref<1x256xf32, #tpu.memory_space<vmem>>, vector<1x256xf32>
    %73 = vector.broadcast %72 : vector<1x256xf32> to vector<2x256xf32>
    %74 = arith.addf %71, %73 : vector<2x256xf32>
    %cst_46 = arith.constant 0.000000e+00 : f32
    %75 = vector.broadcast %cst_46 : f32 to vector<2x256xf32>
    %76 = arith.cmpf ogt, %74, %75 : vector<2x256xf32>
    %cst_47 = arith.constant 0.00999999977 : f32
    %77 = vector.broadcast %cst_47 : f32 to vector<2x256xf32>
    %78 = arith.mulf %77, %74 : vector<2x256xf32>
    %79 = arith.select %76, %74, %78 : vector<2x256xi1>, vector<2x256xf32>
    %cst_48 = arith.constant dense<0.000000e+00> : vector<2xf32>
    %80 = vector.multi_reduction <add>, %79, %cst_48 [1] : vector<2x256xf32> to vector<2xf32>
    %81 = vector.shape_cast %80 : vector<2xf32> to vector<2x1xf32>
    %cst_49 = arith.constant 2.560000e+02 : f32
    %82 = vector.broadcast %cst_49 : f32 to vector<2x1xf32>
    %83 = arith.divf %81, %82 : vector<2x1xf32>
    %84 = vector.broadcast %83 : vector<2x1xf32> to vector<2x256xf32>
    %85 = arith.subf %79, %84 : vector<2x256xf32>
    %86 = arith.mulf %85, %85 : vector<2x256xf32>
    %cst_50 = arith.constant dense<0.000000e+00> : vector<2xf32>
    %87 = vector.multi_reduction <add>, %86, %cst_50 [1] : vector<2x256xf32> to vector<2xf32>
    %88 = vector.shape_cast %87 : vector<2xf32> to vector<2x1xf32>
    %cst_51 = arith.constant 2.560000e+02 : f32
    %89 = vector.broadcast %cst_51 : f32 to vector<2x1xf32>
    %90 = arith.divf %88, %89 : vector<2x1xf32>
    %91 = vector.broadcast %83 : vector<2x1xf32> to vector<2x256xf32>
    %92 = arith.subf %79, %91 : vector<2x256xf32>
    %cst_52 = arith.constant 9.99999974E-6 : f32
    %93 = vector.broadcast %cst_52 : f32 to vector<2x1xf32>
    %94 = arith.addf %90, %93 : vector<2x1xf32>
    %95 = math.rsqrt %94 : vector<2x1xf32>
    %96 = vector.broadcast %95 : vector<2x1xf32> to vector<2x256xf32>
    %97 = arith.mulf %92, %96 : vector<2x256xf32>
    %c0_53 = arith.constant 0 : index
    %c0_54 = arith.constant 0 : index
    %98 = vector.load %arg7[%c0_53, %c0_54] : memref<1x256xf32, #tpu.memory_space<vmem>>, vector<1x256xf32>
    %99 = vector.broadcast %98 : vector<1x256xf32> to vector<2x256xf32>
    %100 = arith.mulf %97, %99 : vector<2x256xf32>
    %c0_55 = arith.constant 0 : index
    %c0_56 = arith.constant 0 : index
    %101 = vector.load %arg8[%c0_55, %c0_56] : memref<1x256xf32, #tpu.memory_space<vmem>>, vector<1x256xf32>
    %102 = vector.broadcast %101 : vector<1x256xf32> to vector<2x256xf32>
    %103 = arith.addf %100, %102 : vector<2x256xf32>
    %104 = arith.truncf %68 : vector<2x384xf32> to vector<2x384xbf16>
    %c0_57 = arith.constant 0 : index
    %c0_58 = arith.constant 0 : index
    %105 = vector.load %arg9[%c0_57, %c0_58] : memref<384x512xbf16, #tpu.memory_space<vmem>>, vector<384x512xbf16>
    %cst_59 = arith.constant dense<0.000000e+00> : vector<2x512xf32>
    %106 = tpu.matmul %104, %105, %cst_59 {dimension_numbers = #tpu.dot_dimension_numbers<[1], [0], [0], [1], [0, 0, 1, 1], [], []>} : vector<2x384xbf16>, vector<384x512xbf16>, vector<2x512xf32> -> vector<2x512xf32>
    %107 = arith.truncf %103 : vector<2x256xf32> to vector<2x256xbf16>
    %c0_60 = arith.constant 0 : index
    %c0_61 = arith.constant 0 : index
    %108 = vector.load %arg10[%c0_60, %c0_61] : memref<256x512xbf16, #tpu.memory_space<vmem>>, vector<256x512xbf16>
    %cst_62 = arith.constant dense<0.000000e+00> : vector<2x512xf32>
    %109 = tpu.matmul %107, %108, %cst_62 {dimension_numbers = #tpu.dot_dimension_numbers<[1], [0], [0], [1], [0, 0, 1, 1], [], []>} : vector<2x256xbf16>, vector<256x512xbf16>, vector<2x512xf32> -> vector<2x512xf32>
    %110 = arith.addf %106, %109 : vector<2x512xf32>
    %c0_63 = arith.constant 0 : index
    %c0_64 = arith.constant 0 : index
    %111 = vector.load %arg11[%c0_63, %c0_64] : memref<1x512xf32, #tpu.memory_space<vmem>>, vector<1x512xf32>
    %112 = vector.broadcast %111 : vector<1x512xf32> to vector<2x512xf32>
    %113 = arith.addf %110, %112 : vector<2x512xf32>
    %cst_65 = arith.constant 0.000000e+00 : f32
    %114 = vector.broadcast %cst_65 : f32 to vector<2x512xf32>
    %115 = arith.cmpf ogt, %113, %114 : vector<2x512xf32>
    %cst_66 = arith.constant 0.00999999977 : f32
    %116 = vector.broadcast %cst_66 : f32 to vector<2x512xf32>
    %117 = arith.mulf %116, %113 : vector<2x512xf32>
    %118 = arith.select %115, %113, %117 : vector<2x512xi1>, vector<2x512xf32>
    %cst_67 = arith.constant dense<0.000000e+00> : vector<2xf32>
    %119 = vector.multi_reduction <add>, %118, %cst_67 [1] : vector<2x512xf32> to vector<2xf32>
    %120 = vector.shape_cast %119 : vector<2xf32> to vector<2x1xf32>
    %cst_68 = arith.constant 5.120000e+02 : f32
    %121 = vector.broadcast %cst_68 : f32 to vector<2x1xf32>
    %122 = arith.divf %120, %121 : vector<2x1xf32>
    %123 = vector.broadcast %122 : vector<2x1xf32> to vector<2x512xf32>
    %124 = arith.subf %118, %123 : vector<2x512xf32>
    %125 = arith.mulf %124, %124 : vector<2x512xf32>
    %cst_69 = arith.constant dense<0.000000e+00> : vector<2xf32>
    %126 = vector.multi_reduction <add>, %125, %cst_69 [1] : vector<2x512xf32> to vector<2xf32>
    %127 = vector.shape_cast %126 : vector<2xf32> to vector<2x1xf32>
    %cst_70 = arith.constant 5.120000e+02 : f32
    %128 = vector.broadcast %cst_70 : f32 to vector<2x1xf32>
    %129 = arith.divf %127, %128 : vector<2x1xf32>
    %130 = vector.broadcast %122 : vector<2x1xf32> to vector<2x512xf32>
    %131 = arith.subf %118, %130 : vector<2x512xf32>
    %cst_71 = arith.constant 9.99999974E-6 : f32
    %132 = vector.broadcast %cst_71 : f32 to vector<2x1xf32>
    %133 = arith.addf %129, %132 : vector<2x1xf32>
    %134 = math.rsqrt %133 : vector<2x1xf32>
    %135 = vector.broadcast %134 : vector<2x1xf32> to vector<2x512xf32>
    %136 = arith.mulf %131, %135 : vector<2x512xf32>
    %c0_72 = arith.constant 0 : index
    %c0_73 = arith.constant 0 : index
    %137 = vector.load %arg12[%c0_72, %c0_73] : memref<1x512xf32, #tpu.memory_space<vmem>>, vector<1x512xf32>
    %138 = vector.broadcast %137 : vector<1x512xf32> to vector<2x512xf32>
    %139 = arith.mulf %136, %138 : vector<2x512xf32>
    %c0_74 = arith.constant 0 : index
    %c0_75 = arith.constant 0 : index
    %140 = vector.load %arg13[%c0_74, %c0_75] : memref<1x512xf32, #tpu.memory_space<vmem>>, vector<1x512xf32>
    %141 = vector.broadcast %140 : vector<1x512xf32> to vector<2x512xf32>
    %142 = arith.addf %139, %141 : vector<2x512xf32>
    %143 = arith.truncf %142 : vector<2x512xf32> to vector<2x512xbf16>
    %c0_76 = arith.constant 0 : index
    %c0_77 = arith.constant 0 : index
    %144 = vector.load %arg14[%c0_76, %c0_77] : memref<512x256xbf16, #tpu.memory_space<vmem>>, vector<512x256xbf16>
    %cst_78 = arith.constant dense<0.000000e+00> : vector<2x256xf32>
    %145 = tpu.matmul %143, %144, %cst_78 {dimension_numbers = #tpu.dot_dimension_numbers<[1], [0], [0], [1], [0, 0, 1, 1], [], []>} : vector<2x512xbf16>, vector<512x256xbf16>, vector<2x256xf32> -> vector<2x256xf32>
    %c0_79 = arith.constant 0 : index
    %c0_80 = arith.constant 0 : index
    %146 = vector.load %arg15[%c0_79, %c0_80] : memref<1x256xf32, #tpu.memory_space<vmem>>, vector<1x256xf32>
    %147 = vector.broadcast %146 : vector<1x256xf32> to vector<2x256xf32>
    %148 = arith.addf %145, %147 : vector<2x256xf32>
    %cst_81 = arith.constant 0.000000e+00 : f32
    %149 = vector.broadcast %cst_81 : f32 to vector<2x256xf32>
    %150 = arith.cmpf ogt, %148, %149 : vector<2x256xf32>
    %cst_82 = arith.constant 0.00999999977 : f32
    %151 = vector.broadcast %cst_82 : f32 to vector<2x256xf32>
    %152 = arith.mulf %151, %148 : vector<2x256xf32>
    %153 = arith.select %150, %148, %152 : vector<2x256xi1>, vector<2x256xf32>
    %cst_83 = arith.constant dense<0.000000e+00> : vector<2xf32>
    %154 = vector.multi_reduction <add>, %153, %cst_83 [1] : vector<2x256xf32> to vector<2xf32>
    %155 = vector.shape_cast %154 : vector<2xf32> to vector<2x1xf32>
    %cst_84 = arith.constant 2.560000e+02 : f32
    %156 = vector.broadcast %cst_84 : f32 to vector<2x1xf32>
    %157 = arith.divf %155, %156 : vector<2x1xf32>
    %158 = vector.broadcast %157 : vector<2x1xf32> to vector<2x256xf32>
    %159 = arith.subf %153, %158 : vector<2x256xf32>
    %160 = arith.mulf %159, %159 : vector<2x256xf32>
    %cst_85 = arith.constant dense<0.000000e+00> : vector<2xf32>
    %161 = vector.multi_reduction <add>, %160, %cst_85 [1] : vector<2x256xf32> to vector<2xf32>
    %162 = vector.shape_cast %161 : vector<2xf32> to vector<2x1xf32>
    %cst_86 = arith.constant 2.560000e+02 : f32
    %163 = vector.broadcast %cst_86 : f32 to vector<2x1xf32>
    %164 = arith.divf %162, %163 : vector<2x1xf32>
    %165 = vector.broadcast %157 : vector<2x1xf32> to vector<2x256xf32>
    %166 = arith.subf %153, %165 : vector<2x256xf32>
    %cst_87 = arith.constant 9.99999974E-6 : f32
    %167 = vector.broadcast %cst_87 : f32 to vector<2x1xf32>
    %168 = arith.addf %164, %167 : vector<2x1xf32>
    %169 = math.rsqrt %168 : vector<2x1xf32>
    %170 = vector.broadcast %169 : vector<2x1xf32> to vector<2x256xf32>
    %171 = arith.mulf %166, %170 : vector<2x256xf32>
    %c0_88 = arith.constant 0 : index
    %c0_89 = arith.constant 0 : index
    %172 = vector.load %arg16[%c0_88, %c0_89] : memref<1x256xf32, #tpu.memory_space<vmem>>, vector<1x256xf32>
    %173 = vector.broadcast %172 : vector<1x256xf32> to vector<2x256xf32>
    %174 = arith.mulf %171, %173 : vector<2x256xf32>
    %c0_90 = arith.constant 0 : index
    %c0_91 = arith.constant 0 : index
    %175 = vector.load %arg17[%c0_90, %c0_91] : memref<1x256xf32, #tpu.memory_space<vmem>>, vector<1x256xf32>
    %176 = vector.broadcast %175 : vector<1x256xf32> to vector<2x256xf32>
    %177 = arith.addf %174, %176 : vector<2x256xf32>
    %178 = arith.truncf %177 : vector<2x256xf32> to vector<2x256xbf16>
    %c0_92 = arith.constant 0 : index
    %c0_93 = arith.constant 0 : index
    %179 = vector.load %arg18[%c0_92, %c0_93] : memref<256x128xbf16, #tpu.memory_space<vmem>>, vector<256x128xbf16>
    %cst_94 = arith.constant dense<0.000000e+00> : vector<2x128xf32>
    %180 = tpu.matmul %178, %179, %cst_94 {dimension_numbers = #tpu.dot_dimension_numbers<[1], [0], [0], [1], [0, 0, 1, 1], [], []>} : vector<2x256xbf16>, vector<256x128xbf16>, vector<2x128xf32> -> vector<2x128xf32>
    %c0_95 = arith.constant 0 : index
    %c0_96 = arith.constant 0 : index
    %181 = vector.load %arg19[%c0_95, %c0_96] : memref<1x128xf32, #tpu.memory_space<vmem>>, vector<1x128xf32>
    %182 = vector.broadcast %181 : vector<1x128xf32> to vector<2x128xf32>
    %183 = arith.addf %180, %182 : vector<2x128xf32>
    %c0_97 = arith.constant 0 : index
    %c0_98 = arith.constant 0 : index
    %184 = vector.load %arg20[%c0_97, %c0_98] : memref<2x128xf32, #tpu.memory_space<vmem>>, vector<2x128xf32>
    tpu.vector_store %arg20[%c0_97, %c0_98], %183 {strides = array<i32>} : memref<2x128xf32, #tpu.memory_space<vmem>>, vector<2x128xf32>,
    return
  }
  func.func @transform_0(%arg0: i32) -> (i32, i32, i32) {
    %c0_i32 = arith.constant 0 : i32
    %c0_i32_0 = arith.constant 0 : i32
    %c0_i32_1 = arith.constant 0 : i32
    return %c0_i32, %arg0, %c0_i32_0 : i32, i32, i32
  }
  func.func @transform_1(%arg0: i32) -> (i32, i32) {
    %c0_i32 = arith.constant 0 : i32
    %c0_i32_0 = arith.constant 0 : i32
    return %arg0, %c0_i32 : i32, i32
  }
  func.func @transform_2(%arg0: i32) -> (i32, i32, i32) {
    %c0_i32 = arith.constant 0 : i32
    %c0_i32_0 = arith.constant 0 : i32
    %c0_i32_1 = arith.constant 0 : i32
    %c0_i32_2 = arith.constant 0 : i32
    return %c0_i32, %c0_i32_0, %c0_i32_1 : i32, i32, i32
  }
  func.func @transform_3(%arg0: i32) -> (i32, i32) {
    %c0_i32 = arith.constant 0 : i32
    %c0_i32_0 = arith.constant 0 : i32
    %c0_i32_1 = arith.constant 0 : i32
    return %c0_i32, %c0_i32_0 : i32, i32
  }
  func.func @transform_4(%arg0: i32) -> (i32, i32) {
    %c0_i32 = arith.constant 0 : i32
    %c0_i32_0 = arith.constant 0 : i32
    %c0_i32_1 = arith.constant 0 : i32
    return %c0_i32, %c0_i32_0 : i32, i32
  }
  func.func @transform_5(%arg0: i32) -> (i32, i32) {
    %c0_i32 = arith.constant 0 : i32
    %c0_i32_0 = arith.constant 0 : i32
    %c0_i32_1 = arith.constant 0 : i32
    return %c0_i32, %c0_i32_0 : i32, i32
  }
  func.func @transform_6(%arg0: i32) -> (i32, i32) {
    %c0_i32 = arith.constant 0 : i32
    %c0_i32_0 = arith.constant 0 : i32
    %c0_i32_1 = arith.constant 0 : i32
    return %c0_i32, %c0_i32_0 : i32, i32
  }
  func.func @transform_7(%arg0: i32) -> (i32, i32) {
    %c0_i32 = arith.constant 0 : i32
    %c0_i32_0 = arith.constant 0 : i32
    %c0_i32_1 = arith.constant 0 : i32
    return %c0_i32, %c0_i32_0 : i32, i32
  }
  func.func @transform_8(%arg0: i32) -> (i32, i32) {
    %c0_i32 = arith.constant 0 : i32
    %c0_i32_0 = arith.constant 0 : i32
    %c0_i32_1 = arith.constant 0 : i32
    return %c0_i32, %c0_i32_0 : i32, i32
  }
  func.func @transform_9(%arg0: i32) -> (i32, i32) {
    %c0_i32 = arith.constant 0 : i32
    %c0_i32_0 = arith.constant 0 : i32
    %c0_i32_1 = arith.constant 0 : i32
    return %c0_i32, %c0_i32_0 : i32, i32
  }
  func.func @transform_10(%arg0: i32) -> (i32, i32) {
    %c0_i32 = arith.constant 0 : i32
    %c0_i32_0 = arith.constant 0 : i32
    %c0_i32_1 = arith.constant 0 : i32
    return %c0_i32, %c0_i32_0 : i32, i32
  }
  func.func @transform_11(%arg0: i32) -> (i32, i32) {
    %c0_i32 = arith.constant 0 : i32
    %c0_i32_0 = arith.constant 0 : i32
    %c0_i32_1 = arith.constant 0 : i32
    return %c0_i32, %c0_i32_0 : i32, i32
  }
  func.func @transform_12(%arg0: i32) -> (i32, i32) {
    %c0_i32 = arith.constant 0 : i32
    %c0_i32_0 = arith.constant 0 : i32
    %c0_i32_1 = arith.constant 0 : i32
    return %c0_i32, %c0_i32_0 : i32, i32
  }
  func.func @transform_13(%arg0: i32) -> (i32, i32) {
    %c0_i32 = arith.constant 0 : i32
    %c0_i32_0 = arith.constant 0 : i32
    %c0_i32_1 = arith.constant 0 : i32
    return %c0_i32, %c0_i32_0 : i32, i32
  }
  func.func @transform_14(%arg0: i32) -> (i32, i32) {
    %c0_i32 = arith.constant 0 : i32
    %c0_i32_0 = arith.constant 0 : i32
    %c0_i32_1 = arith.constant 0 : i32
    return %c0_i32, %c0_i32_0 : i32, i32
  }
  func.func @transform_15(%arg0: i32) -> (i32, i32) {
    %c0_i32 = arith.constant 0 : i32
    %c0_i32_0 = arith.constant 0 : i32
    %c0_i32_1 = arith.constant 0 : i32
    return %c0_i32, %c0_i32_0 : i32, i32
  }
  func.func @transform_16(%arg0: i32) -> (i32, i32) {
    %c0_i32 = arith.constant 0 : i32
    %c0_i32_0 = arith.constant 0 : i32
    %c0_i32_1 = arith.constant 0 : i32
    return %c0_i32, %c0_i32_0 : i32, i32
  }
  func.func @transform_17(%arg0: i32) -> (i32, i32) {
    %c0_i32 = arith.constant 0 : i32
    %c0_i32_0 = arith.constant 0 : i32
    %c0_i32_1 = arith.constant 0 : i32
    return %c0_i32, %c0_i32_0 : i32, i32
  }
  func.func @transform_18(%arg0: i32) -> (i32, i32) {
    %c0_i32 = arith.constant 0 : i32
    %c0_i32_0 = arith.constant 0 : i32
    %c0_i32_1 = arith.constant 0 : i32
    return %c0_i32, %c0_i32_0 : i32, i32
  }
  func.func @transform_19(%arg0: i32) -> (i32, i32) {
    %c0_i32 = arith.constant 0 : i32
    %c0_i32_0 = arith.constant 0 : i32
    return %arg0, %c0_i32 : i32, i32
  }
}

</mosaic_0001>

<bundles_post_ra>
// kernel: forward.1
= control target key start
LH: loop header
LB: loop body
LE: loop exit
PB: predicated region body
PF: predicated region fallthrough
CT: control target
= control target key end

     0   :  { %s19928_s0 = inlined_call_operand.vmem [shape: bf16[5,32,768], index: 0, kind: input, shape index: {}]   ;;  %s19929_s1 = inlined_call_operand.vmem [shape: bf16[2,2048], index: 1, kind: input, shape index: {}]   ;;  %s19930_s2 = inlined_call_operand.hbm [shape: bf16[5,768,384], index: 2, kind: input, shape index: {}]   ;;  %s19931_s3 = inlined_call_operand.hbm [shape: f32[1,384], index: 3, kind: input, shape index: {}]   ;;  %s19932_s4 = inlined_call_operand.hbm [shape: bf16[2048,256], index: 4, kind: input, shape index: {}]   ;;  %s19933_s5 = inlined_call_operand.hbm [shape: f32[1,256], index: 5, kind: input, shape index: {}]   ;;  %s19934_s6 = inlined_call_operand.hbm [shape: f32[1,256], index: 6, kind: input, shape index: {}]   ;;  %s19935_s7 = inlined_call_operand.hbm [shape: f32[1,256], index: 7, kind: input, shape index: {}]   ;;  %s19936_s8 = inlined_call_operand.hbm [shape: bf16[384,512], index: 8, kind: input, shape index: {}]   ;;  %s19937_s9 = inlined_call_operand.hbm [shape: bf16[256,512], index: 9, kind: input, shape index: {}]   ;;  %s19938_s10 = inlined_call_operand.hbm [shape: f32[1,512], index: 10, kind: input, shape index: {}]   ;;  %s19939_s11 = inlined_call_operand.hbm [shape: f32[1,512], index: 11, kind: input, shape index: {}]   ;;  %s19940_s12 = inlined_call_operand.hbm [shape: f32[1,512], index: 12, kind: input, shape index: {}]   ;;  %s19941_s13 = inlined_call_operand.hbm [shape: bf16[512,256], index: 13, kind: input, shape index: {}]   ;;  %s19942_s14 = inlined_call_operand.hbm [shape: f32[1,256], index: 14, kind: input, shape index: {}]   ;;  %s19943_s15 = inlined_call_operand.hbm [shape: f32[1,256], index: 15, kind: input, shape index: {}]   ;;  %s19944_s16 = inlined_call_operand.hbm [shape: f32[1,256], index: 16, kind: input, shape index: {}]   ;;  %s19945_s17 = inlined_call_operand.hbm [shape: bf16[256,128], index: 17, kind: input, shape index: {}]   ;;  %s19946_s18 = inlined_call_operand.hbm [shape: f32[1,128], index: 18, kind: input, shape index: {}]   ;;  %s19947_s19 = inlined_call_operand.hbm [shape: f32[2,128], index: 19, kind: output, shape index: {}]  }
   0x1   :  { %19950 = sst [smem:[#allocation40_spill]] %s19928_s0 }
   0x2   :  { %19951 = sst [smem:[#allocation41_spill]] %s19929_s1 }
   0x3   :  { %19952 = sst [smem:[#allocation42_spill]] %s19930_s2 }
   0x4   :  { %19953 = sst [smem:[#allocation43_spill]] %s19931_s3 }
   0x5   :  { %24 = vsyncpa [#allocation3], 0 }
   0x6   :  { %25 = vsyncpa [#allocation6], 0 }
   0x7   :  { %26 = vsyncpa [#allocation9], 0 }
   0x8   :  { %27 = vsyncpa [#allocation12], 0 }
   0x9   :  { %28 = vsyncpa [#allocation15], 0 }
   0xa   :  { %29 = vsyncpa [#allocation18], 0 }
   0xb   :  { %30 = vsyncpa [#allocation21], 0 }
   0xc   :  { %31 = vsyncpa [#allocation24], 0 }
   0xd   :  { %32 = vsyncpa [#allocation27], 0  ;;  %s19954_s20 = sld [smem:[#allocation43_spill]] }
  0x13   :  { %s56_s21 = sshll.u32 %s19954_s20, 4  ;;  %s57_s21 = int_to_ptr.hbm [resolvable:$true] %s56_s21 }
  0x14   :  { %33 = vsyncpa [#allocation4], 0  ;;  %s18444_s1 = smov [#allocation5]   ;;  %s80_s24 = sshll.u32 %s19933_s5, 4  ;;  %s81_s24 = int_to_ptr.hbm [resolvable:$true] %s80_s24 }
  0x15   :  { %s58_s22 = sshll.u32 %s18444_s1, 4  ;;  %s18445_s25 = smov [#allocation8]   ;;  %s59_s22 = int_to_ptr.vmem [resolvable:$true] %s58_s22 }
  0x16   :  { %61 = dma.hbm_to_vmem [thread:$0]  %s57_s21, 48, %s59_s22, [#allocation6]  }
  0x17   :  { %s82_s3 = sshll.u32 %s18445_s25, 4  ;;  %s102_s28 = sshll.u32 %s19935_s7, 4  ;;  %s83_s3 = int_to_ptr.vmem [resolvable:$true] %s82_s3  ;;  %s103_s28 = int_to_ptr.hbm [resolvable:$true] %s102_s28 }
  0x18   :  { %85 = dma.hbm_to_vmem [thread:$0]  %s81_s24, 32, %s83_s3, [#allocation9]  }
  0x19   :  { %s18446_s29 = smov [#allocation11]   ;;  %s125_s1 = sshll.u32 %s19937_s9, 4  ;;  %s126_s1 = int_to_ptr.hbm [resolvable:$true] %s125_s1 }
  0x1a   :  { %s104_s0 = sshll.u32 %s18446_s29, 4  ;;  %s18447_s5 = smov [#allocation14]   ;;  %s105_s0 = int_to_ptr.vmem [resolvable:$true] %s104_s0 }
  0x1b   :  { %107 = dma.hbm_to_vmem [thread:$0]  %s103_s28, 32, %s105_s0, [#allocation12]  }
  0x1c   :  { %s127_s21 = sshll.u32 %s18447_s5, 4  ;;  %s150_s23 = sshll.u32 %s19939_s11, 4  ;;  %s128_s21 = int_to_ptr.vmem [resolvable:$true] %s127_s21  ;;  %s151_s23 = int_to_ptr.hbm [resolvable:$true] %s150_s23 }
  0x1d   :  { %s18448_s7 = smov 256   ;;  %s18449_s25 = smov 16  }
  0x1e   :  { %133 = dma.hbm_to_vmem [thread:$0]  %s126_s1, 8192, %s128_s21, [#allocation15], %s18448_s7, %s18448_s7, %s18449_s25  }
  0x1f   :  { %s18450_s24 = smov [#allocation17]   ;;  %s171_s27 = sshll.u32 %s19941_s13, 4  ;;  %s172_s27 = int_to_ptr.hbm [resolvable:$true] %s171_s27 }
  0x20   :  { %s152_s3 = sshll.u32 %s18450_s24, 4  ;;  %s18451_s28 = smov [#allocation20]   ;;  %s153_s3 = int_to_ptr.vmem [resolvable:$true] %s152_s3 }
  0x21   :  { %155 = dma.hbm_to_vmem [thread:$0]  %s151_s23, 64, %s153_s3, [#allocation18]  }
  0x22   :  { %s173_s29 = sshll.u32 %s18451_s28, 4  ;;  %s196_s30 = sshll.u32 %s19943_s15, 4  ;;  %s174_s29 = int_to_ptr.vmem [resolvable:$true] %s173_s29  ;;  %s197_s30 = int_to_ptr.hbm [resolvable:$true] %s196_s30 }
  0x23   :  { %s18452_s20 = smov 128   ;;  %s18453_s5 = smov 8  }
  0x24   :  { %179 = dma.hbm_to_vmem [thread:$0]  %s172_s27, 8192, %s174_s29, [#allocation21], %s18452_s20, %s18452_s20, %s18453_s5  }
  0x25   :  { %s217_s13 = sshll.u32 %s19945_s17, 4  ;;  %s18454_s22 = smov [#allocation23]   ;;  %s218_s13 = int_to_ptr.hbm [resolvable:$true] %s217_s13 }
  0x26   :  { %s198_s2 = sshll.u32 %s18454_s22, 4  ;;  %s18455_s23 = smov [#allocation26]   ;;  %s199_s2 = int_to_ptr.vmem [resolvable:$true] %s198_s2 }
  0x27   :  { %201 = dma.hbm_to_vmem [thread:$0]  %s197_s30, 32, %s199_s2, [#allocation24]  }
  0x28   :  { %s219_s24 = sshll.u32 %s18455_s23, 4  ;;  %s18456_s15 = smov 64   ;;  %s220_s24 = int_to_ptr.vmem [resolvable:$true] %s219_s24 }
  0x29   :  { %s18457_s3 = smov 4   ;;  %s19955_s28 = sld [smem:[#allocation42_spill]] }
  0x2a   :  { %225 = dma.hbm_to_vmem [thread:$0]  %s218_s13, 2048, %s220_s24, [#allocation27], %s18456_s15, %s18456_s15, %s18457_s3  }
  0x2b   :  { %s18458_s27 = smov [#allocation2]   ;;  %s66_s1 = sshll.u32 %s19932_s4, 4  ;;  %s67_s1 = int_to_ptr.hbm [resolvable:$true] %s66_s1 }
  0x2c   :  { %s44_s29 = sshll.u32 %s18458_s27, 4  ;;  %s18459_s21 = smov 192   ;;  %s45_s29 = int_to_ptr.vmem [resolvable:$true] %s44_s29 }
  0x2d   :  { %s18460_s30 = smov 12   ;;  %s18461_s22 = smov [#allocation7]  }
  0x2e   :  { %s68_s2 = sshll.u32 %s18461_s22, 4  ;;  %s91_s24 = sshll.u32 %s19934_s6, 4  ;;  %s69_s2 = int_to_ptr.vmem [resolvable:$true] %s68_s2  ;;  %s92_s24 = int_to_ptr.hbm [resolvable:$true] %s91_s24 }
  0x2f   :  { %s42_s11 = sshll.u32 %s19955_s28, 4  ;;  %s112_s4 = sshll.u32 %s19936_s8, 4  ;;  %s43_s11 = int_to_ptr.hbm [resolvable:$true] %s42_s11  ;;  %s113_s4 = int_to_ptr.hbm [resolvable:$true] %s112_s4 }
  0x30   :  { %50 = dma.hbm_to_vmem [thread:$0]  %s43_s11, 92160, %s45_s29, [#allocation3], %s18459_s21, %s18459_s21, %s18460_s30  }
  0x31   :  { %74 = dma.hbm_to_vmem [thread:$0]  %s67_s1, 32768, %s69_s2, [#allocation6], %s18452_s20, %s18452_s20, %s18453_s5  }
  0x32   :  { %s18462_s9 = smov [#allocation10]   ;;  %s18463_s28 = smov [#allocation13]  }
  0x33   :  { %s93_s26 = sshll.u32 %s18462_s9, 4  ;;  %s114_s11 = sshll.u32 %s18463_s28, 4  ;;  %s94_s26 = int_to_ptr.vmem [resolvable:$true] %s93_s26  ;;  %s115_s11 = int_to_ptr.vmem [resolvable:$true] %s114_s11 }
  0x34   :  { %96 = dma.hbm_to_vmem [thread:$0]  %s92_s24, 32, %s94_s26, [#allocation9]  }
  0x35   :  { %s139_s6 = sshll.u32 %s19938_s10, 4  ;;  %s161_s8 = sshll.u32 %s19940_s12, 4  ;;  %s140_s6 = int_to_ptr.hbm [resolvable:$true] %s139_s6  ;;  %s162_s8 = int_to_ptr.hbm [resolvable:$true] %s161_s8 }
  0x36   :  { %120 = dma.hbm_to_vmem [thread:$0]  %s113_s4, 12288, %s115_s11, [#allocation12], %s18448_s7, %s18448_s7, %s18449_s25  }
  0x37   :  { %s18464_s17 = smov [#allocation16]   ;;  %s18465_s1 = smov [#allocation19]  }
  0x38   :  { %s141_s0 = sshll.u32 %s18464_s17, 4  ;;  %s163_s21 = sshll.u32 %s18465_s1, 4  ;;  %s142_s0 = int_to_ptr.vmem [resolvable:$true] %s141_s0  ;;  %s164_s21 = int_to_ptr.vmem [resolvable:$true] %s163_s21 }
  0x39   :  { %144 = dma.hbm_to_vmem [thread:$0]  %s140_s6, 64, %s142_s0, [#allocation15]  }
  0x3a   :  { %s185_s10 = sshll.u32 %s19942_s14, 4  ;;  %s207_s25 = sshll.u32 %s19944_s16, 4  ;;  %s186_s10 = int_to_ptr.hbm [resolvable:$true] %s185_s10  ;;  %s208_s25 = int_to_ptr.hbm [resolvable:$true] %s207_s25 }
  0x3b   :  { %166 = dma.hbm_to_vmem [thread:$0]  %s162_s8, 64, %s164_s21, [#allocation18]  }
  0x3c   :  { %s18466_s23 = smov [#allocation22]   ;;  %s18467_s13 = smov [#allocation25]  }
  0x3d   :  { %s187_s12 = sshll.u32 %s18466_s23, 4  ;;  %s209_s24 = sshll.u32 %s18467_s13, 4  ;;  %s188_s12 = int_to_ptr.vmem [resolvable:$true] %s187_s12  ;;  %s210_s24 = int_to_ptr.vmem [resolvable:$true] %s209_s24 }
  0x3e   :  { %190 = dma.hbm_to_vmem [thread:$0]  %s186_s10, 32, %s188_s12, [#allocation21]  }
  0x3f   :  { %s231_s4 = sshll.u32 %s19946_s18, 4  ;;  %s18468_s14 = smov [#allocation28]   ;;  %s232_s4 = int_to_ptr.hbm [resolvable:$true] %s231_s4 }
  0x40   :  { %212 = dma.hbm_to_vmem [thread:$0]  %s208_s25, 32, %s210_s24, [#allocation24]  }
  0x41   :  { %s233_s9 = sshll.u32 %s18468_s14, 4  ;;  %s234_s9 = int_to_ptr.vmem [resolvable:$true] %s233_s9 }
  0x42   :  { %236 = dma.hbm_to_vmem [thread:$0]  %s232_s4, 16, %s234_s9, [#allocation27]  }
  0x43   :  { %18424 = dma.done.wait [#allocation3], 92160  }
  0x44   :  { %18425 = vsyncadd [#allocation3], 4294875136 }
  0x45   :  { %18426 = dma.done.wait [#allocation6], 32816  }
  0x46   :  { %18427 = vsyncadd [#allocation6], 4294934480 }
  0x47   :  { %18428 = dma.done.wait [#allocation9], 64  }
  0x48   :  { %18429 = vsyncadd [#allocation9], 4294967232 }
  0x49   :  { %18430 = dma.done.wait [#allocation12], 12320  }
  0x4a   :  { %18431 = vsyncadd [#allocation12], 4294954976 }
  0x4b   :  { %18432 = dma.done.wait [#allocation15], 8256  }
  0x4c   :  { %18433 = vsyncadd [#allocation15], 4294959040 }
  0x4d   :  { %18434 = dma.done.wait [#allocation18], 128  }
  0x4e   :  { %18435 = vsyncadd [#allocation18], 4294967168 }
  0x4f   :  { %18436 = dma.done.wait [#allocation21], 8224  }
  0x50   :  { %18437 = vsyncadd [#allocation21], 4294959072 }
  0x51   :  { %18438 = dma.done.wait [#allocation24], 64  }
  0x52   :  { %18439 = vsyncadd [#allocation24], 4294967232 }
  0x53   :  { %18440 = dma.done.wait [#allocation27], 2064  }
  0x54   :  { %18441 = vsyncadd [#allocation27], 4294965232  ;;  %v11658_v0 = vld [vmem:[#allocation2 + $0x528] sm:$0xf]  ;;  %v16857_v1 = vld [vmem:[#allocation2 + $0x530] sm:$0xf0] }
  0x55   :  { %v11754_v2 = vld [vmem:[#allocation2 + $0x5e8] sm:$0xf]  ;;  %v11659_v3 = vor.u32 %v16857_v1, %v11658_v0  ;;  %v16881_v4 = vld [vmem:[#allocation2 + $0x5f0] sm:$0xf0]  ;;  %v11646_v11 = vld [vmem:[#allocation2 + $0x510] sm:$0xf] }
  0x56   :  { %v11850_v5 = vld [vmem:[#allocation2 + $0x6a8] sm:$0xf]  ;;  %v16905_v6 = vld [vmem:[#allocation2 + $0x6b0] sm:$0xf0]  ;;  %v11755_v7 = vor.u32 %v16881_v4, %v11754_v2  ;;  %v16854_v13 = vld [vmem:[#allocation2 + $0x518] sm:$0xf0] }
  0x57   :  { %v11851_v8 = vor.u32 %v16905_v6, %v11850_v5  ;;  %v11946_v9 = vld [vmem:[#allocation2 + $0x768] sm:$0xf]  ;;  %v16929_v10 = vld [vmem:[#allocation2 + $0x770] sm:$0xf0]  ;;  %1543 = vmatpush.bf16.msra.mxu0 %v11659_v3  ;;  %v11742_v14 = vld [vmem:[#allocation2 + $0x5d0] sm:$0xf]  ;;  %v11647_v16 = vor.u32 %v16854_v13, %v11646_v11 }
  0x58   :  { %v11947_v12 = vor.u32 %v16929_v10, %v11946_v9  ;;  %v16878_v15 = vld [vmem:[#allocation2 + $0x5d8] sm:$0xf0]  ;;  %1562 = vmatpush.bf16.msra.mxu1 %v11755_v7  ;;  %v11838_v18 = vld [vmem:[#allocation2 + $0x690] sm:$0xf]  ;;  %v11634_v23 = vld [vmem:[#allocation2 + $0x4f8] sm:$0xf] }
  0x59   :  { %1581 = vmatpush.bf16.msra.mxu2 %v11851_v8  ;;  %v11743_v17 = vor.u32 %v16878_v15, %v11742_v14  ;;  %v16902_v19 = vld [vmem:[#allocation2 + $0x698] sm:$0xf0]  ;;  %v11934_v20 = vld [vmem:[#allocation2 + $0x750] sm:$0xf]  ;;  %v16851_v24 = vld [vmem:[#allocation2 + $0x500] sm:$0xf0] }
  0x5a   :  { %1600 = vmatpush.bf16.msra.mxu3 %v11947_v12  ;;  %v11839_v21 = vor.u32 %v16902_v19, %v11838_v18  ;;  %v16926_v22 = vld [vmem:[#allocation2 + $0x758] sm:$0xf0]  ;;  %v11730_v26 = vld [vmem:[#allocation2 + $0x5b8] sm:$0xf]  ;;  %v16875_v27 = vld [vmem:[#allocation2 + $0x5c0] sm:$0xf0]  ;;  %v11635_v29 = vor.u32 %v16851_v24, %v11634_v23 }
  0x5b   :  { %v11935_v25 = vor.u32 %v16926_v22, %v11934_v20  ;;  %v11826_v28 = vld [vmem:[#allocation2 + $0x678] sm:$0xf]  ;;  %1544 = vmatpush.bf16.msra.mxu0 %v11647_v16  ;;  %v16899_v30 = vld [vmem:[#allocation2 + $0x680] sm:$0xf0]  ;;  %v11731_v33 = vor.u32 %v16875_v27, %v11730_v26  ;;  %v11622_v35 = vld [vmem:[#allocation2 + $0x4e0] sm:$0xf] }
  0x5c   :  { %v11922_v31 = vld [vmem:[#allocation2 + $0x738] sm:$0xf]  ;;  %v16923_v32 = vld [vmem:[#allocation2 + $0x740] sm:$0xf0]  ;;  %1563 = vmatpush.bf16.msra.mxu1 %v11743_v17  ;;  %v11827_v34 = vor.u32 %v16899_v30, %v11826_v28  ;;  %v16848_v36 = vld [vmem:[#allocation2 + $0x4e8] sm:$0xf0] }
  0x5d   :  { %1582 = vmatpush.bf16.msra.mxu2 %v11839_v21  ;;  %v11718_v37 = vld [vmem:[#allocation2 + $0x5a0] sm:$0xf]  ;;  %v11923_v38 = vor.u32 %v16923_v32, %v11922_v31  ;;  %v16872_v39 = vld [vmem:[#allocation2 + $0x5a8] sm:$0xf0]  ;;  %v11623_v44 = vor.u32 %v16848_v36, %v11622_v35  ;;  %v11610_v47 = vld [vmem:[#allocation2 + $0x4c8] sm:$0xf] }
  0x5e   :  { %1601 = vmatpush.bf16.msra.mxu3 %v11935_v25  ;;  %v11814_v40 = vld [vmem:[#allocation2 + $0x660] sm:$0xf]  ;;  %v16896_v41 = vld [vmem:[#allocation2 + $0x668] sm:$0xf0]  ;;  %v11719_v45 = vor.u32 %v16872_v39, %v11718_v37  ;;  %v16845_v48 = vld [vmem:[#allocation2 + $0x4d0] sm:$0xf0] }
  0x5f   :  { %v11910_v42 = vld [vmem:[#allocation2 + $0x720] sm:$0xf]  ;;  %v16920_v43 = vld [vmem:[#allocation2 + $0x728] sm:$0xf0]  ;;  %1545 = vmatpush.bf16.msra.mxu0 %v11635_v29  ;;  %v11815_v46 = vor.u32 %v16896_v41, %v11814_v40  ;;  %v11706_v49 = vld [vmem:[#allocation2 + $0x588] sm:$0xf]  ;;  %v11611_v56 = vor.u32 %v16845_v48, %v11610_v47 }
  0x60   :  { %1564 = vmatpush.bf16.msra.mxu1 %v11731_v33  ;;  %v11911_v50 = vor.u32 %v16920_v43, %v11910_v42  ;;  %v16869_v51 = vld [vmem:[#allocation2 + $0x590] sm:$0xf0]  ;;  %v11802_v52 = vld [vmem:[#allocation2 + $0x648] sm:$0xf]  ;;  %v11598_v59 = vld [vmem:[#allocation2 + $0x4b0] sm:$0xf] }
  0x61   :  { %1583 = vmatpush.bf16.msra.mxu2 %v11827_v34  ;;  %v16893_v53 = vld [vmem:[#allocation2 + $0x650] sm:$0xf0]  ;;  %v11898_v54 = vld [vmem:[#allocation2 + $0x708] sm:$0xf]  ;;  %v11707_v57 = vor.u32 %v16869_v51, %v11706_v49  ;;  %v16842_v60 = vld [vmem:[#allocation2 + $0x4b8] sm:$0xf0] }
  0x62   :  { %1602 = vmatpush.bf16.msra.mxu3 %v11923_v38  ;;  %v16917_v55 = vld [vmem:[#allocation2 + $0x710] sm:$0xf0]  ;;  %v11803_v58 = vor.u32 %v16893_v53, %v11802_v52  ;;  %v11694_v61 = vld [vmem:[#allocation2 + $0x570] sm:$0xf]  ;;  %v16866_v63 = vld [vmem:[#allocation2 + $0x578] sm:$0xf0]  ;;  %v11599_v4 = vor.u32 %v16842_v60, %v11598_v59 }
  0x63   :  { %1546 = vmatpush.bf16.msra.mxu0 %v11623_v44  ;;  %v11899_v62 = vor.u32 %v16917_v55, %v11898_v54  ;;  %v11790_v0 = vld [vmem:[#allocation2 + $0x630] sm:$0xf]  ;;  %v16890_v1 = vld [vmem:[#allocation2 + $0x638] sm:$0xf0]  ;;  %v11695_v5 = vor.u32 %v16866_v63, %v11694_v61  ;;  %v11586_v7 = vld [vmem:[#allocation2 + $0x498] sm:$0xf] }
  0x64   :  { %1565 = vmatpush.bf16.msra.mxu1 %v11719_v45  ;;  %v11886_v2 = vld [vmem:[#allocation2 + $0x6f0] sm:$0xf]  ;;  %v16914_v3 = vld [vmem:[#allocation2 + $0x6f8] sm:$0xf0]  ;;  %v11791_v6 = vor.u32 %v16890_v1, %v11790_v0  ;;  %v16839_v8 = vld [vmem:[#allocation2 + $0x4a0] sm:$0xf0] }
  0x65   :  { %1584 = vmatpush.bf16.msra.mxu2 %v11815_v46  ;;  %v11682_v9 = vld [vmem:[#allocation2 + $0x558] sm:$0xf]  ;;  %v11887_v10 = vor.u32 %v16914_v3, %v11886_v2  ;;  %v16863_v11 = vld [vmem:[#allocation2 + $0x560] sm:$0xf0]  ;;  %v11574_v16 = vld [vmem:[#allocation2 + $0x480] sm:$0xf]  ;;  %v11587_v17 = vor.u32 %v16839_v8, %v11586_v7 }
  0x66   :  { %1603 = vmatpush.bf16.msra.mxu3 %v11911_v50  ;;  %v11778_v12 = vld [vmem:[#allocation2 + $0x618] sm:$0xf]  ;;  %v16887_v13 = vld [vmem:[#allocation2 + $0x620] sm:$0xf0]  ;;  %v16836_v18 = vld [vmem:[#allocation2 + $0x488] sm:$0xf0]  ;;  %v11683_v21 = vor.u32 %v16863_v11, %v11682_v9 }
  0x67   :  { %1547 = vmatpush.bf16.msra.mxu0 %v11611_v56  ;;  %v11874_v14 = vld [vmem:[#allocation2 + $0x6d8] sm:$0xf]  ;;  %v16911_v15 = vld [vmem:[#allocation2 + $0x6e0] sm:$0xf0]  ;;  %v11670_v19 = vld [vmem:[#allocation2 + $0x540] sm:$0xf]  ;;  %v11779_v22 = vor.u32 %v16887_v13, %v11778_v12  ;;  %v11575_v34 = vor.u32 %v16836_v18, %v11574_v16 }
  0x68   :  { %1566 = vmatpush.bf16.msra.mxu1 %v11707_v57  ;;  %v16860_v20 = vld [vmem:[#allocation2 + $0x548] sm:$0xf0]  ;;  %v11766_v23 = vld [vmem:[#allocation2 + $0x600] sm:$0xf]  ;;  %v11875_v26 = vor.u32 %v16911_v15, %v11874_v14  ;;  %s19956_s26 = sld [smem:[#allocation40_spill]]  ;;  %vm7389_vm2 = vcmask 1040384  }
  0x69   :  { %1585 = vmatpush.bf16.msra.mxu2 %v11803_v58  ;;  %v16884_v24 = vld [vmem:[#allocation2 + $0x608] sm:$0xf0]  ;;  %v11862_v25 = vld [vmem:[#allocation2 + $0x6c0] sm:$0xf]  ;;  %v12042_v32 = vld [vmem:[#allocation2 + $0x828] sm:$0xf]  ;;  %v11671_v38 = vor.u32 %v16860_v20, %v11670_v19 }
  0x6a   :  { %1604 = vmatpush.bf16.msra.mxu3 %v11899_v62  ;;  %v16908_v27 = vld [vmem:[#allocation2 + $0x6c8] sm:$0xf0]  ;;  %v16953_v33 = vld [vmem:[#allocation2 + $0x830] sm:$0xf0]  ;;  %v12138_v36 = vld [vmem:[#allocation2 + $0x8e8] sm:$0xf]  ;;  %v11767_v39 = vor.u32 %v16884_v24, %v11766_v23 }
  0x6b   :  { %1548 = vmatpush.bf16.msra.mxu0 %v11599_v4  ;;  %v16977_v37 = vld [vmem:[#allocation2 + $0x8f0] sm:$0xf0]  ;;  %v16856_v41 = vld [vmem:[#allocation2 + $0x52c] sm:$0xf]  ;;  %v11660_v42 = vld [vmem:[#allocation2 + $0x534] sm:$0xf0]  ;;  %v11863_v43 = vor.u32 %v16908_v27, %v11862_v25  ;;  %v12043_v44 = vor.u32 %v16953_v33, %v12042_v32 }
  0x6c   :  { %1567 = vmatpush.bf16.msra.mxu1 %v11695_v5  ;;  %v16880_v47 = vld [vmem:[#allocation2 + $0x5ec] sm:$0xf]  ;;  %v12139_v49 = vor.u32 %v16977_v37, %v12138_v36  ;;  %v11756_v50 = vld [vmem:[#allocation2 + $0x5f4] sm:$0xf0]  ;;  %v12030_v51 = vld [vmem:[#allocation2 + $0x810] sm:$0xf]  ;;  %v11663_v57 = vor.u32 %v16856_v41, %v11660_v42 }
  0x6d   :  { %1586 = vmatpush.bf16.msra.mxu2 %v11791_v6  ;;  %v16950_v52 = vld [vmem:[#allocation2 + $0x818] sm:$0xf0]  ;;  %v12126_v55 = vld [vmem:[#allocation2 + $0x8d0] sm:$0xf]  ;;  %v11759_v59 = vor.u32 %v16880_v47, %v11756_v50  ;;  %v16853_v61 = vld [vmem:[#allocation2 + $0x514] sm:$0xf] }
  0x6e   :  { %1605 = vmatpush.bf16.msra.mxu3 %v11887_v10  ;;  %v11526_v28 = vld [vmem:[%s19956_s26 + $0x60] sm:$0xf]  ;;  %v16826_v29 = vld [vmem:[%s19956_s26 + $0x74] sm:$0xf0]  ;;  %v16823_v30 = vld [vmem:[%s19956_s26 + $0x64] sm:$0xf]  ;;  %v12031_v60 = vor.u32 %v16950_v52, %v12030_v51 }
  0x6f   :  { %v11528_v31 = vld [vmem:[%s19956_s26 + $0x78] sm:$0xf0]  ;;  %1549 = vmatpush.bf16.msra.mxu0 %v11587_v17  ;;  %v11534_v35 = vld [vmem:[%s19956_s26 + $0x68] sm:$0xf]  ;;  %v16827_v40 = vld [vmem:[%s19956_s26 + $0x7c] sm:$0xf0]  ;;  %v18660_v48 = vor.u32 %v16826_v29, %v11526_v28 }
  0x70   :  { %1568 = vmatpush.bf16.msra.mxu1 %v11683_v21  ;;  %v16824_v45 = vld [vmem:[%s19956_s26 + $0x6c] sm:$0xf]  ;;  %v11536_v46 = vld [vmem:[%s19956_s26 + $0x80] sm:$0xf0]  ;;  %v18662_v53 = vor.u32 %v16823_v30, %v11528_v31  ;;  %v18664_v54 = vor.u32 %v16827_v40, %v11534_v35  ;;  %v11648_v62 = vld [vmem:[#allocation2 + $0x51c] sm:$0xf0] }
  0x71   :  { %1587 = vmatpush.bf16.msra.mxu2 %v11779_v22  ;;  %v16974_v56 = vld [vmem:[#allocation2 + $0x8d8] sm:$0xf0]  ;;  %v18666_v58 = vor.u32 %v16824_v45, %v11536_v46  ;;  %v16877_v63 = vld [vmem:[#allocation2 + $0x5d4] sm:$0xf]  ;;  %v11744_v1 = vld [vmem:[#allocation2 + $0x5dc] sm:$0xf0]  ;;  %v11651_v6 = vor.u32 %v16853_v61, %v11648_v62 }
  0x72   :  { %1606 = vmatpush.bf16.msra.mxu3 %v11875_v26  ;;  %v12127_v0 = vor.u32 %v16974_v56, %v12126_v55  ;;  %v12018_v2 = vld [vmem:[#allocation2 + $0x7f8] sm:$0xf]  ;;  %v16947_v3 = vld [vmem:[#allocation2 + $0x800] sm:$0xf0]  ;;  %v11747_v7 = vor.u32 %v16877_v63, %v11744_v1  ;;  %v16850_v9 = vld [vmem:[#allocation2 + $0x4fc] sm:$0xf] }
  0x73   :  { %1550 = vmatpush.bf16.msra.mxu0 %v11575_v34  ;;  %v12114_v4 = vld [vmem:[#allocation2 + $0x8b8] sm:$0xf]  ;;  %v16971_v5 = vld [vmem:[#allocation2 + $0x8c0] sm:$0xf0]  ;;  %v12019_v8 = vor.u32 %v16947_v3, %v12018_v2  ;;  %v11636_v10 = vld [vmem:[#allocation2 + $0x504] sm:$0xf0] }
  0x74   :  { %1569 = vmatpush.bf16.msra.mxu1 %v11671_v38  ;;  %v16874_v11 = vld [vmem:[#allocation2 + $0x5bc] sm:$0xf]  ;;  %v12115_v12 = vor.u32 %v16971_v5, %v12114_v4  ;;  %v11732_v13 = vld [vmem:[#allocation2 + $0x5c4] sm:$0xf0]  ;;  %v12006_v14 = vld [vmem:[#allocation2 + $0x7e0] sm:$0xf]  ;;  %v11639_v18 = vor.u32 %v16850_v9, %v11636_v10 }
  0x75   :  { %1588 = vmatpush.bf16.msra.mxu2 %v11767_v39  ;;  %v16944_v15 = vld [vmem:[#allocation2 + $0x7e8] sm:$0xf0]  ;;  %v12102_v16 = vld [vmem:[#allocation2 + $0x8a0] sm:$0xf]  ;;  %v16847_v19 = vld [vmem:[#allocation2 + $0x4e4] sm:$0xf]  ;;  %v11735_v22 = vor.u32 %v16874_v11, %v11732_v13 }
  0x76   :  { %1607 = vmatpush.bf16.msra.mxu3 %v11863_v43  ;;  %1551 = vmatmul.bf16.vlgmr.msra.gmra.mxu0 %v18660_v48  ;;  %v16968_v17 = vld [vmem:[#allocation2 + $0x8a8] sm:$0xf0]  ;;  %v11624_v20 = vld [vmem:[#allocation2 + $0x4ec] sm:$0xf0]  ;;  %v16871_v21 = vld [vmem:[#allocation2 + $0x5a4] sm:$0xf]  ;;  %v12007_v23 = vor.u32 %v16944_v15, %v12006_v14 }
  0x77   :  { %1619 = vmatpush.bf16.msrb.mxu0 %v12043_v44  ;;  %1570 = vmatmul.bf16.vlgmr.msra.gmra.mxu1 %v18662_v53  ;;  %v11720_v24 = vld [vmem:[#allocation2 + $0x5ac] sm:$0xf0]  ;;  %v11550_v25 = vld [vmem:[%s19956_s26 + $0x90] sm:$0xf]  ;;  %v16832_v26 = vld [vmem:[%s19956_s26 + $0xa4] sm:$0xf0]  ;;  %v12103_v27 = vor.u32 %v16968_v17, %v12102_v16  ;;  %v11627_v35 = vor.u32 %v16847_v19, %v11624_v20 }
  0x78   :  { %1638 = vmatpush.bf16.msrb.mxu1 %v12139_v49  ;;  %1589 = vmatmul.bf16.vlgmr.msra.gmra.mxu2 %v18664_v54  ;;  %v16829_v28 = vld [vmem:[%s19956_s26 + $0x94] sm:$0xf]  ;;  %v11552_v29 = vld [vmem:[%s19956_s26 + $0xa8] sm:$0xf0]  ;;  %v11994_v30 = vld [vmem:[#allocation2 + $0x7c8] sm:$0xf]  ;;  %v11723_v39 = vor.u32 %v16871_v21, %v11720_v24  ;;  %v18696_v44 = vor.u32 %v16832_v26, %v11550_v25 }
  0x79   :  { %1657 = vmatpush.bf16.msrb.mxu2 %v11663_v57  ;;  %1608 = vmatmul.bf16.vlgmr.msra.gmra.mxu3 %v18666_v58  ;;  %v16941_v31 = vld [vmem:[#allocation2 + $0x7d0] sm:$0xf0]  ;;  %v11558_v32 = vld [vmem:[%s19956_s26 + $0x98] sm:$0xf]  ;;  %v12090_v33 = vld [vmem:[#allocation2 + $0x888] sm:$0xf]  ;;  %v18698_v50 = vor.u32 %v16829_v28, %v11552_v29 }
  0x7a   :  { %1676 = vmatpush.bf16.msrb.mxu3 %v11759_v59  ;;  %v16965_v34 = vld [vmem:[#allocation2 + $0x890] sm:$0xf0]  ;;  %v16833_v36 = vld [vmem:[%s19956_s26 + $0xac] sm:$0xf0]  ;;  %v16844_v37 = vld [vmem:[#allocation2 + $0x4cc] sm:$0xf]  ;;  %v11995_v40 = vor.u32 %v16941_v31, %v11994_v30 }
  0x7b   :  { %1620 = vmatpush.bf16.msrb.mxu0 %v12031_v60  ;;  %v11612_v38 = vld [vmem:[#allocation2 + $0x4d4] sm:$0xf0]  ;;  %v16830_v41 = vld [vmem:[%s19956_s26 + $0x9c] sm:$0xf]  ;;  %v11560_v42 = vld [vmem:[%s19956_s26 + $0xb0] sm:$0xf0]  ;;  %v12091_v45 = vor.u32 %v16965_v34, %v12090_v33  ;;  %v18700_v51 = vor.u32 %v16833_v36, %v11558_v32 }
  0x7c   :  { %1639 = vmatpush.bf16.msrb.mxu1 %v12127_v0  ;;  %v16868_v43 = vld [vmem:[#allocation2 + $0x58c] sm:$0xf]  ;;  %v11708_v46 = vld [vmem:[#allocation2 + $0x594] sm:$0xf0]  ;;  %v11982_v47 = vld [vmem:[#allocation2 + $0x7b0] sm:$0xf]  ;;  %v11615_v56 = vor.u32 %v16844_v37, %v11612_v38  ;;  %v18702_v57 = vor.u32 %v16830_v41, %v11560_v42 }
  0x7d   :  { %1658 = vmatpush.bf16.msrb.mxu2 %v11651_v6  ;;  %v16938_v49 = vld [vmem:[#allocation2 + $0x7b8] sm:$0xf0]  ;;  %v12078_v52 = vld [vmem:[#allocation2 + $0x870] sm:$0xf]  ;;  %v11711_v59 = vor.u32 %v16868_v43, %v11708_v46  ;;  %v16841_v61 = vld [vmem:[#allocation2 + $0x4b4] sm:$0xf] }
  0x7e   :  { %1677 = vmatpush.bf16.msrb.mxu3 %v11747_v7  ;;  %v16962_v55 = vld [vmem:[#allocation2 + $0x878] sm:$0xf0]  ;;  %v11983_v60 = vor.u32 %v16938_v49, %v11982_v47  ;;  %v11600_v62 = vld [vmem:[#allocation2 + $0x4bc] sm:$0xf0]  ;;  %v16865_v63 = vld [vmem:[#allocation2 + $0x574] sm:$0xf] }
  0x7f   :  { %1621 = vmatpush.bf16.msrb.mxu0 %v12019_v8  ;;  %v12079_v0 = vor.u32 %v16962_v55, %v12078_v52  ;;  %v11696_v1 = vld [vmem:[#allocation2 + $0x57c] sm:$0xf0]  ;;  %v11970_v2 = vld [vmem:[#allocation2 + $0x798] sm:$0xf]  ;;  %v16935_v3 = vld [vmem:[#allocation2 + $0x7a0] sm:$0xf0]  ;;  %v11603_v6 = vor.u32 %v16841_v61, %v11600_v62 }
  0x80   :  { %1640 = vmatpush.bf16.msrb.mxu1 %v12115_v12  ;;  %v12066_v4 = vld [vmem:[#allocation2 + $0x858] sm:$0xf]  ;;  %v16959_v5 = vld [vmem:[#allocation2 + $0x860] sm:$0xf0]  ;;  %v16838_v7 = vld [vmem:[#allocation2 + $0x49c] sm:$0xf]  ;;  %v11699_v8 = vor.u32 %v16865_v63, %v11696_v1  ;;  %v11971_v9 = vor.u32 %v16935_v3, %v11970_v2 }
  0x81   :  { %1659 = vmatpush.bf16.msrb.mxu2 %v11639_v18  ;;  %v11588_v10 = vld [vmem:[#allocation2 + $0x4a4] sm:$0xf0]  ;;  %v16862_v11 = vld [vmem:[#allocation2 + $0x55c] sm:$0xf]  ;;  %v12067_v13 = vor.u32 %v16959_v5, %v12066_v4  ;;  %v11958_v14 = vld [vmem:[#allocation2 + $0x780] sm:$0xf] }
  0x82   :  { %1678 = vmatpush.bf16.msrb.mxu3 %v11735_v22  ;;  %v11684_v12 = vld [vmem:[#allocation2 + $0x564] sm:$0xf0]  ;;  %v16932_v15 = vld [vmem:[#allocation2 + $0x788] sm:$0xf0]  ;;  %v12054_v16 = vld [vmem:[#allocation2 + $0x840] sm:$0xf]  ;;  %v11591_v20 = vor.u32 %v16838_v7, %v11588_v10 }
  0x83   :  { %1622 = vmatpush.bf16.msrb.mxu0 %v12007_v23  ;;  %v16956_v17 = vld [vmem:[#allocation2 + $0x848] sm:$0xf0]  ;;  %v11852_v19 = vld [vmem:[#allocation2 + $0x6b4] sm:$0xf0]  ;;  %v16835_v21 = vld [vmem:[#allocation2 + $0x484] sm:$0xf]  ;;  %v11687_v24 = vor.u32 %v16862_v11, %v11684_v12  ;;  %v11959_v25 = vor.u32 %v16932_v15, %v11958_v14 }
  0x84   :  { %1641 = vmatpush.bf16.msrb.mxu1 %v12103_v27  ;;  %v16904_v18 = vld [vmem:[#allocation2 + $0x6ac] sm:$0xf]  ;;  %v11948_v23 = vld [vmem:[#allocation2 + $0x774] sm:$0xf0]  ;;  %v11576_v26 = vld [vmem:[#allocation2 + $0x48c] sm:$0xf0]  ;;  %v12055_v29 = vor.u32 %v16956_v17, %v12054_v16 }
  0x85   :  { %1660 = vmatpush.bf16.msrb.mxu2 %v11627_v35  ;;  %v16928_v22 = vld [vmem:[#allocation2 + $0x76c] sm:$0xf]  ;;  %v16859_v27 = vld [vmem:[#allocation2 + $0x544] sm:$0xf]  ;;  %v11672_v28 = vld [vmem:[#allocation2 + $0x54c] sm:$0xf0]  ;;  %v11855_v31 = vor.u32 %v16904_v18, %v11852_v19  ;;  %v11579_v38 = vor.u32 %v16835_v21, %v11576_v26 }
  0x86   :  { %1679 = vmatpush.bf16.msrb.mxu3 %v11723_v39  ;;  %1556 = vmatmul.bf16.gmra.mxu0 %v18696_v44  ;;  %v11542_v30 = vld [vmem:[%s19956_s26 + $0x70] sm:$0xf]  ;;  %v16952_v32 = vld [vmem:[#allocation2 + $0x82c] sm:$0xf]  ;;  %v12044_v33 = vld [vmem:[#allocation2 + $0x834] sm:$0xf0]  ;;  %v11951_v35 = vor.u32 %v16928_v22, %v11948_v23  ;;  %v11675_v41 = vor.u32 %v16859_v27, %v11672_v28 }
  0x87   :  { %1623 = vmatpush.bf16.msrb.mxu0 %v11995_v40  ;;  %1575 = vmatmul.bf16.gmra.mxu1 %v18698_v50  ;;  %v16828_v34 = vld [vmem:[%s19956_s26 + $0x84] sm:$0xf0]  ;;  %v16976_v36 = vld [vmem:[#allocation2 + $0x8ec] sm:$0xf]  ;;  %v12140_v37 = vld [vmem:[#allocation2 + $0x8f4] sm:$0xf0]  ;;  %v12047_v42 = vor.u32 %v16952_v32, %v12044_v33 }
  0x88   :  { %1642 = vmatpush.bf16.msrb.mxu1 %v12091_v45  ;;  %1594 = vmatmul.bf16.gmra.mxu2 %v18700_v51  ;;  %v16825_v39 = vld [vmem:[%s19956_s26 + $0x74] sm:$0xf]  ;;  %v11544_v40 = vld [vmem:[%s19956_s26 + $0x88] sm:$0xf0]  ;;  %v16901_v43 = vld [vmem:[#allocation2 + $0x694] sm:$0xf]  ;;  %v18720_v47 = vor.u32 %v16828_v34, %v11542_v30  ;;  %v12143_v49 = vor.u32 %v16976_v36, %v12140_v37 }
  0x89   :  { %1661 = vmatpush.bf16.msrb.mxu2 %v11615_v56  ;;  %1613 = vmatmul.bf16.gmra.mxu3 %v18702_v57  ;;  %v11840_v45 = vld [vmem:[#allocation2 + $0x69c] sm:$0xf0]  ;;  %v16925_v46 = vld [vmem:[#allocation2 + $0x754] sm:$0xf]  ;;  %v16898_v1 = vld [vmem:[#allocation2 + $0x67c] sm:$0xf] }
  0x8a   :  { %1680 = vmatpush.bf16.msrb.mxu3 %v11711_v59  ;;  %v11936_v52 = vld [vmem:[#allocation2 + $0x75c] sm:$0xf0]  ;;  %v16949_v55 = vld [vmem:[#allocation2 + $0x814] sm:$0xf]  ;;  %v18722_v59 = vor.u32 %v16825_v39, %v11544_v40  ;;  %v11843_v62 = vor.u32 %v16901_v43, %v11840_v45  ;;  %v11828_v2 = vld [vmem:[#allocation2 + $0x684] sm:$0xf0] }
  0x8b   :  { %1624 = vmatpush.bf16.msrb.mxu0 %v11983_v60  ;;  %v12032_v56 = vld [vmem:[#allocation2 + $0x81c] sm:$0xf0]  ;;  %v16973_v60 = vld [vmem:[#allocation2 + $0x8d4] sm:$0xf]  ;;  %v11939_v63 = vor.u32 %v16925_v46, %v11936_v52  ;;  %v16922_v3 = vld [vmem:[#allocation2 + $0x73c] sm:$0xf]  ;;  %v11831_v10 = vor.u32 %v16898_v1, %v11828_v2 }
  0x8c   :  { %1643 = vmatpush.bf16.msrb.mxu1 %v12079_v0  ;;  %v12128_v61 = vld [vmem:[#allocation2 + $0x8dc] sm:$0xf0]  ;;  %v12035_v0 = vor.u32 %v16949_v55, %v12032_v56  ;;  %v11924_v5 = vld [vmem:[#allocation2 + $0x744] sm:$0xf0]  ;;  %v11816_v14 = vld [vmem:[#allocation2 + $0x66c] sm:$0xf0] }
  0x8d   :  { %1662 = vmatpush.bf16.msrb.mxu2 %v11603_v6  ;;  %v12131_v4 = vor.u32 %v16973_v60, %v12128_v61  ;;  %v16946_v6 = vld [vmem:[#allocation2 + $0x7fc] sm:$0xf]  ;;  %v12020_v7 = vld [vmem:[#allocation2 + $0x804] sm:$0xf0]  ;;  %v11927_v11 = vor.u32 %v16922_v3, %v11924_v5  ;;  %v16919_v15 = vld [vmem:[#allocation2 + $0x724] sm:$0xf] }
  0x8e   :  { %1681 = vmatpush.bf16.msrb.mxu3 %v11699_v8  ;;  %v16970_v8 = vld [vmem:[#allocation2 + $0x8bc] sm:$0xf]  ;;  %v12023_v12 = vor.u32 %v16946_v6, %v12020_v7  ;;  %v11912_v17 = vld [vmem:[#allocation2 + $0x72c] sm:$0xf0]  ;;  %v16943_v18 = vld [vmem:[#allocation2 + $0x7e4] sm:$0xf] }
  0x8f   :  { %1625 = vmatpush.bf16.msrb.mxu0 %v11971_v9  ;;  %v12116_v9 = vld [vmem:[#allocation2 + $0x8c4] sm:$0xf0]  ;;  %v12008_v19 = vld [vmem:[#allocation2 + $0x7ec] sm:$0xf0]  ;;  %v11915_v23 = vor.u32 %v16919_v15, %v11912_v17  ;;  %v16892_v26 = vld [vmem:[#allocation2 + $0x64c] sm:$0xf] }
  0x90   :  { %1644 = vmatpush.bf16.msrb.mxu1 %v12067_v13  ;;  %v16895_v13 = vld [vmem:[#allocation2 + $0x664] sm:$0xf]  ;;  %v12119_v16 = vor.u32 %v16970_v8, %v12116_v9  ;;  %v12104_v21 = vld [vmem:[#allocation2 + $0x8ac] sm:$0xf0]  ;;  %v11804_v27 = vld [vmem:[#allocation2 + $0x654] sm:$0xf0] }
  0x91   :  { %1663 = vmatpush.bf16.msrb.mxu2 %v11591_v20  ;;  %v16967_v20 = vld [vmem:[#allocation2 + $0x8a4] sm:$0xf]  ;;  %v11819_v22 = vor.u32 %v16895_v13, %v11816_v14  ;;  %v16916_v28 = vld [vmem:[#allocation2 + $0x70c] sm:$0xf]  ;;  %v11900_v30 = vld [vmem:[#allocation2 + $0x714] sm:$0xf0] }
  0x92   :  { %1682 = vmatpush.bf16.msrb.mxu3 %v11687_v24  ;;  %v12011_v24 = vor.u32 %v16943_v18, %v12008_v19  ;;  %v11996_v32 = vld [vmem:[#allocation2 + $0x7d4] sm:$0xf0]  ;;  %v16834_v33 = vld [vmem:[%s19956_s26 + $0xb4] sm:$0xf0]  ;;  %v16964_v34 = vld [vmem:[#allocation2 + $0x88c] sm:$0xf]  ;;  %v11903_v39 = vor.u32 %v16916_v28, %v11900_v30 }
  0x93   :  { %1626 = vmatpush.bf16.msrb.mxu0 %v11959_v25  ;;  %v11566_v25 = vld [vmem:[%s19956_s26 + $0xa0] sm:$0xf]  ;;  %v16831_v36 = vld [vmem:[%s19956_s26 + $0xa4] sm:$0xf]  ;;  %v11568_v37 = vld [vmem:[%s19956_s26 + $0xb8] sm:$0xf0] }
  0x94   :  { %1645 = vmatpush.bf16.msrb.mxu1 %v12055_v29  ;;  %v12107_v29 = vor.u32 %v16967_v20, %v12104_v21  ;;  %v16913_v43 = vld [vmem:[#allocation2 + $0x6f4] sm:$0xf]  ;;  %v18740_v45 = vor.u32 %v16834_v33, %v11566_v25  ;;  %v11984_v55 = vld [vmem:[#allocation2 + $0x7bc] sm:$0xf0]  ;;  %v18742_v56 = vor.u32 %v16831_v36, %v11568_v37  ;;  %v16886_v1 = vld [vmem:[#allocation2 + $0x61c] sm:$0xf] }
  0x95   :  { %1664 = vmatpush.bf16.msrb.mxu2 %v11579_v38  ;;  %v11807_v38 = vor.u32 %v16892_v26, %v11804_v27  ;;  %v16937_v52 = vld [vmem:[#allocation2 + $0x7b4] sm:$0xf]  ;;  %v12080_v61 = vld [vmem:[#allocation2 + $0x87c] sm:$0xf0]  ;;  %v11780_v2 = vld [vmem:[#allocation2 + $0x624] sm:$0xf0] }
  0x96   :  { %1683 = vmatpush.bf16.msrb.mxu3 %v11675_v41  ;;  %1627 = vmatmul.bf16.vlgmr.msrb.gmra.mxu0 %v18720_v47  ;;  %v16889_v41 = vld [vmem:[#allocation2 + $0x634] sm:$0xf]  ;;  %v16910_v3 = vld [vmem:[#allocation2 + $0x6dc] sm:$0xf]  ;;  %v11876_v5 = vld [vmem:[#allocation2 + $0x6e4] sm:$0xf0] }
  0x97   :  { %1695 = vmatpush.bf16.msra.mxu0 %v11855_v31  ;;  %1646 = vmatmul.bf16.vlgmr.msrb.gmra.mxu1 %v18722_v59  ;;  %v16940_v31 = vld [vmem:[#allocation2 + $0x7cc] sm:$0xf]  ;;  %v16961_v60 = vld [vmem:[#allocation2 + $0x874] sm:$0xf]  ;;  %v16934_v6 = vld [vmem:[#allocation2 + $0x79c] sm:$0xf]  ;;  %v11879_v13 = vor.u32 %v16910_v3, %v11876_v5 }
  0x98   :  { %1714 = vmatpush.bf16.msra.mxu1 %v11951_v35  ;;  %1665 = vmatmul.bf16.vlgmr.msrb.gmra.mxu2 %v18660_v48  ;;  %v12092_v35 = vld [vmem:[#allocation2 + $0x894] sm:$0xf0]  ;;  %v11999_v40 = vor.u32 %v16940_v31, %v11996_v32  ;;  %v11972_v7 = vld [vmem:[#allocation2 + $0x7a4] sm:$0xf0]  ;;  %v16958_v8 = vld [vmem:[#allocation2 + $0x85c] sm:$0xf] }
  0x99   :  { %1733 = vmatpush.bf16.msra.mxu2 %v12047_v42  ;;  %1684 = vmatmul.bf16.vlgmr.msrb.gmra.mxu3 %v18662_v53  ;;  %v11792_v42 = vld [vmem:[#allocation2 + $0x63c] sm:$0xf0]  ;;  %v12095_v46 = vor.u32 %v16964_v34, %v12092_v35  ;;  %v12068_v9 = vld [vmem:[#allocation2 + $0x864] sm:$0xf0]  ;;  %v11975_v14 = vor.u32 %v16934_v6, %v11972_v7  ;;  %v16907_v15 = vld [vmem:[#allocation2 + $0x6c4] sm:$0xf] }
  0x9a   :  { %1752 = vmatpush.bf16.msra.mxu3 %v12143_v49  ;;  %v11888_v49 = vld [vmem:[#allocation2 + $0x6fc] sm:$0xf0]  ;;  %v16931_v17 = vld [vmem:[#allocation2 + $0x784] sm:$0xf]  ;;  %v12071_v18 = vor.u32 %v16958_v8, %v12068_v9  ;;  %v11960_v19 = vld [vmem:[#allocation2 + $0x78c] sm:$0xf0] }
  0x9b   :  { %1696 = vmatpush.bf16.msra.mxu0 %v11843_v62  ;;  %v11795_v62 = vor.u32 %v16889_v41, %v11792_v42  ;;  %v16955_v20 = vld [vmem:[#allocation2 + $0x844] sm:$0xf]  ;;  %v12056_v21 = vld [vmem:[#allocation2 + $0x84c] sm:$0xf0]  ;;  %v16882_v26 = vld [vmem:[#allocation2 + $0x5f8] sm:$0xf0]  ;;  %v11963_v30 = vor.u32 %v16931_v17, %v11960_v19 }
  0x9c   :  { %1715 = vmatpush.bf16.msra.mxu1 %v11939_v63  ;;  %v11891_v63 = vor.u32 %v16913_v43, %v11888_v49  ;;  %v11858_v27 = vld [vmem:[#allocation2 + $0x6b0] sm:$0xf]  ;;  %v16906_v28 = vld [vmem:[#allocation2 + $0x6b8] sm:$0xf0]  ;;  %v12059_v33 = vor.u32 %v16955_v20, %v12056_v21  ;;  %v16879_v41 = vld [vmem:[#allocation2 + $0x5e0] sm:$0xf0] }
  0x9d   :  { %1734 = vmatpush.bf16.msra.mxu2 %v12035_v0  ;;  %v11987_v0 = vor.u32 %v16937_v52, %v11984_v55  ;;  %v11954_v31 = vld [vmem:[#allocation2 + $0x770] sm:$0xf]  ;;  %v16930_v32 = vld [vmem:[#allocation2 + $0x778] sm:$0xf0]  ;;  %v11859_v36 = vor.u32 %v16906_v28, %v11858_v27  ;;  %v11846_v42 = vld [vmem:[#allocation2 + $0x698] sm:$0xf] }
  0x9e   :  { %1753 = vmatpush.bf16.msra.mxu3 %v12131_v4  ;;  %v12083_v4 = vor.u32 %v16961_v60, %v12080_v61  ;;  %v11955_v37 = vor.u32 %v16930_v32, %v11954_v31  ;;  %v16903_v43 = vld [vmem:[#allocation2 + $0x6a0] sm:$0xf0]  ;;  %v11642_v61 = vld [vmem:[#allocation2 + $0x500] sm:$0xf]  ;;  %v16900_v3 = vld [vmem:[#allocation2 + $0x688] sm:$0xf0] }
  0x9f   :  { %1697 = vmatpush.bf16.msra.mxu0 %v11831_v10  ;;  %v11783_v10 = vor.u32 %v16886_v1, %v11780_v2  ;;  %v16927_v49 = vld [vmem:[#allocation2 + $0x760] sm:$0xf0]  ;;  %v11847_v60 = vor.u32 %v16903_v43, %v11846_v42  ;;  %v16876_v1 = vld [vmem:[#allocation2 + $0x5c8] sm:$0xf0]  ;;  %v11834_v2 = vld [vmem:[#allocation2 + $0x680] sm:$0xf] }
  0xa0   :  { %1716 = vmatpush.bf16.msra.mxu1 %v11927_v11  ;;  %v16883_v11 = vld [vmem:[#allocation2 + $0x604] sm:$0xf]  ;;  %v16924_v5 = vld [vmem:[#allocation2 + $0x748] sm:$0xf0]  ;;  %v11835_v8 = vor.u32 %v16900_v3, %v11834_v2  ;;  %v11630_v9 = vld [vmem:[#allocation2 + $0x4e8] sm:$0xf] }
  0xa1   :  { %1735 = vmatpush.bf16.msra.mxu2 %v12023_v12  ;;  %v11768_v12 = vld [vmem:[#allocation2 + $0x60c] sm:$0xf0]  ;;  %v16921_v17 = vld [vmem:[#allocation2 + $0x730] sm:$0xf0]  ;;  %v16894_v27 = vld [vmem:[#allocation2 + $0x658] sm:$0xf0] }
  0xa2   :  { %1754 = vmatpush.bf16.msra.mxu3 %v12119_v16  ;;  %v11864_v16 = vld [vmem:[#allocation2 + $0x6cc] sm:$0xf0]  ;;  %v11771_v25 = vor.u32 %v16883_v11, %v11768_v12  ;;  %v11726_v11 = vld [vmem:[#allocation2 + $0x5a8] sm:$0xf]  ;;  %s19957_s8 = sld [smem:[#allocation41_spill]]  ;;  %vm9395_vm6 = vcmask 1041408  }
  0xa3   :  { %1698 = vmatpush.bf16.msra.mxu0 %v11819_v22  ;;  %v11666_v22 = vld [vmem:[#allocation2 + $0x530] sm:$0xf]  ;;  %v11582_v3 = vld [vmem:[#allocation2 + $0x488] sm:$0xf]  ;;  %s18472_s1 = smov [#allocation29]   ;;  %s11494_s10 = sshll.u32 %s19947_s19, 4  ;;  %s11495_s10 = int_to_ptr.hbm [resolvable:$true] %s11494_s10 }
  0xa4   :  { %1717 = vmatpush.bf16.msra.mxu1 %v11915_v23  ;;  %v16858_v23 = vld [vmem:[#allocation2 + $0x538] sm:$0xf0]  ;;  %v11618_v21 = vld [vmem:[#allocation2 + $0x4d0] sm:$0xf]  ;;  %s11492_s21 = sshll.u32 %s18472_s1, 4  ;;  %s11493_s21 = int_to_ptr.vmem [resolvable:$true] %s11492_s21 }
  0xa5   :  { %1736 = vmatpush.bf16.msra.mxu2 %v12011_v24  ;;  %v11762_v24 = vld [vmem:[#allocation2 + $0x5f0] sm:$0xf]  ;;  %v11667_v34 = vor.u32 %v16858_v23, %v11666_v22  ;;  %v16846_v22 = vld [vmem:[#allocation2 + $0x4d8] sm:$0xf0] }
  0xa6   :  { %1755 = vmatpush.bf16.msra.mxu3 %v12107_v29  ;;  %1632 = vmatmul.bf16.gmra.mxu0 %v18740_v45  ;;  %v11867_v29 = vor.u32 %v16907_v15, %v11864_v16  ;;  %v11763_v35 = vor.u32 %v16882_v26, %v11762_v24  ;;  %v16897_v15 = vld [vmem:[#allocation2 + $0x670] sm:$0xf0]  ;;  %v11918_v16 = vld [vmem:[#allocation2 + $0x728] sm:$0xf]  ;;  %v11714_v23 = vld [vmem:[#allocation2 + $0x590] sm:$0xf] }
  0xa7   :  { %1699 = vmatpush.bf16.msra.mxu0 %v11807_v38  ;;  %1651 = vmatmul.bf16.gmra.mxu1 %v18742_v56  ;;  %v11654_v38 = vld [vmem:[#allocation2 + $0x518] sm:$0xf]  ;;  %v11919_v24 = vor.u32 %v16921_v17, %v11918_v16  ;;  %v11810_v26 = vld [vmem:[#allocation2 + $0x650] sm:$0xf] }
  0xa8   :  { %1718 = vmatpush.bf16.msra.mxu1 %v11903_v39  ;;  %1670 = vmatmul.bf16.gmra.mxu2 %v18696_v44  ;;  %v16855_v39 = vld [vmem:[#allocation2 + $0x520] sm:$0xf0]  ;;  %v11906_v28 = vld [vmem:[#allocation2 + $0x710] sm:$0xf]  ;;  %v11811_v32 = vor.u32 %v16894_v27, %v11810_v26 }
  0xa9   :  { %1737 = vmatpush.bf16.msra.mxu2 %v11999_v40  ;;  %1689 = vmatmul.bf16.gmra.mxu3 %v18698_v50  ;;  %v11750_v40 = vld [vmem:[#allocation2 + $0x5d8] sm:$0xf]  ;;  %v11655_v52 = vor.u32 %v16855_v39, %v11654_v38  ;;  %v16891_v39 = vld [vmem:[#allocation2 + $0x640] sm:$0xf0]  ;;  %v12146_v16 = vld [vmem:[#allocation2 + $0x8f0] sm:$0xf] }
  0xaa   :  { %1756 = vmatpush.bf16.msra.mxu3 %v12095_v46  ;;  %v11942_v46 = vld [vmem:[#allocation2 + $0x758] sm:$0xf]  ;;  %v11751_v55 = vor.u32 %v16879_v41, %v11750_v40  ;;  %v16915_v41 = vld [vmem:[#allocation2 + $0x700] sm:$0xf0] }
  0xab   :  { %1700 = vmatpush.bf16.msra.mxu0 %v11795_v62  ;;  %v16852_v62 = vld [vmem:[#allocation2 + $0x508] sm:$0xf0]  ;;  %v11798_v38 = vld [vmem:[#allocation2 + $0x638] sm:$0xf] }
  0xac   :  { %1719 = vmatpush.bf16.msra.mxu1 %v11891_v63  ;;  %v11738_v63 = vld [vmem:[#allocation2 + $0x5c0] sm:$0xf]  ;;  %v11643_v6 = vor.u32 %v16852_v62, %v11642_v61  ;;  %v11894_v40 = vld [vmem:[#allocation2 + $0x6f8] sm:$0xf]  ;;  %v16864_v61 = vld [vmem:[#allocation2 + $0x568] sm:$0xf0] }
  0xad   :  { %1738 = vmatpush.bf16.msra.mxu2 %v11987_v0  ;;  %v11943_v0 = vor.u32 %v16927_v49, %v11942_v46  ;;  %v11739_v7 = vor.u32 %v16876_v1, %v11738_v63  ;;  %v11799_v46 = vor.u32 %v16891_v39, %v11798_v38  ;;  %v11594_v49 = vld [vmem:[#allocation2 + $0x4a0] sm:$0xf]  ;;  %v16888_v63 = vld [vmem:[#allocation2 + $0x628] sm:$0xf0] }
  0xae   :  { %1757 = vmatpush.bf16.msra.mxu3 %v12083_v4  ;;  %v11930_v4 = vld [vmem:[#allocation2 + $0x740] sm:$0xf]  ;;  %v16912_v1 = vld [vmem:[#allocation2 + $0x6e8] sm:$0xf0] }
  0xaf   :  { %1701 = vmatpush.bf16.msra.mxu0 %v11783_v10  ;;  %v16849_v10 = vld [vmem:[#allocation2 + $0x4f0] sm:$0xf0]  ;;  %v11931_v12 = vor.u32 %v16924_v5, %v11930_v4  ;;  %v11786_v62 = vld [vmem:[#allocation2 + $0x620] sm:$0xf] }
  0xb0   :  { %1720 = vmatpush.bf16.msra.mxu1 %v11879_v13  ;;  %v16873_v13 = vld [vmem:[#allocation2 + $0x5b0] sm:$0xf0] }
  0xb1   :  { %1739 = vmatpush.bf16.msra.mxu2 %v11975_v14  ;;  %v11822_v14 = vld [vmem:[#allocation2 + $0x668] sm:$0xf]  ;;  %v11727_v19 = vor.u32 %v16873_v13, %v11726_v11  ;;  %v16837_v4 = vld [vmem:[#allocation2 + $0x490] sm:$0xf0] }
  0xb2   :  { %1758 = vmatpush.bf16.msra.mxu3 %v12071_v18  ;;  %v11631_v18 = vor.u32 %v16849_v10, %v11630_v9  ;;  %v11823_v20 = vor.u32 %v16897_v15, %v11822_v14  ;;  %v11774_v9 = vld [vmem:[#allocation2 + $0x608] sm:$0xf]  ;;  %v16885_v11 = vld [vmem:[#allocation2 + $0x610] sm:$0xf0]  ;;  %v12050_v14 = vld [vmem:[#allocation2 + $0x830] sm:$0xf]  ;;  %v11583_v17 = vor.u32 %v16837_v4, %v11582_v3 }
  0xb3   :  { %1702 = vmatpush.bf16.msra.mxu0 %v11771_v25  ;;  %v16870_v25 = vld [vmem:[#allocation2 + $0x598] sm:$0xf0]  ;;  %v16909_v13 = vld [vmem:[#allocation2 + $0x6d0] sm:$0xf0] }
  0xb4   :  { %1721 = vmatpush.bf16.msra.mxu1 %v11867_v29  ;;  %v16918_v29 = vld [vmem:[#allocation2 + $0x718] sm:$0xf0]  ;;  %v11715_v31 = vor.u32 %v16870_v25, %v11714_v23  ;;  %v12378_v23 = vld [vmem:[#allocation2 + $0x168] sm:$0xf]  ;;  %v16969_v4 = vld [vmem:[#allocation2 + $0x8b0] sm:$0xf0] }
  0xb5   :  { %1740 = vmatpush.bf16.msra.mxu2 %v11963_v30  ;;  %v11619_v30 = vor.u32 %v16846_v22, %v11618_v21  ;;  %v16954_v15 = vld [vmem:[#allocation2 + $0x838] sm:$0xf0]  ;;  %v11775_v22 = vor.u32 %v16885_v11, %v11774_v9  ;;  %v12002_v9 = vld [vmem:[#allocation2 + $0x7d0] sm:$0xf] }
  0xb6   :  { %1759 = vmatpush.bf16.msra.mxu3 %v12059_v33  ;;  %1703 = vmatmul.bf16.vlgmr.msra.gmra.mxu0 %v18664_v54  ;;  %v11606_v33 = vld [vmem:[#allocation2 + $0x4b8] sm:$0xf]  ;;  %v12051_v26 = vor.u32 %v16954_v15, %v12050_v14  ;;  %v12098_v11 = vld [vmem:[#allocation2 + $0x890] sm:$0xf]  ;;  %v12234_v14 = vld [vmem:[#allocation2 + $0x48] sm:$0xf] }
  0xb7   :  { %1771 = vmatpush.bf16.msrb.mxu0 %v11667_v34  ;;  %1722 = vmatmul.bf16.vlgmr.msra.gmra.mxu1 %v18666_v58  ;;  %v16843_v34 = vld [vmem:[#allocation2 + $0x4c0] sm:$0xf0]  ;;  %v16689_v15 = vld [vmem:[#allocation2 + $0x50] sm:$0xf0] }
  0xb8   :  { %1790 = vmatpush.bf16.msrb.mxu1 %v11763_v35  ;;  %1741 = vmatmul.bf16.vlgmr.msra.gmra.mxu2 %v18720_v47  ;;  %v11702_v35 = vld [vmem:[#allocation2 + $0x578] sm:$0xf]  ;;  %v11607_v42 = vor.u32 %v16843_v34, %v11606_v33  ;;  %v16975_v33 = vld [vmem:[#allocation2 + $0x8e0] sm:$0xf0]  ;;  %v12270_v34 = vld [vmem:[#allocation2 + $0x90] sm:$0xf] }
  0xb9   :  { %1809 = vmatpush.bf16.msrb.mxu2 %v11859_v36  ;;  %1760 = vmatmul.bf16.vlgmr.msra.gmra.mxu3 %v18722_v59  ;;  %v11907_v36 = vor.u32 %v16918_v29, %v11906_v28 }
  0xba   :  { %1828 = vmatpush.bf16.msrb.mxu3 %v11955_v37  ;;  %v16867_v37 = vld [vmem:[#allocation2 + $0x580] sm:$0xf0] }
  0xbb   :  { %1772 = vmatpush.bf16.msrb.mxu0 %v11655_v52  ;;  %v11703_v43 = vor.u32 %v16867_v37, %v11702_v35  ;;  %v16840_v52 = vld [vmem:[#allocation2 + $0x4a8] sm:$0xf0]  ;;  %v16698_v35 = vld [vmem:[#allocation2 + $0x98] sm:$0xf0] }
  0xbc   :  { %1791 = vmatpush.bf16.msrb.mxu1 %v11751_v55  ;;  %v11690_v55 = vld [vmem:[#allocation2 + $0x560] sm:$0xf]  ;;  %v11595_v2 = vor.u32 %v16840_v52, %v11594_v49  ;;  %v16722_v37 = vld [vmem:[#allocation2 + $0x158] sm:$0xf0]  ;;  %v16972_v49 = vld [vmem:[#allocation2 + $0x8c8] sm:$0xf0] }
  0xbd   :  { %1810 = vmatpush.bf16.msrb.mxu2 %v11847_v60  ;;  %v11895_v60 = vor.u32 %v16915_v41, %v11894_v40  ;;  %v11691_v5 = vor.u32 %v16864_v61, %v11690_v55  ;;  %v12271_v40 = vor.u32 %v16698_v35, %v12270_v34  ;;  %v12026_v41 = vld [vmem:[#allocation2 + $0x800] sm:$0xf]  ;;  %v12258_v52 = vld [vmem:[#allocation2 + $0x78] sm:$0xf]  ;;  %v16695_v55 = vld [vmem:[#allocation2 + $0x80] sm:$0xf0] }
  0xbe   :  { %1829 = vmatpush.bf16.msrb.mxu3 %v11943_v0  ;;  %v11882_v0 = vld [vmem:[#allocation2 + $0x6e0] sm:$0xf]  ;;  %v16719_v61 = vld [vmem:[#allocation2 + $0x140] sm:$0xf0]  ;;  %v16936_v34 = vld [vmem:[#allocation2 + $0x7a8] sm:$0xf0] }
  0xbf   :  { %1773 = vmatpush.bf16.msrb.mxu0 %v11643_v6  ;;  %v11787_v6 = vor.u32 %v16888_v63, %v11786_v62  ;;  %v11883_v10 = vor.u32 %v16912_v1, %v11882_v0  ;;  %v12259_v0 = vor.u32 %v16695_v55, %v12258_v52  ;;  %v12014_v1 = vld [vmem:[#allocation2 + $0x7e8] sm:$0xf]  ;;  %v12074_v35 = vld [vmem:[#allocation2 + $0x860] sm:$0xf]  ;;  %v16957_v55 = vld [vmem:[#allocation2 + $0x850] sm:$0xf0] }
  0xc0   :  { %1792 = vmatpush.bf16.msrb.mxu1 %v11739_v7  ;;  %v11678_v7 = vld [vmem:[#allocation2 + $0x548] sm:$0xf] }
  0xc1   :  { %1811 = vmatpush.bf16.msrb.mxu2 %v11835_v8  ;;  %v16861_v8 = vld [vmem:[#allocation2 + $0x550] sm:$0xf0]  ;;  %v12062_v52 = vld [vmem:[#allocation2 + $0x848] sm:$0xf] }
  0xc2   :  { %1830 = vmatpush.bf16.msrb.mxu3 %v11931_v12  ;;  %v11870_v12 = vld [vmem:[#allocation2 + $0x6c8] sm:$0xf]  ;;  %v11679_v21 = vor.u32 %v16861_v8, %v11678_v7 }
  0xc3   :  { %1774 = vmatpush.bf16.msrb.mxu0 %v11631_v18  ;;  %v16978_v18 = vld [vmem:[#allocation2 + $0x8f8] sm:$0xf0]  ;;  %v11871_v25 = vor.u32 %v16909_v13, %v11870_v12 }
  0xc4   :  { %1793 = vmatpush.bf16.msrb.mxu1 %v11727_v19  ;;  %v12282_v19 = vld [vmem:[#allocation2 + $0xa8] sm:$0xf]  ;;  %v12147_v27 = vor.u32 %v16978_v18, %v12146_v16  ;;  %v16966_v13 = vld [vmem:[#allocation2 + $0x898] sm:$0xf0] }
  0xc5   :  { %1812 = vmatpush.bf16.msrb.mxu2 %v11823_v20  ;;  %v16701_v20 = vld [vmem:[#allocation2 + $0xb0] sm:$0xf0]  ;;  %v12330_v16 = vld [vmem:[#allocation2 + $0x108] sm:$0xf] }
  0xc6   :  { %1831 = vmatpush.bf16.msrb.mxu3 %v11919_v24  ;;  %1708 = vmatmul.bf16.gmra.mxu0 %v18700_v51  ;;  %v16725_v24 = vld [vmem:[#allocation2 + $0x170] sm:$0xf0]  ;;  %v12283_v28 = vor.u32 %v16701_v20, %v12282_v19  ;;  %v12099_v19 = vor.u32 %v16966_v13, %v12098_v11  ;;  %v12235_v20 = vor.u32 %v16689_v15, %v12234_v14  ;;  %v16667_v11 = vld [vmem:[%s19956_s26 + $0x4] sm:$0xf]  ;;  %v12462_v14 = vld [vmem:[#allocation2 + $0x210] sm:$0xf] }
  0xc7   :  { %1775 = vmatpush.bf16.msrb.mxu0 %v11619_v30  ;;  %1727 = vmatmul.bf16.gmra.mxu1 %v18702_v57  ;;  %v12379_v29 = vor.u32 %v16725_v24, %v12378_v23  ;;  %v12038_v30 = vld [vmem:[#allocation2 + $0x818] sm:$0xf]  ;;  %v16746_v15 = vld [vmem:[#allocation2 + $0x218] sm:$0xf0] }
  0xc8   :  { %1794 = vmatpush.bf16.msrb.mxu1 %v11715_v31  ;;  %1746 = vmatmul.bf16.gmra.mxu2 %v18740_v45  ;;  %v16951_v31 = vld [vmem:[#allocation2 + $0x820] sm:$0xf0]  ;;  %v12086_v23 = vld [vmem:[#allocation2 + $0x878] sm:$0xf] }
  0xc9   :  { %1813 = vmatpush.bf16.msrb.mxu2 %v11811_v32  ;;  %1765 = vmatmul.bf16.gmra.mxu3 %v18742_v56  ;;  %v12134_v32 = vld [vmem:[#allocation2 + $0x8d8] sm:$0xf]  ;;  %v12039_v38 = vor.u32 %v16951_v31, %v12038_v30 }
  0xca   :  { %1832 = vmatpush.bf16.msrb.mxu3 %v11907_v36  ;;  %v12366_v36 = vld [vmem:[#allocation2 + $0x150] sm:$0xf]  ;;  %v12135_v39 = vor.u32 %v16975_v33, %v12134_v32  ;;  %v11978_v33 = vld [vmem:[#allocation2 + $0x7a0] sm:$0xf] }
  0xcb   :  { %1776 = vmatpush.bf16.msrb.mxu0 %v11607_v42  ;;  %v16948_v42 = vld [vmem:[#allocation2 + $0x808] sm:$0xf0] }
  0xcc   :  { %1795 = vmatpush.bf16.msrb.mxu1 %v11703_v43  ;;  %v12122_v43 = vld [vmem:[#allocation2 + $0x8c0] sm:$0xf]  ;;  %v12027_v62 = vor.u32 %v16948_v42, %v12026_v41  ;;  %v16707_v41 = vld [vmem:[#allocation2 + $0xe0] sm:$0xf0]  ;;  %v11979_v42 = vor.u32 %v16936_v34, %v11978_v33 }
  0xcd   :  { %1814 = vmatpush.bf16.msrb.mxu2 %v11799_v46  ;;  %v12367_v46 = vor.u32 %v16722_v37, %v12366_v36  ;;  %v12123_v63 = vor.u32 %v16972_v49, %v12122_v43  ;;  %v16960_v37 = vld [vmem:[#allocation2 + $0x868] sm:$0xf0]  ;;  %v11966_v43 = vld [vmem:[#allocation2 + $0x788] sm:$0xf]  ;;  %v16767_v34 = vld [vmem:[#allocation2 + $0x2c0] sm:$0xf0] }
  0xce   :  { %1833 = vmatpush.bf16.msrb.mxu3 %v11895_v60  ;;  %v12354_v60 = vld [vmem:[#allocation2 + $0x138] sm:$0xf] }
  0xcf   :  { %1777 = vmatpush.bf16.msrb.mxu0 %v11595_v2  ;;  %v12110_v2 = vld [vmem:[#allocation2 + $0x8a8] sm:$0xf]  ;;  %v12355_v3 = vor.u32 %v16719_v61, %v12354_v60  ;;  %v12198_v60 = vld [vmem:[#allocation2] sm:$0xf] }
  0xd0   :  { %1796 = vmatpush.bf16.msrb.mxu1 %v11691_v5  ;;  %v12246_v5 = vld [vmem:[#allocation2 + $0x60] sm:$0xf] }
  0xd1   :  { %1815 = vmatpush.bf16.msrb.mxu2 %v11787_v6  ;;  %v12342_v6 = vld [vmem:[#allocation2 + $0x120] sm:$0xf] }
  0xd2   :  { %1834 = vmatpush.bf16.msrb.mxu3 %v11883_v10  ;;  %v16942_v10 = vld [vmem:[#allocation2 + $0x7d8] sm:$0xf0] }
  0xd3   :  { %1778 = vmatpush.bf16.msrb.mxu0 %v11583_v17  ;;  %v16713_v17 = vld [vmem:[#allocation2 + $0x110] sm:$0xf0]  ;;  %v12003_v18 = vor.u32 %v16942_v10, %v12002_v9  ;;  %v16670_v10 = vld [vmem:[%s19956_s26 + $0x14] sm:$0xf0] }
  0xd4   :  { %1797 = vmatpush.bf16.msrb.mxu1 %v11679_v21  ;;  %v11990_v21 = vld [vmem:[#allocation2 + $0x7b8] sm:$0xf]  ;;  %v12331_v24 = vor.u32 %v16713_v17, %v12330_v16  ;;  %v12558_v16 = vld [vmem:[#allocation2 + $0x2d0] sm:$0xf]  ;;  %v16770_v17 = vld [vmem:[#allocation2 + $0x2d8] sm:$0xf0] }
  0xd5   :  { %1816 = vmatpush.bf16.msrb.mxu2 %v11775_v22  ;;  %v16939_v22 = vld [vmem:[#allocation2 + $0x7c0] sm:$0xf0] }
  0xd6   :  { %1835 = vmatpush.bf16.msrb.mxu3 %v11871_v25  ;;  %1779 = vmatmul.bf16.vlgmr.msrb.gmra.mxu0 %v18660_v48  ;;  %v16945_v48 = vld [vmem:[#allocation2 + $0x7f0] sm:$0xf0]  ;;  %v16963_v25 = vld [vmem:[#allocation2 + $0x880] sm:$0xf0]  ;;  %v11991_v30 = vor.u32 %v16939_v22, %v11990_v21  ;;  %v12750_v22 = vld [vmem:[#allocation2 + $0x450] sm:$0xf] }
  0xd7   :  { %1847 = vmatpush.bf16.msra.mxu0 %v12051_v26  ;;  %1798 = vmatmul.bf16.vlgmr.msrb.gmra.mxu1 %v18662_v53  ;;  %v16692_v53 = vld [vmem:[#allocation2 + $0x68] sm:$0xf0]  ;;  %v12015_v7 = vor.u32 %v16945_v48, %v12014_v1  ;;  %v12222_v26 = vld [vmem:[#allocation2 + $0x30] sm:$0xf]  ;;  %v12087_v31 = vor.u32 %v16963_v25, %v12086_v23  ;;  %v12570_v1 = vld [vmem:[#allocation2 + $0x2e8] sm:$0xf] }
  0xd8   :  { %1866 = vmatpush.bf16.msra.mxu1 %v12147_v27  ;;  %1817 = vmatmul.bf16.vlgmr.msrb.gmra.mxu2 %v18664_v54  ;;  %v16716_v54 = vld [vmem:[#allocation2 + $0x128] sm:$0xf0]  ;;  %v12247_v8 = vor.u32 %v16692_v53, %v12246_v5  ;;  %v16686_v27 = vld [vmem:[#allocation2 + $0x38] sm:$0xf0]  ;;  %v16773_v48 = vld [vmem:[#allocation2 + $0x2f0] sm:$0xf0] }
  0xd9   :  { %2713 = vmatpush.bf16.msra.mxu2 %v12283_v28  ;;  %1836 = vmatmul.bf16.vlgmr.msrb.gmra.mxu3 %v18666_v58  ;;  %v12111_v58 = vor.u32 %v16969_v4, %v12110_v2  ;;  %v12343_v12 = vor.u32 %v16716_v54, %v12342_v6  ;;  %v12318_v28 = vld [vmem:[#allocation2 + $0xf0] sm:$0xf]  ;;  %v12223_v32 = vor.u32 %v16686_v27, %v12222_v26  ;;  %v12666_v2 = vld [vmem:[#allocation2 + $0x3a8] sm:$0xf]  ;;  %v16821_v6 = vld [vmem:[#allocation2 + $0x470] sm:$0xf0] }
  0xda   :  { %2732 = vmatpush.bf16.msra.mxu3 %v12379_v29  ;;  %v16710_v29 = vld [vmem:[#allocation2 + $0xf8] sm:$0xf0]  ;;  %v12063_v4 = vor.u32 %v16957_v55, %v12062_v52  ;;  %v12762_v53 = vld [vmem:[#allocation2 + $0x468] sm:$0xf]  ;;  %v12463_v26 = vor.u32 %v16746_v15, %v12462_v14  ;;  %v16788_v52 = vld [vmem:[#allocation2 + $0x368] sm:$0xf0] }
  0xdb   :  { %1848 = vmatpush.bf16.msra.mxu0 %v12039_v38  ;;  %v12319_v36 = vor.u32 %v16710_v29, %v12318_v28  ;;  %v12210_v38 = vld [vmem:[#allocation2 + $0x18] sm:$0xf]  ;;  %v12763_v13 = vor.u32 %v16821_v6, %v12762_v53  ;;  %v16818_v23 = vld [vmem:[#allocation2 + $0x458] sm:$0xf0]  ;;  %v12559_v28 = vor.u32 %v16770_v17, %v12558_v16  ;;  %v12174_v53 = vld [vmem:[%s19956_s26 + $0x30] sm:$0xf] }
  0xdc   :  { %1867 = vmatpush.bf16.msra.mxu1 %v12135_v39  ;;  %v16683_v39 = vld [vmem:[#allocation2 + $0x20] sm:$0xf0]  ;;  %v12751_v33 = vor.u32 %v16818_v23, %v12750_v22  ;;  %v16761_v6 = vld [vmem:[#allocation2 + $0x290] sm:$0xf0]  ;;  %v16734_v16 = vld [vmem:[#allocation2 + $0x1b8] sm:$0xf0] }
  0xdd   :  { %2714 = vmatpush.bf16.msra.mxu2 %v12271_v40  ;;  %v12306_v40 = vld [vmem:[#allocation2 + $0xd8] sm:$0xf]  ;;  %v12211_v49 = vor.u32 %v16683_v39, %v12210_v38  ;;  %v16815_v38 = vld [vmem:[#allocation2 + $0x440] sm:$0xf0]  ;;  %v12510_v17 = vld [vmem:[#allocation2 + $0x270] sm:$0xf] }
  0xde   :  { %2733 = vmatpush.bf16.msra.mxu3 %v12367_v46  ;;  %v16933_v46 = vld [vmem:[#allocation2 + $0x790] sm:$0xf0]  ;;  %v12307_v61 = vor.u32 %v16707_v41, %v12306_v40  ;;  %v12438_v40 = vld [vmem:[#allocation2 + $0x1e0] sm:$0xf]  ;;  %v12606_v22 = vld [vmem:[#allocation2 + $0x330] sm:$0xf] }
  0xdf   :  { %1849 = vmatpush.bf16.msra.mxu0 %v12027_v62  ;;  %v12294_v62 = vld [vmem:[#allocation2 + $0xc0] sm:$0xf]  ;;  %v16782_v23 = vld [vmem:[#allocation2 + $0x338] sm:$0xf0] }
  0xe0   :  { %1868 = vmatpush.bf16.msra.mxu1 %v12123_v63  ;;  %v12474_v63 = vld [vmem:[#allocation2 + $0x228] sm:$0xf] }
  0xe1   :  { %2715 = vmatpush.bf16.msra.mxu2 %v12259_v0  ;;  %v16749_v0 = vld [vmem:[#allocation2 + $0x230] sm:$0xf0] }
  0xe2   :  { %2734 = vmatpush.bf16.msra.mxu3 %v12355_v3  ;;  %v16797_v3 = vld [vmem:[#allocation2 + $0x3b0] sm:$0xf0] }
  0xe3   :  { %1850 = vmatpush.bf16.msra.mxu0 %v12015_v7  ;;  %v12475_v7 = vor.u32 %v16749_v0, %v12474_v63  ;;  %v12667_v9 = vor.u32 %v16797_v3, %v12666_v2  ;;  %v12426_v2 = vld [vmem:[#allocation2 + $0x1c8] sm:$0xf]  ;;  %v16737_v3 = vld [vmem:[#allocation2 + $0x1d0] sm:$0xf0] }
  0xe4   :  { %1869 = vmatpush.bf16.msra.mxu1 %v12111_v58  ;;  %v12150_v58 = vld [vmem:[%s19956_s26] sm:$0xf] }
  0xe5   :  { %2716 = vmatpush.bf16.msra.mxu2 %v12247_v8  ;;  %v12571_v8 = vor.u32 %v16773_v48, %v12570_v1  ;;  %v18776_v21 = vor.u32 %v16670_v10, %v12150_v58  ;;  %v16676_v58 = vld [vmem:[%s19956_s26 + $0x44] sm:$0xf0]  ;;  %v12427_v10 = vor.u32 %v16737_v3, %v12426_v2  ;;  %v16700_v3 = vld [vmem:[#allocation2 + $0xac] sm:$0xf] }
  0xe6   :  { %2735 = vmatpush.bf16.msra.mxu3 %v12343_v12  ;;  %1784 = vmatmul.bf16.gmra.mxu0 %v18696_v44  ;;  %v12075_v44 = vor.u32 %v16960_v37, %v12074_v35  ;;  %v12152_v12 = vld [vmem:[%s19956_s26 + $0x18] sm:$0xf0]  ;;  %v12642_v35 = vld [vmem:[#allocation2 + $0x378] sm:$0xf] }
  0xe7   :  { %1851 = vmatpush.bf16.msra.mxu0 %v12003_v18  ;;  %1803 = vmatmul.bf16.gmra.mxu1 %v18698_v50  ;;  %v16680_v50 = vld [vmem:[#allocation2 + $0x8] sm:$0xf0]  ;;  %v12654_v18 = vld [vmem:[#allocation2 + $0x390] sm:$0xf]  ;;  %v18778_v25 = vor.u32 %v16667_v11, %v12152_v12  ;;  %v12738_v37 = vld [vmem:[#allocation2 + $0x438] sm:$0xf] }
  0xe8   :  { %1870 = vmatpush.bf16.msra.mxu1 %v12099_v19  ;;  %1822 = vmatmul.bf16.gmra.mxu2 %v18700_v51  ;;  %v16704_v51 = vld [vmem:[#allocation2 + $0xc8] sm:$0xf0]  ;;  %v12199_v5 = vor.u32 %v16680_v50, %v12198_v60  ;;  %v16794_v19 = vld [vmem:[#allocation2 + $0x398] sm:$0xf0]  ;;  %v12726_v50 = vld [vmem:[#allocation2 + $0x420] sm:$0xf] }
  0xe9   :  { %2717 = vmatpush.bf16.msra.mxu2 %v12235_v20  ;;  %1841 = vmatmul.bf16.gmra.mxu3 %v18702_v57  ;;  %v11967_v57 = vor.u32 %v16933_v46, %v11966_v43  ;;  %v12295_v54 = vor.u32 %v16704_v51, %v12294_v62  ;;  %v12655_v29 = vor.u32 %v16794_v19, %v12654_v18  ;;  %v12534_v43 = vld [vmem:[#allocation2 + $0x2a0] sm:$0xf]  ;;  %v16764_v46 = vld [vmem:[#allocation2 + $0x2a8] sm:$0xf0]  ;;  %v12176_v12 = vld [vmem:[%s19956_s26 + $0x48] sm:$0xf0] }
  0xea   :  { %2736 = vmatpush.bf16.msra.mxu3 %v12331_v24  ;;  %v16812_v62 = vld [vmem:[#allocation2 + $0x428] sm:$0xf0]  ;;  %v12535_v0 = vor.u32 %v16764_v46, %v12534_v43  ;;  %v16758_v18 = vld [vmem:[#allocation2 + $0x278] sm:$0xf0]  ;;  %v16779_v43 = vld [vmem:[#allocation2 + $0x320] sm:$0xf0] }
  0xeb   :  { %1852 = vmatpush.bf16.msra.mxu0 %v11991_v30  ;;  %v12450_v30 = vld [vmem:[#allocation2 + $0x1f8] sm:$0xf]  ;;  %v16673_v11 = vld [vmem:[%s19956_s26 + $0x34] sm:$0xf] }
  0xec   :  { %1871 = vmatpush.bf16.msra.mxu1 %v12087_v31  ;;  %v16743_v31 = vld [vmem:[#allocation2 + $0x200] sm:$0xf0]  ;;  %v12690_v46 = vld [vmem:[#allocation2 + $0x3d8] sm:$0xf] }
  0xed   :  { %2718 = vmatpush.bf16.msra.mxu2 %v12223_v32  ;;  %v12546_v32 = vld [vmem:[#allocation2 + $0x2b8] sm:$0xf]  ;;  %v12451_v39 = vor.u32 %v16743_v31, %v12450_v30  ;;  %v16806_v30 = vld [vmem:[#allocation2 + $0x3f8] sm:$0xf0] }
  0xee   :  { %2737 = vmatpush.bf16.msra.mxu3 %v12319_v36  ;;  %v16791_v36 = vld [vmem:[#allocation2 + $0x380] sm:$0xf0]  ;;  %v12547_v41 = vor.u32 %v16767_v34, %v12546_v32  ;;  %v18800_v32 = vor.u32 %v16673_v11, %v12176_v12  ;;  %v12511_v34 = vor.u32 %v16758_v18, %v12510_v17  ;;  %v16772_v12 = vld [vmem:[#allocation2 + $0x2ec] sm:$0xf] }
  0xef   :  { %1853 = vmatpush.bf16.msra.mxu0 %v11979_v42  ;;  %v12643_v42 = vor.u32 %v16791_v36, %v12642_v35  ;;  %v16668_v18 = vld [vmem:[%s19956_s26 + $0xc] sm:$0xf] }
  0xf0   :  { %1872 = vmatpush.bf16.msra.mxu1 %v12075_v44 }
  0xf1   :  { %2719 = vmatpush.bf16.msra.mxu2 %v12211_v49  ;;  %v12739_v49 = vor.u32 %v16815_v38, %v12738_v37  ;;  %v12607_v37 = vor.u32 %v16782_v23, %v12606_v22  ;;  %v12402_v38 = vld [vmem:[#allocation2 + $0x198] sm:$0xf] }
  0xf2   :  { %2738 = vmatpush.bf16.msra.mxu3 %v12307_v61 }
  0xf3   :  { %1854 = vmatpush.bf16.msra.mxu0 %v11967_v57  ;;  %v1552_v20 = vpop.f32.mrf.mxu0 }
  0xf4   :  { %1873 = vmatpush.bf16.msra.mxu1 %v12063_v4  ;;  %v1571_v24 = vpop.f32.mrf.mxu1  ;;  %v12522_v4 = vld [vmem:[#allocation2 + $0x288] sm:$0xf] }
  0xf5   :  { %2720 = vmatpush.bf16.msra.mxu2 %v12199_v5  ;;  %v1572_v27 = vadd.f32 %v1571_v24, %v1552_v20  ;;  %v12727_v5 = vor.u32 %v16812_v62, %v12726_v50  ;;  %v12523_v14 = vor.u32 %v16761_v6, %v12522_v4  ;;  %v12582_v50 = vld [vmem:[#allocation2 + $0x300] sm:$0xf]  ;;  %v12284_v4 = vld [vmem:[#allocation2 + $0xb4] sm:$0xf0] }
  0xf6   :  { %2739 = vmatpush.bf16.msra.mxu3 %v12295_v54  ;;  %1855 = vmatmul.bf16.vlgmr.msra.gmra.mxu0 %v18720_v47  ;;  %v16740_v47 = vld [vmem:[#allocation2 + $0x1e8] sm:$0xf0]  ;;  %v12618_v54 = vld [vmem:[#allocation2 + $0x348] sm:$0xf]  ;;  %v12287_v17 = vor.u32 %v16700_v3, %v12284_v4 }
  0xf7   :  { %2751 = vmatpush.bf16.msrb.mxu0 %v12475_v7  ;;  %1874 = vmatmul.bf16.vlgmr.msra.gmra.mxu1 %v18722_v59  ;;  %v12630_v59 = vld [vmem:[#allocation2 + $0x360] sm:$0xf]  ;;  %v12439_v63 = vor.u32 %v16740_v47, %v12438_v40  ;;  %v16785_v7 = vld [vmem:[#allocation2 + $0x350] sm:$0xf0]  ;;  %v12498_v40 = vld [vmem:[#allocation2 + $0x258] sm:$0xf] }
  0xf8   :  { %2770 = vmatpush.bf16.msrb.mxu1 %v12571_v8  ;;  %2721 = vmatmul.bf16.vlgmr.msra.gmra.mxu2 %v18776_v21  ;;  %v12631_v48 = vor.u32 %v16788_v52, %v12630_v59  ;;  %v12714_v8 = vld [vmem:[#allocation2 + $0x408] sm:$0xf]  ;;  %v12619_v15 = vor.u32 %v16785_v7, %v12618_v54  ;;  %v12594_v47 = vld [vmem:[#allocation2 + $0x318] sm:$0xf]  ;;  %v12390_v59 = vld [vmem:[#allocation2 + $0x180] sm:$0xf] }
  0xf9   :  { %2789 = vmatpush.bf16.msrb.mxu2 %v12667_v9  ;;  %2740 = vmatmul.bf16.vlgmr.msra.gmra.mxu3 %v18778_v25  ;;  %v16809_v9 = vld [vmem:[#allocation2 + $0x410] sm:$0xf0]  ;;  %v16728_v52 = vld [vmem:[#allocation2 + $0x188] sm:$0xf0]  ;;  %v12380_v7 = vld [vmem:[#allocation2 + $0x174] sm:$0xf0] }
  0xfa   :  { %2808 = vmatpush.bf16.msrb.mxu3 %v12763_v13  ;;  %v12414_v13 = vld [vmem:[#allocation2 + $0x1b0] sm:$0xf]  ;;  %v12715_v20 = vor.u32 %v16809_v9, %v12714_v8  ;;  %v12391_v6 = vor.u32 %v16728_v52, %v12390_v59  ;;  %v12476_v8 = vld [vmem:[#allocation2 + $0x234] sm:$0xf0] }
  0xfb   :  { %2752 = vmatpush.bf16.msrb.mxu0 %v12463_v26  ;;  %v1590_v44 = vpop.f32.mrf.mxu2  ;;  %v1554_v60 = vpop.f32.mrf.mxu0 }
  0xfc   :  { %2771 = vmatpush.bf16.msrb.mxu1 %v12559_v28  ;;  %v1591_v55 = vadd.f32 %v1590_v44, %v1572_v27  ;;  %v1609_v61 = vpop.f32.mrf.mxu3  ;;  %v1573_v51 = vpop.f32.mrf.mxu1  ;;  %v18798_v28 = vor.u32 %v16676_v58, %v12174_v53  ;;  %v16803_v44 = vld [vmem:[#allocation2 + $0x3e0] sm:$0xf0]  ;;  %v16748_v58 = vld [vmem:[#allocation2 + $0x22c] sm:$0xf] }
  0xfd   :  { %2790 = vmatpush.bf16.msrb.mxu2 %v12655_v29  ;;  %v1574_v1 = vadd.f32 %v1573_v51, %v1554_v60  ;;  %v12702_v29 = vld [vmem:[#allocation2 + $0x3f0] sm:$0xf]  ;;  %v12486_v60 = vld [vmem:[#allocation2 + $0x240] sm:$0xf]  ;;  %v16776_v51 = vld [vmem:[#allocation2 + $0x308] sm:$0xf0]  ;;  %v12479_v23 = vor.u32 %v16748_v58, %v12476_v8 }
  0xfe   :  { %2809 = vmatpush.bf16.msrb.mxu3 %v12751_v33  ;;  %v18784_v57 = vadd.f32 %v1609_v61, %v1591_v55  ;;  %v12415_v33 = vor.u32 %v16734_v16, %v12414_v13  ;;  %v12595_v55 = vor.u32 %v16779_v43, %v12594_v47  ;;  %v16752_v61 = vld [vmem:[#allocation2 + $0x248] sm:$0xf0]  ;;  %v12583_v11 = vor.u32 %v16776_v51, %v12582_v50  ;;  %v12572_v13 = vld [vmem:[#allocation2 + $0x2f4] sm:$0xf0]  ;;  %v16694_v50 = vld [vmem:[#allocation2 + $0x7c] sm:$0xf] }
  0xff   :  { %2753 = vmatpush.bf16.msrb.mxu0 %v12451_v39  ;;  %v16731_v39 = vld [vmem:[#allocation2 + $0x1a0] sm:$0xf0]  ;;  %v12487_v54 = vor.u32 %v16752_v61, %v12486_v60  ;;  %v16671_v16 = vld [vmem:[%s19956_s26 + $0x1c] sm:$0xf0]  ;;  %v12344_v8 = vld [vmem:[#allocation2 + $0x12c] sm:$0xf0] }
 0x100   :  { %2772 = vmatpush.bf16.msrb.mxu1 %v12547_v41  ;;  %v12703_v41 = vor.u32 %v16806_v30, %v12702_v29  ;;  %v12575_v29 = vor.u32 %v16772_v12, %v12572_v13  ;;  %v16697_v30 = vld [vmem:[#allocation2 + $0x94] sm:$0xf] }
 0x101   :  { %2791 = vmatpush.bf16.msrb.mxu2 %v12643_v42  ;;  %v16755_v42 = vld [vmem:[#allocation2 + $0x260] sm:$0xf0] }
 0x102   :  { %2810 = vmatpush.bf16.msrb.mxu3 %v12739_v49  ;;  %v12403_v49 = vor.u32 %v16731_v39, %v12402_v38  ;;  %v16745_v38 = vld [vmem:[#allocation2 + $0x214] sm:$0xf]  ;;  %v12464_v39 = vld [vmem:[#allocation2 + $0x21c] sm:$0xf0] }
 0x103   :  { %2754 = vmatpush.bf16.msrb.mxu0 %v12439_v63  ;;  %v1592_v19 = vpop.f32.mrf.mxu2  ;;  %v1557_v26 = vpop.f32.mrf.mxu0  ;;  %v12678_v63 = vld [vmem:[#allocation2 + $0x3c0] sm:$0xf]  ;;  %v12467_v61 = vor.u32 %v16745_v38, %v12464_v39  ;;  %v12428_v38 = vld [vmem:[#allocation2 + $0x1d4] sm:$0xf0] }
 0x104   :  { %2773 = vmatpush.bf16.msrb.mxu1 %v12535_v0  ;;  %v1593_v24 = vadd.f32 %v1592_v19, %v1574_v1  ;;  %v1611_v27 = vpop.f32.mrf.mxu3  ;;  %v1576_v31 = vpop.f32.mrf.mxu1  ;;  %v16800_v0 = vld [vmem:[#allocation2 + $0x3c8] sm:$0xf0]  ;;  %v12160_v19 = vld [vmem:[%s19956_s26 + $0x20] sm:$0xf0]  ;;  %v12190_v39 = vld [vmem:[%s19956_s26 + $0x40] sm:$0xf] }
 0x105   :  { %2792 = vmatpush.bf16.msrb.mxu2 %v12631_v48  ;;  %v1577_v35 = vadd.f32 %v1576_v31, %v1557_v26  ;;  %v16669_v26 = vld [vmem:[%s19956_s26 + $0x14] sm:$0xf]  ;;  %v12272_v31 = vld [vmem:[#allocation2 + $0x9c] sm:$0xf0]  ;;  %v18836_v47 = vor.u32 %v16668_v18, %v12160_v19 }
 0x106   :  { %2811 = vmatpush.bf16.msrb.mxu3 %v12727_v5  ;;  %v18802_v36 = vadd.f32 %v1611_v27, %v1593_v24  ;;  %1860 = vmatmul.bf16.gmra.mxu0 %v18740_v45  ;;  %v12499_v45 = vor.u32 %v16755_v42, %v12498_v40  ;;  %v16724_v5 = vld [vmem:[#allocation2 + $0x16c] sm:$0xf]  ;;  %v16672_v24 = vld [vmem:[%s19956_s26 + $0x24] sm:$0xf0]  ;;  %v12168_v27 = vld [vmem:[%s19956_s26 + $0x28] sm:$0xf0] }
 0x107   :  { %2755 = vmatpush.bf16.msrb.mxu0 %v12427_v10  ;;  %1879 = vmatmul.bf16.gmra.mxu1 %v18742_v56  ;;  %v12691_v56 = vor.u32 %v16803_v44, %v12690_v46  ;;  %v12383_v22 = vor.u32 %v16724_v5, %v12380_v7  ;;  %v16769_v46 = vld [vmem:[#allocation2 + $0x2d4] sm:$0xf]  ;;  %v12560_v44 = vld [vmem:[#allocation2 + $0x2dc] sm:$0xf0]  ;;  %v18841_v52 = vor.u32 %v16669_v26, %v12168_v27  ;;  %v16688_v26 = vld [vmem:[#allocation2 + $0x4c] sm:$0xf] }
 0x108   :  { %2774 = vmatpush.bf16.msrb.mxu1 %v12523_v14  ;;  %2726 = vmatmul.bf16.gmra.mxu2 %v18798_v28  ;;  %v12679_v14 = vor.u32 %v16800_v0, %v12678_v63  ;;  %v12563_v63 = vor.u32 %v16769_v46, %v12560_v44  ;;  %v12356_v0 = vld [vmem:[#allocation2 + $0x144] sm:$0xf0]  ;;  %v12236_v27 = vld [vmem:[#allocation2 + $0x54] sm:$0xf0]  ;;  %v16675_v44 = vld [vmem:[%s19956_s26 + $0x44] sm:$0xf] }
 0x109   :  { %2793 = vmatpush.bf16.msrb.mxu2 %v12619_v15  ;;  %2745 = vmatmul.bf16.gmra.mxu3 %v18800_v32  ;;  %v12158_v15 = vld [vmem:[%s19956_s26 + $0x8] sm:$0xf]  ;;  %v12239_v46 = vor.u32 %v16688_v26, %v12236_v27  ;;  %v12200_v26 = vld [vmem:[#allocation2 + $0xc] sm:$0xf0] }
 0x10a   :  { %2812 = vmatpush.bf16.msrb.mxu3 %v12715_v20  ;;  %v12166_v20 = vld [vmem:[%s19956_s26 + $0x10] sm:$0xf] }
 0x10b   :  { %2756 = vmatpush.bf16.msrb.mxu0 %v12415_v33  ;;  %v1595_v62 = vpop.f32.mrf.mxu2  ;;  %v1559_v48 = vpop.f32.mrf.mxu0  ;;  %v16721_v33 = vld [vmem:[#allocation2 + $0x154] sm:$0xf]  ;;  %v18838_v43 = vor.u32 %v16672_v24, %v12166_v20  ;;  %v16677_v24 = vld [vmem:[%s19956_s26 + $0x4c] sm:$0xf0] }
 0x10c   :  { %2775 = vmatpush.bf16.msrb.mxu1 %v12511_v34  ;;  %v1596_v1 = vadd.f32 %v1595_v62, %v1577_v35  ;;  %v1614_v2 = vpop.f32.mrf.mxu3  ;;  %v1578_v53 = vpop.f32.mrf.mxu1  ;;  %v18834_v35 = vor.u32 %v16671_v16, %v12158_v15  ;;  %v12260_v62 = vld [vmem:[#allocation2 + $0x84] sm:$0xf0]  ;;  %v12536_v15 = vld [vmem:[#allocation2 + $0x2ac] sm:$0xf0] }
 0x10d   :  { %2794 = vmatpush.bf16.msrb.mxu2 %v12607_v37  ;;  %v1579_v9 = vadd.f32 %v1578_v53, %v1559_v48  ;;  %v12368_v37 = vld [vmem:[#allocation2 + $0x15c] sm:$0xf0]  ;;  %v16766_v48 = vld [vmem:[#allocation2 + $0x2bc] sm:$0xf]  ;;  %v12263_v3 = vor.u32 %v16694_v50, %v12260_v62  ;;  %v16691_v53 = vld [vmem:[#allocation2 + $0x64] sm:$0xf] }
 0x10e   :  { %2813 = vmatpush.bf16.msrb.mxu3 %v12703_v41  ;;  %v18808_v10 = vadd.f32 %v1614_v2, %v1596_v1  ;;  %v12371_v60 = vor.u32 %v16721_v33, %v12368_v37  ;;  %v16742_v1 = vld [vmem:[#allocation2 + $0x1fc] sm:$0xf]  ;;  %v12548_v2 = vld [vmem:[#allocation2 + $0x2c4] sm:$0xf0]  ;;  %v12184_v33 = vld [vmem:[%s19956_s26 + $0x50] sm:$0xf0] }
 0x10f   :  { %2757 = vmatpush.bf16.msrb.mxu0 %v12403_v49  ;;  %v12551_v58 = vor.u32 %v16766_v48, %v12548_v2  ;;  %v16736_v37 = vld [vmem:[#allocation2 + $0x1cc] sm:$0xf]  ;;  %v16709_v50 = vld [vmem:[#allocation2 + $0xf4] sm:$0xf] }
 0x110   :  { %2776 = vmatpush.bf16.msrb.mxu1 %v12499_v45  ;;  %v12275_v45 = vor.u32 %v16697_v30, %v12272_v31  ;;  %v16674_v31 = vld [vmem:[%s19956_s26 + $0x3c] sm:$0xf] }
 0x111   :  { %2795 = vmatpush.bf16.msrb.mxu2 %v12595_v55 }
 0x112   :  { %2814 = vmatpush.bf16.msrb.mxu3 %v12691_v56  ;;  %v16718_v56 = vld [vmem:[#allocation2 + $0x13c] sm:$0xf] }
 0x113   :  { %2758 = vmatpush.bf16.msrb.mxu0 %v12391_v6  ;;  %v1597_v34 = vpop.f32.mrf.mxu2  ;;  %v1628_v42 = vpop.f32.mrf.mxu0  ;;  %v12359_v4 = vor.u32 %v16718_v56, %v12356_v0  ;;  %v12248_v6 = vld [vmem:[#allocation2 + $0x6c] sm:$0xf0]  ;;  %v12320_v0 = vld [vmem:[#allocation2 + $0xfc] sm:$0xf0] }
 0x114   :  { %2777 = vmatpush.bf16.msrb.mxu1 %v12487_v54  ;;  %v1598_v40 = vadd.f32 %v1597_v34, %v1579_v9  ;;  %v1616_v41 = vpop.f32.mrf.mxu3  ;;  %v1629_v49 = vadd.f32 %v1628_v42, %v18784_v57  ;;  %v1647_v59 = vpop.f32.mrf.mxu1  ;;  %v12452_v57 = vld [vmem:[#allocation2 + $0x204] sm:$0xf0]  ;;  %v16715_v54 = vld [vmem:[#allocation2 + $0x124] sm:$0xf]  ;;  %v12251_v19 = vor.u32 %v16691_v53, %v12248_v6  ;;  %v12332_v34 = vld [vmem:[#allocation2 + $0x114] sm:$0xf0] }
 0x115   :  { %2796 = vmatpush.bf16.msrb.mxu2 %v12583_v11  ;;  %v12455_v5 = vor.u32 %v16742_v1, %v12452_v57  ;;  %v16739_v9 = vld [vmem:[#allocation2 + $0x1e4] sm:$0xf]  ;;  %v12440_v11 = vld [vmem:[#allocation2 + $0x1ec] sm:$0xf0]  ;;  %v12347_v20 = vor.u32 %v16715_v54, %v12344_v8  ;;  %v16733_v1 = vld [vmem:[#allocation2 + $0x1b4] sm:$0xf] }
 0x116   :  { %2815 = vmatpush.bf16.msrb.mxu3 %v12679_v14  ;;  %v18843_v55 = vadd.f32 %v1616_v41, %v1598_v40  ;;  %v18845_v51 = vadd.f32 %v1647_v59, %v1629_v49  ;;  %2759 = vmatmul.bf16.vlgmr.msrb.gmra.mxu0 %v18834_v35  ;;  %v16763_v14 = vld [vmem:[#allocation2 + $0x2a4] sm:$0xf]  ;;  %v16760_v40 = vld [vmem:[#allocation2 + $0x28c] sm:$0xf]  ;;  %v12524_v41 = vld [vmem:[#allocation2 + $0x294] sm:$0xf0] }
 0x117   :  { %2827 = vmatpush.bf16.msra.mxu0 %v12287_v17  ;;  %2778 = vmatmul.bf16.vlgmr.msrb.gmra.mxu1 %v18836_v47  ;;  %v12539_v30 = vor.u32 %v16763_v14, %v12536_v15  ;;  %v16678_v42 = vld [vmem:[%s19956_s26 + $0x54] sm:$0xf0]  ;;  %v12192_v49 = vld [vmem:[%s19956_s26 + $0x58] sm:$0xf0]  ;;  %v12416_v57 = vld [vmem:[#allocation2 + $0x1bc] sm:$0xf0] }
 0x118   :  { %2846 = vmatpush.bf16.msra.mxu1 %v12383_v22  ;;  %2797 = vmatmul.bf16.vlgmr.msrb.gmra.mxu2 %v18838_v43  ;;  %v12443_v22 = vor.u32 %v16739_v9, %v12440_v11  ;;  %v12512_v53 = vld [vmem:[#allocation2 + $0x27c] sm:$0xf0]  ;;  %v12323_v9 = vor.u32 %v16709_v50, %v12320_v0  ;;  %v12419_v11 = vor.u32 %v16733_v1, %v12416_v57  ;;  %v16706_v14 = vld [vmem:[#allocation2 + $0xdc] sm:$0xf]  ;;  %v12764_v50 = vld [vmem:[#allocation2 + $0x474] sm:$0xf0] }
 0x119   :  { %2865 = vmatpush.bf16.msra.mxu2 %v12479_v23  ;;  %2816 = vmatmul.bf16.vlgmr.msrb.gmra.mxu3 %v18841_v52  ;;  %v12182_v23 = vld [vmem:[%s19956_s26 + $0x38] sm:$0xf] }
 0x11a   :  { %2884 = vmatpush.bf16.msra.mxu3 %v12575_v29  ;;  %v18880_v56 = vor.u32 %v16677_v24, %v12182_v23  ;;  %v16679_v24 = vld [vmem:[#allocation2 + $0x4] sm:$0xf]  ;;  %v12386_v57 = vld [vmem:[#allocation2 + $0x170] sm:$0xf] }
 0x11b   :  { %2828 = vmatpush.bf16.msra.mxu0 %v12275_v45  ;;  %v1666_v7 = vpop.f32.mrf.mxu2  ;;  %v1630_v12 = vpop.f32.mrf.mxu0  ;;  %v12431_v45 = vor.u32 %v16736_v37, %v12428_v38  ;;  %v12392_v38 = vld [vmem:[#allocation2 + $0x18c] sm:$0xf0] }
 0x11c   :  { %2847 = vmatpush.bf16.msra.mxu1 %v12371_v60  ;;  %v1685_v13 = vpop.f32.mrf.mxu3  ;;  %v1631_v16 = vadd.f32 %v1630_v12, %v18802_v36  ;;  %v1649_v17 = vpop.f32.mrf.mxu1  ;;  %v16712_v36 = vld [vmem:[#allocation2 + $0x10c] sm:$0xf]  ;;  %v16685_v60 = vld [vmem:[#allocation2 + $0x34] sm:$0xf]  ;;  %v16682_v12 = vld [vmem:[#allocation2 + $0x1c] sm:$0xf] }
 0x11d   :  { %2866 = vmatpush.bf16.msra.mxu2 %v12467_v61  ;;  %v18852_v18 = vadd.f32 %v1685_v13, %v1666_v7  ;;  %v12335_v59 = vor.u32 %v16712_v36, %v12332_v34  ;;  %v12224_v61 = vld [vmem:[#allocation2 + $0x3c] sm:$0xf0]  ;;  %v12212_v13 = vld [vmem:[#allocation2 + $0x24] sm:$0xf0] }
 0x11e   :  { %2885 = vmatpush.bf16.msra.mxu3 %v12563_v63  ;;  %v18860_v29 = vadd.f32 %v1649_v17, %v1631_v16  ;;  %v12527_v63 = vor.u32 %v16760_v40, %v12524_v41  ;;  %v12227_v8 = vor.u32 %v16685_v60, %v12224_v61  ;;  %v12308_v16 = vld [vmem:[#allocation2 + $0xe4] sm:$0xf0]  ;;  %v16730_v17 = vld [vmem:[#allocation2 + $0x19c] sm:$0xf]  ;;  %v12215_v23 = vor.u32 %v16682_v12, %v12212_v13  ;;  %v12488_v40 = vld [vmem:[#allocation2 + $0x24c] sm:$0xf0] }
 0x11f   :  { %2829 = vmatpush.bf16.msra.mxu0 %v12263_v3  ;;  %v18882_v3 = vor.u32 %v16674_v31, %v12184_v33  ;;  %v12311_v27 = vor.u32 %v16706_v14, %v12308_v16  ;;  %v12296_v31 = vld [vmem:[#allocation2 + $0xcc] sm:$0xf0]  ;;  %v16727_v33 = vld [vmem:[#allocation2 + $0x184] sm:$0xf]  ;;  %v12203_v61 = vor.u32 %v16679_v24, %v12200_v26  ;;  %v12752_v13 = vld [vmem:[#allocation2 + $0x45c] sm:$0xf0] }
 0x120   :  { %2848 = vmatpush.bf16.msra.mxu1 %v12359_v4  ;;  %v18884_v4 = vor.u32 %v16678_v42, %v12190_v39  ;;  %v16751_v39 = vld [vmem:[#allocation2 + $0x244] sm:$0xf]  ;;  %v12395_v1 = vor.u32 %v16727_v33, %v12392_v38  ;;  %v12278_v14 = vld [vmem:[#allocation2 + $0x98] sm:$0xf]  ;;  %v16814_v33 = vld [vmem:[#allocation2 + $0x43c] sm:$0xf] }
 0x121   :  { %2867 = vmatpush.bf16.msra.mxu2 %v12455_v5  ;;  %v16757_v5 = vld [vmem:[#allocation2 + $0x274] sm:$0xf]  ;;  %v12740_v38 = vld [vmem:[#allocation2 + $0x444] sm:$0xf0] }
 0x122   :  { %2886 = vmatpush.bf16.msra.mxu3 %v12551_v58  ;;  %v18889_v58 = vor.u32 %v16675_v44, %v12192_v49  ;;  %v12668_v44 = vld [vmem:[#allocation2 + $0x3b4] sm:$0xf0]  ;;  %v16820_v49 = vld [vmem:[#allocation2 + $0x46c] sm:$0xf] }
 0x123   :  { %2830 = vmatpush.bf16.msra.mxu0 %v12251_v19  ;;  %v1668_v62 = vpop.f32.mrf.mxu2  ;;  %v1633_v48 = vpop.f32.mrf.mxu0  ;;  %v12404_v19 = vld [vmem:[#allocation2 + $0x1a4] sm:$0xf0] }
 0x124   :  { %2849 = vmatpush.bf16.msra.mxu1 %v12347_v20  ;;  %v1687_v2 = vpop.f32.mrf.mxu3  ;;  %v1634_v6 = vadd.f32 %v1633_v48, %v18808_v10  ;;  %v1652_v54 = vpop.f32.mrf.mxu1  ;;  %v12515_v10 = vor.u32 %v16757_v5, %v12512_v53  ;;  %v16754_v20 = vld [vmem:[#allocation2 + $0x25c] sm:$0xf]  ;;  %v12407_v36 = vor.u32 %v16730_v17, %v12404_v19  ;;  %v12491_v5 = vor.u32 %v16751_v39, %v12488_v40  ;;  %v12374_v19 = vld [vmem:[#allocation2 + $0x158] sm:$0xf]  ;;  %v12266_v39 = vld [vmem:[#allocation2 + $0x80] sm:$0xf] }
 0x125   :  { %2868 = vmatpush.bf16.msra.mxu2 %v12443_v22  ;;  %v18887_v7 = vadd.f32 %v1687_v2, %v1668_v62  ;;  %v12500_v22 = vld [vmem:[#allocation2 + $0x264] sm:$0xf0]  ;;  %v12290_v62 = vld [vmem:[#allocation2 + $0xb0] sm:$0xf]  ;;  %v16726_v48 = vld [vmem:[#allocation2 + $0x178] sm:$0xf0] }
 0x126   :  { %2887 = vmatpush.bf16.msra.mxu3 %v12539_v30  ;;  %v18891_v15 = vadd.f32 %v1652_v54, %v1634_v6  ;;  %2764 = vmatmul.bf16.gmra.mxu0 %v18880_v56  ;;  %v16703_v30 = vld [vmem:[#allocation2 + $0xc4] sm:$0xf]  ;;  %v12503_v37 = vor.u32 %v16754_v20, %v12500_v22  ;;  %v12387_v54 = vor.u32 %v16726_v48, %v12386_v57  ;;  %v16696_v40 = vld [vmem:[#allocation2 + $0x88] sm:$0xf0] }
 0x127   :  { %2831 = vmatpush.bf16.msra.mxu0 %v12239_v46  ;;  %2783 = vmatmul.bf16.gmra.mxu1 %v18882_v3  ;;  %v16796_v46 = vld [vmem:[#allocation2 + $0x3ac] sm:$0xf]  ;;  %v12299_v0 = vor.u32 %v16703_v30, %v12296_v31  ;;  %v16723_v20 = vld [vmem:[#allocation2 + $0x160] sm:$0xf0]  ;;  %v16790_v30 = vld [vmem:[#allocation2 + $0x37c] sm:$0xf] }
 0x128   :  { %2850 = vmatpush.bf16.msra.mxu1 %v12335_v59  ;;  %2802 = vmatmul.bf16.gmra.mxu2 %v18884_v4  ;;  %v12671_v53 = vor.u32 %v16796_v46, %v12668_v44  ;;  %v12644_v31 = vld [vmem:[#allocation2 + $0x384] sm:$0xf0]  ;;  %v12743_v46 = vor.u32 %v16814_v33, %v12740_v38  ;;  %v12267_v44 = vor.u32 %v16696_v40, %v12266_v39  ;;  %v12230_v38 = vld [vmem:[#allocation2 + $0x38] sm:$0xf]  ;;  %v16687_v39 = vld [vmem:[#allocation2 + $0x40] sm:$0xf0] }
 0x129   :  { %2869 = vmatpush.bf16.msra.mxu2 %v12431_v45  ;;  %2821 = vmatmul.bf16.gmra.mxu3 %v18889_v58 }
 0x12a   :  { %2888 = vmatpush.bf16.msra.mxu3 %v12527_v63  ;;  %v16702_v63 = vld [vmem:[#allocation2 + $0xb8] sm:$0xf0] }
 0x12b   :  { %2832 = vmatpush.bf16.msra.mxu0 %v12227_v8  ;;  %v1671_v34 = vpop.f32.mrf.mxu2  ;;  %v1635_v41 = vpop.f32.mrf.mxu0  ;;  %v12291_v6 = vor.u32 %v16702_v63, %v12290_v62  ;;  %v16793_v8 = vld [vmem:[#allocation2 + $0x394] sm:$0xf]  ;;  %v12728_v62 = vld [vmem:[#allocation2 + $0x42c] sm:$0xf0]  ;;  %v12254_v63 = vld [vmem:[#allocation2 + $0x68] sm:$0xf] }
 0x12c   :  { %2851 = vmatpush.bf16.msra.mxu1 %v12323_v9  ;;  %v1690_v42 = vpop.f32.mrf.mxu3  ;;  %v1636_v59 = vadd.f32 %v1635_v41, %v18843_v55  ;;  %v1654_v45 = vpop.f32.mrf.mxu1  ;;  %v12767_v55 = vor.u32 %v16820_v49, %v12764_v50  ;;  %v12656_v9 = vld [vmem:[#allocation2 + $0x39c] sm:$0xf0]  ;;  %v16720_v41 = vld [vmem:[#allocation2 + $0x148] sm:$0xf0]  ;;  %v16787_v49 = vld [vmem:[#allocation2 + $0x364] sm:$0xf] }
 0x12d   :  { %2870 = vmatpush.bf16.msra.mxu2 %v12419_v11  ;;  %v18898_v60 = vadd.f32 %v1690_v42, %v1671_v34  ;;  %v16817_v11 = vld [vmem:[#allocation2 + $0x454] sm:$0xf]  ;;  %v12659_v26 = vor.u32 %v16793_v8, %v12656_v9  ;;  %v12647_v42 = vor.u32 %v16790_v30, %v12644_v31  ;;  %v12608_v30 = vld [vmem:[#allocation2 + $0x33c] sm:$0xf0] }
 0x12e   :  { %2889 = vmatpush.bf16.msra.mxu3 %v12515_v10  ;;  %v18900_v2 = vadd.f32 %v1654_v45, %v1636_v59  ;;  %v16699_v10 = vld [vmem:[#allocation2 + $0xa0] sm:$0xf0]  ;;  %v12632_v59 = vld [vmem:[#allocation2 + $0x36c] sm:$0xf0]  ;;  %v16805_v31 = vld [vmem:[#allocation2 + $0x3f4] sm:$0xf] }
 0x12f   :  { %2833 = vmatpush.bf16.msra.mxu0 %v12215_v23  ;;  %v16811_v45 = vld [vmem:[#allocation2 + $0x424] sm:$0xf] }
 0x130   :  { %2852 = vmatpush.bf16.msra.mxu1 %v12311_v27  ;;  %v12755_v27 = vor.u32 %v16817_v11, %v12752_v13  ;;  %v12731_v9 = vor.u32 %v16811_v45, %v12728_v62  ;;  %v12620_v13 = vld [vmem:[#allocation2 + $0x354] sm:$0xf0]  ;;  %v16778_v62 = vld [vmem:[#allocation2 + $0x31c] sm:$0xf] }
 0x131   :  { %2871 = vmatpush.bf16.msra.mxu2 %v12407_v36  ;;  %v12279_v36 = vor.u32 %v16699_v10, %v12278_v14  ;;  %v16808_v14 = vld [vmem:[#allocation2 + $0x40c] sm:$0xf] }
 0x132   :  { %2890 = vmatpush.bf16.msra.mxu3 %v12503_v37  ;;  %v12375_v37 = vor.u32 %v16723_v20, %v12374_v19  ;;  %v12242_v19 = vld [vmem:[#allocation2 + $0x50] sm:$0xf]  ;;  %v16690_v20 = vld [vmem:[#allocation2 + $0x58] sm:$0xf0] }
 0x133   :  { %2834 = vmatpush.bf16.msra.mxu0 %v12203_v61  ;;  %v1673_v12 = vpop.f32.mrf.mxu2  ;;  %v1704_v17 = vpop.f32.mrf.mxu0 }
 0x134   :  { %2853 = vmatpush.bf16.msra.mxu1 %v12299_v0  ;;  %v1692_v16 = vpop.f32.mrf.mxu3  ;;  %v1705_v23 = vadd.f32 %v1704_v17, %v18852_v18  ;;  %v1723_v24 = vpop.f32.mrf.mxu1  ;;  %v12362_v18 = vld [vmem:[#allocation2 + $0x140] sm:$0xf]  ;;  %v16693_v0 = vld [vmem:[#allocation2 + $0x70] sm:$0xf0]  ;;  %v12716_v17 = vld [vmem:[#allocation2 + $0x414] sm:$0xf0] }
 0x135   :  { %2872 = vmatpush.bf16.msra.mxu2 %v12395_v1  ;;  %v18902_v22 = vadd.f32 %v1692_v16, %v1673_v12  ;;  %v12363_v50 = vor.u32 %v16720_v41, %v12362_v18  ;;  %v12255_v11 = vor.u32 %v16693_v0, %v12254_v63  ;;  %v16784_v12 = vld [vmem:[#allocation2 + $0x34c] sm:$0xf]  ;;  %v12596_v63 = vld [vmem:[#allocation2 + $0x324] sm:$0xf0]  ;;  %v16802_v0 = vld [vmem:[#allocation2 + $0x3dc] sm:$0xf] }
 0x136   :  { %2891 = vmatpush.bf16.msra.mxu3 %v12491_v5  ;;  %v1724_v34 = vadd.f32 %v1723_v24, %v1705_v23  ;;  %2835 = vmatmul.bf16.vlgmr.msra.gmra.mxu0 %v18776_v21  ;;  %v12350_v5 = vld [vmem:[#allocation2 + $0x128] sm:$0xf]  ;;  %v12338_v23 = vld [vmem:[#allocation2 + $0x110] sm:$0xf]  ;;  %v12623_v24 = vor.u32 %v16784_v12, %v12620_v13  ;;  %v16799_v13 = vld [vmem:[#allocation2 + $0x3c4] sm:$0xf] }
 0x137   :  { %2903 = vmatpush.bf16.msrb.mxu0 %v12671_v53  ;;  %2854 = vmatmul.bf16.vlgmr.msra.gmra.mxu1 %v18778_v25  ;;  %v16717_v53 = vld [vmem:[#allocation2 + $0x130] sm:$0xf0] }
 0x138   :  { %2922 = vmatpush.bf16.msrb.mxu1 %v12767_v55  ;;  %2873 = vmatmul.bf16.vlgmr.msra.gmra.mxu2 %v18834_v35  ;;  %v12351_v16 = vor.u32 %v16717_v53, %v12350_v5  ;;  %v12218_v5 = vld [vmem:[#allocation2 + $0x20] sm:$0xf] }
 0x139   :  { %2941 = vmatpush.bf16.msrb.mxu2 %v12291_v6  ;;  %2892 = vmatmul.bf16.vlgmr.msra.gmra.mxu3 %v18836_v47  ;;  %v12314_v53 = vld [vmem:[#allocation2 + $0xe0] sm:$0xf] }
 0x13a   :  { %2960 = vmatpush.bf16.msrb.mxu3 %v12387_v54  ;;  %v12635_v54 = vor.u32 %v16787_v49, %v12632_v59 }
 0x13b   :  { %2904 = vmatpush.bf16.msrb.mxu0 %v12659_v26  ;;  %v1742_v61 = vpop.f32.mrf.mxu2  ;;  %v1706_v57 = vpop.f32.mrf.mxu0  ;;  %v12719_v26 = vor.u32 %v16808_v14, %v12716_v17  ;;  %v12680_v14 = vld [vmem:[#allocation2 + $0x3cc] sm:$0xf0] }
 0x13c   :  { %2923 = vmatpush.bf16.msrb.mxu1 %v12755_v27  ;;  %v1743_v1 = vadd.f32 %v1742_v61, %v1724_v34  ;;  %v1761_v48 = vpop.f32.mrf.mxu3  ;;  %v1707_v55 = vadd.f32 %v1706_v57, %v18887_v7  ;;  %v1725_v6 = vpop.f32.mrf.mxu1  ;;  %v16714_v7 = vld [vmem:[#allocation2 + $0x118] sm:$0xf0]  ;;  %v12243_v27 = vor.u32 %v16690_v20, %v12242_v19  ;;  %v16681_v19 = vld [vmem:[#allocation2 + $0x10] sm:$0xf0]  ;;  %v12302_v20 = vld [vmem:[#allocation2 + $0xc8] sm:$0xf] }
 0x13d   :  { %2942 = vmatpush.bf16.msrb.mxu2 %v12279_v36  ;;  %v16781_v36 = vld [vmem:[#allocation2 + $0x334] sm:$0xf]  ;;  %v12339_v34 = vor.u32 %v16714_v7, %v12338_v23 }
 0x13e   :  { %2961 = vmatpush.bf16.msrb.mxu3 %v12375_v37  ;;  %v18910_v8 = vadd.f32 %v1761_v48, %v1743_v1  ;;  %v1726_v10 = vadd.f32 %v1725_v6, %v1707_v55  ;;  %v12704_v37 = vld [vmem:[#allocation2 + $0x3fc] sm:$0xf0]  ;;  %v12611_v59 = vor.u32 %v16781_v36, %v12608_v30  ;;  %v12692_v48 = vld [vmem:[#allocation2 + $0x3e4] sm:$0xf0]  ;;  %v16708_v55 = vld [vmem:[#allocation2 + $0xe8] sm:$0xf0]  ;;  %v12599_v6 = vor.u32 %v16778_v62, %v12596_v63 }
 0x13f   :  { %2905 = vmatpush.bf16.msrb.mxu0 %v12647_v42  ;;  %v12326_v42 = vld [vmem:[#allocation2 + $0xf8] sm:$0xf]  ;;  %v12707_v61 = vor.u32 %v16805_v31, %v12704_v37  ;;  %v12315_v17 = vor.u32 %v16708_v55, %v12314_v53  ;;  %v16705_v23 = vld [vmem:[#allocation2 + $0xd0] sm:$0xf0]  ;;  %v16750_v36 = vld [vmem:[#allocation2 + $0x238] sm:$0xf0] }
 0x140   :  { %2924 = vmatpush.bf16.msrb.mxu1 %v12743_v46  ;;  %v16711_v46 = vld [vmem:[#allocation2 + $0x100] sm:$0xf0]  ;;  %v12578_v30 = vld [vmem:[#allocation2 + $0x2f0] sm:$0xf]  ;;  %v16774_v37 = vld [vmem:[#allocation2 + $0x2f8] sm:$0xf0] }
 0x141   :  { %2943 = vmatpush.bf16.msrb.mxu2 %v12267_v44  ;;  %v12327_v57 = vor.u32 %v16711_v46, %v12326_v42  ;;  %v12770_v42 = vld [vmem:[#allocation2 + $0x470] sm:$0xf]  ;;  %v16822_v46 = vld [vmem:[#allocation2 + $0x478] sm:$0xf0]  ;;  %v12470_v62 = vld [vmem:[#allocation2 + $0x218] sm:$0xf] }
 0x142   :  { %2962 = vmatpush.bf16.msrb.mxu3 %v12363_v50  ;;  %v12231_v50 = vor.u32 %v16687_v39, %v12230_v38  ;;  %v12674_v38 = vld [vmem:[#allocation2 + $0x3b0] sm:$0xf]  ;;  %v16798_v39 = vld [vmem:[#allocation2 + $0x3b8] sm:$0xf0]  ;;  %v16747_v63 = vld [vmem:[#allocation2 + $0x220] sm:$0xf0] }
 0x143   :  { %2906 = vmatpush.bf16.msrb.mxu0 %v12635_v54  ;;  %v1744_v33 = vpop.f32.mrf.mxu2  ;;  %v1709_v18 = vpop.f32.mrf.mxu0  ;;  %v16775_v54 = vld [vmem:[#allocation2 + $0x304] sm:$0xf] }
 0x144   :  { %2925 = vmatpush.bf16.msrb.mxu1 %v12731_v9  ;;  %v1745_v40 = vadd.f32 %v1744_v33, %v1726_v10  ;;  %v1763_v41 = vpop.f32.mrf.mxu3  ;;  %v1710_v44 = vadd.f32 %v1709_v18, %v18898_v60  ;;  %v1728_v49 = vpop.f32.mrf.mxu1  ;;  %v16684_v60 = vld [vmem:[#allocation2 + $0x28] sm:$0xf0]  ;;  %v12584_v9 = vld [vmem:[#allocation2 + $0x30c] sm:$0xf0]  ;;  %v12206_v10 = vld [vmem:[#allocation2 + $0x8] sm:$0xf]  ;;  %v12683_v18 = vor.u32 %v16799_v13, %v12680_v14 }
 0x145   :  { %2944 = vmatpush.bf16.msrb.mxu2 %v12255_v11  ;;  %v12695_v11 = vor.u32 %v16802_v0, %v12692_v48  ;;  %v12219_v12 = vor.u32 %v16684_v60, %v12218_v5  ;;  %v12566_v0 = vld [vmem:[#allocation2 + $0x2d8] sm:$0xf]  ;;  %v16795_v5 = vld [vmem:[#allocation2 + $0x3a0] sm:$0xf0] }
 0x146   :  { %2963 = vmatpush.bf16.msrb.mxu3 %v12351_v16  ;;  %v18913_v45 = vadd.f32 %v1763_v41, %v1745_v40  ;;  %v1729_v1 = vadd.f32 %v1728_v49, %v1710_v44  ;;  %2840 = vmatmul.bf16.gmra.mxu0 %v18798_v28  ;;  %v12207_v41 = vor.u32 %v16681_v19, %v12206_v10  ;;  %v12662_v48 = vld [vmem:[#allocation2 + $0x398] sm:$0xf]  ;;  %v12554_v19 = vld [vmem:[#allocation2 + $0x2c0] sm:$0xf] }
 0x147   :  { %2907 = vmatpush.bf16.msrb.mxu0 %v12623_v24  ;;  %2859 = vmatmul.bf16.gmra.mxu1 %v18800_v32  ;;  %v12303_v49 = vor.u32 %v16705_v23, %v12302_v20  ;;  %v12663_v10 = vor.u32 %v16795_v5, %v12662_v48  ;;  %v16768_v23 = vld [vmem:[#allocation2 + $0x2c8] sm:$0xf0]  ;;  %v16762_v5 = vld [vmem:[#allocation2 + $0x298] sm:$0xf0] }
 0x148   :  { %2926 = vmatpush.bf16.msrb.mxu1 %v12719_v26  ;;  %2878 = vmatmul.bf16.gmra.mxu2 %v18880_v56 }
 0x149   :  { %2945 = vmatpush.bf16.msrb.mxu2 %v12243_v27  ;;  %2897 = vmatmul.bf16.gmra.mxu3 %v18882_v3  ;;  %v12482_v27 = vld [vmem:[#allocation2 + $0x230] sm:$0xf] }
 0x14a   :  { %2964 = vmatpush.bf16.msrb.mxu3 %v12339_v34  ;;  %v12587_v34 = vor.u32 %v16775_v54, %v12584_v9  ;;  %v16819_v54 = vld [vmem:[#allocation2 + $0x460] sm:$0xf0] }
 0x14b   :  { %2908 = vmatpush.bf16.msrb.mxu0 %v12611_v59  ;;  %v1747_v16 = vpop.f32.mrf.mxu2  ;;  %v1711_v24 = vpop.f32.mrf.mxu0  ;;  %v12483_v59 = vor.u32 %v16750_v36, %v12482_v27  ;;  %v16816_v27 = vld [vmem:[#allocation2 + $0x448] sm:$0xf0] }
 0x14c   :  { %2927 = vmatpush.bf16.msrb.mxu1 %v12707_v61  ;;  %v1748_v7 = vadd.f32 %v1747_v16, %v1729_v1  ;;  %v1766_v26 = vpop.f32.mrf.mxu3  ;;  %v1712_v31 = vadd.f32 %v1711_v24, %v18902_v22  ;;  %v1730_v33 = vpop.f32.mrf.mxu1  ;;  %v12579_v61 = vor.u32 %v16774_v37, %v12578_v30  ;;  %v12675_v22 = vor.u32 %v16798_v39, %v12674_v38  ;;  %v12458_v16 = vld [vmem:[#allocation2 + $0x200] sm:$0xf]  ;;  %v16792_v24 = vld [vmem:[#allocation2 + $0x388] sm:$0xf0]  ;;  %v12446_v30 = vld [vmem:[#allocation2 + $0x1e8] sm:$0xf] }
 0x14d   :  { %2946 = vmatpush.bf16.msrb.mxu2 %v12231_v50  ;;  %v12771_v50 = vor.u32 %v16822_v46, %v12770_v42  ;;  %v12542_v37 = vld [vmem:[#allocation2 + $0x2a8] sm:$0xf]  ;;  %v16765_v38 = vld [vmem:[#allocation2 + $0x2b0] sm:$0xf0] }
 0x14e   :  { %2965 = vmatpush.bf16.msrb.mxu3 %v12327_v57  ;;  %v18920_v40 = vadd.f32 %v1766_v26, %v1748_v7  ;;  %v1731_v44 = vadd.f32 %v1730_v33, %v1712_v31  ;;  %v16771_v57 = vld [vmem:[#allocation2 + $0x2e0] sm:$0xf0]  ;;  %v12650_v7 = vld [vmem:[#allocation2 + $0x380] sm:$0xf]  ;;  %v12555_v31 = vor.u32 %v16768_v23, %v12554_v19  ;;  %v16789_v42 = vld [vmem:[#allocation2 + $0x370] sm:$0xf0] }
 0x14f   :  { %2909 = vmatpush.bf16.msrb.mxu0 %v12599_v6  ;;  %v12758_v6 = vld [vmem:[#allocation2 + $0x458] sm:$0xf]  ;;  %v12567_v14 = vor.u32 %v16771_v57, %v12566_v0  ;;  %v12746_v26 = vld [vmem:[#allocation2 + $0x440] sm:$0xf]  ;;  %v12651_v33 = vor.u32 %v16792_v24, %v12650_v7  ;;  %v12434_v0 = vld [vmem:[#allocation2 + $0x1d0] sm:$0xf] }
 0x150   :  { %2928 = vmatpush.bf16.msrb.mxu1 %v12695_v11  ;;  %v12471_v11 = vor.u32 %v16747_v63, %v12470_v62  ;;  %v12759_v20 = vor.u32 %v16819_v54, %v12758_v6  ;;  %v12530_v57 = vld [vmem:[#allocation2 + $0x290] sm:$0xf]  ;;  %v16810_v6 = vld [vmem:[#allocation2 + $0x418] sm:$0xf0]  ;;  %v16783_v23 = vld [vmem:[#allocation2 + $0x340] sm:$0xf0] }
 0x151   :  { %2947 = vmatpush.bf16.msrb.mxu2 %v12219_v12 }
 0x152   :  { %2966 = vmatpush.bf16.msrb.mxu3 %v12315_v17  ;;  %v16744_v17 = vld [vmem:[#allocation2 + $0x208] sm:$0xf0] }
 0x153   :  { %2910 = vmatpush.bf16.msrb.mxu0 %v12587_v34  ;;  %v1749_v1 = vpop.f32.mrf.mxu2  ;;  %v1780_v55 = vpop.f32.mrf.mxu0  ;;  %v12459_v36 = vor.u32 %v16744_v17, %v12458_v16  ;;  %v16741_v34 = vld [vmem:[#allocation2 + $0x1f0] sm:$0xf0]  ;;  %v16759_v16 = vld [vmem:[#allocation2 + $0x280] sm:$0xf0] }
 0x154   :  { %2929 = vmatpush.bf16.msrb.mxu1 %v12683_v18  ;;  %v1750_v60 = vadd.f32 %v1749_v1, %v1731_v44  ;;  %v1768_v53 = vpop.f32.mrf.mxu3  ;;  %v1799_v9 = vpop.f32.mrf.mxu1  ;;  %v12747_v18 = vor.u32 %v16816_v27, %v12746_v26  ;;  %v16738_v1 = vld [vmem:[#allocation2 + $0x1d8] sm:$0xf0]  ;;  %v12710_v27 = vld [vmem:[#allocation2 + $0x3f8] sm:$0xf] }
 0x155   :  { %2948 = vmatpush.bf16.msrb.mxu2 %v12207_v41  ;;  %v1800_v13 = vadd.f32 %v1799_v9, %v1780_v55  ;;  %v12638_v41 = vld [vmem:[#allocation2 + $0x368] sm:$0xf]  ;;  %v12722_v55 = vld [vmem:[#allocation2 + $0x410] sm:$0xf]  ;;  %v12435_v54 = vor.u32 %v16738_v1, %v12434_v0  ;;  %v12422_v9 = vld [vmem:[#allocation2 + $0x1b8] sm:$0xf] }
 0x156   :  { %2967 = vmatpush.bf16.msrb.mxu3 %v12303_v49  ;;  %v18922_v12 = vadd.f32 %v1768_v53, %v1750_v60  ;;  %2911 = vmatmul.bf16.vlgmr.msrb.gmra.mxu0 %v18838_v43  ;;  %v12734_v49 = vld [vmem:[#allocation2 + $0x428] sm:$0xf]  ;;  %v12639_v63 = vor.u32 %v16789_v42, %v12638_v41  ;;  %v12626_v60 = vld [vmem:[#allocation2 + $0x350] sm:$0xf]  ;;  %v16786_v53 = vld [vmem:[#allocation2 + $0x358] sm:$0xf0]  ;;  %v12723_v19 = vor.u32 %v16810_v6, %v12722_v55 }
 0x157   :  { %2979 = vmatpush.bf16.msra.mxu0 %v12483_v59  ;;  %2930 = vmatmul.bf16.vlgmr.msrb.gmra.mxu1 %v18841_v52  ;;  %v12506_v41 = vld [vmem:[#allocation2 + $0x260] sm:$0xf]  ;;  %v12494_v0 = vld [vmem:[#allocation2 + $0x248] sm:$0xf]  ;;  %v16753_v1 = vld [vmem:[#allocation2 + $0x250] sm:$0xf0] }
 0x158   :  { %2998 = vmatpush.bf16.msra.mxu1 %v12579_v61  ;;  %2949 = vmatmul.bf16.vlgmr.msrb.gmra.mxu2 %v18776_v21  ;;  %v12447_v61 = vor.u32 %v16741_v34, %v12446_v30 }
 0x159   :  { %3017 = vmatpush.bf16.msra.mxu2 %v12675_v22  ;;  %2968 = vmatmul.bf16.vlgmr.msrb.gmra.mxu3 %v18778_v25  ;;  %v16813_v25 = vld [vmem:[#allocation2 + $0x430] sm:$0xf0]  ;;  %v12543_v22 = vor.u32 %v16765_v38, %v12542_v37 }
 0x15a   :  { %3036 = vmatpush.bf16.msra.mxu3 %v12771_v50  ;;  %v12735_v48 = vor.u32 %v16813_v25, %v12734_v49  ;;  %v12698_v49 = vld [vmem:[#allocation2 + $0x3e0] sm:$0xf]  ;;  %v16804_v25 = vld [vmem:[#allocation2 + $0x3e8] sm:$0xf0] }
 0x15b   :  { %2980 = vmatpush.bf16.msra.mxu0 %v12471_v11  ;;  %v1818_v39 = vpop.f32.mrf.mxu2  ;;  %v1782_v46 = vpop.f32.mrf.mxu0  ;;  %v12531_v11 = vor.u32 %v16762_v5, %v12530_v57  ;;  %v12590_v57 = vld [vmem:[#allocation2 + $0x308] sm:$0xf]  ;;  %v12699_v5 = vor.u32 %v16804_v25, %v12698_v49  ;;  %v13194_v25 = vld [vmem:[#allocation2 + $0xbd0] sm:$0xf] }
 0x15c   :  { %2999 = vmatpush.bf16.msra.mxu1 %v12567_v14  ;;  %v1819_v21 = vadd.f32 %v1818_v39, %v1800_v13  ;;  %v1837_v44 = vpop.f32.mrf.mxu3  ;;  %v1801_v59 = vpop.f32.mrf.mxu1  ;;  %v12627_v13 = vor.u32 %v16786_v53, %v12626_v60  ;;  %v16735_v14 = vld [vmem:[#allocation2 + $0x1c0] sm:$0xf0]  ;;  %v12410_v39 = vld [vmem:[#allocation2 + $0x1a0] sm:$0xf]  ;;  %v16777_v60 = vld [vmem:[#allocation2 + $0x310] sm:$0xf0] }
 0x15d   :  { %3018 = vmatpush.bf16.msra.mxu2 %v12663_v10  ;;  %v1802_v50 = vadd.f32 %v1801_v59, %v1782_v46  ;;  %v12518_v10 = vld [vmem:[#allocation2 + $0x278] sm:$0xf]  ;;  %v12602_v46 = vld [vmem:[#allocation2 + $0x320] sm:$0xf]  ;;  %v16801_v53 = vld [vmem:[#allocation2 + $0x3d0] sm:$0xf0] }
 0x15e   :  { %3037 = vmatpush.bf16.msra.mxu3 %v12759_v20  ;;  %v18928_v62 = vadd.f32 %v1837_v44, %v1819_v21  ;;  %v12614_v20 = vld [vmem:[#allocation2 + $0x338] sm:$0xf]  ;;  %v16756_v21 = vld [vmem:[#allocation2 + $0x268] sm:$0xf0] }
 0x15f   :  { %2981 = vmatpush.bf16.msra.mxu0 %v12459_v36  ;;  %v16807_v36 = vld [vmem:[#allocation2 + $0x400] sm:$0xf0]  ;;  %v12615_v38 = vor.u32 %v16783_v23, %v12614_v20  ;;  %v16780_v44 = vld [vmem:[#allocation2 + $0x328] sm:$0xf0] }
 0x160   :  { %3000 = vmatpush.bf16.msra.mxu1 %v12555_v31  ;;  %v12423_v31 = vor.u32 %v16735_v14, %v12422_v9  ;;  %v12711_v42 = vor.u32 %v16807_v36, %v12710_v27  ;;  %v17013_v9 = vld [vmem:[#allocation2 + $0x9b0] sm:$0xf0] }
 0x161   :  { %3019 = vmatpush.bf16.msra.mxu2 %v12651_v33  ;;  %v12519_v33 = vor.u32 %v16759_v16, %v12518_v10  ;;  %v12495_v10 = vor.u32 %v16753_v1, %v12494_v0  ;;  %v17037_v16 = vld [vmem:[#allocation2 + $0xa70] sm:$0xf0] }
 0x162   :  { %3038 = vmatpush.bf16.msra.mxu3 %v12747_v18  ;;  %v16732_v18 = vld [vmem:[#allocation2 + $0x1a8] sm:$0xf0] }
 0x163   :  { %2982 = vmatpush.bf16.msra.mxu0 %v12447_v61  ;;  %v1820_v17 = vpop.f32.mrf.mxu2  ;;  %v1785_v24 = vpop.f32.mrf.mxu0  ;;  %v12411_v59 = vor.u32 %v16732_v18, %v12410_v39  ;;  %v12398_v61 = vld [vmem:[#allocation2 + $0x188] sm:$0xf]  ;;  %v13002_v39 = vld [vmem:[#allocation2 + $0xa50] sm:$0xf] }
 0x164   :  { %3001 = vmatpush.bf16.msra.mxu1 %v12543_v22  ;;  %v1821_v7 = vadd.f32 %v1820_v17, %v1802_v50  ;;  %v1839_v26 = vpop.f32.mrf.mxu3  ;;  %v1804_v30 = vpop.f32.mrf.mxu1  ;;  %v16729_v22 = vld [vmem:[#allocation2 + $0x190] sm:$0xf0]  ;;  %v12507_v50 = vor.u32 %v16756_v21, %v12506_v41  ;;  %v13110_v17 = vld [vmem:[#allocation2 + $0xb28] sm:$0xf]  ;;  %v17034_v41 = vld [vmem:[#allocation2 + $0xa58] sm:$0xf0] }
 0x165   :  { %3020 = vmatpush.bf16.msra.mxu2 %v12639_v63  ;;  %v1805_v34 = vadd.f32 %v1804_v30, %v1785_v24  ;;  %v12603_v63 = vor.u32 %v16780_v44, %v12602_v46  ;;  %v12399_v14 = vor.u32 %v16729_v22, %v12398_v61  ;;  %v13206_v24 = vld [vmem:[#allocation2 + $0xbe8] sm:$0xf]  ;;  %v17058_v21 = vld [vmem:[#allocation2 + $0xb18] sm:$0xf0]  ;;  %v13003_v0 = vor.u32 %v17034_v41, %v13002_v39  ;;  %v17025_v41 = vld [vmem:[#allocation2 + $0xa10] sm:$0xf0] }
 0x166   :  { %3039 = vmatpush.bf16.msra.mxu3 %v12735_v48  ;;  %v18930_v37 = vadd.f32 %v1839_v26, %v1821_v7  ;;  %2916 = vmatmul.bf16.gmra.mxu0 %v18884_v4  ;;  %v12591_v7 = vor.u32 %v16777_v60, %v12590_v57  ;;  %v17085_v26 = vld [vmem:[#allocation2 + $0xbf0] sm:$0xf0]  ;;  %v12894_v57 = vld [vmem:[#allocation2 + $0x978] sm:$0xf]  ;;  %v12966_v39 = vld [vmem:[#allocation2 + $0xa08] sm:$0xf] }
 0x167   :  { %2983 = vmatpush.bf16.msra.mxu0 %v12435_v54  ;;  %2935 = vmatmul.bf16.gmra.mxu1 %v18889_v58  ;;  %v12918_v54 = vld [vmem:[#allocation2 + $0x9a8] sm:$0xf] }
 0x168   :  { %3002 = vmatpush.bf16.msra.mxu1 %v12531_v11  ;;  %2954 = vmatmul.bf16.gmra.mxu2 %v18798_v28  ;;  %v12686_v28 = vld [vmem:[#allocation2 + $0x3c8] sm:$0xf]  ;;  %v12919_v36 = vor.u32 %v17013_v9, %v12918_v54 }
 0x169   :  { %3021 = vmatpush.bf16.msra.mxu2 %v12627_v13  ;;  %2973 = vmatmul.bf16.gmra.mxu3 %v18800_v32  ;;  %v13014_v11 = vld [vmem:[#allocation2 + $0xa68] sm:$0xf]  ;;  %v12687_v27 = vor.u32 %v16801_v53, %v12686_v28  ;;  %v17031_v53 = vld [vmem:[#allocation2 + $0xa40] sm:$0xf0] }
 0x16a   :  { %3040 = vmatpush.bf16.msra.mxu3 %v12723_v19  ;;  %v17061_v19 = vld [vmem:[#allocation2 + $0xb30] sm:$0xf0]  ;;  %v13015_v30 = vor.u32 %v17037_v16, %v13014_v11 }
 0x16b   :  { %2984 = vmatpush.bf16.msra.mxu0 %v12423_v31  ;;  %v1823_v48 = vpop.f32.mrf.mxu2  ;;  %v1787_v6 = vpop.f32.mrf.mxu0  ;;  %v13111_v31 = vor.u32 %v17061_v19, %v13110_v17  ;;  %v17028_v17 = vld [vmem:[#allocation2 + $0xa28] sm:$0xf0] }
 0x16c   :  { %3003 = vmatpush.bf16.msra.mxu1 %v12519_v33  ;;  %v1824_v55 = vadd.f32 %v1823_v48, %v1805_v34  ;;  %v1842_v32 = vpop.f32.mrf.mxu3  ;;  %v1806_v13 = vpop.f32.mrf.mxu1  ;;  %v13207_v33 = vor.u32 %v17085_v26, %v13206_v24  ;;  %v12906_v34 = vld [vmem:[#allocation2 + $0x990] sm:$0xf]  ;;  %v17007_v48 = vld [vmem:[#allocation2 + $0x980] sm:$0xf0]  ;;  %v17052_v19 = vld [vmem:[#allocation2 + $0xae8] sm:$0xf0] }
 0x16d   :  { %3022 = vmatpush.bf16.msra.mxu2 %v12615_v38  ;;  %v1807_v20 = vadd.f32 %v1806_v13, %v1787_v6  ;;  %v17010_v38 = vld [vmem:[#allocation2 + $0x998] sm:$0xf0]  ;;  %v17055_v6 = vld [vmem:[#allocation2 + $0xb00] sm:$0xf0]  ;;  %v12895_v54 = vor.u32 %v17007_v48, %v12894_v57  ;;  %v12882_v13 = vld [vmem:[#allocation2 + $0x960] sm:$0xf] }
 0x16e   :  { %3041 = vmatpush.bf16.msra.mxu3 %v12711_v42  ;;  %v18936_v23 = vadd.f32 %v1842_v32, %v1824_v55  ;;  %v13098_v42 = vld [vmem:[#allocation2 + $0xb10] sm:$0xf]  ;;  %v13086_v55 = vld [vmem:[#allocation2 + $0xaf8] sm:$0xf]  ;;  %v17079_v32 = vld [vmem:[#allocation2 + $0xbc0] sm:$0xf0] }
 0x16f   :  { %2985 = vmatpush.bf16.msra.mxu0 %v12411_v59  ;;  %v17082_v59 = vld [vmem:[#allocation2 + $0xbd8] sm:$0xf0]  ;;  %v13099_v1 = vor.u32 %v17058_v21, %v13098_v42  ;;  %v13087_v11 = vor.u32 %v17055_v6, %v13086_v55  ;;  %v17076_v24 = vld [vmem:[#allocation2 + $0xba8] sm:$0xf0]  ;;  %v13062_v42 = vld [vmem:[#allocation2 + $0xac8] sm:$0xf] }
 0x170   :  { %3004 = vmatpush.bf16.msra.mxu1 %v12507_v50  ;;  %v12907_v50 = vor.u32 %v17010_v38, %v12906_v34  ;;  %v13195_v28 = vor.u32 %v17082_v59, %v13194_v25  ;;  %v12870_v34 = vld [vmem:[#allocation2 + $0x948] sm:$0xf]  ;;  %v17001_v38 = vld [vmem:[#allocation2 + $0x950] sm:$0xf0]  ;;  %v12858_v59 = vld [vmem:[#allocation2 + $0x930] sm:$0xf] }
 0x171   :  { %3023 = vmatpush.bf16.msra.mxu2 %v12603_v63  ;;  %v17049_v21 = vld [vmem:[#allocation2 + $0xad0] sm:$0xf0]  ;;  %v13050_v57 = vld [vmem:[#allocation2 + $0xab0] sm:$0xf]  ;;  %v17046_v48 = vld [vmem:[#allocation2 + $0xab8] sm:$0xf0] }
 0x172   :  { %3042 = vmatpush.bf16.msra.mxu3 %v12699_v5  ;;  %v12990_v5 = vld [vmem:[#allocation2 + $0xa38] sm:$0xf]  ;;  %v13063_v25 = vor.u32 %v17049_v21, %v13062_v42  ;;  %v13146_v55 = vld [vmem:[#allocation2 + $0xb70] sm:$0xf]  ;;  %v17070_v6 = vld [vmem:[#allocation2 + $0xb78] sm:$0xf0] }
 0x173   :  { %2986 = vmatpush.bf16.msra.mxu0 %v12399_v14  ;;  %v1825_v18 = vpop.f32.mrf.mxu2  ;;  %v1856_v49 = vpop.f32.mrf.mxu0  ;;  %v12991_v9 = vor.u32 %v17031_v53, %v12990_v5  ;;  %v12978_v14 = vld [vmem:[#allocation2 + $0xa20] sm:$0xf]  ;;  %v13398_v42 = vld [vmem:[#allocation2 + $0xd68] sm:$0xf] }
 0x174   :  { %3005 = vmatpush.bf16.msra.mxu1 %v12495_v10  ;;  %v1826_v46 = vadd.f32 %v1825_v18, %v1807_v20  ;;  %v1844_v44 = vpop.f32.mrf.mxu3  ;;  %v1857_v61 = vadd.f32 %v1856_v49, %v18928_v62  ;;  %v1875_v22 = vpop.f32.mrf.mxu1  ;;  %v13182_v62 = vld [vmem:[#allocation2 + $0xbb8] sm:$0xf]  ;;  %v12967_v49 = vor.u32 %v17025_v41, %v12966_v39  ;;  %v17109_v41 = vld [vmem:[#allocation2 + $0xcb0] sm:$0xf0] }
 0x175   :  { %3024 = vmatpush.bf16.msra.mxu2 %v12591_v7  ;;  %v13183_v16 = vor.u32 %v17079_v32, %v13182_v62 }
 0x176   :  { %3043 = vmatpush.bf16.msra.mxu3 %v12687_v27  ;;  %v18939_v63 = vadd.f32 %v1844_v44, %v1826_v46  ;;  %v18941_v60 = vadd.f32 %v1875_v22, %v1857_v61  ;;  %2987 = vmatmul.bf16.vlgmr.msra.gmra.mxu0 %v18834_v35  ;;  %v17004_v35 = vld [vmem:[#allocation2 + $0x968] sm:$0xf0]  ;;  %v17073_v46 = vld [vmem:[#allocation2 + $0xb90] sm:$0xf0]  ;;  %v12871_v44 = vor.u32 %v17001_v38, %v12870_v34  ;;  %v16998_v61 = vld [vmem:[#allocation2 + $0x938] sm:$0xf0] }
 0x177   :  { %4089 = vmatpush.bf16.msrb.mxu0 %v12919_v36  ;;  %3006 = vmatmul.bf16.vlgmr.msra.gmra.mxu1 %v18836_v47  ;;  %v13074_v47 = vld [vmem:[#allocation2 + $0xae0] sm:$0xf]  ;;  %v12883_v36 = vor.u32 %v17004_v35, %v12882_v13  ;;  %v12954_v22 = vld [vmem:[#allocation2 + $0x9f0] sm:$0xf]  ;;  %v13051_v13 = vor.u32 %v17046_v48, %v13050_v57  ;;  %v12846_v35 = vld [vmem:[#allocation2 + $0x918] sm:$0xf] }
 0x178   :  { %4108 = vmatpush.bf16.msrb.mxu1 %v13015_v30  ;;  %3025 = vmatmul.bf16.vlgmr.msra.gmra.mxu2 %v18838_v43  ;;  %v17064_v34 = vld [vmem:[#allocation2 + $0xb48] sm:$0xf0]  ;;  %v16982_v57 = vld [vmem:[%s19956_s26 + $0xd4] sm:$0xf0] }
 0x179   :  { %4127 = vmatpush.bf16.msrb.mxu2 %v13111_v31  ;;  %3044 = vmatmul.bf16.vlgmr.msra.gmra.mxu3 %v18841_v52  ;;  %v13170_v52 = vld [vmem:[#allocation2 + $0xba0] sm:$0xf]  ;;  %v12979_v31 = vor.u32 %v17028_v17, %v12978_v14  ;;  %v16995_v14 = vld [vmem:[#allocation2 + $0x920] sm:$0xf0] }
 0x17a   :  { %4146 = vmatpush.bf16.msrb.mxu3 %v13207_v33  ;;  %v13075_v33 = vor.u32 %v17052_v19, %v13074_v47  ;;  %v17019_v17 = vld [vmem:[#allocation2 + $0x9e0] sm:$0xf0]  ;;  %v13134_v19 = vld [vmem:[#allocation2 + $0xb58] sm:$0xf] }
 0x17b   :  { %4090 = vmatpush.bf16.msrb.mxu0 %v12907_v50  ;;  %v2722_v10 = vpop.f32.mrf.mxu2  ;;  %v1858_v20 = vpop.f32.mrf.mxu0  ;;  %v17043_v47 = vld [vmem:[#allocation2 + $0xaa0] sm:$0xf0] }
 0x17c   :  { %4109 = vmatpush.bf16.msrb.mxu1 %v13003_v0  ;;  %v2723_v43 = vadd.f32 %v2722_v10, %v18845_v51  ;;  %v2741_v7 = vpop.f32.mrf.mxu3  ;;  %v1859_v26 = vadd.f32 %v1858_v20, %v18930_v37  ;;  %v1877_v27 = vpop.f32.mrf.mxu1  ;;  %v13171_v51 = vor.u32 %v17076_v24, %v13170_v52  ;;  %v13158_v37 = vld [vmem:[#allocation2 + $0xb88] sm:$0xf]  ;;  %v12942_v10 = vld [vmem:[#allocation2 + $0x9d8] sm:$0xf]  ;;  %v12847_v20 = vor.u32 %v16995_v14, %v12846_v35  ;;  %v16992_v52 = vld [vmem:[#allocation2 + $0x908] sm:$0xf0] }
 0x17d   :  { %4128 = vmatpush.bf16.msrb.mxu2 %v13099_v1  ;;  %v13159_v0 = vor.u32 %v17073_v46, %v13158_v37  ;;  %v17022_v1 = vld [vmem:[#allocation2 + $0x9f8] sm:$0xf0]  ;;  %v13386_v14 = vld [vmem:[#allocation2 + $0xd50] sm:$0xf] }
 0x17e   :  { %4147 = vmatpush.bf16.msrb.mxu3 %v13195_v28  ;;  %v18949_v30 = vadd.f32 %v2741_v7, %v2723_v43  ;;  %v18951_v18 = vadd.f32 %v1877_v27, %v1859_v26  ;;  %v17067_v43 = vld [vmem:[#allocation2 + $0xb60] sm:$0xf0]  ;;  %v12834_v7 = vld [vmem:[#allocation2 + $0x900] sm:$0xf]  ;;  %v17016_v27 = vld [vmem:[#allocation2 + $0x9c8] sm:$0xf0] }
 0x17f   :  { %4091 = vmatpush.bf16.msrb.mxu0 %v12895_v54  ;;  %v12859_v54 = vor.u32 %v16998_v61, %v12858_v59  ;;  %v12930_v26 = vld [vmem:[#allocation2 + $0x9c0] sm:$0xf]  ;;  %v12835_v46 = vor.u32 %v16992_v52, %v12834_v7  ;;  %v17106_v35 = vld [vmem:[#allocation2 + $0xc98] sm:$0xf0] }
 0x180   :  { %4110 = vmatpush.bf16.msrb.mxu1 %v12991_v9  ;;  %v12931_v61 = vor.u32 %v17016_v27, %v12930_v26 }
 0x181   :  { %4129 = vmatpush.bf16.msrb.mxu2 %v13087_v11  ;;  %v12955_v11 = vor.u32 %v17022_v1, %v12954_v22 }
 0x182   :  { %4148 = vmatpush.bf16.msrb.mxu3 %v13183_v16 }
 0x183   :  { %4092 = vmatpush.bf16.msrb.mxu0 %v12883_v36  ;;  %v2724_v50 = vpop.f32.mrf.mxu2  ;;  %v1861_v28 = vpop.f32.mrf.mxu0  ;;  %v13026_v36 = vld [vmem:[#allocation2 + $0xa80] sm:$0xf] }
 0x184   :  { %4111 = vmatpush.bf16.msrb.mxu1 %v12979_v31  ;;  %v2725_v5 = vadd.f32 %v2724_v50, %v18860_v29  ;;  %v2743_v53 = vpop.f32.mrf.mxu3  ;;  %v1862_v62 = vadd.f32 %v1861_v28, %v18936_v23  ;;  %v1880_v32 = vpop.f32.mrf.mxu1  ;;  %v13147_v29 = vor.u32 %v17070_v6, %v13146_v55  ;;  %v13038_v23 = vld [vmem:[#allocation2 + $0xa98] sm:$0xf]  ;;  %v12788_v28 = vld [vmem:[%s19956_s26 + $0xd8] sm:$0xf0] }
 0x185   :  { %4130 = vmatpush.bf16.msrb.mxu2 %v13075_v33  ;;  %v13039_v24 = vor.u32 %v17043_v47, %v13038_v23  ;;  %v17040_v33 = vld [vmem:[#allocation2 + $0xa88] sm:$0xf0]  ;;  %v13016_v50 = vld [vmem:[#allocation2 + $0xa74] sm:$0xf0]  ;;  %v17009_v23 = vld [vmem:[#allocation2 + $0x994] sm:$0xf] }
 0x186   :  { %4149 = vmatpush.bf16.msrb.mxu3 %v13171_v51  ;;  %v18955_v9 = vadd.f32 %v2743_v53, %v2725_v5  ;;  %v18957_v16 = vadd.f32 %v1880_v32, %v1862_v62  ;;  %2992 = vmatmul.bf16.gmra.mxu0 %v18880_v56  ;;  %v12943_v56 = vor.u32 %v17019_v17, %v12942_v10  ;;  %v13302_v51 = vld [vmem:[#allocation2 + $0xca8] sm:$0xf]  ;;  %v16979_v5 = vld [vmem:[%s19956_s26 + $0xc4] sm:$0xf]  ;;  %v12794_v53 = vld [vmem:[%s19956_s26 + $0xc8] sm:$0xf] }
 0x187   :  { %4093 = vmatpush.bf16.msrb.mxu0 %v12871_v44  ;;  %3011 = vmatmul.bf16.gmra.mxu1 %v18882_v3  ;;  %v13135_v3 = vor.u32 %v17067_v43, %v13134_v19  ;;  %v17133_v44 = vld [vmem:[#allocation2 + $0xd70] sm:$0xf0]  ;;  %v13027_v22 = vor.u32 %v17040_v33, %v13026_v36  ;;  %v13303_v48 = vor.u32 %v17109_v41, %v13302_v51  ;;  %v16983_v62 = vld [vmem:[%s19956_s26 + $0xdc] sm:$0xf0]  ;;  %v16980_v32 = vld [vmem:[%s19956_s26 + $0xcc] sm:$0xf] }
 0x188   :  { %4112 = vmatpush.bf16.msrb.mxu1 %v12967_v49  ;;  %3030 = vmatmul.bf16.gmra.mxu2 %v18884_v4  ;;  %v13122_v4 = vld [vmem:[#allocation2 + $0xb40] sm:$0xf]  ;;  %v17012_v49 = vld [vmem:[#allocation2 + $0x9ac] sm:$0xf]  ;;  %v13399_v55 = vor.u32 %v17133_v44, %v13398_v42  ;;  %v17130_v17 = vld [vmem:[#allocation2 + $0xd58] sm:$0xf0]  ;;  %v18996_v7 = vor.u32 %v16979_v5, %v12788_v28  ;;  %v18998_v52 = vor.u32 %v16983_v62, %v12794_v53 }
 0x189   :  { %4131 = vmatpush.bf16.msrb.mxu2 %v13063_v25  ;;  %3049 = vmatmul.bf16.gmra.mxu3 %v18889_v58  ;;  %v12920_v25 = vld [vmem:[#allocation2 + $0x9b4] sm:$0xf0]  ;;  %v13123_v1 = vor.u32 %v17064_v34, %v13122_v4  ;;  %v12908_v47 = vld [vmem:[#allocation2 + $0x99c] sm:$0xf0]  ;;  %v17103_v34 = vld [vmem:[#allocation2 + $0xc80] sm:$0xf0] }
 0x18a   :  { %4150 = vmatpush.bf16.msrb.mxu3 %v13159_v0  ;;  %v12923_v6 = vor.u32 %v17012_v49, %v12920_v25  ;;  %v12911_v33 = vor.u32 %v17009_v23, %v12908_v47  ;;  %v13278_v4 = vld [vmem:[#allocation2 + $0xc78] sm:$0xf]  ;;  %v17127_v51 = vld [vmem:[#allocation2 + $0xd40] sm:$0xf0]  ;;  %v17006_v41 = vld [vmem:[#allocation2 + $0x97c] sm:$0xf] }
 0x18b   :  { %4094 = vmatpush.bf16.msrb.mxu0 %v12859_v54  ;;  %v2727_v31 = vpop.f32.mrf.mxu2  ;;  %v1863_v58 = vpop.f32.mrf.mxu0  ;;  %v12796_v54 = vld [vmem:[%s19956_s26 + $0xe0] sm:$0xf0]  ;;  %v12896_v42 = vld [vmem:[#allocation2 + $0x984] sm:$0xf0]  ;;  %v13266_v49 = vld [vmem:[#allocation2 + $0xc60] sm:$0xf] }
 0x18c   :  { %4113 = vmatpush.bf16.msrb.mxu1 %v12955_v11  ;;  %v2728_v38 = vadd.f32 %v2727_v31, %v18891_v15  ;;  %v2746_v39 = vpop.f32.mrf.mxu3  ;;  %v1864_v21 = vadd.f32 %v1863_v58, %v18939_v63  ;;  %v1882_v37 = vpop.f32.mrf.mxu1  ;;  %v17036_v15 = vld [vmem:[#allocation2 + $0xa6c] sm:$0xf]  ;;  %v12786_v63 = vld [vmem:[%s19956_s26 + $0xc0] sm:$0xf]  ;;  %v19001_v36 = vor.u32 %v16980_v32, %v12796_v54  ;;  %v12899_v44 = vor.u32 %v17006_v41, %v12896_v42  ;;  %v17027_v28 = vld [vmem:[#allocation2 + $0xa24] sm:$0xf] }
 0x18d   :  { %4132 = vmatpush.bf16.msrb.mxu2 %v13051_v13  ;;  %v13019_v11 = vor.u32 %v17036_v15, %v13016_v50  ;;  %v13290_v13 = vld [vmem:[#allocation2 + $0xc90] sm:$0xf]  ;;  %v17100_v25 = vld [vmem:[#allocation2 + $0xc68] sm:$0xf0] }
 0x18e   :  { %4151 = vmatpush.bf16.msrb.mxu3 %v13147_v29  ;;  %v18965_v59 = vadd.f32 %v2746_v39, %v2728_v38  ;;  %v18967_v0 = vadd.f32 %v1882_v37, %v1864_v21  ;;  %v18993_v29 = vor.u32 %v16982_v57, %v12786_v63  ;;  %v13291_v31 = vor.u32 %v17106_v35, %v13290_v13  ;;  %v13374_v38 = vld [vmem:[#allocation2 + $0xd38] sm:$0xf]  ;;  %v12992_v21 = vld [vmem:[#allocation2 + $0xa44] sm:$0xf0]  ;;  %v17124_v50 = vld [vmem:[#allocation2 + $0xd28] sm:$0xf0] }
 0x18f   :  { %4095 = vmatpush.bf16.msrb.mxu0 %v12847_v20  ;;  %v13279_v37 = vor.u32 %v17103_v34, %v13278_v4  ;;  %v12884_v63 = vld [vmem:[#allocation2 + $0x96c] sm:$0xf0]  ;;  %v13267_v62 = vor.u32 %v17100_v25, %v13266_v49  ;;  %v12810_v13 = vld [vmem:[%s19956_s26 + $0xf0] sm:$0xf]  ;;  %v16988_v35 = vld [vmem:[%s19956_s26 + $0x104] sm:$0xf0] }
 0x190   :  { %4114 = vmatpush.bf16.msrb.mxu1 %v12943_v56  ;;  %v17033_v56 = vld [vmem:[#allocation2 + $0xa54] sm:$0xf]  ;;  %v12980_v53 = vld [vmem:[#allocation2 + $0xa2c] sm:$0xf0]  ;;  %v16985_v47 = vld [vmem:[%s19956_s26 + $0xf4] sm:$0xf]  ;;  %v19036_v42 = vor.u32 %v16988_v35, %v12810_v13 }
 0x191   :  { %4133 = vmatpush.bf16.msrb.mxu2 %v13039_v24  ;;  %v13004_v24 = vld [vmem:[#allocation2 + $0xa5c] sm:$0xf0]  ;;  %v12983_v23 = vor.u32 %v17027_v28, %v12980_v53  ;;  %v12820_v4 = vld [vmem:[%s19956_s26 + $0x110] sm:$0xf0]  ;;  %v16994_v13 = vld [vmem:[#allocation2 + $0x91c] sm:$0xf] }
 0x192   :  { %4152 = vmatpush.bf16.msrb.mxu3 %v13135_v3  ;;  %v13007_v39 = vor.u32 %v17033_v56, %v13004_v24  ;;  %v12872_v56 = vld [vmem:[#allocation2 + $0x954] sm:$0xf0]  ;;  %v12818_v24 = vld [vmem:[%s19956_s26 + $0xf8] sm:$0xf]  ;;  %v12848_v35 = vld [vmem:[#allocation2 + $0x924] sm:$0xf0] }
 0x193   :  { %4096 = vmatpush.bf16.msrb.mxu0 %v12835_v46  ;;  %v2729_v10 = vpop.f32.mrf.mxu2  ;;  %v2760_v20 = vpop.f32.mrf.mxu0  ;;  %v13375_v46 = vor.u32 %v17127_v51, %v13374_v38  ;;  %v13338_v51 = vld [vmem:[#allocation2 + $0xcf0] sm:$0xf] }
 0x194   :  { %4115 = vmatpush.bf16.msrb.mxu1 %v12931_v61  ;;  %v2730_v19 = vadd.f32 %v2729_v10, %v18900_v2  ;;  %v2748_v43 = vpop.f32.mrf.mxu3  ;;  %v2761_v26 = vadd.f32 %v2760_v20, %v18949_v30  ;;  %v2779_v27 = vpop.f32.mrf.mxu1  ;;  %v13387_v2 = vor.u32 %v17130_v17, %v13386_v14  ;;  %v17030_v30 = vld [vmem:[#allocation2 + $0xa3c] sm:$0xf]  ;;  %v13362_v61 = vld [vmem:[#allocation2 + $0xd20] sm:$0xf]  ;;  %v13254_v14 = vld [vmem:[#allocation2 + $0xc48] sm:$0xf] }
 0x195   :  { %4134 = vmatpush.bf16.msrb.mxu2 %v13027_v22  ;;  %v12995_v15 = vor.u32 %v17030_v30, %v12992_v21  ;;  %v13363_v54 = vor.u32 %v17124_v50, %v13362_v61  ;;  %v17097_v10 = vld [vmem:[#allocation2 + $0xc50] sm:$0xf0]  ;;  %v17000_v20 = vld [vmem:[#allocation2 + $0x94c] sm:$0xf]  ;;  %v17118_v21 = vld [vmem:[#allocation2 + $0xcf8] sm:$0xf0] }
 0x196   :  { %4153 = vmatpush.bf16.msrb.mxu3 %v13123_v1  ;;  %v19003_v3 = vadd.f32 %v2748_v43, %v2730_v19  ;;  %v2780_v58 = vadd.f32 %v2779_v27, %v2761_v26  ;;  %4097 = vmatmul.bf16.vlgmr.msrb.gmra.mxu0 %v18993_v29  ;;  %v17003_v1 = vld [vmem:[#allocation2 + $0x964] sm:$0xf]  ;;  %v17121_v43 = vld [vmem:[#allocation2 + $0xd10] sm:$0xf0]  ;;  %v17024_v26 = vld [vmem:[#allocation2 + $0xa0c] sm:$0xf]  ;;  %v12875_v38 = vor.u32 %v17000_v20, %v12872_v56 }
 0x197   :  { %4165 = vmatpush.bf16.msra.mxu0 %v13303_v48  ;;  %4116 = vmatmul.bf16.vlgmr.msrb.gmra.mxu1 %v18996_v7  ;;  %v12812_v19 = vld [vmem:[%s19956_s26 + $0x108] sm:$0xf0]  ;;  %v12968_v27 = vld [vmem:[#allocation2 + $0xa14] sm:$0xf0]  ;;  %v12956_v50 = vld [vmem:[#allocation2 + $0x9fc] sm:$0xf0]  ;;  %v13339_v28 = vor.u32 %v17118_v21, %v13338_v51 }
 0x198   :  { %4184 = vmatpush.bf16.msra.mxu1 %v13399_v55  ;;  %4135 = vmatmul.bf16.vlgmr.msrb.gmra.mxu2 %v18998_v52  ;;  %v12971_v30 = vor.u32 %v17024_v26, %v12968_v27  ;;  %v19038_v61 = vor.u32 %v16985_v47, %v12812_v19  ;;  %v12851_v19 = vor.u32 %v16994_v13, %v12848_v35  ;;  %v17112_v20 = vld [vmem:[#allocation2 + $0xcc8] sm:$0xf0]  ;;  %v16991_v56 = vld [vmem:[#allocation2 + $0x904] sm:$0xf]  ;;  %v12836_v27 = vld [vmem:[#allocation2 + $0x90c] sm:$0xf0] }
 0x199   :  { %4203 = vmatpush.bf16.msra.mxu2 %v12923_v6  ;;  %4154 = vmatmul.bf16.vlgmr.msrb.gmra.mxu3 %v19001_v36  ;;  %v13208_v21 = vld [vmem:[#allocation2 + $0xbf4] sm:$0xf0]  ;;  %v17081_v13 = vld [vmem:[#allocation2 + $0xbd4] sm:$0xf] }
 0x19a   :  { %4222 = vmatpush.bf16.msra.mxu3 %v13019_v11  ;;  %v12887_v11 = vor.u32 %v17003_v1, %v12884_v63 }
 0x19b   :  { %4166 = vmatpush.bf16.msra.mxu0 %v13291_v31  ;;  %v2798_v22 = vpop.f32.mrf.mxu2  ;;  %v2762_v48 = vpop.f32.mrf.mxu0  ;;  %v16989_v31 = vld [vmem:[%s19956_s26 + $0x10c] sm:$0xf0] }
 0x19c   :  { %4185 = vmatpush.bf16.msra.mxu1 %v13387_v2  ;;  %v2799_v57 = vadd.f32 %v2798_v22, %v2780_v58  ;;  %v2817_v5 = vpop.f32.mrf.mxu3  ;;  %v2763_v55 = vadd.f32 %v2762_v48, %v18955_v9  ;;  %v2781_v6 = vpop.f32.mrf.mxu1  ;;  %v13350_v9 = vld [vmem:[#allocation2 + $0xd08] sm:$0xf]  ;;  %v13255_v2 = vor.u32 %v17097_v10, %v13254_v14  ;;  %v13242_v58 = vld [vmem:[#allocation2 + $0xc30] sm:$0xf]  ;;  %v19040_v22 = vor.u32 %v16989_v31, %v12818_v24  ;;  %v17018_v14 = vld [vmem:[#allocation2 + $0x9dc] sm:$0xf] }
 0x19d   :  { %4204 = vmatpush.bf16.msra.mxu2 %v12911_v33  ;;  %v16986_v33 = vld [vmem:[%s19956_s26 + $0xfc] sm:$0xf]  ;;  %v13351_v34 = vor.u32 %v17121_v43, %v13350_v9  ;;  %v12944_v10 = vld [vmem:[#allocation2 + $0x9e4] sm:$0xf0]  ;;  %v13314_v43 = vld [vmem:[#allocation2 + $0xcc0] sm:$0xf] }
 0x19e   :  { %4223 = vmatpush.bf16.msra.mxu3 %v13007_v39  ;;  %v19010_v32 = vadd.f32 %v2817_v5, %v2799_v57  ;;  %v2782_v17 = vadd.f32 %v2781_v6, %v2763_v55  ;;  %v17094_v39 = vld [vmem:[#allocation2 + $0xc38] sm:$0xf0]  ;;  %v19043_v57 = vor.u32 %v16986_v33, %v12820_v4  ;;  %v13230_v55 = vld [vmem:[#allocation2 + $0xc18] sm:$0xf]  ;;  %v17091_v6 = vld [vmem:[#allocation2 + $0xc20] sm:$0xf0]  ;;  %v12947_v26 = vor.u32 %v17018_v14, %v12944_v10 }
 0x19f   :  { %4167 = vmatpush.bf16.msra.mxu0 %v13279_v37  ;;  %v16997_v37 = vld [vmem:[#allocation2 + $0x934] sm:$0xf]  ;;  %v13243_v48 = vor.u32 %v17094_v39, %v13242_v58  ;;  %v13231_v9 = vor.u32 %v17091_v6, %v13230_v55  ;;  %v17015_v31 = vld [vmem:[#allocation2 + $0x9c4] sm:$0xf]  ;;  %v13112_v58 = vld [vmem:[#allocation2 + $0xb34] sm:$0xf0] }
 0x1a0   :  { %4186 = vmatpush.bf16.msra.mxu1 %v13375_v46  ;;  %v12860_v46 = vld [vmem:[#allocation2 + $0x93c] sm:$0xf0]  ;;  %v17084_v39 = vld [vmem:[#allocation2 + $0xbec] sm:$0xf] }
 0x1a1   :  { %4205 = vmatpush.bf16.msra.mxu2 %v12899_v44  ;;  %v12863_v53 = vor.u32 %v16997_v37, %v12860_v46  ;;  %v17108_v37 = vld [vmem:[#allocation2 + $0xcac] sm:$0xf]  ;;  %v13304_v46 = vld [vmem:[#allocation2 + $0xcb4] sm:$0xf0]  ;;  %v13196_v10 = vld [vmem:[#allocation2 + $0xbdc] sm:$0xf0] }
 0x1a2   :  { %4224 = vmatpush.bf16.msra.mxu3 %v12995_v15  ;;  %v17021_v15 = vld [vmem:[#allocation2 + $0x9f4] sm:$0xf]  ;;  %v13307_v55 = vor.u32 %v17108_v37, %v13304_v46  ;;  %v16981_v6 = vld [vmem:[%s19956_s26 + $0xd4] sm:$0xf] }
 0x1a3   :  { %4168 = vmatpush.bf16.msra.mxu0 %v13267_v62  ;;  %v2800_v41 = vpop.f32.mrf.mxu2  ;;  %v2765_v49 = vpop.f32.mrf.mxu0  ;;  %v13326_v62 = vld [vmem:[#allocation2 + $0xcd8] sm:$0xf] }
 0x1a4   :  { %4187 = vmatpush.bf16.msra.mxu1 %v13363_v54  ;;  %v2801_v44 = vadd.f32 %v2800_v41, %v2782_v17  ;;  %v2819_v25 = vpop.f32.mrf.mxu3  ;;  %v2766_v1 = vadd.f32 %v2765_v49, %v18965_v59  ;;  %v2784_v63 = vpop.f32.mrf.mxu1  ;;  %v17115_v59 = vld [vmem:[#allocation2 + $0xce0] sm:$0xf0]  ;;  %v13218_v17 = vld [vmem:[#allocation2 + $0xc00] sm:$0xf]  ;;  %v13315_v49 = vor.u32 %v17112_v20, %v13314_v43  ;;  %v17129_v20 = vld [vmem:[#allocation2 + $0xd54] sm:$0xf] }
 0x1a5   :  { %4206 = vmatpush.bf16.msra.mxu2 %v12887_v11  ;;  %v12959_v11 = vor.u32 %v17021_v15, %v12956_v50  ;;  %v13327_v47 = vor.u32 %v17115_v59, %v13326_v62  ;;  %v17132_v15 = vld [vmem:[#allocation2 + $0xd6c] sm:$0xf]  ;;  %v13400_v50 = vld [vmem:[#allocation2 + $0xd74] sm:$0xf0]  ;;  %v12804_v62 = vld [vmem:[%s19956_s26 + $0xe8] sm:$0xf0] }
 0x1a6   :  { %4225 = vmatpush.bf16.msra.mxu3 %v12983_v23  ;;  %v19045_v5 = vadd.f32 %v2819_v25, %v2801_v44  ;;  %v2785_v54 = vadd.f32 %v2784_v63, %v2766_v1  ;;  %4102 = vmatmul.bf16.gmra.mxu0 %v19036_v42  ;;  %v17088_v23 = vld [vmem:[#allocation2 + $0xc08] sm:$0xf0]  ;;  %v12839_v25 = vor.u32 %v16991_v56, %v12836_v27  ;;  %v13100_v59 = vld [vmem:[#allocation2 + $0xb1c] sm:$0xf0] }
 0x1a7   :  { %4169 = vmatpush.bf16.msra.mxu0 %v13255_v2  ;;  %4121 = vmatmul.bf16.gmra.mxu1 %v19038_v61  ;;  %v12932_v2 = vld [vmem:[#allocation2 + $0x9cc] sm:$0xf0]  ;;  %v19068_v43 = vor.u32 %v16981_v6, %v12804_v62  ;;  %v13388_v56 = vld [vmem:[#allocation2 + $0xd5c] sm:$0xf0]  ;;  %v17123_v62 = vld [vmem:[#allocation2 + $0xd24] sm:$0xf] }
 0x1a8   :  { %4188 = vmatpush.bf16.msra.mxu1 %v13351_v34  ;;  %4140 = vmatmul.bf16.gmra.mxu2 %v19040_v22  ;;  %v12935_v63 = vor.u32 %v17015_v31, %v12932_v2  ;;  %v13199_v2 = vor.u32 %v17081_v13, %v13196_v10 }
 0x1a9   :  { %4207 = vmatpush.bf16.msra.mxu2 %v12875_v38  ;;  %4159 = vmatmul.bf16.gmra.mxu3 %v19043_v57  ;;  %v17060_v38 = vld [vmem:[#allocation2 + $0xb2c] sm:$0xf] }
 0x1aa   :  { %4226 = vmatpush.bf16.msra.mxu3 %v12971_v30  ;;  %v13219_v30 = vor.u32 %v17088_v23, %v13218_v17  ;;  %v13292_v17 = vld [vmem:[#allocation2 + $0xc9c] sm:$0xf0] }
 0x1ab   :  { %4170 = vmatpush.bf16.msra.mxu0 %v13243_v48  ;;  %v2803_v24 = vpop.f32.mrf.mxu2  ;;  %v2767_v4 = vpop.f32.mrf.mxu0  ;;  %v13115_v48 = vor.u32 %v17060_v38, %v13112_v58  ;;  %v17078_v38 = vld [vmem:[#allocation2 + $0xbbc] sm:$0xf] }
 0x1ac   :  { %4189 = vmatpush.bf16.msra.mxu1 %v13339_v28  ;;  %v2804_v33 = vadd.f32 %v2803_v24, %v2785_v54  ;;  %v2822_v34 = vpop.f32.mrf.mxu3  ;;  %v2768_v51 = vadd.f32 %v2767_v4, %v19003_v3  ;;  %v2786_v41 = vpop.f32.mrf.mxu1  ;;  %v12802_v3 = vld [vmem:[%s19956_s26 + $0xd0] sm:$0xf]  ;;  %v16984_v28 = vld [vmem:[%s19956_s26 + $0xe4] sm:$0xf0]  ;;  %v13403_v54 = vor.u32 %v17132_v15, %v13400_v50  ;;  %v17054_v4 = vld [vmem:[#allocation2 + $0xafc] sm:$0xf] }
 0x1ad   :  { %4208 = vmatpush.bf16.msra.mxu2 %v12863_v53  ;;  %v13211_v53 = vor.u32 %v17084_v39, %v13208_v21  ;;  %v19066_v14 = vor.u32 %v16984_v28, %v12802_v3  ;;  %v13391_v39 = vor.u32 %v17129_v20, %v13388_v56  ;;  %v13376_v21 = vld [vmem:[#allocation2 + $0xd44] sm:$0xf0]  ;;  %v13076_v15 = vld [vmem:[#allocation2 + $0xaec] sm:$0xf0]  ;;  %v17075_v50 = vld [vmem:[#allocation2 + $0xba4] sm:$0xf] }
 0x1ae   :  { %4227 = vmatpush.bf16.msra.mxu3 %v12959_v11  ;;  %v19052_v44 = vadd.f32 %v2822_v34, %v2804_v33  ;;  %v2787_v1 = vadd.f32 %v2786_v41, %v2768_v51  ;;  %v17057_v11 = vld [vmem:[#allocation2 + $0xb14] sm:$0xf]  ;;  %v13088_v34 = vld [vmem:[#allocation2 + $0xb04] sm:$0xf0]  ;;  %v17102_v41 = vld [vmem:[#allocation2 + $0xc7c] sm:$0xf] }
 0x1af   :  { %4171 = vmatpush.bf16.msra.mxu0 %v13231_v9  ;;  %v17105_v9 = vld [vmem:[#allocation2 + $0xc94] sm:$0xf]  ;;  %v13103_v27 = vor.u32 %v17057_v11, %v13100_v59  ;;  %v13184_v51 = vld [vmem:[#allocation2 + $0xbc4] sm:$0xf0]  ;;  %v13091_v37 = vor.u32 %v17054_v4, %v13088_v34  ;;  %v17099_v3 = vld [vmem:[#allocation2 + $0xc64] sm:$0xf] }
 0x1b0   :  { %4190 = vmatpush.bf16.msra.mxu1 %v13327_v47  ;;  %v13295_v33 = vor.u32 %v17105_v9, %v13292_v17  ;;  %v13187_v46 = vor.u32 %v17078_v38, %v13184_v51  ;;  %v13268_v28 = vld [vmem:[#allocation2 + $0xc6c] sm:$0xf0]  ;;  %v12826_v17 = vld [vmem:[%s19956_s26 + $0x100] sm:$0xf]  ;;  %v16987_v4 = vld [vmem:[%s19956_s26 + $0x104] sm:$0xf] }
 0x1b1   :  { %4209 = vmatpush.bf16.msra.mxu2 %v12851_v19  ;;  %v13271_v9 = vor.u32 %v17099_v3, %v13268_v28  ;;  %v12828_v34 = vld [vmem:[%s19956_s26 + $0x118] sm:$0xf0]  ;;  %v13340_v3 = vld [vmem:[#allocation2 + $0xcfc] sm:$0xf0] }
 0x1b2   :  { %4228 = vmatpush.bf16.msra.mxu3 %v12947_v26  ;;  %v17045_v51 = vld [vmem:[#allocation2 + $0xab4] sm:$0xf] }
 0x1b3   :  { %4172 = vmatpush.bf16.msra.mxu0 %v13219_v30  ;;  %v2805_v35 = vpop.f32.mrf.mxu2  ;;  %v2836_v19 = vpop.f32.mrf.mxu0  ;;  %v13280_v30 = vld [vmem:[#allocation2 + $0xc84] sm:$0xf0] }
 0x1b4   :  { %4191 = vmatpush.bf16.msra.mxu1 %v13315_v49  ;;  %v2806_v23 = vadd.f32 %v2805_v35, %v2787_v1  ;;  %v2824_v47 = vpop.f32.mrf.mxu3  ;;  %v2837_v24 = vadd.f32 %v2836_v19, %v18910_v8  ;;  %v2855_v26 = vpop.f32.mrf.mxu1  ;;  %v17126_v8 = vld [vmem:[#allocation2 + $0xd3c] sm:$0xf]  ;;  %v13283_v49 = vor.u32 %v17102_v41, %v13280_v30  ;;  %v17072_v19 = vld [vmem:[#allocation2 + $0xb8c] sm:$0xf]  ;;  %v13052_v41 = vld [vmem:[#allocation2 + $0xabc] sm:$0xf0] }
 0x1b5   :  { %4210 = vmatpush.bf16.msra.mxu2 %v12839_v25  ;;  %v17051_v25 = vld [vmem:[#allocation2 + $0xae4] sm:$0xf]  ;;  %v17069_v30 = vld [vmem:[#allocation2 + $0xb74] sm:$0xf] }
 0x1b6   :  { %4229 = vmatpush.bf16.msra.mxu3 %v12935_v63  ;;  %v19071_v31 = vadd.f32 %v2824_v47, %v2806_v23  ;;  %v2856_v58 = vadd.f32 %v2855_v26, %v2837_v24  ;;  %4173 = vmatmul.bf16.vlgmr.msra.gmra.mxu0 %v19066_v14  ;;  %v13379_v63 = vor.u32 %v17126_v8, %v13376_v21  ;;  %v17048_v23 = vld [vmem:[#allocation2 + $0xacc] sm:$0xf]  ;;  %v13064_v47 = vld [vmem:[#allocation2 + $0xad4] sm:$0xf0] }
 0x1b7   :  { %4241 = vmatpush.bf16.msrb.mxu0 %v13115_v48  ;;  %4192 = vmatmul.bf16.vlgmr.msra.gmra.mxu1 %v19068_v43  ;;  %v13172_v48 = vld [vmem:[#allocation2 + $0xbac] sm:$0xf0]  ;;  %v13079_v13 = vor.u32 %v17051_v25, %v13076_v15  ;;  %v17096_v24 = vld [vmem:[#allocation2 + $0xc4c] sm:$0xf]  ;;  %v13256_v26 = vld [vmem:[#allocation2 + $0xc54] sm:$0xf0]  ;;  %v13067_v38 = vor.u32 %v17048_v23, %v13064_v47 }
 0x1b8   :  { %4260 = vmatpush.bf16.msrb.mxu1 %v13211_v53  ;;  %4211 = vmatmul.bf16.vlgmr.msra.gmra.mxu2 %v18993_v29  ;;  %v13175_v10 = vor.u32 %v17075_v50, %v13172_v48  ;;  %v13244_v25 = vld [vmem:[#allocation2 + $0xc3c] sm:$0xf0]  ;;  %v17117_v48 = vld [vmem:[#allocation2 + $0xcf4] sm:$0xf]  ;;  %v17090_v23 = vld [vmem:[#allocation2 + $0xc1c] sm:$0xf] }
 0x1b9   :  { %4279 = vmatpush.bf16.msrb.mxu2 %v13307_v55  ;;  %4230 = vmatmul.bf16.vlgmr.msra.gmra.mxu3 %v18996_v7  ;;  %v17114_v47 = vld [vmem:[#allocation2 + $0xcdc] sm:$0xf] }
 0x1ba   :  { %4298 = vmatpush.bf16.msrb.mxu3 %v13403_v54  ;;  %v13364_v54 = vld [vmem:[#allocation2 + $0xd2c] sm:$0xf0] }
 0x1bb   :  { %4242 = vmatpush.bf16.msrb.mxu0 %v13103_v27  ;;  %v2874_v1 = vpop.f32.mrf.mxu2  ;;  %v2838_v55 = vpop.f32.mrf.mxu0  ;;  %v13367_v56 = vor.u32 %v17123_v62, %v13364_v54  ;;  %v16990_v27 = vld [vmem:[%s19956_s26 + $0x114] sm:$0xf0] }
 0x1bc   :  { %4261 = vmatpush.bf16.msrb.mxu1 %v13199_v2  ;;  %v2875_v53 = vadd.f32 %v2874_v1, %v2856_v58  ;;  %v2893_v6 = vpop.f32.mrf.mxu3  ;;  %v2839_v11 = vadd.f32 %v2838_v55, %v18913_v45  ;;  %v2857_v59 = vpop.f32.mrf.mxu1  ;;  %v13160_v45 = vld [vmem:[#allocation2 + $0xb94] sm:$0xf0]  ;;  %v17120_v2 = vld [vmem:[#allocation2 + $0xd0c] sm:$0xf]  ;;  %v19092_v21 = vor.u32 %v16990_v27, %v12826_v17  ;;  %v13055_v55 = vor.u32 %v17045_v51, %v13052_v41  ;;  %v13136_v17 = vld [vmem:[#allocation2 + $0xb64] sm:$0xf0] }
 0x1bd   :  { %4280 = vmatpush.bf16.msrb.mxu2 %v13295_v33  ;;  %v13352_v33 = vld [vmem:[#allocation2 + $0xd14] sm:$0xf0]  ;;  %v13163_v58 = vor.u32 %v17072_v19, %v13160_v45  ;;  %v13328_v19 = vld [vmem:[#allocation2 + $0xce4] sm:$0xf0]  ;;  %v13028_v45 = vld [vmem:[#allocation2 + $0xa8c] sm:$0xf0] }
 0x1be   :  { %4299 = vmatpush.bf16.msrb.mxu3 %v13391_v39  ;;  %v19078_v35 = vadd.f32 %v2893_v6, %v2875_v53  ;;  %v2858_v20 = vadd.f32 %v2857_v59, %v2839_v11  ;;  %v13259_v39 = vor.u32 %v17096_v24, %v13256_v26  ;;  %v17042_v11 = vld [vmem:[#allocation2 + $0xa9c] sm:$0xf]  ;;  %v13040_v59 = vld [vmem:[#allocation2 + $0xaa4] sm:$0xf0]  ;;  %v17063_v27 = vld [vmem:[#allocation2 + $0xb44] sm:$0xf] }
 0x1bf   :  { %4243 = vmatpush.bf16.msrb.mxu0 %v13091_v37  ;;  %v13355_v37 = vor.u32 %v17120_v2, %v13352_v33  ;;  %v13124_v2 = vld [vmem:[#allocation2 + $0xb4c] sm:$0xf0]  ;;  %v17087_v33 = vld [vmem:[#allocation2 + $0xc04] sm:$0xf] }
 0x1c0   :  { %4262 = vmatpush.bf16.msrb.mxu1 %v13187_v46  ;;  %v13148_v46 = vld [vmem:[#allocation2 + $0xb7c] sm:$0xf0] }
 0x1c1   :  { %4281 = vmatpush.bf16.msrb.mxu2 %v13283_v49  ;;  %v17093_v49 = vld [vmem:[#allocation2 + $0xc34] sm:$0xf]  ;;  %v13151_v62 = vor.u32 %v17069_v30, %v13148_v46  ;;  %v13022_v46 = vld [vmem:[#allocation2 + $0xa70] sm:$0xf] }
 0x1c2   :  { %4300 = vmatpush.bf16.msrb.mxu3 %v13379_v63  ;;  %v19094_v63 = vor.u32 %v16987_v4, %v12828_v34  ;;  %v13247_v54 = vor.u32 %v17093_v49, %v13244_v25  ;;  %v13331_v34 = vor.u32 %v17114_v47, %v13328_v19  ;;  %v17035_v47 = vld [vmem:[#allocation2 + $0xa60] sm:$0xf0]  ;;  %v13106_v19 = vld [vmem:[#allocation2 + $0xb18] sm:$0xf] }
 0x1c3   :  { %4244 = vmatpush.bf16.msrb.mxu0 %v13079_v13  ;;  %v2876_v8 = vpop.f32.mrf.mxu2  ;;  %v2841_v50 = vpop.f32.mrf.mxu0  ;;  %v17066_v13 = vld [vmem:[#allocation2 + $0xb5c] sm:$0xf] }
 0x1c4   :  { %4263 = vmatpush.bf16.msrb.mxu1 %v13175_v10  ;;  %v2877_v15 = vadd.f32 %v2876_v8, %v2858_v20  ;;  %v2895_v1 = vpop.f32.mrf.mxu3  ;;  %v2842_v28 = vadd.f32 %v2841_v50, %v18920_v40  ;;  %v2860_v53 = vpop.f32.mrf.mxu1  ;;  %v13232_v40 = vld [vmem:[#allocation2 + $0xc24] sm:$0xf0]  ;;  %v13043_v20 = vor.u32 %v17042_v11, %v13040_v59  ;;  %v13139_v24 = vor.u32 %v17066_v13, %v13136_v17  ;;  %v12926_v8 = vld [vmem:[#allocation2 + $0x9b0] sm:$0xf]  ;;  %v17038_v50 = vld [vmem:[#allocation2 + $0xa78] sm:$0xf0] }
 0x1c5   :  { %4282 = vmatpush.bf16.msrb.mxu2 %v13271_v9  ;;  %v13343_v9 = vor.u32 %v17117_v48, %v13340_v3  ;;  %v13235_v26 = vor.u32 %v17090_v23, %v13232_v40  ;;  %v17062_v48 = vld [vmem:[#allocation2 + $0xb38] sm:$0xf0]  ;;  %v13023_v13 = vor.u32 %v17038_v50, %v13022_v46  ;;  %v17011_v17 = vld [vmem:[#allocation2 + $0x9a0] sm:$0xf0]  ;;  %v13010_v23 = vld [vmem:[#allocation2 + $0xa58] sm:$0xf] }
 0x1c6   :  { %4301 = vmatpush.bf16.msrb.mxu3 %v13367_v56  ;;  %v19097_v6 = vadd.f32 %v2895_v1, %v2877_v15  ;;  %v2861_v10 = vadd.f32 %v2860_v53, %v2842_v28  ;;  %4178 = vmatmul.bf16.gmra.mxu0 %v19092_v21  ;;  %v17039_v56 = vld [vmem:[#allocation2 + $0xa84] sm:$0xf]  ;;  %v13118_v1 = vld [vmem:[#allocation2 + $0xb30] sm:$0xf]  ;;  %v13127_v28 = vor.u32 %v17063_v27, %v13124_v2  ;;  %v13094_v46 = vld [vmem:[#allocation2 + $0xb00] sm:$0xf] }
 0x1c7   :  { %4245 = vmatpush.bf16.msrb.mxu0 %v13067_v38  ;;  %4197 = vmatmul.bf16.gmra.mxu1 %v19094_v63  ;;  %v13220_v38 = vld [vmem:[#allocation2 + $0xc0c] sm:$0xf0]  ;;  %v13031_v15 = vor.u32 %v17039_v56, %v13028_v45  ;;  %v17083_v27 = vld [vmem:[#allocation2 + $0xbe0] sm:$0xf0] }
 0x1c8   :  { %4264 = vmatpush.bf16.msrb.mxu1 %v13163_v58  ;;  %4216 = vmatmul.bf16.gmra.mxu2 %v19036_v42  ;;  %v17111_v58 = vld [vmem:[#allocation2 + $0xcc4] sm:$0xf]  ;;  %v13223_v53 = vor.u32 %v17087_v33, %v13220_v38  ;;  %v13011_v38 = vor.u32 %v17035_v47, %v13010_v23 }
 0x1c9   :  { %4283 = vmatpush.bf16.msrb.mxu2 %v13259_v39  ;;  %4235 = vmatmul.bf16.gmra.mxu3 %v19038_v61  ;;  %v13316_v39 = vld [vmem:[#allocation2 + $0xccc] sm:$0xf0] }
 0x1ca   :  { %4302 = vmatpush.bf16.msrb.mxu3 %v13355_v37  ;;  %v17014_v37 = vld [vmem:[#allocation2 + $0x9b8] sm:$0xf0]  ;;  %v13319_v11 = vor.u32 %v17111_v58, %v13316_v39  ;;  %v12902_v39 = vld [vmem:[#allocation2 + $0x980] sm:$0xf] }
 0x1cb   :  { %4246 = vmatpush.bf16.msrb.mxu0 %v13055_v55  ;;  %v2879_v4 = vpop.f32.mrf.mxu2  ;;  %v2843_v41 = vpop.f32.mrf.mxu0  ;;  %v13214_v55 = vld [vmem:[#allocation2 + $0xbf0] sm:$0xf]  ;;  %v12927_v59 = vor.u32 %v17014_v37, %v12926_v8  ;;  %v17032_v37 = vld [vmem:[#allocation2 + $0xa48] sm:$0xf0] }
 0x1cc   :  { %4265 = vmatpush.bf16.msrb.mxu1 %v13151_v62  ;;  %v2880_v51 = vadd.f32 %v2879_v4, %v2861_v10  ;;  %v2898_v30 = vpop.f32.mrf.mxu3  ;;  %v2844_v49 = vadd.f32 %v2843_v41, %v18922_v12  ;;  %v2862_v25 = vpop.f32.mrf.mxu1  ;;  %v17086_v62 = vld [vmem:[#allocation2 + $0xbf8] sm:$0xf0]  ;;  %v13119_v12 = vor.u32 %v17062_v48, %v13118_v1  ;;  %v12998_v41 = vld [vmem:[#allocation2 + $0xa40] sm:$0xf]  ;;  %v12890_v48 = vld [vmem:[#allocation2 + $0x968] sm:$0xf] }
 0x1cd   :  { %4284 = vmatpush.bf16.msrb.mxu2 %v13247_v54  ;;  %v13215_v10 = vor.u32 %v17086_v62, %v13214_v55  ;;  %v12999_v50 = vor.u32 %v17032_v37, %v12998_v41  ;;  %v12866_v41 = vld [vmem:[#allocation2 + $0x938] sm:$0xf] }
 0x1ce   :  { %4303 = vmatpush.bf16.msrb.mxu3 %v13343_v9  ;;  %v19104_v3 = vadd.f32 %v2898_v30, %v2880_v51  ;;  %v2863_v54 = vadd.f32 %v2862_v25, %v2844_v49  ;;  %v12914_v9 = vld [vmem:[#allocation2 + $0x998] sm:$0xf]  ;;  %v17008_v51 = vld [vmem:[#allocation2 + $0x988] sm:$0xf0] }
 0x1cf   :  { %4247 = vmatpush.bf16.msrb.mxu0 %v13043_v20  ;;  %v17059_v20 = vld [vmem:[#allocation2 + $0xb20] sm:$0xf0]  ;;  %v12915_v4 = vor.u32 %v17011_v17, %v12914_v9  ;;  %v17056_v49 = vld [vmem:[#allocation2 + $0xb08] sm:$0xf0]  ;;  %v13178_v9 = vld [vmem:[#allocation2 + $0xba8] sm:$0xf] }
 0x1d0   :  { %4266 = vmatpush.bf16.msrb.mxu1 %v13139_v24  ;;  %v13107_v58 = vor.u32 %v17059_v20, %v13106_v19  ;;  %v17080_v25 = vld [vmem:[#allocation2 + $0xbc8] sm:$0xf0]  ;;  %v13095_v1 = vor.u32 %v17056_v49, %v13094_v46  ;;  %v17077_v17 = vld [vmem:[#allocation2 + $0xbb0] sm:$0xf0]  ;;  %v12962_v37 = vld [vmem:[#allocation2 + $0x9f8] sm:$0xf] }
 0x1d1   :  { %4285 = vmatpush.bf16.msrb.mxu2 %v13235_v26  ;;  %v13202_v26 = vld [vmem:[#allocation2 + $0xbd8] sm:$0xf] }
 0x1d2   :  { %4304 = vmatpush.bf16.msrb.mxu3 %v13331_v34  ;;  %v13203_v8 = vor.u32 %v17083_v27, %v13202_v26  ;;  %v12974_v26 = vld [vmem:[#allocation2 + $0xa10] sm:$0xf] }
 0x1d3   :  { %4248 = vmatpush.bf16.msrb.mxu0 %v13031_v15  ;;  %v2881_v40 = vpop.f32.mrf.mxu2  ;;  %v2912_v24 = vpop.f32.mrf.mxu0  ;;  %v12903_v15 = vor.u32 %v17008_v51, %v12902_v39 }
 0x1d4   :  { %4267 = vmatpush.bf16.msrb.mxu1 %v13127_v28  ;;  %v2882_v56 = vadd.f32 %v2881_v40, %v2863_v54  ;;  %v2900_v45 = vpop.f32.mrf.mxu3  ;;  %v2913_v2 = vadd.f32 %v2912_v24, %v19078_v35  ;;  %v2931_v33 = vpop.f32.mrf.mxu1  ;;  %v13190_v35 = vld [vmem:[#allocation2 + $0xbc0] sm:$0xf]  ;;  %v17005_v28 = vld [vmem:[#allocation2 + $0x970] sm:$0xf0]  ;;  %v17002_v24 = vld [vmem:[#allocation2 + $0x958] sm:$0xf0] }
 0x1d5   :  { %4286 = vmatpush.bf16.msrb.mxu2 %v13223_v53  ;;  %v12986_v53 = vld [vmem:[#allocation2 + $0xa28] sm:$0xf]  ;;  %v13191_v62 = vor.u32 %v17080_v25, %v13190_v35  ;;  %v17029_v54 = vld [vmem:[#allocation2 + $0xa30] sm:$0xf0]  ;;  %v12891_v47 = vor.u32 %v17005_v28, %v12890_v48  ;;  %v17023_v35 = vld [vmem:[#allocation2 + $0xa00] sm:$0xf0] }
 0x1d6   :  { %4305 = vmatpush.bf16.msrb.mxu3 %v13319_v11  ;;  %v19107_v34 = vadd.f32 %v2900_v45, %v2882_v56  ;;  %v19109_v30 = vadd.f32 %v2931_v33, %v2913_v2  ;;  %4249 = vmatmul.bf16.vlgmr.msrb.gmra.mxu0 %v18998_v52  ;;  %v13082_v11 = vld [vmem:[#allocation2 + $0xae8] sm:$0xf]  ;;  %v12987_v20 = vor.u32 %v17029_v54, %v12986_v53  ;;  %v12878_v45 = vld [vmem:[#allocation2 + $0x950] sm:$0xf]  ;;  %v17026_v2 = vld [vmem:[#allocation2 + $0xa18] sm:$0xf0] }
 0x1d7   :  { %4317 = vmatpush.bf16.msra.mxu0 %v12927_v59  ;;  %4268 = vmatmul.bf16.vlgmr.msrb.gmra.mxu1 %v19001_v36  ;;  %v17053_v59 = vld [vmem:[#allocation2 + $0xaf0] sm:$0xf0]  ;;  %v13070_v33 = vld [vmem:[#allocation2 + $0xad0] sm:$0xf]  ;;  %v12975_v39 = vor.u32 %v17026_v2, %v12974_v26  ;;  %v13058_v25 = vld [vmem:[#allocation2 + $0xab8] sm:$0xf] }
 0x1d8   :  { %4336 = vmatpush.bf16.msra.mxu1 %v13023_v13  ;;  %4287 = vmatmul.bf16.vlgmr.msrb.gmra.mxu2 %v19066_v14  ;;  %v13083_v56 = vor.u32 %v17053_v59, %v13082_v11  ;;  %v13154_v28 = vld [vmem:[#allocation2 + $0xb78] sm:$0xf]  ;;  %v17071_v53 = vld [vmem:[#allocation2 + $0xb80] sm:$0xf0]  ;;  %v12963_v59 = vor.u32 %v17023_v35, %v12962_v37  ;;  %v12938_v2 = vld [vmem:[#allocation2 + $0x9c8] sm:$0xf] }
 0x1d9   :  { %4355 = vmatpush.bf16.msra.mxu2 %v13119_v12  ;;  %4306 = vmatmul.bf16.vlgmr.msrb.gmra.mxu3 %v19068_v43  ;;  %v13406_v35 = vld [vmem:[#allocation2 + $0xd70] sm:$0xf] }
 0x1da   :  { %4374 = vmatpush.bf16.msra.mxu3 %v13215_v10 }
 0x1db   :  { %4318 = vmatpush.bf16.msra.mxu0 %v12915_v4  ;;  %v2950_v55 = vpop.f32.mrf.mxu2  ;;  %v2914_v12 = vpop.f32.mrf.mxu0  ;;  %v17050_v4 = vld [vmem:[#allocation2 + $0xad8] sm:$0xf0] }
 0x1dc   :  { %4337 = vmatpush.bf16.msra.mxu1 %v13011_v38  ;;  %v2951_v13 = vadd.f32 %v2950_v55, %v18941_v60  ;;  %v2969_v10 = vpop.f32.mrf.mxu3  ;;  %v2915_v23 = vadd.f32 %v2914_v12, %v19097_v6  ;;  %v2933_v40 = vpop.f32.mrf.mxu1  ;;  %v13179_v60 = vor.u32 %v17077_v17, %v13178_v9  ;;  %v13166_v6 = vld [vmem:[#allocation2 + $0xb90] sm:$0xf]  ;;  %v17074_v38 = vld [vmem:[#allocation2 + $0xb98] sm:$0xf0]  ;;  %v13071_v51 = vor.u32 %v17050_v4, %v13070_v33  ;;  %v12854_v12 = vld [vmem:[#allocation2 + $0x920] sm:$0xf] }
 0x1dd   :  { %4356 = vmatpush.bf16.msra.mxu2 %v13107_v58  ;;  %v12879_v58 = vor.u32 %v17002_v24, %v12878_v45  ;;  %v13167_v49 = vor.u32 %v17074_v38, %v13166_v6  ;;  %v12950_v9 = vld [vmem:[#allocation2 + $0x9e0] sm:$0xf]  ;;  %v12842_v45 = vld [vmem:[#allocation2 + $0x908] sm:$0xf]  ;;  %v16993_v24 = vld [vmem:[#allocation2 + $0x910] sm:$0xf0] }
 0x1de   :  { %4375 = vmatpush.bf16.msra.mxu3 %v13203_v8  ;;  %v19117_v19 = vadd.f32 %v2969_v10, %v2951_v13  ;;  %v19119_v27 = vadd.f32 %v2933_v40, %v2915_v23  ;;  %v16999_v8 = vld [vmem:[#allocation2 + $0x940] sm:$0xf0]  ;;  %v16996_v10 = vld [vmem:[#allocation2 + $0x928] sm:$0xf0]  ;;  %v17017_v33 = vld [vmem:[#allocation2 + $0x9d0] sm:$0xf0] }
 0x1df   :  { %4319 = vmatpush.bf16.msra.mxu0 %v12903_v15  ;;  %v17047_v15 = vld [vmem:[#allocation2 + $0xac0] sm:$0xf0]  ;;  %v12867_v54 = vor.u32 %v16999_v8, %v12866_v41  ;;  %v17020_v23 = vld [vmem:[#allocation2 + $0x9e8] sm:$0xf0]  ;;  %v13034_v4 = vld [vmem:[#allocation2 + $0xa88] sm:$0xf] }
 0x1e0   :  { %4338 = vmatpush.bf16.msra.mxu1 %v12999_v50  ;;  %v13059_v13 = vor.u32 %v17047_v15, %v13058_v25  ;;  %v17044_v40 = vld [vmem:[#allocation2 + $0xaa8] sm:$0xf0]  ;;  %v12951_v26 = vor.u32 %v17020_v23, %v12950_v9  ;;  %v17107_v23 = vld [vmem:[#allocation2 + $0xca0] sm:$0xf0] }
 0x1e1   :  { %4357 = vmatpush.bf16.msra.mxu2 %v13095_v1 }
 0x1e2   :  { %4376 = vmatpush.bf16.msra.mxu3 %v13191_v62 }
 0x1e3   :  { %4320 = vmatpush.bf16.msra.mxu0 %v12891_v47  ;;  %v2952_v46 = vpop.f32.mrf.mxu2  ;;  %v2917_v1 = vpop.f32.mrf.mxu0  ;;  %v13142_v47 = vld [vmem:[#allocation2 + $0xb60] sm:$0xf] }
 0x1e4   :  { %4339 = vmatpush.bf16.msra.mxu1 %v12987_v20  ;;  %v2953_v50 = vadd.f32 %v2952_v46, %v18951_v18  ;;  %v2971_v48 = vpop.f32.mrf.mxu3  ;;  %v2918_v55 = vadd.f32 %v2917_v1, %v19104_v3  ;;  %v2936_v62 = vpop.f32.mrf.mxu1  ;;  %v13155_v18 = vor.u32 %v17071_v53, %v13154_v28  ;;  %v13046_v3 = vld [vmem:[#allocation2 + $0xaa0] sm:$0xf]  ;;  %v17068_v20 = vld [vmem:[#allocation2 + $0xb68] sm:$0xf0]  ;;  %v13310_v46 = vld [vmem:[#allocation2 + $0xcb0] sm:$0xf] }
 0x1e5   :  { %4358 = vmatpush.bf16.msra.mxu2 %v13083_v56  ;;  %v12855_v56 = vor.u32 %v16996_v10, %v12854_v12  ;;  %v13143_v38 = vor.u32 %v17068_v20, %v13142_v47  ;;  %v17134_v1 = vld [vmem:[#allocation2 + $0xd78] sm:$0xf0]  ;;  %v17169_v28 = vld [vmem:[#allocation2 + $0xe30] sm:$0xf0]  ;;  %v17131_v47 = vld [vmem:[#allocation2 + $0xd60] sm:$0xf0] }
 0x1e6   :  { %4377 = vmatpush.bf16.msra.mxu3 %v13179_v60  ;;  %v19123_v11 = vadd.f32 %v2971_v48, %v2953_v50  ;;  %v19125_v17 = vadd.f32 %v2936_v62, %v2918_v55  ;;  %4254 = vmatmul.bf16.gmra.mxu0 %v19040_v22  ;;  %v13047_v60 = vor.u32 %v17044_v40, %v13046_v3  ;;  %v13554_v48 = vld [vmem:[#allocation2 + $0xe28] sm:$0xf]  ;;  %v13394_v3 = vld [vmem:[#allocation2 + $0xd58] sm:$0xf]  ;;  %v13542_v20 = vld [vmem:[#allocation2 + $0xe10] sm:$0xf] }
 0x1e7   :  { %4321 = vmatpush.bf16.msra.mxu0 %v12879_v58  ;;  %4273 = vmatmul.bf16.gmra.mxu1 %v19043_v57  ;;  %v17041_v58 = vld [vmem:[#allocation2 + $0xa90] sm:$0xf0]  ;;  %v12843_v50 = vor.u32 %v16993_v24, %v12842_v45  ;;  %v12939_v55 = vor.u32 %v17017_v33, %v12938_v2  ;;  %v13555_v10 = vor.u32 %v17169_v28, %v13554_v48  ;;  %v17190_v2 = vld [vmem:[#allocation2 + $0xed8] sm:$0xf0]  ;;  %v13274_v48 = vld [vmem:[#allocation2 + $0xc68] sm:$0xf] }
 0x1e8   :  { %4340 = vmatpush.bf16.msra.mxu1 %v12975_v39  ;;  %4292 = vmatmul.bf16.gmra.mxu2 %v19092_v21  ;;  %v13130_v39 = vld [vmem:[#allocation2 + $0xb48] sm:$0xf]  ;;  %v13035_v62 = vor.u32 %v17041_v58, %v13034_v4  ;;  %v13395_v58 = vor.u32 %v17131_v47, %v13394_v3  ;;  %v13262_v47 = vld [vmem:[#allocation2 + $0xc50] sm:$0xf] }
 0x1e9   :  { %4359 = vmatpush.bf16.msra.mxu2 %v13071_v51  ;;  %4311 = vmatmul.bf16.gmra.mxu3 %v19094_v63  ;;  %v17065_v51 = vld [vmem:[#allocation2 + $0xb50] sm:$0xf0]  ;;  %v13370_v28 = vld [vmem:[#allocation2 + $0xd28] sm:$0xf] }
 0x1ea   :  { %4378 = vmatpush.bf16.msra.mxu3 %v13167_v49  ;;  %v17110_v49 = vld [vmem:[#allocation2 + $0xcb8] sm:$0xf0] }
 0x1eb   :  { %4322 = vmatpush.bf16.msra.mxu0 %v12867_v54  ;;  %v2955_v6 = vpop.f32.mrf.mxu2  ;;  %v2919_v8 = vpop.f32.mrf.mxu0  ;;  %v17193_v54 = vld [vmem:[#allocation2 + $0xef0] sm:$0xf0]  ;;  %v13311_v12 = vor.u32 %v17110_v49, %v13310_v46  ;;  %v17128_v46 = vld [vmem:[#allocation2 + $0xd48] sm:$0xf0]  ;;  %v13530_v49 = vld [vmem:[#allocation2 + $0xdf8] sm:$0xf] }
 0x1ec   :  { %4341 = vmatpush.bf16.msra.mxu1 %v12963_v59  ;;  %v2956_v41 = vadd.f32 %v2955_v6, %v18957_v16  ;;  %v2974_v37 = vpop.f32.mrf.mxu3  ;;  %v2920_v25 = vadd.f32 %v2919_v8, %v19107_v34  ;;  %v2938_v15 = vpop.f32.mrf.mxu1  ;;  %v13650_v16 = vld [vmem:[#allocation2 + $0xee8] sm:$0xf]  ;;  %v13407_v34 = vor.u32 %v17134_v1, %v13406_v35  ;;  %v13382_v8 = vld [vmem:[#allocation2 + $0xd40] sm:$0xf]  ;;  %v17163_v35 = vld [vmem:[#allocation2 + $0xe00] sm:$0xf0] }
 0x1ed   :  { %4360 = vmatpush.bf16.msra.mxu2 %v13059_v13  ;;  %v13131_v13 = vor.u32 %v17065_v51, %v13130_v39  ;;  %v13651_v9 = vor.u32 %v17193_v54, %v13650_v16  ;;  %v13286_v51 = vld [vmem:[#allocation2 + $0xc80] sm:$0xf]  ;;  %v13531_v1 = vor.u32 %v17163_v35, %v13530_v49  ;;  %v17125_v16 = vld [vmem:[#allocation2 + $0xd30] sm:$0xf0]  ;;  %v17160_v54 = vld [vmem:[#allocation2 + $0xde8] sm:$0xf0] }
 0x1ee   :  { %4379 = vmatpush.bf16.msra.mxu3 %v13155_v18  ;;  %v19133_v53 = vadd.f32 %v2974_v37, %v2956_v41  ;;  %v19135_v59 = vadd.f32 %v2938_v15, %v2920_v25  ;;  %v13298_v18 = vld [vmem:[#allocation2 + $0xc98] sm:$0xf]  ;;  %v17104_v41 = vld [vmem:[#allocation2 + $0xc88] sm:$0xf0]  ;;  %v17187_v25 = vld [vmem:[#allocation2 + $0xec0] sm:$0xf0]  ;;  %v13371_v3 = vor.u32 %v17125_v16, %v13370_v28 }
 0x1ef   :  { %4323 = vmatpush.bf16.msra.mxu0 %v12855_v56  ;;  %v17166_v56 = vld [vmem:[#allocation2 + $0xe18] sm:$0xf0]  ;;  %v13299_v6 = vor.u32 %v17107_v23, %v13298_v18  ;;  %v13287_v15 = vor.u32 %v17104_v41, %v13286_v51  ;;  %v17095_v51 = vld [vmem:[#allocation2 + $0xc40] sm:$0xf0]  ;;  %v13346_v41 = vld [vmem:[#allocation2 + $0xcf8] sm:$0xf] }
 0x1f0   :  { %4342 = vmatpush.bf16.msra.mxu1 %v12951_v26  ;;  %v13543_v39 = vor.u32 %v17166_v56, %v13542_v20  ;;  %v17098_v20 = vld [vmem:[#allocation2 + $0xc58] sm:$0xf0]  ;;  %v13358_v56 = vld [vmem:[#allocation2 + $0xd10] sm:$0xf]  ;;  %v13238_v16 = vld [vmem:[#allocation2 + $0xc20] sm:$0xf] }
 0x1f1   :  { %4361 = vmatpush.bf16.msra.mxu2 %v13047_v60  ;;  %v13638_v60 = vld [vmem:[#allocation2 + $0xed0] sm:$0xf]  ;;  %v17154_v49 = vld [vmem:[#allocation2 + $0xdb8] sm:$0xf0] }
 0x1f2   :  { %4380 = vmatpush.bf16.msra.mxu3 %v13143_v38 }
 0x1f3   :  { %4324 = vmatpush.bf16.msra.mxu0 %v12843_v50  ;;  %v2957_v40 = vpop.f32.mrf.mxu2  ;;  %v2988_v26 = vpop.f32.mrf.mxu0  ;;  %v13383_v50 = vor.u32 %v17128_v46, %v13382_v8  ;;  %v13494_v46 = vld [vmem:[#allocation2 + $0xdb0] sm:$0xf] }
 0x1f4   :  { %4343 = vmatpush.bf16.msra.mxu1 %v12939_v55  ;;  %v2958_v45 = vadd.f32 %v2957_v40, %v18967_v0  ;;  %v2976_v24 = vpop.f32.mrf.mxu3  ;;  %v2989_v33 = vadd.f32 %v2988_v26, %v19117_v19  ;;  %v3007_v4 = vpop.f32.mrf.mxu1  ;;  %v13639_v0 = vor.u32 %v17190_v2, %v13638_v60  ;;  %v13626_v19 = vld [vmem:[#allocation2 + $0xeb8] sm:$0xf]  ;;  %v17122_v26 = vld [vmem:[#allocation2 + $0xd18] sm:$0xf0]  ;;  %v13506_v60 = vld [vmem:[#allocation2 + $0xdc8] sm:$0xf] }
 0x1f5   :  { %4362 = vmatpush.bf16.msra.mxu2 %v13035_v62  ;;  %v13627_v62 = vor.u32 %v17187_v25, %v13626_v19  ;;  %v17157_v2 = vld [vmem:[#allocation2 + $0xdd0] sm:$0xf0] }
 0x1f6   :  { %4381 = vmatpush.bf16.msra.mxu3 %v13131_v13  ;;  %v19139_v38 = vadd.f32 %v2976_v24, %v2958_v45  ;;  %v3008_v37 = vadd.f32 %v3007_v4, %v2989_v33  ;;  %4325 = vmatmul.bf16.vlgmr.msra.gmra.mxu0 %v18993_v29  ;;  %v17101_v29 = vld [vmem:[#allocation2 + $0xc70] sm:$0xf0]  ;;  %v13602_v33 = vld [vmem:[#allocation2 + $0xe88] sm:$0xf]  ;;  %v13263_v4 = vor.u32 %v17098_v20, %v13262_v47 }
 0x1f7   :  { %4393 = vmatpush.bf16.msrb.mxu0 %v13311_v12  ;;  %4344 = vmatmul.bf16.vlgmr.msra.gmra.mxu1 %v18996_v7  ;;  %v13518_v7 = vld [vmem:[#allocation2 + $0xde0] sm:$0xf]  ;;  %v13275_v18 = vor.u32 %v17101_v29, %v13274_v48  ;;  %v13322_v47 = vld [vmem:[#allocation2 + $0xcc8] sm:$0xf]  ;;  %v17113_v20 = vld [vmem:[#allocation2 + $0xcd0] sm:$0xf0] }
 0x1f8   :  { %4412 = vmatpush.bf16.msrb.mxu1 %v13407_v34  ;;  %4363 = vmatmul.bf16.vlgmr.msra.gmra.mxu2 %v18998_v52  ;;  %v13614_v34 = vld [vmem:[#allocation2 + $0xea0] sm:$0xf]  ;;  %v13519_v40 = vor.u32 %v17160_v54, %v13518_v7  ;;  %v17092_v7 = vld [vmem:[#allocation2 + $0xc28] sm:$0xf0] }
 0x1f9   :  { %5477 = vmatpush.bf16.msrb.mxu2 %v13555_v10  ;;  %4382 = vmatmul.bf16.vlgmr.msra.gmra.mxu3 %v19001_v36  ;;  %v17184_v36 = vld [vmem:[#allocation2 + $0xea8] sm:$0xf0]  ;;  %v13334_v54 = vld [vmem:[#allocation2 + $0xce0] sm:$0xf] }
 0x1fa   :  { %5496 = vmatpush.bf16.msrb.mxu3 %v13651_v9  ;;  %v13615_v24 = vor.u32 %v17184_v36, %v13614_v34  ;;  %v13482_v34 = vld [vmem:[#allocation2 + $0xd98] sm:$0xf] }
 0x1fb   :  { %4394 = vmatpush.bf16.msrb.mxu0 %v13299_v6  ;;  %v3026_v55 = vpop.f32.mrf.mxu2  ;;  %v2990_v13 = vpop.f32.mrf.mxu0  ;;  %v13359_v6 = vor.u32 %v17122_v26, %v13358_v56  ;;  %v13578_v36 = vld [vmem:[#allocation2 + $0xe58] sm:$0xf]  ;;  %v13470_v56 = vld [vmem:[#allocation2 + $0xd80] sm:$0xf]  ;;  %v17172_v26 = vld [vmem:[#allocation2 + $0xe48] sm:$0xf0] }
 0x1fc   :  { %4413 = vmatpush.bf16.msrb.mxu1 %v13395_v58  ;;  %v3027_v52 = vadd.f32 %v3026_v55, %v3008_v37  ;;  %v3045_v12 = vpop.f32.mrf.mxu3  ;;  %v2991_v10 = vadd.f32 %v2990_v13, %v19123_v11  ;;  %v3009_v9 = vpop.f32.mrf.mxu1  ;;  %v17181_v11 = vld [vmem:[#allocation2 + $0xe90] sm:$0xf0]  ;;  %v13507_v58 = vor.u32 %v17157_v2, %v13506_v60 }
 0x1fd   :  { %5478 = vmatpush.bf16.msrb.mxu2 %v13543_v39  ;;  %v13250_v39 = vld [vmem:[#allocation2 + $0xc38] sm:$0xf]  ;;  %v13603_v37 = vor.u32 %v17181_v11, %v13602_v33  ;;  %v13938_v33 = vld [vmem:[#allocation2 + $0x1128] sm:$0xf]  ;;  %v17265_v11 = vld [vmem:[#allocation2 + $0x1130] sm:$0xf0] }
 0x1fe   :  { %5497 = vmatpush.bf16.msrb.mxu3 %v13639_v0  ;;  %v19146_v23 = vadd.f32 %v3045_v12, %v3027_v52  ;;  %v3010_v45 = vadd.f32 %v3009_v9, %v2991_v10  ;;  %v17119_v0 = vld [vmem:[#allocation2 + $0xd00] sm:$0xf0]  ;;  %v13251_v29 = vor.u32 %v17095_v51, %v13250_v39  ;;  %v17116_v12 = vld [vmem:[#allocation2 + $0xce8] sm:$0xf0]  ;;  %v13239_v9 = vor.u32 %v17092_v7, %v13238_v16  ;;  %v17217_v51 = vld [vmem:[#allocation2 + $0xfb0] sm:$0xf0] }
 0x1ff   :  { %4395 = vmatpush.bf16.msrb.mxu0 %v13287_v15  ;;  %v13590_v15 = vld [vmem:[#allocation2 + $0xe70] sm:$0xf]  ;;  %v13347_v55 = vor.u32 %v17119_v0, %v13346_v41  ;;  %v17175_v10 = vld [vmem:[#allocation2 + $0xe60] sm:$0xf0]  ;;  %v13842_v41 = vld [vmem:[#allocation2 + $0x1068] sm:$0xf]  ;;  %v13323_v0 = vor.u32 %v17113_v20, %v13322_v47 }
 0x200   :  { %4414 = vmatpush.bf16.msrb.mxu1 %v13383_v50  ;;  %v17178_v50 = vld [vmem:[#allocation2 + $0xe78] sm:$0xf0]  ;;  %v13424_v7 = vld [vmem:[%s19956_s26 + $0x138] sm:$0xf0]  ;;  %v17259_v47 = vld [vmem:[#allocation2 + $0x1100] sm:$0xf0] }
 0x201   :  { %5479 = vmatpush.bf16.msrb.mxu2 %v13531_v1  ;;  %v13591_v13 = vor.u32 %v17178_v50, %v13590_v15  ;;  %v13939_v15 = vor.u32 %v17265_v11, %v13938_v33  ;;  %v17135_v16 = vld [vmem:[%s19956_s26 + $0x124] sm:$0xf]  ;;  %v17235_v11 = vld [vmem:[#allocation2 + $0x1040] sm:$0xf0] }
 0x202   :  { %5498 = vmatpush.bf16.msrb.mxu3 %v13627_v62  ;;  %v13495_v62 = vor.u32 %v17154_v49, %v13494_v46  ;;  %v14034_v49 = vld [vmem:[#allocation2 + $0x11e8] sm:$0xf] }
 0x203   :  { %4396 = vmatpush.bf16.msrb.mxu0 %v13275_v18  ;;  %v3028_v8 = vpop.f32.mrf.mxu2  ;;  %v2993_v19 = vpop.f32.mrf.mxu0  ;;  %v13226_v18 = vld [vmem:[#allocation2 + $0xc08] sm:$0xf] }
 0x204   :  { %4415 = vmatpush.bf16.msrb.mxu1 %v13371_v3  ;;  %v3029_v35 = vadd.f32 %v3028_v8, %v3010_v45  ;;  %v3047_v25 = vpop.f32.mrf.mxu3  ;;  %v2994_v1 = vadd.f32 %v2993_v19, %v19133_v53  ;;  %v3012_v48 = vpop.f32.mrf.mxu1  ;;  %v17151_v53 = vld [vmem:[#allocation2 + $0xda0] sm:$0xf0]  ;;  %v17089_v3 = vld [vmem:[#allocation2 + $0xc10] sm:$0xf0] }
 0x205   :  { %5480 = vmatpush.bf16.msrb.mxu2 %v13519_v40  ;;  %v13483_v40 = vor.u32 %v17151_v53, %v13482_v34  ;;  %v13227_v39 = vor.u32 %v17089_v3, %v13226_v18  ;;  %v17241_v8 = vld [vmem:[#allocation2 + $0x1070] sm:$0xf0]  ;;  %v17238_v53 = vld [vmem:[#allocation2 + $0x1058] sm:$0xf0] }
 0x206   :  { %5499 = vmatpush.bf16.msrb.mxu3 %v13615_v24  ;;  %v19149_v28 = vadd.f32 %v3047_v25, %v3029_v35  ;;  %v3013_v52 = vadd.f32 %v3012_v48, %v2994_v1  ;;  %4330 = vmatmul.bf16.gmra.mxu0 %v19036_v42  ;;  %v13335_v42 = vor.u32 %v17116_v12, %v13334_v54  ;;  %v17148_v24 = vld [vmem:[#allocation2 + $0xd88] sm:$0xf0]  ;;  %v17289_v35 = vld [vmem:[#allocation2 + $0x11f0] sm:$0xf0]  ;;  %v13926_v48 = vld [vmem:[#allocation2 + $0x1110] sm:$0xf] }
 0x207   :  { %4397 = vmatpush.bf16.msrb.mxu0 %v13263_v4  ;;  %4349 = vmatmul.bf16.gmra.mxu1 %v19038_v61  ;;  %v13579_v61 = vor.u32 %v17175_v10, %v13578_v36  ;;  %v13746_v4 = vld [vmem:[#allocation2 + $0xfa8] sm:$0xf]  ;;  %v13471_v46 = vor.u32 %v17148_v24, %v13470_v56  ;;  %v13843_v1 = vor.u32 %v17241_v8, %v13842_v41  ;;  %v13734_v54 = vld [vmem:[#allocation2 + $0xf90] sm:$0xf]  ;;  %v17286_v10 = vld [vmem:[#allocation2 + $0x11d8] sm:$0xf0] }
 0x208   :  { %4416 = vmatpush.bf16.msrb.mxu1 %v13359_v6  ;;  %4368 = vmatmul.bf16.gmra.mxu2 %v19040_v22  ;;  %v13566_v22 = vld [vmem:[#allocation2 + $0xe40] sm:$0xf]  ;;  %v13747_v50 = vor.u32 %v17217_v51, %v13746_v4  ;;  %v14022_v36 = vld [vmem:[#allocation2 + $0x11d0] sm:$0xf]  ;;  %v19172_v56 = vor.u32 %v17135_v16, %v13424_v7  ;;  %v14010_v4 = vld [vmem:[#allocation2 + $0x11b8] sm:$0xf] }
 0x209   :  { %5481 = vmatpush.bf16.msrb.mxu2 %v13507_v58  ;;  %4387 = vmatmul.bf16.gmra.mxu3 %v19043_v57  ;;  %v13567_v25 = vor.u32 %v17172_v26, %v13566_v22  ;;  %v14023_v26 = vor.u32 %v17286_v10, %v14022_v36  ;;  %v13710_v41 = vld [vmem:[#allocation2 + $0xf60] sm:$0xf]  ;;  %v17229_v36 = vld [vmem:[#allocation2 + $0x1010] sm:$0xf0]  ;;  %v13986_v10 = vld [vmem:[#allocation2 + $0x1188] sm:$0xf] }
 0x20a   :  { %5500 = vmatpush.bf16.msrb.mxu3 %v13603_v37 }
 0x20b   :  { %4398 = vmatpush.bf16.msrb.mxu0 %v13251_v29  ;;  %v3031_v45 = vpop.f32.mrf.mxu2  ;;  %v2995_v2 = vpop.f32.mrf.mxu0  ;;  %v17262_v29 = vld [vmem:[#allocation2 + $0x1118] sm:$0xf0] }
 0x20c   :  { %4417 = vmatpush.bf16.msrb.mxu1 %v13347_v55  ;;  %v3032_v60 = vadd.f32 %v3031_v45, %v3013_v52  ;;  %v3050_v57 = vpop.f32.mrf.mxu3  ;;  %v2996_v6 = vadd.f32 %v2995_v2, %v19139_v38  ;;  %v3014_v58 = vpop.f32.mrf.mxu1  ;;  %v13422_v38 = vld [vmem:[%s19956_s26 + $0x120] sm:$0xf]  ;;  %v17138_v55 = vld [vmem:[%s19956_s26 + $0x134] sm:$0xf0]  ;;  %v17214_v52 = vld [vmem:[#allocation2 + $0xf98] sm:$0xf0]  ;;  %v13927_v34 = vor.u32 %v17262_v29, %v13926_v48 }
 0x20d   :  { %5482 = vmatpush.bf16.msrb.mxu2 %v13495_v62  ;;  %v14035_v62 = vor.u32 %v17289_v35, %v14034_v49  ;;  %v13735_v45 = vor.u32 %v17214_v52, %v13734_v54  ;;  %v17211_v2 = vld [vmem:[#allocation2 + $0xf80] sm:$0xf0]  ;;  %v17232_v49 = vld [vmem:[#allocation2 + $0x1028] sm:$0xf0]  ;;  %v17253_v48 = vld [vmem:[#allocation2 + $0x10d0] sm:$0xf0] }
 0x20e   :  { %5501 = vmatpush.bf16.msrb.mxu3 %v13591_v13  ;;  %v19156_v37 = vadd.f32 %v3050_v57, %v3032_v60  ;;  %v3015_v19 = vadd.f32 %v3014_v58, %v2996_v6  ;;  %v13830_v13 = vld [vmem:[#allocation2 + $0x1050] sm:$0xf]  ;;  %v13722_v60 = vld [vmem:[#allocation2 + $0xf78] sm:$0xf]  ;;  %v17283_v6 = vld [vmem:[#allocation2 + $0x11c0] sm:$0xf0] }
 0x20f   :  { %4399 = vmatpush.bf16.msrb.mxu0 %v13239_v9  ;;  %v13831_v22 = vor.u32 %v17238_v53, %v13830_v13  ;;  %v13818_v57 = vld [vmem:[#allocation2 + $0x1038] sm:$0xf]  ;;  %v13902_v58 = vld [vmem:[#allocation2 + $0x10e0] sm:$0xf]  ;;  %v13723_v51 = vor.u32 %v17211_v2, %v13722_v60  ;;  %v13698_v52 = vld [vmem:[#allocation2 + $0xf48] sm:$0xf] }
 0x210   :  { %4418 = vmatpush.bf16.msrb.mxu1 %v13335_v42  ;;  %v19170_v42 = vor.u32 %v17138_v55, %v13422_v38  ;;  %v13819_v8 = vor.u32 %v17235_v11, %v13818_v57  ;;  %v17205_v13 = vld [vmem:[#allocation2 + $0xf50] sm:$0xf0]  ;;  %v13446_v53 = vld [vmem:[%s19956_s26 + $0x150] sm:$0xf]  ;;  %v17202_v60 = vld [vmem:[#allocation2 + $0xf38] sm:$0xf0] }
 0x211   :  { %5483 = vmatpush.bf16.msrb.mxu2 %v13483_v40  ;;  %v13914_v40 = vld [vmem:[#allocation2 + $0x10f8] sm:$0xf]  ;;  %v13782_v2 = vld [vmem:[#allocation2 + $0xff0] sm:$0xf]  ;;  %v17226_v57 = vld [vmem:[#allocation2 + $0xff8] sm:$0xf0] }
 0x212   :  { %5502 = vmatpush.bf16.msrb.mxu3 %v13579_v61  ;;  %v13915_v33 = vor.u32 %v17259_v47, %v13914_v40  ;;  %v17250_v40 = vld [vmem:[#allocation2 + $0x10b8] sm:$0xf0]  ;;  %v13699_v47 = vor.u32 %v17205_v13, %v13698_v52  ;;  %v13748_v13 = vld [vmem:[#allocation2 + $0xfb4] sm:$0xf0] }
 0x213   :  { %4400 = vmatpush.bf16.msrb.mxu0 %v13227_v39  ;;  %v3033_v12 = vpop.f32.mrf.mxu2  ;;  %v4098_v3 = vpop.f32.mrf.mxu0  ;;  %v17256_v39 = vld [vmem:[#allocation2 + $0x10e8] sm:$0xf0] }
 0x214   :  { %4419 = vmatpush.bf16.msrb.mxu1 %v13323_v0  ;;  %v3034_v9 = vadd.f32 %v3033_v12, %v3015_v19  ;;  %v3052_v18 = vpop.f32.mrf.mxu3  ;;  %v4117_v20 = vpop.f32.mrf.mxu1  ;;  %v17208_v0 = vld [vmem:[#allocation2 + $0xf68] sm:$0xf0]  ;;  %v13903_v19 = vor.u32 %v17256_v39, %v13902_v58  ;;  %v13794_v12 = vld [vmem:[#allocation2 + $0x1008] sm:$0xf] }
 0x215   :  { %5484 = vmatpush.bf16.msrb.mxu2 %v13471_v46  ;;  %v4118_v24 = vadd.f32 %v4117_v20, %v4098_v3  ;;  %v13806_v46 = vld [vmem:[#allocation2 + $0x1020] sm:$0xf]  ;;  %v13711_v55 = vor.u32 %v17208_v0, %v13710_v41  ;;  %v13878_v3 = vld [vmem:[#allocation2 + $0x10b0] sm:$0xf]  ;;  %v17141_v20 = vld [vmem:[%s19956_s26 + $0x154] sm:$0xf] }
 0x216   :  { %5503 = vmatpush.bf16.msrb.mxu3 %v13567_v25  ;;  %v19174_v61 = vadd.f32 %v3052_v18, %v3034_v9  ;;  %4401 = vmatmul.bf16.vlgmr.msrb.gmra.mxu0 %v19066_v14  ;;  %v14011_v14 = vor.u32 %v17283_v6, %v14010_v4  ;;  %v17280_v25 = vld [vmem:[#allocation2 + $0x11a8] sm:$0xf0]  ;;  %v17277_v9 = vld [vmem:[#allocation2 + $0x1190] sm:$0xf0]  ;;  %v17144_v18 = vld [vmem:[%s19956_s26 + $0x164] sm:$0xf0]  ;;  %v13879_v11 = vor.u32 %v17250_v40, %v13878_v3 }
 0x217   :  { %5515 = vmatpush.bf16.msra.mxu0 %v13747_v50  ;;  %4420 = vmatmul.bf16.vlgmr.msrb.gmra.mxu1 %v19068_v43  ;;  %v13998_v43 = vld [vmem:[#allocation2 + $0x11a0] sm:$0xf]  ;;  %v13974_v4 = vld [vmem:[#allocation2 + $0x1170] sm:$0xf]  ;;  %v17274_v6 = vld [vmem:[#allocation2 + $0x1178] sm:$0xf0]  ;;  %v19194_v41 = vor.u32 %v17144_v18, %v13446_v53 }
 0x218   :  { %5534 = vmatpush.bf16.msra.mxu1 %v13843_v1  ;;  %5485 = vmatmul.bf16.vlgmr.msrb.gmra.mxu2 %v19170_v42  ;;  %v13890_v1 = vld [vmem:[#allocation2 + $0x10c8] sm:$0xf]  ;;  %v13999_v54 = vor.u32 %v17280_v25, %v13998_v43  ;;  %v13975_v25 = vor.u32 %v17274_v6, %v13974_v4  ;;  %v17268_v3 = vld [vmem:[#allocation2 + $0x1148] sm:$0xf0]  ;;  %v13844_v4 = vld [vmem:[#allocation2 + $0x1074] sm:$0xf0] }
 0x219   :  { %5553 = vmatpush.bf16.msra.mxu2 %v13939_v15  ;;  %5504 = vmatmul.bf16.vlgmr.msrb.gmra.mxu3 %v19172_v56  ;;  %v17168_v40 = vld [vmem:[#allocation2 + $0xe2c] sm:$0xf]  ;;  %v17213_v6 = vld [vmem:[#allocation2 + $0xf94] sm:$0xf] }
 0x21a   :  { %5572 = vmatpush.bf16.msra.mxu3 %v14035_v62  ;;  %v13807_v62 = vor.u32 %v17232_v49, %v13806_v46 }
 0x21b   :  { %5516 = vmatpush.bf16.msra.mxu0 %v13735_v45  ;;  %v4136_v35 = vpop.f32.mrf.mxu2  ;;  %v4100_v38 = vpop.f32.mrf.mxu0  ;;  %v13448_v45 = vld [vmem:[%s19956_s26 + $0x168] sm:$0xf0] }
 0x21c   :  { %5535 = vmatpush.bf16.msra.mxu1 %v13831_v22  ;;  %v4137_v15 = vadd.f32 %v4136_v35, %v4118_v24  ;;  %v4155_v50 = vpop.f32.mrf.mxu3  ;;  %v4119_v29 = vpop.f32.mrf.mxu1  ;;  %v13686_v24 = vld [vmem:[#allocation2 + $0xf30] sm:$0xf]  ;;  %v13795_v22 = vor.u32 %v17229_v36, %v13794_v12  ;;  %v19196_v46 = vor.u32 %v17141_v20, %v13448_v45  ;;  %v13783_v35 = vor.u32 %v17226_v57, %v13782_v2  ;;  %v13662_v12 = vld [vmem:[#allocation2 + $0xf00] sm:$0xf]  ;;  %v17240_v2 = vld [vmem:[#allocation2 + $0x106c] sm:$0xf] }
 0x21d   :  { %5554 = vmatpush.bf16.msra.mxu2 %v13927_v34  ;;  %v4120_v16 = vadd.f32 %v4119_v29, %v4100_v38  ;;  %v13891_v34 = vor.u32 %v17253_v48, %v13890_v1  ;;  %v13687_v49 = vor.u32 %v17202_v60, %v13686_v24  ;;  %v17199_v38 = vld [vmem:[#allocation2 + $0xf20] sm:$0xf0]  ;;  %v13962_v29 = vld [vmem:[#allocation2 + $0x1158] sm:$0xf]  ;;  %v13758_v36 = vld [vmem:[#allocation2 + $0xfc0] sm:$0xf] }
 0x21e   :  { %5573 = vmatpush.bf16.msra.mxu3 %v14023_v26  ;;  %v19180_v7 = vadd.f32 %v4155_v50, %v4137_v15  ;;  %v13987_v26 = vor.u32 %v17277_v9, %v13986_v10  ;;  %v13674_v15 = vld [vmem:[#allocation2 + $0xf18] sm:$0xf]  ;;  %v17223_v48 = vld [vmem:[#allocation2 + $0xfe0] sm:$0xf0]  ;;  %v17220_v10 = vld [vmem:[#allocation2 + $0xfc8] sm:$0xf0] }
 0x21f   :  { %5517 = vmatpush.bf16.msra.mxu0 %v13723_v51  ;;  %v13770_v50 = vld [vmem:[#allocation2 + $0xfd8] sm:$0xf]  ;;  %v13675_v52 = vor.u32 %v17199_v38, %v13674_v15  ;;  %v13950_v9 = vld [vmem:[#allocation2 + $0x1140] sm:$0xf]  ;;  %v13847_v15 = vor.u32 %v17240_v2, %v13844_v4  ;;  %v13438_v38 = vld [vmem:[%s19956_s26 + $0x130] sm:$0xf] }
 0x220   :  { %5536 = vmatpush.bf16.msra.mxu1 %v13819_v8  ;;  %v13866_v8 = vld [vmem:[#allocation2 + $0x1098] sm:$0xf] }
 0x221   :  { %5555 = vmatpush.bf16.msra.mxu2 %v13915_v33  ;;  %v13652_v60 = vld [vmem:[#allocation2 + $0xef4] sm:$0xf0] }
 0x222   :  { %5574 = vmatpush.bf16.msra.mxu3 %v14011_v14  ;;  %v17247_v14 = vld [vmem:[#allocation2 + $0x10a0] sm:$0xf0] }
 0x223   :  { %5518 = vmatpush.bf16.msra.mxu0 %v13711_v55  ;;  %v4138_v33 = vpop.f32.mrf.mxu2  ;;  %v4103_v39 = vpop.f32.mrf.mxu0  ;;  %v13867_v1 = vor.u32 %v17247_v14, %v13866_v8  ;;  %v17271_v55 = vld [vmem:[#allocation2 + $0x1160] sm:$0xf0]  ;;  %v13951_v8 = vor.u32 %v17268_v3, %v13950_v9  ;;  %v13430_v14 = vld [vmem:[%s19956_s26 + $0x128] sm:$0xf] }
 0x224   :  { %5537 = vmatpush.bf16.msra.mxu1 %v13807_v62  ;;  %v4139_v58 = vadd.f32 %v4138_v33, %v4120_v16  ;;  %v4157_v51 = vpop.f32.mrf.mxu3  ;;  %v4122_v0 = vpop.f32.mrf.mxu1  ;;  %v13854_v62 = vld [vmem:[#allocation2 + $0x1080] sm:$0xf]  ;;  %v17244_v16 = vld [vmem:[#allocation2 + $0x1088] sm:$0xf0]  ;;  %v13963_v53 = vor.u32 %v17271_v55, %v13962_v29 }
 0x225   :  { %5556 = vmatpush.bf16.msra.mxu2 %v13903_v19  ;;  %v4123_v19 = vadd.f32 %v4122_v0, %v4103_v39  ;;  %v13855_v18 = vor.u32 %v17244_v16, %v13854_v62  ;;  %v17140_v29 = vld [vmem:[%s19956_s26 + $0x144] sm:$0xf0]  ;;  %v17137_v55 = vld [vmem:[%s19956_s26 + $0x134] sm:$0xf]  ;;  %v13440_v62 = vld [vmem:[%s19956_s26 + $0x148] sm:$0xf0] }
 0x226   :  { %5575 = vmatpush.bf16.msra.mxu3 %v13999_v54  ;;  %v19198_v43 = vadd.f32 %v4157_v51, %v4139_v58  ;;  %4406 = vmatmul.bf16.gmra.mxu0 %v19092_v21  ;;  %v17216_v54 = vld [vmem:[#allocation2 + $0xfac] sm:$0xf]  ;;  %v13771_v21 = vor.u32 %v17223_v48, %v13770_v50  ;;  %v13736_v58 = vld [vmem:[#allocation2 + $0xf9c] sm:$0xf0]  ;;  %v17165_v16 = vld [vmem:[#allocation2 + $0xe14] sm:$0xf]  ;;  %v19234_v3 = vor.u32 %v17140_v29, %v13438_v38 }
 0x227   :  { %5519 = vmatpush.bf16.msra.mxu0 %v13699_v47  ;;  %4425 = vmatmul.bf16.gmra.mxu1 %v19094_v63  ;;  %v13556_v47 = vld [vmem:[#allocation2 + $0xe34] sm:$0xf0]  ;;  %v13739_v50 = vor.u32 %v17213_v6, %v13736_v58  ;;  %v13640_v48 = vld [vmem:[#allocation2 + $0xedc] sm:$0xf0]  ;;  %v13820_v58 = vld [vmem:[#allocation2 + $0x1044] sm:$0xf0] }
 0x228   :  { %5538 = vmatpush.bf16.msra.mxu1 %v13795_v22  ;;  %5490 = vmatmul.bf16.gmra.mxu2 %v19194_v41  ;;  %v13751_v22 = vor.u32 %v17216_v54, %v13748_v13  ;;  %v13559_v0 = vor.u32 %v17168_v40, %v13556_v47  ;;  %v13544_v54 = vld [vmem:[#allocation2 + $0xe1c] sm:$0xf0]  ;;  %v17186_v40 = vld [vmem:[#allocation2 + $0xebc] sm:$0xf]  ;;  %v13628_v47 = vld [vmem:[#allocation2 + $0xec4] sm:$0xf0] }
 0x229   :  { %5557 = vmatpush.bf16.msra.mxu2 %v13891_v34  ;;  %5509 = vmatmul.bf16.gmra.mxu3 %v19196_v46  ;;  %v17196_v34 = vld [vmem:[#allocation2 + $0xf08] sm:$0xf0]  ;;  %v13631_v6 = vor.u32 %v17186_v40, %v13628_v47  ;;  %v17231_v38 = vld [vmem:[#allocation2 + $0x1024] sm:$0xf]  ;;  %v13796_v40 = vld [vmem:[#allocation2 + $0x1014] sm:$0xf0] }
 0x22a   :  { %5576 = vmatpush.bf16.msra.mxu3 %v13987_v26  ;;  %v17192_v26 = vld [vmem:[#allocation2 + $0xeec] sm:$0xf]  ;;  %v13663_v33 = vor.u32 %v17196_v34, %v13662_v12  ;;  %v13454_v47 = vld [vmem:[%s19956_s26 + $0x158] sm:$0xf] }
 0x22b   :  { %5520 = vmatpush.bf16.msra.mxu0 %v13687_v49  ;;  %v4141_v63 = vpop.f32.mrf.mxu2  ;;  %v4105_v45 = vpop.f32.mrf.mxu0  ;;  %v13655_v49 = vor.u32 %v17192_v26, %v13652_v60  ;;  %v17204_v29 = vld [vmem:[#allocation2 + $0xf4c] sm:$0xf] }
 0x22c   :  { %5539 = vmatpush.bf16.msra.mxu1 %v13783_v35  ;;  %v4142_v20 = vadd.f32 %v4141_v63, %v4123_v19  ;;  %v4160_v24 = vpop.f32.mrf.mxu3  ;;  %v4124_v57 = vpop.f32.mrf.mxu1  ;;  %v17139_v35 = vld [vmem:[%s19956_s26 + $0x13c] sm:$0xf0]  ;;  %v17136_v19 = vld [vmem:[%s19956_s26 + $0x12c] sm:$0xf] }
 0x22d   :  { %5558 = vmatpush.bf16.msra.mxu2 %v13879_v11  ;;  %v13759_v11 = vor.u32 %v17220_v10, %v13758_v36  ;;  %v4125_v39 = vadd.f32 %v4124_v57, %v4105_v45  ;;  %v19230_v12 = vor.u32 %v17139_v35, %v13430_v14  ;;  %v13724_v36 = vld [vmem:[#allocation2 + $0xf84] sm:$0xf0]  ;;  %v17162_v57 = vld [vmem:[#allocation2 + $0xdfc] sm:$0xf]  ;;  %v13616_v14 = vld [vmem:[#allocation2 + $0xeac] sm:$0xf0] }
 0x22e   :  { %5577 = vmatpush.bf16.msra.mxu3 %v13975_v25  ;;  %v19204_v51 = vadd.f32 %v4160_v24, %v4142_v20  ;;  %v13432_v25 = vld [vmem:[%s19956_s26 + $0x140] sm:$0xf0]  ;;  %v19237_v24 = vor.u32 %v17137_v55, %v13440_v62  ;;  %v13700_v55 = vld [vmem:[#allocation2 + $0xf54] sm:$0xf0] }
 0x22f   :  { %5521 = vmatpush.bf16.msra.mxu0 %v13675_v52  ;;  %v17237_v52 = vld [vmem:[#allocation2 + $0x1054] sm:$0xf] }
 0x230   :  { %5540 = vmatpush.bf16.msra.mxu1 %v13771_v21  ;;  %v13832_v21 = vld [vmem:[#allocation2 + $0x105c] sm:$0xf0] }
 0x231   :  { %5559 = vmatpush.bf16.msra.mxu2 %v13867_v1  ;;  %v17189_v1 = vld [vmem:[#allocation2 + $0xed4] sm:$0xf]  ;;  %v13835_v60 = vor.u32 %v17237_v52, %v13832_v21 }
 0x232   :  { %5578 = vmatpush.bf16.msra.mxu3 %v13963_v53  ;;  %v13643_v34 = vor.u32 %v17189_v1, %v13640_v48  ;;  %v17210_v53 = vld [vmem:[#allocation2 + $0xf7c] sm:$0xf]  ;;  %v13808_v48 = vld [vmem:[#allocation2 + $0x102c] sm:$0xf0] }
 0x233   :  { %5522 = vmatpush.bf16.msra.mxu0 %v13663_v33  ;;  %v4143_v13 = vpop.f32.mrf.mxu2  ;;  %v4174_v63 = vpop.f32.mrf.mxu0  ;;  %v13727_v2 = vor.u32 %v17210_v53, %v13724_v36  ;;  %v13532_v33 = vld [vmem:[#allocation2 + $0xe04] sm:$0xf0]  ;;  %v17156_v53 = vld [vmem:[#allocation2 + $0xdcc] sm:$0xf]  ;;  %v13508_v36 = vld [vmem:[#allocation2 + $0xdd4] sm:$0xf0] }
 0x234   :  { %5541 = vmatpush.bf16.msra.mxu1 %v13759_v11  ;;  %v4144_v10 = vadd.f32 %v4143_v13, %v4125_v39  ;;  %v4162_v9 = vpop.f32.mrf.mxu3  ;;  %v4175_v20 = vadd.f32 %v4174_v63, %v19180_v7  ;;  %v4193_v45 = vpop.f32.mrf.mxu1  ;;  %v17234_v11 = vld [vmem:[#allocation2 + $0x103c] sm:$0xf]  ;;  %v17207_v39 = vld [vmem:[#allocation2 + $0xf64] sm:$0xf]  ;;  %v13703_v63 = vor.u32 %v17204_v29, %v13700_v55 }
 0x235   :  { %5560 = vmatpush.bf16.msra.mxu2 %v13855_v18  ;;  %v19232_v18 = vor.u32 %v17136_v19, %v13432_v25  ;;  %v17183_v7 = vld [vmem:[#allocation2 + $0xea4] sm:$0xf]  ;;  %v13823_v35 = vor.u32 %v17234_v11, %v13820_v58  ;;  %v17177_v11 = vld [vmem:[#allocation2 + $0xe74] sm:$0xf]  ;;  %v13511_v58 = vor.u32 %v17156_v53, %v13508_v36 }
 0x236   :  { %5579 = vmatpush.bf16.msra.mxu3 %v13951_v8  ;;  %v19239_v26 = vadd.f32 %v4162_v9, %v4144_v10  ;;  %v4194_v4 = vadd.f32 %v4193_v45, %v4175_v20  ;;  %5523 = vmatmul.bf16.vlgmr.msra.gmra.mxu0 %v19230_v12  ;;  %v13712_v8 = vld [vmem:[#allocation2 + $0xf6c] sm:$0xf0]  ;;  %v17159_v25 = vld [vmem:[#allocation2 + $0xde4] sm:$0xf]  ;;  %v13619_v1 = vor.u32 %v17183_v7, %v13616_v14  ;;  %v17228_v10 = vld [vmem:[#allocation2 + $0x100c] sm:$0xf] }
 0x237   :  { %5591 = vmatpush.bf16.msrb.mxu0 %v13559_v0  ;;  %5542 = vmatmul.bf16.vlgmr.msra.gmra.mxu1 %v19232_v18  ;;  %v13715_v19 = vor.u32 %v17207_v39, %v13712_v8  ;;  %v13811_v9 = vor.u32 %v17231_v38, %v13808_v48  ;;  %v17146_v39 = vld [vmem:[%s19956_s26 + $0x174] sm:$0xf0]  ;;  %v17143_v8 = vld [vmem:[%s19956_s26 + $0x164] sm:$0xf]  ;;  %v13464_v7 = vld [vmem:[%s19956_s26 + $0x178] sm:$0xf0]  ;;  %v13799_v14 = vor.u32 %v17228_v10, %v13796_v40 }
 0x238   :  { %5610 = vmatpush.bf16.msrb.mxu1 %v13655_v49  ;;  %5561 = vmatmul.bf16.vlgmr.msra.gmra.mxu2 %v19234_v3  ;;  %v19245_v0 = vadd.f32 %v4194_v4, %v19010_v32  ;;  %v13535_v49 = vor.u32 %v17162_v57, %v13532_v33  ;;  %v13688_v57 = vld [vmem:[#allocation2 + $0xf3c] sm:$0xf0]  ;;  %v13462_v33 = vld [vmem:[%s19956_s26 + $0x160] sm:$0xf]  ;;  %v13676_v48 = vld [vmem:[#allocation2 + $0xf24] sm:$0xf0]  ;;  %v19287_v53 = vor.u32 %v17143_v8, %v13464_v7 }
 0x239   :  { %5629 = vmatpush.bf16.msrb.mxu2 %v13751_v22  ;;  %v13547_v22 = vor.u32 %v17165_v16, %v13544_v54  ;;  %5580 = vmatmul.bf16.vlgmr.msra.gmra.mxu3 %v19237_v24  ;;  %v17180_v16 = vld [vmem:[#allocation2 + $0xe8c] sm:$0xf]  ;;  %v13604_v54 = vld [vmem:[#allocation2 + $0xe94] sm:$0xf0]  ;;  %v13592_v4 = vld [vmem:[#allocation2 + $0xe7c] sm:$0xf0] }
 0x23a   :  { %5648 = vmatpush.bf16.msrb.mxu3 %v13847_v15  ;;  %v13520_v15 = vld [vmem:[#allocation2 + $0xdec] sm:$0xf0]  ;;  %v13607_v45 = vor.u32 %v17180_v16, %v13604_v54  ;;  %v13595_v38 = vor.u32 %v17177_v11, %v13592_v4  ;;  %v17174_v16 = vld [vmem:[#allocation2 + $0xe5c] sm:$0xf]  ;;  %v13580_v54 = vld [vmem:[#allocation2 + $0xe64] sm:$0xf0] }
 0x23b   :  { %5592 = vmatpush.bf16.msrb.mxu0 %v13547_v22  ;;  %v4176_v62 = vpop.f32.mrf.mxu0  ;;  %v13523_v21 = vor.u32 %v17159_v25, %v13520_v15  ;;  %v17142_v22 = vld [vmem:[%s19956_s26 + $0x15c] sm:$0xf]  ;;  %v17150_v10 = vld [vmem:[#allocation2 + $0xd9c] sm:$0xf]  ;;  %v13484_v40 = vld [vmem:[#allocation2 + $0xda4] sm:$0xf0] }
 0x23c   :  { %5611 = vmatpush.bf16.msrb.mxu1 %v13643_v34  ;;  %v4231_v32 = vpop.f32.mrf.mxu3  ;;  %v4177_v52 = vadd.f32 %v4176_v62, %v19198_v43  ;;  %v4195_v13 = vpop.f32.mrf.mxu1  ;;  %v17145_v43 = vld [vmem:[%s19956_s26 + $0x16c] sm:$0xf0]  ;;  %v13487_v4 = vor.u32 %v17150_v10, %v13484_v40  ;;  %v14036_v8 = vld [vmem:[#allocation2 + $0x11f4] sm:$0xf0]  ;;  %v14024_v40 = vld [vmem:[#allocation2 + $0x11dc] sm:$0xf0] }
 0x23d   :  { %5630 = vmatpush.bf16.msrb.mxu2 %v13739_v50  ;;  %v4212_v50 = vpop.f32.mrf.mxu2  ;;  %v19278_v15 = vor.u32 %v17145_v43, %v13454_v47  ;;  %v17222_v47 = vld [vmem:[#allocation2 + $0xfdc] sm:$0xf]  ;;  %v13772_v43 = vld [vmem:[#allocation2 + $0xfe4] sm:$0xf0] }
 0x23e   :  { %5649 = vmatpush.bf16.msrb.mxu3 %v13835_v60  ;;  %v19249_v34 = vadd.f32 %v4231_v32, %v4212_v50  ;;  %v4196_v20 = vadd.f32 %v4195_v13, %v4177_v52  ;;  %v13456_v60 = vld [vmem:[%s19956_s26 + $0x170] sm:$0xf0]  ;;  %v13784_v50 = vld [vmem:[#allocation2 + $0xffc] sm:$0xf0]  ;;  %v19282_v32 = vor.u32 %v17146_v39, %v13462_v33  ;;  %v13568_v33 = vld [vmem:[#allocation2 + $0xe4c] sm:$0xf0]  ;;  %v13775_v7 = vor.u32 %v17222_v47, %v13772_v43 }
 0x23f   :  { %5593 = vmatpush.bf16.msrb.mxu0 %v13535_v49  ;;  %v19280_v62 = vor.u32 %v17142_v22, %v13456_v60  ;;  %v13664_v22 = vld [vmem:[#allocation2 + $0xf0c] sm:$0xf0]  ;;  %v17288_v39 = vld [vmem:[#allocation2 + $0x11ec] sm:$0xf] }
 0x240   :  { %5612 = vmatpush.bf16.msrb.mxu1 %v13631_v6  ;;  %v19267_v6 = vadd.f32 %v4196_v20, %v19045_v5  ;;  %v17153_v5 = vld [vmem:[#allocation2 + $0xdb4] sm:$0xf]  ;;  %v13562_v60 = vld [vmem:[#allocation2 + $0xe30] sm:$0xf] }
 0x241   :  { %5631 = vmatpush.bf16.msrb.mxu2 %v13727_v2  ;;  %v17201_v2 = vld [vmem:[#allocation2 + $0xf34] sm:$0xf] }
 0x242   :  { %5650 = vmatpush.bf16.msrb.mxu3 %v13823_v35  ;;  %v13691_v49 = vor.u32 %v17201_v2, %v13688_v57  ;;  %v13496_v35 = vld [vmem:[#allocation2 + $0xdbc] sm:$0xf0]  ;;  %v17170_v2 = vld [vmem:[#allocation2 + $0xe38] sm:$0xf0]  ;;  %v17171_v57 = vld [vmem:[#allocation2 + $0xe44] sm:$0xf] }
 0x243   :  { %5594 = vmatpush.bf16.msrb.mxu0 %v13523_v21  ;;  %v4179_v29 = vpop.f32.mrf.mxu0  ;;  %v13499_v36 = vor.u32 %v17153_v5, %v13496_v35  ;;  %v17219_v5 = vld [vmem:[#allocation2 + $0xfc4] sm:$0xf]  ;;  %v13760_v35 = vld [vmem:[#allocation2 + $0xfcc] sm:$0xf0] }
 0x244   :  { %5613 = vmatpush.bf16.msrb.mxu1 %v13619_v1  ;;  %v17198_v1 = vld [vmem:[#allocation2 + $0xf1c] sm:$0xf]  ;;  %v4233_v55 = vpop.f32.mrf.mxu3  ;;  %v4180_v52 = vadd.f32 %v4179_v29, %v19204_v51  ;;  %v4198_v13 = vpop.f32.mrf.mxu1  ;;  %v13583_v51 = vor.u32 %v17174_v16, %v13580_v54  ;;  %v13550_v54 = vld [vmem:[#allocation2 + $0xe18] sm:$0xf]  ;;  %v13763_v47 = vor.u32 %v17219_v5, %v13760_v35  ;;  %v14012_v35 = vld [vmem:[#allocation2 + $0x11c4] sm:$0xf0] }
 0x245   :  { %5632 = vmatpush.bf16.msrb.mxu2 %v13715_v19  ;;  %v17225_v19 = vld [vmem:[#allocation2 + $0xff4] sm:$0xf]  ;;  %v4214_v25 = vpop.f32.mrf.mxu2  ;;  %v17194_v16 = vld [vmem:[#allocation2 + $0xef8] sm:$0xf0] }
 0x246   :  { %5651 = vmatpush.bf16.msrb.mxu3 %v13811_v9  ;;  %v19285_v21 = vadd.f32 %v4233_v55, %v4214_v25  ;;  %v13787_v9 = vor.u32 %v17225_v19, %v13784_v50  ;;  %v4199_v20 = vadd.f32 %v4198_v13, %v4180_v52  ;;  %5528 = vmatmul.bf16.gmra.mxu0 %v19278_v15  ;;  %v13940_v50 = vld [vmem:[#allocation2 + $0x1134] sm:$0xf0]  ;;  %v17167_v52 = vld [vmem:[#allocation2 + $0xe20] sm:$0xf0]  ;;  %v17282_v5 = vld [vmem:[#allocation2 + $0x11bc] sm:$0xf] }
 0x247   :  { %5595 = vmatpush.bf16.msrb.mxu0 %v13511_v58  ;;  %5547 = vmatmul.bf16.gmra.mxu1 %v19280_v62  ;;  %v17147_v58 = vld [vmem:[#allocation2 + $0xd84] sm:$0xf]  ;;  %v13563_v25 = vor.u32 %v17170_v2, %v13562_v60  ;;  %v14039_v55 = vor.u32 %v17288_v39, %v14036_v8  ;;  %v13928_v60 = vld [vmem:[#allocation2 + $0x111c] sm:$0xf0]  ;;  %v13646_v2 = vld [vmem:[#allocation2 + $0xed8] sm:$0xf] }
 0x248   :  { %5614 = vmatpush.bf16.msrb.mxu1 %v13607_v45  ;;  %v17195_v45 = vld [vmem:[#allocation2 + $0xf04] sm:$0xf]  ;;  %5566 = vmatmul.bf16.gmra.mxu2 %v19282_v32  ;;  %v19293_v11 = vadd.f32 %v4199_v20, %v19052_v44  ;;  %v17264_v44 = vld [vmem:[#allocation2 + $0x112c] sm:$0xf]  ;;  %v17258_v8 = vld [vmem:[#allocation2 + $0x10fc] sm:$0xf] }
 0x249   :  { %5633 = vmatpush.bf16.msrb.mxu2 %v13703_v63  ;;  %v13679_v63 = vor.u32 %v17198_v1, %v13676_v48  ;;  %5585 = vmatmul.bf16.gmra.mxu3 %v19287_v53  ;;  %v13658_v1 = vld [vmem:[#allocation2 + $0xef0] sm:$0xf]  ;;  %v13943_v43 = vor.u32 %v17264_v44, %v13940_v50  ;;  %v17164_v39 = vld [vmem:[#allocation2 + $0xe08] sm:$0xf0] }
 0x24a   :  { %5652 = vmatpush.bf16.msrb.mxu3 %v13799_v14  ;;  %v13667_v14 = vor.u32 %v17195_v45, %v13664_v22  ;;  %v13551_v45 = vor.u32 %v17167_v52, %v13550_v54  ;;  %v17261_v22 = vld [vmem:[#allocation2 + $0x1114] sm:$0xf]  ;;  %v17255_v52 = vld [vmem:[#allocation2 + $0x10e4] sm:$0xf] }
 0x24b   :  { %5596 = vmatpush.bf16.msrb.mxu0 %v13499_v36  ;;  %v4181_v48 = vpop.f32.mrf.mxu0  ;;  %v17161_v54 = vld [vmem:[#allocation2 + $0xdf0] sm:$0xf0] }
 0x24c   :  { %5615 = vmatpush.bf16.msrb.mxu1 %v13595_v38  ;;  %v13571_v38 = vor.u32 %v17171_v57, %v13568_v33  ;;  %v4236_v29 = vpop.f32.mrf.mxu3  ;;  %v4182_v13 = vadd.f32 %v4181_v48, %v19239_v26  ;;  %v4200_v36 = vpop.f32.mrf.mxu1  ;;  %v17191_v57 = vld [vmem:[#allocation2 + $0xee0] sm:$0xf0] }
 0x24d   :  { %5634 = vmatpush.bf16.msrb.mxu2 %v13691_v49  ;;  %v13472_v49 = vld [vmem:[#allocation2 + $0xd8c] sm:$0xf0]  ;;  %v4217_v19 = vpop.f32.mrf.mxu2 }
 0x24e   :  { %5653 = vmatpush.bf16.msrb.mxu3 %v13787_v9  ;;  %v19297_v10 = vadd.f32 %v4236_v29, %v4217_v19  ;;  %v13475_v9 = vor.u32 %v17147_v58, %v13472_v49  ;;  %v4201_v20 = vadd.f32 %v4200_v36, %v4182_v13  ;;  %v13538_v58 = vld [vmem:[#allocation2 + $0xe00] sm:$0xf]  ;;  %v13916_v49 = vld [vmem:[#allocation2 + $0x1104] sm:$0xf0] }
 0x24f   :  { %5597 = vmatpush.bf16.msrb.mxu0 %v13487_v4  ;;  %v13931_v4 = vor.u32 %v17261_v22, %v13928_v60  ;;  %v13539_v48 = vor.u32 %v17164_v39, %v13538_v58  ;;  %v13919_v29 = vor.u32 %v17258_v8, %v13916_v49  ;;  %v17158_v22 = vld [vmem:[#allocation2 + $0xdd8] sm:$0xf0]  ;;  %v17252_v60 = vld [vmem:[#allocation2 + $0x10cc] sm:$0xf]  ;;  %v13988_v58 = vld [vmem:[#allocation2 + $0x1194] sm:$0xf0] }
 0x250   :  { %5616 = vmatpush.bf16.msrb.mxu1 %v13583_v51  ;;  %v13659_v51 = vor.u32 %v17194_v16, %v13658_v1  ;;  %v19300_v33 = vadd.f32 %v4201_v20, %v19071_v31  ;;  %v17188_v31 = vld [vmem:[#allocation2 + $0xec8] sm:$0xf0]  ;;  %v13526_v16 = vld [vmem:[#allocation2 + $0xde8] sm:$0xf]  ;;  %v17182_v49 = vld [vmem:[#allocation2 + $0xe98] sm:$0xf0] }
 0x251   :  { %5635 = vmatpush.bf16.msrb.mxu2 %v13679_v63  ;;  %v17285_v63 = vld [vmem:[#allocation2 + $0x11d4] sm:$0xf] }
 0x252   :  { %5654 = vmatpush.bf16.msrb.mxu3 %v13775_v7  ;;  %v14027_v26 = vor.u32 %v17285_v63, %v14024_v40  ;;  %v17279_v63 = vld [vmem:[#allocation2 + $0x11a4] sm:$0xf]  ;;  %v14000_v40 = vld [vmem:[#allocation2 + $0x11ac] sm:$0xf0] }
 0x253   :  { %5598 = vmatpush.bf16.msrb.mxu0 %v13475_v9  ;;  %v13904_v9 = vld [vmem:[#allocation2 + $0x10ec] sm:$0xf0] }
 0x254   :  { %5617 = vmatpush.bf16.msrb.mxu1 %v13571_v38  ;;  %v4238_v19 = vpop.f32.mrf.mxu3  ;;  %v13634_v38 = vld [vmem:[#allocation2 + $0xec0] sm:$0xf]  ;;  %v4269_v1 = vpop.f32.mrf.mxu1  ;;  %v13907_v20 = vor.u32 %v17255_v52, %v13904_v9 }
 0x255   :  { %5636 = vmatpush.bf16.msrb.mxu2 %v13667_v14  ;;  %v4219_v7 = vpop.f32.mrf.mxu2  ;;  %v13647_v14 = vor.u32 %v17191_v57, %v13646_v2  ;;  %v13635_v36 = vor.u32 %v17188_v31, %v13634_v38  ;;  %v13892_v57 = vld [vmem:[#allocation2 + $0x10d4] sm:$0xf0]  ;;  %v13976_v52 = vld [vmem:[#allocation2 + $0x117c] sm:$0xf0] }
 0x256   :  { %5655 = vmatpush.bf16.msrb.mxu3 %v13763_v47  ;;  %v19302_v44 = vadd.f32 %v4238_v19, %v4219_v7  ;;  %5599 = vmatmul.bf16.vlgmr.msrb.gmra.mxu0 %v19170_v42  ;;  %v17185_v47 = vld [vmem:[#allocation2 + $0xeb0] sm:$0xf0]  ;;  %v13895_v38 = vor.u32 %v17252_v60, %v13892_v57  ;;  %v13964_v60 = vld [vmem:[#allocation2 + $0x1164] sm:$0xf0]  ;;  %v13586_v57 = vld [vmem:[#allocation2 + $0xe60] sm:$0xf] }
 0x257   :  { %5667 = vmatpush.bf16.msra.mxu0 %v13943_v43  ;;  %5618 = vmatmul.bf16.vlgmr.msrb.gmra.mxu1 %v19172_v56  ;;  %v13527_v43 = vor.u32 %v17161_v54, %v13526_v16  ;;  %v13880_v16 = vld [vmem:[#allocation2 + $0x10bc] sm:$0xf0]  ;;  %v17273_v54 = vld [vmem:[#allocation2 + $0x1174] sm:$0xf] }
 0x258   :  { %5686 = vmatpush.bf16.msra.mxu1 %v14039_v55  ;;  %v14015_v55 = vor.u32 %v17282_v5, %v14012_v35  ;;  %5637 = vmatmul.bf16.vlgmr.msrb.gmra.mxu2 %v19230_v12 }
 0x259   :  { %5705 = vmatpush.bf16.msra.mxu2 %v13563_v25  ;;  %v4250_v25 = vpop.f32.mrf.mxu0  ;;  %5656 = vmatmul.bf16.vlgmr.msrb.gmra.mxu3 %v19232_v18 }
 0x25a   :  { %5724 = vmatpush.bf16.msra.mxu3 %v13659_v51  ;;  %v4251_v50 = vadd.f32 %v4250_v25, %v19249_v34  ;;  %v13622_v34 = vld [vmem:[#allocation2 + $0xea8] sm:$0xf]  ;;  %v14003_v51 = vor.u32 %v17279_v63, %v14000_v40  ;;  %v13979_v40 = vor.u32 %v17273_v54, %v13976_v52  ;;  %v13754_v54 = vld [vmem:[#allocation2 + $0xfb0] sm:$0xf] }
 0x25b   :  { %5668 = vmatpush.bf16.msra.mxu0 %v13931_v4  ;;  %v13623_v2 = vor.u32 %v17185_v47, %v13622_v34  ;;  %v17276_v4 = vld [vmem:[#allocation2 + $0x118c] sm:$0xf]  ;;  %v13490_v34 = vld [vmem:[#allocation2 + $0xda0] sm:$0xf] }
 0x25c   :  { %5687 = vmatpush.bf16.msra.mxu1 %v14027_v26  ;;  %v4270_v13 = vadd.f32 %v4269_v1, %v4251_v50  ;;  %v4307_v7 = vpop.f32.mrf.mxu3  ;;  %v4271_v35 = vpop.f32.mrf.mxu1  ;;  %v13991_v31 = vor.u32 %v17276_v4, %v13988_v58  ;;  %v13502_v50 = vld [vmem:[#allocation2 + $0xdb8] sm:$0xf]  ;;  %v17155_v1 = vld [vmem:[#allocation2 + $0xdc0] sm:$0xf0]  ;;  %v17152_v47 = vld [vmem:[#allocation2 + $0xda8] sm:$0xf0] }
 0x25d   :  { %5706 = vmatpush.bf16.msra.mxu2 %v13551_v45  ;;  %v13514_v45 = vld [vmem:[#allocation2 + $0xdd0] sm:$0xf]  ;;  %v4288_v26 = vpop.f32.mrf.mxu2  ;;  %v13503_v9 = vor.u32 %v17155_v1, %v13502_v50  ;;  %v17176_v4 = vld [vmem:[#allocation2 + $0xe68] sm:$0xf0] }
 0x25e   :  { %5725 = vmatpush.bf16.msra.mxu3 %v13647_v14  ;;  %v4289_v39 = vadd.f32 %v4288_v26, %v4270_v13  ;;  %v13610_v14 = vld [vmem:[#allocation2 + $0xe90] sm:$0xf]  ;;  %v13515_v19 = vor.u32 %v17158_v22, %v13514_v45  ;;  %v13868_v45 = vld [vmem:[#allocation2 + $0x10a4] sm:$0xf0]  ;;  %v17270_v22 = vld [vmem:[#allocation2 + $0x115c] sm:$0xf]  ;;  %v13587_v50 = vor.u32 %v17176_v4, %v13586_v57 }
 0x25f   :  { %5669 = vmatpush.bf16.msra.mxu0 %v13919_v29  ;;  %v13856_v1 = vld [vmem:[#allocation2 + $0x108c] sm:$0xf0]  ;;  %v13742_v57 = vld [vmem:[#allocation2 + $0xf98] sm:$0xf] }
 0x260   :  { %5688 = vmatpush.bf16.msra.mxu1 %v14015_v55  ;;  %v4308_v25 = vadd.f32 %v4307_v7, %v4289_v39  ;;  %v13611_v55 = vor.u32 %v17182_v49, %v13610_v14  ;;  %v13478_v7 = vld [vmem:[#allocation2 + $0xd88] sm:$0xf]  ;;  %v17149_v14 = vld [vmem:[#allocation2 + $0xd90] sm:$0xf0] }
 0x261   :  { %5707 = vmatpush.bf16.msra.mxu2 %v13539_v48  ;;  %v4252_v8 = vpop.f32.mrf.mxu0  ;;  %v17249_v48 = vld [vmem:[#allocation2 + $0x10b4] sm:$0xf]  ;;  %v13479_v52 = vor.u32 %v17149_v14, %v13478_v7  ;;  %v13838_v7 = vld [vmem:[#allocation2 + $0x1058] sm:$0xf]  ;;  %v17239_v14 = vld [vmem:[#allocation2 + $0x1060] sm:$0xf0] }
 0x262   :  { %5726 = vmatpush.bf16.msra.mxu3 %v13635_v36  ;;  %v4253_v5 = vadd.f32 %v4252_v8, %v19285_v21  ;;  %v19311_v13 = vadd.f32 %v4308_v25, %v19109_v30  ;;  %v13598_v21 = vld [vmem:[#allocation2 + $0xe78] sm:$0xf]  ;;  %v17179_v36 = vld [vmem:[#allocation2 + $0xe80] sm:$0xf0]  ;;  %v13883_v63 = vor.u32 %v17249_v48, %v13880_v16  ;;  %v13491_v8 = vor.u32 %v17152_v47, %v13490_v34  ;;  %v17266_v25 = vld [vmem:[#allocation2 + $0x1138] sm:$0xf0] }
 0x263   :  { %5670 = vmatpush.bf16.msra.mxu0 %v13907_v20  ;;  %v13952_v48 = vld [vmem:[#allocation2 + $0x114c] sm:$0xf0]  ;;  %v17173_v16 = vld [vmem:[#allocation2 + $0xe50] sm:$0xf0]  ;;  %v17290_v34 = vld [vmem:[#allocation2 + $0x11f8] sm:$0xf0] }
 0x264   :  { %5689 = vmatpush.bf16.msra.mxu1 %v14003_v51  ;;  %v4272_v29 = vadd.f32 %v4271_v35, %v4253_v5  ;;  %v13599_v51 = vor.u32 %v17179_v36, %v13598_v21  ;;  %v4274_v39 = vpop.f32.mrf.mxu1  ;;  %v13967_v35 = vor.u32 %v17270_v22, %v13964_v60  ;;  %v17218_v21 = vld [vmem:[#allocation2 + $0xfb8] sm:$0xf0]  ;;  %v13850_v36 = vld [vmem:[#allocation2 + $0x1070] sm:$0xf] }
 0x265   :  { %5708 = vmatpush.bf16.msra.mxu2 %v13527_v43  ;;  %v17246_v43 = vld [vmem:[#allocation2 + $0x109c] sm:$0xf]  ;;  %v4290_v20 = vpop.f32.mrf.mxu2 }
 0x266   :  { %5727 = vmatpush.bf16.msra.mxu3 %v13623_v2  ;;  %v4291_v26 = vadd.f32 %v4290_v20, %v4272_v29  ;;  %v4309_v2 = vpop.f32.mrf.mxu3  ;;  %v13871_v5 = vor.u32 %v17246_v43, %v13868_v45  ;;  %5604 = vmatmul.bf16.gmra.mxu0 %v19194_v41  ;;  %v17263_v45 = vld [vmem:[#allocation2 + $0x1120] sm:$0xf0] }
 0x267   :  { %5671 = vmatpush.bf16.msra.mxu0 %v13895_v38  ;;  %v17243_v38 = vld [vmem:[#allocation2 + $0x1084] sm:$0xf]  ;;  %5623 = vmatmul.bf16.gmra.mxu1 %v19196_v46 }
 0x268   :  { %5690 = vmatpush.bf16.msra.mxu1 %v13991_v31  ;;  %v4310_v49 = vadd.f32 %v4309_v2, %v4291_v26  ;;  %5642 = vmatmul.bf16.gmra.mxu2 %v19278_v15 }
 0x269   :  { %5709 = vmatpush.bf16.msra.mxu2 %v13515_v19  ;;  %v4255_v30 = vpop.f32.mrf.mxu0  ;;  %v13946_v19 = vld [vmem:[#allocation2 + $0x1130] sm:$0xf]  ;;  %5661 = vmatmul.bf16.gmra.mxu3 %v19280_v62 }
 0x26a   :  { %5728 = vmatpush.bf16.msra.mxu3 %v13611_v55  ;;  %v4256_v58 = vadd.f32 %v4255_v30, %v19297_v10  ;;  %v17267_v10 = vld [vmem:[#allocation2 + $0x1144] sm:$0xf]  ;;  %v19316_v29 = vadd.f32 %v4310_v49, %v19119_v27  ;;  %v13574_v55 = vld [vmem:[#allocation2 + $0xe48] sm:$0xf]  ;;  %v14042_v27 = vld [vmem:[#allocation2 + $0x11f0] sm:$0xf]  ;;  %v13755_v30 = vor.u32 %v17218_v21, %v13754_v54 }
 0x26b   :  { %5672 = vmatpush.bf16.msra.mxu0 %v13883_v63  ;;  %v13947_v63 = vor.u32 %v17266_v25, %v13946_v19  ;;  %v13955_v43 = vor.u32 %v17267_v10, %v13952_v48  ;;  %v13575_v20 = vor.u32 %v17173_v16, %v13574_v55  ;;  %v17287_v19 = vld [vmem:[#allocation2 + $0x11e0] sm:$0xf0]  ;;  %v13730_v48 = vld [vmem:[#allocation2 + $0xf80] sm:$0xf]  ;;  %v17212_v55 = vld [vmem:[#allocation2 + $0xf88] sm:$0xf0] }
 0x26c   :  { %5691 = vmatpush.bf16.msra.mxu1 %v13979_v40  ;;  %v4275_v31 = vadd.f32 %v4274_v39, %v4256_v58  ;;  %v13859_v40 = vor.u32 %v17243_v38, %v13856_v1  ;;  %v4276_v58 = vpop.f32.mrf.mxu1  ;;  %v14043_v39 = vor.u32 %v17290_v34, %v14042_v27  ;;  %v13922_v38 = vld [vmem:[#allocation2 + $0x1100] sm:$0xf]  ;;  %v13839_v1 = vor.u32 %v17239_v14, %v13838_v7 }
 0x26d   :  { %5710 = vmatpush.bf16.msra.mxu2 %v13503_v9  ;;  %v17242_v9 = vld [vmem:[#allocation2 + $0x1078] sm:$0xf0]  ;;  %v4293_v47 = vpop.f32.mrf.mxu2  ;;  %v13826_v54 = vld [vmem:[#allocation2 + $0x1040] sm:$0xf] }
 0x26e   :  { %5729 = vmatpush.bf16.msra.mxu3 %v13599_v51  ;;  %v13934_v51 = vld [vmem:[#allocation2 + $0x1118] sm:$0xf]  ;;  %v4294_v22 = vadd.f32 %v4293_v47, %v4275_v31  ;;  %v4312_v26 = vpop.f32.mrf.mxu3  ;;  %v13851_v2 = vor.u32 %v17242_v9, %v13850_v36  ;;  %v17260_v31 = vld [vmem:[#allocation2 + $0x1108] sm:$0xf0]  ;;  %v14018_v21 = vld [vmem:[#allocation2 + $0x11c0] sm:$0xf] }
 0x26f   :  { %5673 = vmatpush.bf16.msra.mxu0 %v13871_v5  ;;  %v13935_v5 = vor.u32 %v17263_v45, %v13934_v51  ;;  %v13923_v16 = vor.u32 %v17260_v31, %v13922_v38  ;;  %v17284_v9 = vld [vmem:[#allocation2 + $0x11c8] sm:$0xf0]  ;;  %v13718_v51 = vld [vmem:[#allocation2 + $0xf68] sm:$0xf]  ;;  %v17209_v45 = vld [vmem:[#allocation2 + $0xf70] sm:$0xf0] }
 0x270   :  { %5692 = vmatpush.bf16.msra.mxu1 %v13967_v35  ;;  %v4313_v49 = vadd.f32 %v4312_v26, %v4294_v22  ;;  %v14030_v35 = vld [vmem:[#allocation2 + $0x11d8] sm:$0xf]  ;;  %v14019_v26 = vor.u32 %v17284_v9, %v14018_v21  ;;  %v13719_v14 = vor.u32 %v17209_v45, %v13718_v51  ;;  %v17230_v31 = vld [vmem:[#allocation2 + $0x1018] sm:$0xf0]  ;;  %v17248_v51 = vld [vmem:[#allocation2 + $0x10a8] sm:$0xf0] }
 0x271   :  { %5711 = vmatpush.bf16.msra.mxu2 %v13491_v8  ;;  %v4257_v60 = vpop.f32.mrf.mxu0  ;;  %v17215_v8 = vld [vmem:[#allocation2 + $0xfa0] sm:$0xf0]  ;;  %v14031_v10 = vor.u32 %v17287_v19, %v14030_v35  ;;  %v17206_v35 = vld [vmem:[#allocation2 + $0xf58] sm:$0xf0]  ;;  %v13802_v19 = vld [vmem:[#allocation2 + $0x1010] sm:$0xf] }
 0x272   :  { %5730 = vmatpush.bf16.msra.mxu3 %v13587_v50  ;;  %v4258_v4 = vadd.f32 %v4257_v60, %v19302_v44  ;;  %v19323_v50 = vadd.f32 %v4313_v49, %v19125_v17  ;;  %v13743_v44 = vor.u32 %v17215_v8, %v13742_v57  ;;  %v17233_v57 = vld [vmem:[#allocation2 + $0x1030] sm:$0xf0]  ;;  %v17254_v8 = vld [vmem:[#allocation2 + $0x10d8] sm:$0xf0]  ;;  %v13803_v21 = vor.u32 %v17230_v31, %v13802_v19  ;;  %v13694_v9 = vld [vmem:[#allocation2 + $0xf38] sm:$0xf] }
 0x273   :  { %5674 = vmatpush.bf16.msra.mxu0 %v13859_v40  ;;  %v17257_v40 = vld [vmem:[#allocation2 + $0x10f0] sm:$0xf0] }
 0x274   :  { %v4277_v25 = vadd.f32 %v4276_v58, %v4258_v4  ;;  %5693 = vmatpush.bf16.msra.mxu1 %v13955_v43  ;;  %v4345_v47 = vpop.f32.mrf.mxu1  ;;  %v13731_v43 = vor.u32 %v17212_v55, %v13730_v48  ;;  %v14006_v4 = vld [vmem:[#allocation2 + $0x11a8] sm:$0xf]  ;;  %v17281_v58 = vld [vmem:[#allocation2 + $0x11b0] sm:$0xf0]  ;;  %v17251_v48 = vld [vmem:[#allocation2 + $0x10c0] sm:$0xf0] }
 0x275   :  { %5712 = vmatpush.bf16.msra.mxu2 %v13479_v52  ;;  %v17236_v52 = vld [vmem:[#allocation2 + $0x1048] sm:$0xf0]  ;;  %v4295_v36 = vpop.f32.mrf.mxu2 }
 0x276   :  { %5731 = vmatpush.bf16.msra.mxu3 %v13575_v20  ;;  %v4296_v27 = vadd.f32 %v4295_v36, %v4277_v25  ;;  %v4314_v17 = vpop.f32.mrf.mxu3  ;;  %v13827_v20 = vor.u32 %v17236_v52, %v13826_v54  ;;  %5675 = vmatmul.bf16.vlgmr.msra.gmra.mxu0 %v19234_v3  ;;  %v14007_v25 = vor.u32 %v17281_v58, %v14006_v4  ;;  %v17224_v4 = vld [vmem:[#allocation2 + $0xfe8] sm:$0xf0]  ;;  %v13970_v58 = vld [vmem:[#allocation2 + $0x1160] sm:$0xf] }
 0x277   :  { %5743 = vmatpush.bf16.msrb.mxu0 %v13755_v30  ;;  %5694 = vmatmul.bf16.vlgmr.msra.gmra.mxu1 %v19237_v24 }
 0x278   :  { %5762 = vmatpush.bf16.msrb.mxu1 %v13851_v2  ;;  %v4315_v22 = vadd.f32 %v4314_v17, %v4296_v27  ;;  %v13814_v2 = vld [vmem:[#allocation2 + $0x1028] sm:$0xf]  ;;  %5713 = vmatmul.bf16.vlgmr.msra.gmra.mxu2 %v19170_v42  ;;  %v13790_v17 = vld [vmem:[#allocation2 + $0xff8] sm:$0xf] }
 0x279   :  { %5781 = vmatpush.bf16.msrb.mxu2 %v13947_v63  ;;  %v13910_v63 = vld [vmem:[#allocation2 + $0x10e8] sm:$0xf]  ;;  %v4326_v34 = vpop.f32.mrf.mxu0  ;;  %v13815_v49 = vor.u32 %v17233_v57, %v13814_v2  ;;  %5732 = vmatmul.bf16.vlgmr.msra.gmra.mxu3 %v19172_v56 }
 0x27a   :  { %5800 = vmatpush.bf16.msrb.mxu3 %v14043_v39  ;;  %v4346_v60 = vadd.f32 %v4345_v47, %v4326_v34  ;;  %v13911_v30 = vor.u32 %v17257_v40, %v13910_v63  ;;  %v13898_v39 = vld [vmem:[#allocation2 + $0x10d0] sm:$0xf]  ;;  %v19327_v7 = vadd.f32 %v4315_v22, %v19135_v59  ;;  %v17203_v63 = vld [vmem:[#allocation2 + $0xf40] sm:$0xf0]  ;;  %v13982_v47 = vld [vmem:[#allocation2 + $0x1178] sm:$0xf] }
 0x27b   :  { %5744 = vmatpush.bf16.msrb.mxu0 %v13743_v44  ;;  %v13899_v38 = vor.u32 %v17254_v8, %v13898_v39  ;;  %v13994_v44 = vld [vmem:[#allocation2 + $0x1190] sm:$0xf]  ;;  %v17227_v34 = vld [vmem:[#allocation2 + $0x1000] sm:$0xf0]  ;;  %v13695_v45 = vor.u32 %v17203_v63, %v13694_v9  ;;  %v17272_v39 = vld [vmem:[#allocation2 + $0x1168] sm:$0xf0] }
 0x27c   :  { %5763 = vmatpush.bf16.msrb.mxu1 %v13839_v1  ;;  %v17278_v1 = vld [vmem:[#allocation2 + $0x1198] sm:$0xf0]  ;;  %v4347_v54 = vpop.f32.mrf.mxu1  ;;  %v13791_v22 = vor.u32 %v17227_v34, %v13790_v17  ;;  %v14190_v63 = vld [vmem:[#allocation2 + $0x12a8] sm:$0xf]  ;;  %v17349_v17 = vld [vmem:[#allocation2 + $0x1370] sm:$0xf0] }
 0x27d   :  { %5782 = vmatpush.bf16.msrb.mxu2 %v13935_v5  ;;  %v13706_v5 = vld [vmem:[#allocation2 + $0xf50] sm:$0xf]  ;;  %v4364_v59 = vpop.f32.mrf.mxu2  ;;  %v13995_v36 = vor.u32 %v17278_v1, %v13994_v44  ;;  %v14478_v34 = vld [vmem:[#allocation2 + $0x14e8] sm:$0xf] }
 0x27e   :  { %5801 = vmatpush.bf16.msrb.mxu3 %v14031_v10  ;;  %v13886_v10 = vld [vmem:[#allocation2 + $0x10b8] sm:$0xf]  ;;  %v4365_v42 = vadd.f32 %v4364_v59, %v4346_v60  ;;  %v13707_v52 = vor.u32 %v17206_v35, %v13706_v5  ;;  %v13682_v60 = vld [vmem:[#allocation2 + $0xf20] sm:$0xf]  ;;  %v13971_v59 = vor.u32 %v17272_v39, %v13970_v58 }
 0x27f   :  { %5745 = vmatpush.bf16.msrb.mxu0 %v13731_v43  ;;  %v13887_v56 = vor.u32 %v17251_v48, %v13886_v10  ;;  %v17275_v43 = vld [vmem:[#allocation2 + $0x1180] sm:$0xf0]  ;;  %v13670_v10 = vld [vmem:[#allocation2 + $0xf08] sm:$0xf]  ;;  %v17197_v48 = vld [vmem:[#allocation2 + $0xf10] sm:$0xf0] }
 0x280   :  { %5764 = vmatpush.bf16.msrb.mxu1 %v13827_v20  ;;  %v13874_v20 = vld [vmem:[#allocation2 + $0x10a0] sm:$0xf]  ;;  %v13983_v2 = vor.u32 %v17275_v43, %v13982_v47  ;;  %v17397_v47 = vld [vmem:[#allocation2 + $0x14f0] sm:$0xf0]  ;;  %v13671_v43 = vor.u32 %v17197_v48, %v13670_v10  ;;  %v14166_v10 = vld [vmem:[#allocation2 + $0x1278] sm:$0xf] }
 0x281   :  { %5783 = vmatpush.bf16.msrb.mxu2 %v13923_v16  ;;  %v4328_v55 = vpop.f32.mrf.mxu0  ;;  %v4383_v16 = vpop.f32.mrf.mxu3  ;;  %v13875_v57 = vor.u32 %v17248_v51, %v13874_v20  ;;  %v14370_v51 = vld [vmem:[#allocation2 + $0x1410] sm:$0xf]  ;;  %v17319_v48 = vld [vmem:[#allocation2 + $0x1280] sm:$0xf0] }
 0x282   :  { %5802 = vmatpush.bf16.msrb.mxu3 %v14019_v26  ;;  %v4348_v40 = vadd.f32 %v4347_v54, %v4328_v55  ;;  %v19332_v27 = vadd.f32 %v4383_v16, %v4365_v42  ;;  %v17200_v26 = vld [vmem:[#allocation2 + $0xf28] sm:$0xf0]  ;;  %v13766_v42 = vld [vmem:[#allocation2 + $0xfc8] sm:$0xf] }
 0x283   :  { %5746 = vmatpush.bf16.msrb.mxu0 %v13719_v14  ;;  %v13862_v14 = vld [vmem:[#allocation2 + $0x1088] sm:$0xf]  ;;  %v13683_v44 = vor.u32 %v17200_v26, %v13682_v60 }
 0x284   :  { %5765 = vmatpush.bf16.msrb.mxu1 %v13815_v49  ;;  %v17245_v49 = vld [vmem:[#allocation2 + $0x1090] sm:$0xf0]  ;;  %v4350_v31 = vpop.f32.mrf.mxu1 }
 0x285   :  { %5784 = vmatpush.bf16.msrb.mxu2 %v13911_v30  ;;  %v13778_v30 = vld [vmem:[#allocation2 + $0xfe0] sm:$0xf]  ;;  %v4366_v8 = vpop.f32.mrf.mxu2  ;;  %v13863_v54 = vor.u32 %v17245_v49, %v13862_v14  ;;  %v17346_v49 = vld [vmem:[#allocation2 + $0x1358] sm:$0xf0] }
 0x286   :  { %5803 = vmatpush.bf16.msrb.mxu3 %v14007_v25  ;;  %v4367_v5 = vadd.f32 %v4366_v8, %v4348_v40  ;;  %v14382_v25 = vld [vmem:[#allocation2 + $0x1428] sm:$0xf]  ;;  %v13779_v1 = vor.u32 %v17224_v4, %v13778_v30  ;;  %5680 = vmatmul.bf16.gmra.mxu0 %v19282_v32  ;;  %v17325_v40 = vld [vmem:[#allocation2 + $0x12b0] sm:$0xf0]  ;;  %v14274_v4 = vld [vmem:[#allocation2 + $0x1350] sm:$0xf] }
 0x287   :  { %5747 = vmatpush.bf16.msrb.mxu0 %v13707_v52  ;;  %v17221_v52 = vld [vmem:[#allocation2 + $0xfd0] sm:$0xf0]  ;;  %5699 = vmatmul.bf16.gmra.mxu1 %v19287_v53  ;;  %v14191_v60 = vor.u32 %v17325_v40, %v14190_v63  ;;  %v14167_v63 = vor.u32 %v17319_v48, %v14166_v10 }
 0x288   :  { %5766 = vmatpush.bf16.msrb.mxu1 %v13803_v21  ;;  %v13958_v21 = vld [vmem:[#allocation2 + $0x1148] sm:$0xf]  ;;  %5718 = vmatmul.bf16.gmra.mxu2 %v19194_v41  ;;  %v13767_v20 = vor.u32 %v17221_v52, %v13766_v42  ;;  %v14178_v41 = vld [vmem:[#allocation2 + $0x1290] sm:$0xf]  ;;  %v14262_v42 = vld [vmem:[#allocation2 + $0x1338] sm:$0xf] }
 0x289   :  { %5785 = vmatpush.bf16.msrb.mxu2 %v13899_v38  ;;  %v4331_v35 = vpop.f32.mrf.mxu0  ;;  %v4385_v19 = vpop.f32.mrf.mxu3  ;;  %v17373_v38 = vld [vmem:[#allocation2 + $0x1430] sm:$0xf0]  ;;  %5737 = vmatmul.bf16.gmra.mxu3 %v19196_v46  ;;  %v14454_v52 = vld [vmem:[#allocation2 + $0x14b8] sm:$0xf] }
 0x28a   :  { %5804 = vmatpush.bf16.msrb.mxu3 %v13995_v36  ;;  %v4351_v55 = vadd.f32 %v4350_v31, %v4331_v35  ;;  %v19334_v16 = vadd.f32 %v4385_v19, %v4367_v5  ;;  %v17269_v36 = vld [vmem:[#allocation2 + $0x1150] sm:$0xf0]  ;;  %v14383_v9 = vor.u32 %v17373_v38, %v14382_v25  ;;  %v14466_v5 = vld [vmem:[#allocation2 + $0x14d0] sm:$0xf]  ;;  %v17394_v35 = vld [vmem:[#allocation2 + $0x14d8] sm:$0xf0] }
 0x28b   :  { %5748 = vmatpush.bf16.msrb.mxu0 %v13695_v45  ;;  %v17370_v45 = vld [vmem:[#allocation2 + $0x1418] sm:$0xf0]  ;;  %v14358_v25 = vld [vmem:[#allocation2 + $0x13f8] sm:$0xf]  ;;  %v17367_v38 = vld [vmem:[#allocation2 + $0x1400] sm:$0xf0] }
 0x28c   :  { %5767 = vmatpush.bf16.msrb.mxu1 %v13791_v22  ;;  %v13959_v22 = vor.u32 %v17269_v36, %v13958_v21  ;;  %v14371_v14 = vor.u32 %v17370_v45, %v14370_v51  ;;  %v4352_v19 = vpop.f32.mrf.mxu1  ;;  %v17391_v21 = vld [vmem:[#allocation2 + $0x14c0] sm:$0xf0]  ;;  %v14346_v36 = vld [vmem:[#allocation2 + $0x13e0] sm:$0xf] }
 0x28d   :  { %5786 = vmatpush.bf16.msrb.mxu2 %v13887_v56  ;;  %v14286_v56 = vld [vmem:[#allocation2 + $0x1368] sm:$0xf]  ;;  %v4369_v26 = vpop.f32.mrf.mxu2 }
 0x28e   :  { %5805 = vmatpush.bf16.msrb.mxu3 %v13983_v2  ;;  %v14287_v30 = vor.u32 %v17349_v17, %v14286_v56  ;;  %v14479_v2 = vor.u32 %v17397_v47, %v14478_v34  ;;  %v4370_v58 = vadd.f32 %v4369_v26, %v4351_v55  ;;  %v14359_v55 = vor.u32 %v17367_v38, %v14358_v25  ;;  %v14154_v34 = vld [vmem:[#allocation2 + $0x1260] sm:$0xf]  ;;  %v17316_v47 = vld [vmem:[#allocation2 + $0x1268] sm:$0xf0]  ;;  %v14430_v38 = vld [vmem:[#allocation2 + $0x1488] sm:$0xf] }
 0x28f   :  { %5749 = vmatpush.bf16.msrb.mxu0 %v13683_v44  ;;  %v14455_v17 = vor.u32 %v17391_v21, %v14454_v52  ;;  %v14442_v26 = vld [vmem:[#allocation2 + $0x14a0] sm:$0xf]  ;;  %v14226_v52 = vld [vmem:[#allocation2 + $0x12f0] sm:$0xf] }
 0x290   :  { %5768 = vmatpush.bf16.msrb.mxu1 %v13779_v1  ;;  %v14275_v1 = vor.u32 %v17346_v49, %v14274_v4  ;;  %v17361_v4 = vld [vmem:[#allocation2 + $0x13d0] sm:$0xf0] }
 0x291   :  { %5787 = vmatpush.bf16.msrb.mxu2 %v13875_v57  ;;  %v17322_v57 = vld [vmem:[#allocation2 + $0x1298] sm:$0xf0]  ;;  %v4333_v39 = vpop.f32.mrf.mxu0  ;;  %v4388_v8 = vpop.f32.mrf.mxu3 }
 0x292   :  { %5806 = vmatpush.bf16.msrb.mxu3 %v13971_v59  ;;  %v4353_v46 = vadd.f32 %v4352_v19, %v4333_v39  ;;  %v19340_v31 = vadd.f32 %v4388_v8, %v4370_v58  ;;  %v14179_v44 = vor.u32 %v17322_v57, %v14178_v41  ;;  %v14467_v59 = vor.u32 %v17394_v35, %v14466_v5  ;;  %v14334_v57 = vld [vmem:[#allocation2 + $0x13c8] sm:$0xf]  ;;  %v17313_v35 = vld [vmem:[#allocation2 + $0x1250] sm:$0xf0] }
 0x293   :  { %5750 = vmatpush.bf16.msrb.mxu0 %v13671_v43  ;;  %v14250_v43 = vld [vmem:[#allocation2 + $0x1320] sm:$0xf]  ;;  %v14155_v39 = vor.u32 %v17316_v47, %v14154_v34  ;;  %v14142_v5 = vld [vmem:[#allocation2 + $0x1248] sm:$0xf]  ;;  %v14335_v25 = vor.u32 %v17361_v4, %v14334_v57  ;;  %v17355_v34 = vld [vmem:[#allocation2 + $0x13a0] sm:$0xf0] }
 0x294   :  { %5769 = vmatpush.bf16.msrb.mxu1 %v13767_v20  ;;  %v4421_v41 = vpop.f32.mrf.mxu1  ;;  %v14238_v19 = vld [vmem:[#allocation2 + $0x1308] sm:$0xf]  ;;  %v14143_v10 = vor.u32 %v17313_v35, %v14142_v5  ;;  %v17352_v57 = vld [vmem:[#allocation2 + $0x1388] sm:$0xf0]  ;;  %v14106_v35 = vld [vmem:[#allocation2 + $0x1200] sm:$0xf] }
 0x295   :  { %5788 = vmatpush.bf16.msrb.mxu2 %v13863_v54  ;;  %v17343_v54 = vld [vmem:[#allocation2 + $0x1340] sm:$0xf0]  ;;  %v4371_v40 = vpop.f32.mrf.mxu2 }
 0x296   :  { %5807 = vmatpush.bf16.msrb.mxu3 %v13959_v22  ;;  %v14263_v56 = vor.u32 %v17343_v54, %v14262_v42  ;;  %v4372_v20 = vadd.f32 %v4371_v40, %v4353_v46  ;;  %5751 = vmatmul.bf16.vlgmr.msrb.gmra.mxu0 %v19230_v12  ;;  %v17385_v46 = vld [vmem:[#allocation2 + $0x1490] sm:$0xf0]  ;;  %v17310_v54 = vld [vmem:[#allocation2 + $0x1238] sm:$0xf0] }
 0x297   :  { %6865 = vmatpush.bf16.msra.mxu0 %v14191_v60  ;;  %v17340_v60 = vld [vmem:[#allocation2 + $0x1328] sm:$0xf0]  ;;  %5770 = vmatmul.bf16.vlgmr.msrb.gmra.mxu1 %v19232_v18  ;;  %v14431_v12 = vor.u32 %v17385_v46, %v14430_v38 }
 0x298   :  { %6884 = vmatpush.bf16.msra.mxu1 %v14287_v30  ;;  %v17388_v30 = vld [vmem:[#allocation2 + $0x14a8] sm:$0xf0]  ;;  %5789 = vmatmul.bf16.vlgmr.msrb.gmra.mxu2 %v19234_v3  ;;  %v14418_v3 = vld [vmem:[#allocation2 + $0x1470] sm:$0xf] }
 0x299   :  { %6903 = vmatpush.bf16.msra.mxu2 %v14383_v9  ;;  %v17364_v9 = vld [vmem:[#allocation2 + $0x13e8] sm:$0xf0]  ;;  %v4390_v51 = vpop.f32.mrf.mxu3  ;;  %v4402_v45 = vpop.f32.mrf.mxu0  ;;  %v14443_v49 = vor.u32 %v17388_v30, %v14442_v26  ;;  %5808 = vmatmul.bf16.vlgmr.msrb.gmra.mxu3 %v19237_v24  ;;  %v17331_v26 = vld [vmem:[#allocation2 + $0x12e0] sm:$0xf0]  ;;  %v14406_v30 = vld [vmem:[#allocation2 + $0x1458] sm:$0xf] }
 0x29a   :  { %6922 = vmatpush.bf16.msra.mxu3 %v14479_v2  ;;  %v14347_v22 = vor.u32 %v17364_v9, %v14346_v36  ;;  %v4403_v2 = vadd.f32 %v4402_v45, %v19332_v27  ;;  %v19343_v58 = vadd.f32 %v4390_v51, %v4372_v20  ;;  %v17337_v27 = vld [vmem:[#allocation2 + $0x1310] sm:$0xf0]  ;;  %v17334_v36 = vld [vmem:[#allocation2 + $0x12f8] sm:$0xf0]  ;;  %v14118_v51 = vld [vmem:[#allocation2 + $0x1218] sm:$0xf] }
 0x29b   :  { %6866 = vmatpush.bf16.msra.mxu0 %v14179_v44  ;;  %v14239_v42 = vor.u32 %v17337_v27, %v14238_v19  ;;  %v17382_v9 = vld [vmem:[#allocation2 + $0x1478] sm:$0xf0]  ;;  %v14227_v24 = vor.u32 %v17334_v36, %v14226_v52  ;;  %v17307_v45 = vld [vmem:[#allocation2 + $0x1220] sm:$0xf0]  ;;  %v17304_v19 = vld [vmem:[#allocation2 + $0x1208] sm:$0xf0] }
 0x29c   :  { %6885 = vmatpush.bf16.msra.mxu1 %v14275_v1  ;;  %v4422_v8 = vadd.f32 %v4421_v41, %v4403_v2  ;;  %v14322_v1 = vld [vmem:[#allocation2 + $0x13b0] sm:$0xf]  ;;  %v4423_v40 = vpop.f32.mrf.mxu1  ;;  %v14419_v20 = vor.u32 %v17382_v9, %v14418_v3  ;;  %v14298_v41 = vld [vmem:[#allocation2 + $0x1380] sm:$0xf]  ;;  %v14119_v4 = vor.u32 %v17307_v45, %v14118_v51  ;;  %v14288_v36 = vld [vmem:[#allocation2 + $0x1374] sm:$0xf0] }
 0x29d   :  { %6904 = vmatpush.bf16.msra.mxu2 %v14371_v14  ;;  %v14251_v14 = vor.u32 %v17340_v60, %v14250_v43  ;;  %v5486_v48 = vpop.f32.mrf.mxu2  ;;  %v14299_v46 = vor.u32 %v17352_v57, %v14298_v41  ;;  %v14658_v51 = vld [vmem:[#allocation2 + $0x1650] sm:$0xf]  ;;  %v17442_v45 = vld [vmem:[#allocation2 + $0x1658] sm:$0xf0] }
 0x29e   :  { %6923 = vmatpush.bf16.msra.mxu3 %v14467_v59  ;;  %v19347_v44 = vadd.f32 %v4422_v8, %v19146_v23  ;;  %v17358_v59 = vld [vmem:[#allocation2 + $0x13b8] sm:$0xf0]  ;;  %v14192_v8 = vld [vmem:[#allocation2 + $0x12b4] sm:$0xf0]  ;;  %v14659_v41 = vor.u32 %v17442_v45, %v14658_v51 }
 0x29f   :  { %6867 = vmatpush.bf16.msra.mxu0 %v14167_v63  ;;  %v14323_v18 = vor.u32 %v17358_v59, %v14322_v1  ;;  %v14394_v1 = vld [vmem:[#allocation2 + $0x1440] sm:$0xf]  ;;  %v17376_v59 = vld [vmem:[#allocation2 + $0x1448] sm:$0xf0] }
 0x2a0   :  { %6886 = vmatpush.bf16.msra.mxu1 %v14263_v56 }
 0x2a1   :  { %6905 = vmatpush.bf16.msra.mxu2 %v14359_v55  ;;  %v14130_v55 = vld [vmem:[#allocation2 + $0x1230] sm:$0xf]  ;;  %v4404_v23 = vpop.f32.mrf.mxu0  ;;  %v5505_v21 = vpop.f32.mrf.mxu3 }
 0x2a2   :  { %6924 = vmatpush.bf16.msra.mxu3 %v14455_v17  ;;  %v4405_v63 = vadd.f32 %v4404_v23, %v19334_v16  ;;  %v19353_v56 = vadd.f32 %v5505_v21, %v5486_v48  ;;  %v14310_v17 = vld [vmem:[#allocation2 + $0x1398] sm:$0xf]  ;;  %v14131_v47 = vor.u32 %v17310_v54, %v14130_v55  ;;  %v17379_v16 = vld [vmem:[#allocation2 + $0x1460] sm:$0xf0]  ;;  %v17421_v55 = vld [vmem:[#allocation2 + $0x15b0] sm:$0xf0]  ;;  %v14107_v23 = vor.u32 %v17304_v19, %v14106_v35 }
 0x2a3   :  { %6868 = vmatpush.bf16.msra.mxu0 %v14155_v39  ;;  %v14311_v60 = vor.u32 %v17355_v34, %v14310_v17  ;;  %v17324_v39 = vld [vmem:[#allocation2 + $0x12ac] sm:$0xf]  ;;  %v14407_v5 = vor.u32 %v17379_v16, %v14406_v30  ;;  %v14670_v54 = vld [vmem:[#allocation2 + $0x1668] sm:$0xf]  ;;  %v17445_v21 = vld [vmem:[#allocation2 + $0x1670] sm:$0xf0] }
 0x2a4   :  { %6887 = vmatpush.bf16.msra.mxu1 %v14251_v14  ;;  %v4424_v43 = vadd.f32 %v4423_v40, %v4405_v63  ;;  %v4426_v48 = vpop.f32.mrf.mxu1  ;;  %v14195_v52 = vor.u32 %v17324_v39, %v14192_v8  ;;  %v14395_v63 = vor.u32 %v17376_v59, %v14394_v1  ;;  %v17321_v40 = vld [vmem:[#allocation2 + $0x1294] sm:$0xf]  ;;  %v14180_v17 = vld [vmem:[#allocation2 + $0x129c] sm:$0xf0]  ;;  %v14562_v34 = vld [vmem:[#allocation2 + $0x1590] sm:$0xf] }
 0x2a5   :  { %6906 = vmatpush.bf16.msra.mxu2 %v14347_v22  ;;  %v14214_v22 = vld [vmem:[#allocation2 + $0x12d8] sm:$0xf]  ;;  %v5488_v14 = vpop.f32.mrf.mxu2  ;;  %v17318_v30 = vld [vmem:[#allocation2 + $0x127c] sm:$0xf]  ;;  %v17439_v19 = vld [vmem:[#allocation2 + $0x1640] sm:$0xf0] }
 0x2a6   :  { %6925 = vmatpush.bf16.msra.mxu3 %v14443_v49  ;;  %v19356_v2 = vadd.f32 %v4424_v43, %v19149_v28  ;;  %v14215_v49 = vor.u32 %v17331_v26, %v14214_v22  ;;  %v17328_v28 = vld [vmem:[#allocation2 + $0x12c8] sm:$0xf0]  ;;  %5756 = vmatmul.bf16.gmra.mxu0 %v19278_v15  ;;  %v14671_v43 = vor.u32 %v17445_v21, %v14670_v54  ;;  %v14276_v26 = vld [vmem:[#allocation2 + $0x135c] sm:$0xf0]  ;;  %v17339_v54 = vld [vmem:[#allocation2 + $0x1324] sm:$0xf] }
 0x2a7   :  { %6869 = vmatpush.bf16.msra.mxu0 %v14143_v10  ;;  %5775 = vmatmul.bf16.gmra.mxu1 %v19280_v62  ;;  %v14183_v22 = vor.u32 %v17321_v40, %v14180_v17  ;;  %v14538_v1 = vld [vmem:[#allocation2 + $0x1560] sm:$0xf]  ;;  %v17412_v59 = vld [vmem:[#allocation2 + $0x1568] sm:$0xf0]  ;;  %v14058_v21 = vld [vmem:[%s19956_s26 + $0x180] sm:$0xf] }
 0x2a8   :  { %6888 = vmatpush.bf16.msra.mxu1 %v14239_v42  ;;  %5794 = vmatmul.bf16.gmra.mxu2 %v19282_v32  ;;  %v14539_v17 = vor.u32 %v17412_v59, %v14538_v1  ;;  %v17333_v1 = vld [vmem:[#allocation2 + $0x12f4] sm:$0xf]  ;;  %v14228_v59 = vld [vmem:[#allocation2 + $0x12fc] sm:$0xf0] }
 0x2a9   :  { %6907 = vmatpush.bf16.msra.mxu2 %v14335_v25  ;;  %v14202_v25 = vld [vmem:[#allocation2 + $0x12c0] sm:$0xf]  ;;  %v4407_v27 = vpop.f32.mrf.mxu0  ;;  %v5507_v38 = vpop.f32.mrf.mxu3  ;;  %5813 = vmatmul.bf16.gmra.mxu3 %v19287_v53  ;;  %v17342_v53 = vld [vmem:[#allocation2 + $0x133c] sm:$0xf] }
 0x2aa   :  { %6926 = vmatpush.bf16.msra.mxu3 %v14431_v12  ;;  %v4408_v10 = vadd.f32 %v4407_v27, %v19340_v31  ;;  %v19359_v42 = vadd.f32 %v5507_v38, %v5488_v14  ;;  %v14574_v12 = vld [vmem:[#allocation2 + $0x15a8] sm:$0xf]  ;;  %v14203_v9 = vor.u32 %v17328_v28, %v14202_v25  ;;  %v14550_v14 = vld [vmem:[#allocation2 + $0x1578] sm:$0xf]  ;;  %v17315_v38 = vld [vmem:[#allocation2 + $0x1264] sm:$0xf] }
 0x2ab   :  { %6870 = vmatpush.bf16.msra.mxu0 %v14131_v47  ;;  %v14575_v31 = vor.u32 %v17421_v55, %v14574_v12  ;;  %v14264_v25 = vld [vmem:[#allocation2 + $0x1344] sm:$0xf0]  ;;  %v14634_v12 = vld [vmem:[#allocation2 + $0x1620] sm:$0xf]  ;;  %v17436_v55 = vld [vmem:[#allocation2 + $0x1628] sm:$0xf0] }
 0x2ac   :  { %6889 = vmatpush.bf16.msra.mxu1 %v14227_v24  ;;  %v4427_v3 = vadd.f32 %v4426_v48, %v4408_v10  ;;  %v14267_v48 = vor.u32 %v17342_v53, %v14264_v25  ;;  %v14514_v53 = vld [vmem:[#allocation2 + $0x1530] sm:$0xf] }
 0x2ad   :  { %6908 = vmatpush.bf16.msra.mxu2 %v14323_v18  ;;  %v17348_v18 = vld [vmem:[#allocation2 + $0x136c] sm:$0xf]  ;;  %v5491_v15 = vpop.f32.mrf.mxu2 }
 0x2ae   :  { %6927 = vmatpush.bf16.msra.mxu3 %v14419_v20  ;;  %v19363_v47 = vadd.f32 %v4427_v3, %v19156_v37  ;;  %v14291_v24 = vor.u32 %v17348_v18, %v14288_v36  ;;  %v17418_v20 = vld [vmem:[#allocation2 + $0x1598] sm:$0xf0]  ;;  %v14168_v37 = vld [vmem:[#allocation2 + $0x1284] sm:$0xf0]  ;;  %v17294_v18 = vld [vmem:[%s19956_s26 + $0x194] sm:$0xf0] }
 0x2af   :  { %6871 = vmatpush.bf16.msra.mxu0 %v14119_v4  ;;  %v14563_v16 = vor.u32 %v17418_v20, %v14562_v34  ;;  %v4428_v4 = vpop.f32.mrf.mxu1  ;;  %v14171_v35 = vor.u32 %v17318_v30, %v14168_v37  ;;  %v17291_v36 = vld [vmem:[%s19956_s26 + $0x184] sm:$0xf]  ;;  %v14060_v3 = vld [vmem:[%s19956_s26 + $0x198] sm:$0xf0]  ;;  %v17295_v34 = vld [vmem:[%s19956_s26 + $0x19c] sm:$0xf0]  ;;  %v19401_v30 = vor.u32 %v17294_v18, %v14058_v21 }
 0x2b0   :  { %6890 = vmatpush.bf16.msra.mxu1 %v14215_v49  ;;  %v17415_v49 = vld [vmem:[#allocation2 + $0x1580] sm:$0xf0]  ;;  %v19403_v37 = vor.u32 %v17291_v36, %v14060_v3  ;;  %v14502_v36 = vld [vmem:[#allocation2 + $0x1518] sm:$0xf] }
 0x2b1   :  { %6909 = vmatpush.bf16.msra.mxu2 %v14311_v60  ;;  %v17345_v60 = vld [vmem:[#allocation2 + $0x1354] sm:$0xf]  ;;  %v4409_v62 = vpop.f32.mrf.mxu0  ;;  %v5510_v32 = vpop.f32.mrf.mxu3  ;;  %v14551_v28 = vor.u32 %v17415_v49, %v14550_v14  ;;  %v17403_v3 = vld [vmem:[#allocation2 + $0x1520] sm:$0xf0] }
 0x2b2   :  { %6928 = vmatpush.bf16.msra.mxu3 %v14407_v5  ;;  %v4410_v57 = vadd.f32 %v4409_v62, %v19343_v58  ;;  %v19369_v39 = vadd.f32 %v5510_v32, %v5491_v15  ;;  %v14279_v8 = vor.u32 %v17345_v60, %v14276_v26  ;;  %v14646_v5 = vld [vmem:[#allocation2 + $0x1638] sm:$0xf]  ;;  %v17292_v60 = vld [vmem:[%s19956_s26 + $0x18c] sm:$0xf]  ;;  %v14068_v26 = vld [vmem:[%s19956_s26 + $0x1a0] sm:$0xf0] }
 0x2b3   :  { %6872 = vmatpush.bf16.msra.mxu0 %v14107_v23  ;;  %v14647_v10 = vor.u32 %v17439_v19, %v14646_v5  ;;  %v14252_v23 = vld [vmem:[#allocation2 + $0x132c] sm:$0xf0]  ;;  %v14526_v15 = vld [vmem:[#allocation2 + $0x1548] sm:$0xf]  ;;  %v17409_v62 = vld [vmem:[#allocation2 + $0x1550] sm:$0xf0]  ;;  %v19407_v14 = vor.u32 %v17292_v60, %v14068_v26 }
 0x2b4   :  { %6891 = vmatpush.bf16.msra.mxu1 %v14203_v9  ;;  %v4429_v27 = vadd.f32 %v4428_v4, %v4410_v57  ;;  %v14066_v9 = vld [vmem:[%s19956_s26 + $0x188] sm:$0xf]  ;;  %v14622_v32 = vld [vmem:[#allocation2 + $0x1608] sm:$0xf]  ;;  %v17336_v57 = vld [vmem:[#allocation2 + $0x130c] sm:$0xf]  ;;  %v14527_v49 = vor.u32 %v17409_v62, %v14526_v15  ;;  %v14503_v62 = vor.u32 %v17403_v3, %v14502_v36 }
 0x2b5   :  { %6910 = vmatpush.bf16.msra.mxu2 %v14299_v46  ;;  %v14156_v46 = vld [vmem:[#allocation2 + $0x126c] sm:$0xf0]  ;;  %v14240_v4 = vld [vmem:[#allocation2 + $0x1314] sm:$0xf0]  ;;  %v14132_v19 = vld [vmem:[#allocation2 + $0x123c] sm:$0xf0] }
 0x2b6   :  { %6929 = vmatpush.bf16.msra.mxu3 %v14395_v63  ;;  %v19372_v58 = vadd.f32 %v4429_v27, %v19174_v61  ;;  %v5493_v61 = vpop.f32.mrf.mxu2  ;;  %6873 = vmatmul.bf16.vlgmr.msra.gmra.mxu0 %v19401_v30  ;;  %v14243_v25 = vor.u32 %v17336_v57, %v14240_v4  ;;  %v17406_v27 = vld [vmem:[#allocation2 + $0x1538] sm:$0xf0]  ;;  %v14576_v60 = vld [vmem:[#allocation2 + $0x15b4] sm:$0xf0]  ;;  %v14490_v26 = vld [vmem:[#allocation2 + $0x1500] sm:$0xf] }
 0x2b7   :  { %6941 = vmatpush.bf16.msrb.mxu0 %v14575_v31  ;;  %v14635_v31 = vor.u32 %v17436_v55, %v14634_v12  ;;  %v5543_v45 = vpop.f32.mrf.mxu1  ;;  %6892 = vmatmul.bf16.vlgmr.msra.gmra.mxu1 %v19403_v37  ;;  %v14515_v21 = vor.u32 %v17406_v27, %v14514_v53  ;;  %v17400_v15 = vld [vmem:[#allocation2 + $0x1508] sm:$0xf0]  ;;  %v17327_v57 = vld [vmem:[#allocation2 + $0x12c4] sm:$0xf]  ;;  %v17417_v36 = vld [vmem:[#allocation2 + $0x1594] sm:$0xf] }
 0x2b8   :  { %6960 = vmatpush.bf16.msrb.mxu1 %v14671_v43  ;;  %v17312_v43 = vld [vmem:[#allocation2 + $0x124c] sm:$0xf]  ;;  %v14564_v3 = vld [vmem:[#allocation2 + $0x159c] sm:$0xf0] }
 0x2b9   :  { %6979 = vmatpush.bf16.msrb.mxu2 %v14195_v52  ;;  %v14159_v52 = vor.u32 %v17315_v38, %v14156_v46  ;;  %v5512_v63 = vpop.f32.mrf.mxu3  ;;  %v5524_v40 = vpop.f32.mrf.mxu0  ;;  %v14610_v38 = vld [vmem:[#allocation2 + $0x15f0] sm:$0xf]  ;;  %v17430_v46 = vld [vmem:[#allocation2 + $0x15f8] sm:$0xf0]  ;;  %6930 = vmatmul.bf16.vlgmr.msra.gmra.mxu3 %v19407_v14  ;;  %v17444_v53 = vld [vmem:[#allocation2 + $0x166c] sm:$0xf] }
 0x2ba   :  { %6998 = vmatpush.bf16.msrb.mxu3 %v14291_v24  ;;  %v14144_v24 = vld [vmem:[#allocation2 + $0x1254] sm:$0xf0]  ;;  %v19392_v20 = vadd.f32 %v5512_v63, %v5493_v61  ;;  %v5525_v51 = vadd.f32 %v5524_v40, %v19353_v56  ;;  %v14611_v18 = vor.u32 %v17430_v46, %v14610_v38  ;;  %v14120_v61 = vld [vmem:[#allocation2 + $0x1224] sm:$0xf0]  ;;  %v14231_v63 = vor.u32 %v17333_v1, %v14228_v59  ;;  %v17300_v59 = vld [vmem:[%s19956_s26 + $0x1c4] sm:$0xf0] }
 0x2bb   :  { %6942 = vmatpush.bf16.msrb.mxu0 %v14563_v16  ;;  %v17433_v16 = vld [vmem:[#allocation2 + $0x1610] sm:$0xf0]  ;;  %v14598_v40 = vld [vmem:[#allocation2 + $0x15d8] sm:$0xf]  ;;  %v14082_v1 = vld [vmem:[%s19956_s26 + $0x1b0] sm:$0xf] }
 0x2bc   :  { %6961 = vmatpush.bf16.msrb.mxu1 %v14659_v41  ;;  %v5544_v56 = vadd.f32 %v5543_v45, %v5525_v51  ;;  %v19405_v41 = vor.u32 %v17295_v34, %v14066_v9  ;;  %v14623_v5 = vor.u32 %v17433_v16, %v14622_v32  ;;  %v14108_v51 = vld [vmem:[#allocation2 + $0x120c] sm:$0xf0]  ;;  %v14586_v16 = vld [vmem:[#allocation2 + $0x15c0] sm:$0xf] }
 0x2bd   :  { %6980 = vmatpush.bf16.msrb.mxu2 %v14183_v22  ;;  %v14255_v22 = vor.u32 %v17339_v54, %v14252_v23  ;;  %v17306_v54 = vld [vmem:[#allocation2 + $0x121c] sm:$0xf] }
 0x2be   :  { %6999 = vmatpush.bf16.msrb.mxu3 %v14279_v8  ;;  %v14147_v8 = vor.u32 %v17312_v43, %v14144_v24  ;;  %6911 = vmatmul.bf16.vlgmr.msra.gmra.mxu2 %v19405_v41  ;;  %v14216_v43 = vld [vmem:[#allocation2 + $0x12e4] sm:$0xf0]  ;;  %v17303_v24 = vld [vmem:[#allocation2 + $0x1204] sm:$0xf] }
 0x2bf   :  { %6943 = vmatpush.bf16.msrb.mxu0 %v14551_v28  ;;  %v5562_v28 = vpop.f32.mrf.mxu2  ;;  %v5545_v23 = vpop.f32.mrf.mxu1  ;;  %v14111_v27 = vor.u32 %v17303_v24, %v14108_v51  ;;  %v19445_v51 = vor.u32 %v17300_v59, %v14082_v1  ;;  %v17438_v1 = vld [vmem:[#allocation2 + $0x163c] sm:$0xf]  ;;  %v14648_v59 = vld [vmem:[#allocation2 + $0x1644] sm:$0xf0] }
 0x2c0   :  { %6962 = vmatpush.bf16.msrb.mxu1 %v14647_v10  ;;  %v5563_v10 = vadd.f32 %v5562_v28, %v5544_v56  ;;  %v17424_v56 = vld [vmem:[#allocation2 + $0x15c8] sm:$0xf0]  ;;  %v14672_v28 = vld [vmem:[#allocation2 + $0x1674] sm:$0xf0] }
 0x2c1   :  { %6981 = vmatpush.bf16.msrb.mxu2 %v14171_v35  ;;  %v17309_v35 = vld [vmem:[#allocation2 + $0x1234] sm:$0xf]  ;;  %v5526_v12 = vpop.f32.mrf.mxu0  ;;  %v5581_v55 = vpop.f32.mrf.mxu3  ;;  %v14675_v24 = vor.u32 %v17444_v53, %v14672_v28 }
 0x2c2   :  { %7000 = vmatpush.bf16.msrb.mxu3 %v14267_v48  ;;  %v14135_v48 = vor.u32 %v17309_v35, %v14132_v19  ;;  %v5582_v9 = vadd.f32 %v5581_v55, %v5563_v10  ;;  %v14480_v19 = vld [vmem:[#allocation2 + $0x14f4] sm:$0xf0]  ;;  %v14491_v55 = vor.u32 %v17400_v15, %v14490_v26 }
 0x2c3   :  { %6944 = vmatpush.bf16.msrb.mxu0 %v14539_v17  ;;  %v17427_v17 = vld [vmem:[#allocation2 + $0x15e0] sm:$0xf0] }
 0x2c4   :  { %6963 = vmatpush.bf16.msrb.mxu1 %v14635_v31  ;;  %v17330_v31 = vld [vmem:[#allocation2 + $0x12dc] sm:$0xf]  ;;  %v19415_v45 = vadd.f32 %v5582_v9, %v19245_v0  ;;  %v14599_v32 = vor.u32 %v17427_v17, %v14598_v40  ;;  %v17396_v0 = vld [vmem:[#allocation2 + $0x14ec] sm:$0xf]  ;;  %v17298_v17 = vld [vmem:[%s19956_s26 + $0x1bc] sm:$0xf] }
 0x2c5   :  { %6982 = vmatpush.bf16.msrb.mxu2 %v14159_v52  ;;  %v5527_v52 = vadd.f32 %v5526_v12, %v19359_v42  ;;  %v14123_v42 = vor.u32 %v17306_v54, %v14120_v61  ;;  %v14219_v4 = vor.u32 %v17330_v31, %v14216_v43  ;;  %v17297_v54 = vld [vmem:[%s19956_s26 + $0x1b4] sm:$0xf]  ;;  %v14483_v40 = vor.u32 %v17396_v0, %v14480_v19 }
 0x2c6   :  { %7001 = vmatpush.bf16.msrb.mxu3 %v14255_v22  ;;  %v17420_v22 = vld [vmem:[#allocation2 + $0x15ac] sm:$0xf]  ;;  %6878 = vmatmul.bf16.gmra.mxu0 %v19445_v51 }
 0x2c7   :  { %6945 = vmatpush.bf16.msrb.mxu0 %v14527_v49  ;;  %v5546_v34 = vadd.f32 %v5545_v23, %v5527_v52  ;;  %v17372_v49 = vld [vmem:[#allocation2 + $0x142c] sm:$0xf]  ;;  %v5564_v35 = vpop.f32.mrf.mxu2  ;;  %v14579_v12 = vor.u32 %v17420_v22, %v14576_v60  ;;  %v14084_v52 = vld [vmem:[%s19956_s26 + $0x1c8] sm:$0xf0]  ;;  %v14090_v23 = vld [vmem:[%s19956_s26 + $0x1b8] sm:$0xf] }
 0x2c8   :  { %6964 = vmatpush.bf16.msrb.mxu1 %v14623_v5  ;;  %v14384_v5 = vld [vmem:[#allocation2 + $0x1434] sm:$0xf0]  ;;  %v14092_v31 = vld [vmem:[%s19956_s26 + $0x1d0] sm:$0xf0]  ;;  %v17393_v22 = vld [vmem:[#allocation2 + $0x14d4] sm:$0xf]  ;;  %v19447_v26 = vor.u32 %v17297_v54, %v14084_v52 }
 0x2c9   :  { %6983 = vmatpush.bf16.msrb.mxu2 %v14147_v8  ;;  %v14204_v8 = vld [vmem:[#allocation2 + $0x12cc] sm:$0xf0]  ;;  %v5529_v38 = vpop.f32.mrf.mxu0  ;;  %v5583_v46 = vpop.f32.mrf.mxu3  ;;  %v14468_v60 = vld [vmem:[#allocation2 + $0x14dc] sm:$0xf0]  ;;  %v17411_v52 = vld [vmem:[#allocation2 + $0x1564] sm:$0xf] }
 0x2ca   :  { %7002 = vmatpush.bf16.msrb.mxu3 %v14243_v25  ;;  %v5565_v25 = vadd.f32 %v5564_v35, %v5546_v34  ;;  %v5530_v10 = vadd.f32 %v5529_v38, %v19369_v39  ;;  %v14207_v61 = vor.u32 %v17327_v57, %v14204_v8  ;;  %v17301_v39 = vld [vmem:[%s19956_s26 + $0x1cc] sm:$0xf0]  ;;  %v17369_v34 = vld [vmem:[#allocation2 + $0x1414] sm:$0xf]  ;;  %v17414_v8 = vld [vmem:[#allocation2 + $0x157c] sm:$0xf]  ;;  %6897 = vmatmul.bf16.gmra.mxu1 %v19447_v26 }
 0x2cb   :  { %6946 = vmatpush.bf16.msrb.mxu0 %v14515_v21  ;;  %v19449_v15 = vor.u32 %v17301_v39, %v14090_v23  ;;  %v14456_v38 = vld [vmem:[#allocation2 + $0x14c4] sm:$0xf0]  ;;  %v14540_v23 = vld [vmem:[#allocation2 + $0x156c] sm:$0xf0]  ;;  %v17387_v39 = vld [vmem:[#allocation2 + $0x14a4] sm:$0xf] }
 0x2cc   :  { %6965 = vmatpush.bf16.msrb.mxu1 %v14611_v18  ;;  %v5584_v21 = vadd.f32 %v5583_v46, %v5565_v25  ;;  %v14587_v18 = vor.u32 %v17424_v56, %v14586_v16  ;;  %v14567_v16 = vor.u32 %v17417_v36, %v14564_v3  ;;  %v19451_v56 = vor.u32 %v17298_v17, %v14092_v31  ;;  %v14360_v25 = vld [vmem:[#allocation2 + $0x1404] sm:$0xf0]  ;;  %v14444_v36 = vld [vmem:[#allocation2 + $0x14ac] sm:$0xf0]  ;;  %v17435_v3 = vld [vmem:[#allocation2 + $0x1624] sm:$0xf] }
 0x2cd   :  { %6984 = vmatpush.bf16.msrb.mxu2 %v14135_v48  ;;  %v5548_v48 = vpop.f32.mrf.mxu1 }
 0x2ce   :  { %7003 = vmatpush.bf16.msrb.mxu3 %v14231_v63  ;;  %v5549_v9 = vadd.f32 %v5548_v48, %v5530_v10  ;;  %v14387_v63 = vor.u32 %v17372_v49, %v14384_v5  ;;  %v19443_v43 = vadd.f32 %v5584_v21, %v19267_v6  ;;  %v14552_v49 = vld [vmem:[#allocation2 + $0x1584] sm:$0xf0]  ;;  %v17366_v5 = vld [vmem:[#allocation2 + $0x13fc] sm:$0xf]  ;;  %6916 = vmatmul.bf16.gmra.mxu2 %v19449_v15  ;;  %v17363_v21 = vld [vmem:[#allocation2 + $0x13e4] sm:$0xf] }
 0x2cf   :  { %6947 = vmatpush.bf16.msrb.mxu0 %v14503_v62  ;;  %v17441_v62 = vld [vmem:[#allocation2 + $0x1654] sm:$0xf]  ;;  %v5567_v6 = vpop.f32.mrf.mxu2  ;;  %6935 = vmatmul.bf16.gmra.mxu3 %v19451_v56  ;;  %v14555_v48 = vor.u32 %v17414_v8, %v14552_v49  ;;  %v14624_v8 = vld [vmem:[#allocation2 + $0x1614] sm:$0xf0]  ;;  %v14074_v49 = vld [vmem:[%s19956_s26 + $0x190] sm:$0xf] }
 0x2d0   :  { %6966 = vmatpush.bf16.msrb.mxu1 %v14599_v32  ;;  %v14660_v32 = vld [vmem:[#allocation2 + $0x165c] sm:$0xf0]  ;;  %v5568_v35 = vadd.f32 %v5567_v6, %v5549_v9  ;;  %v14636_v9 = vld [vmem:[#allocation2 + $0x162c] sm:$0xf0]  ;;  %v14432_v6 = vld [vmem:[#allocation2 + $0x1494] sm:$0xf0] }
 0x2d1   :  { %6985 = vmatpush.bf16.msrb.mxu2 %v14123_v42  ;;  %v14372_v42 = vld [vmem:[#allocation2 + $0x141c] sm:$0xf0]  ;;  %v14663_v0 = vor.u32 %v17441_v62, %v14660_v32  ;;  %v5531_v19 = vpop.f32.mrf.mxu0  ;;  %v5586_v53 = vpop.f32.mrf.mxu3 }
 0x2d2   :  { %7004 = vmatpush.bf16.msrb.mxu3 %v14219_v4  ;;  %v14375_v57 = vor.u32 %v17369_v34, %v14372_v42  ;;  %v14471_v4 = vor.u32 %v17393_v22, %v14468_v60  ;;  %v5532_v46 = vadd.f32 %v5531_v19, %v19392_v20  ;;  %v5587_v10 = vadd.f32 %v5586_v53, %v5568_v35  ;;  %v17360_v42 = vld [vmem:[#allocation2 + $0x13cc] sm:$0xf]  ;;  %v14336_v22 = vld [vmem:[#allocation2 + $0x13d4] sm:$0xf0] }
 0x2d3   :  { %6948 = vmatpush.bf16.msrb.mxu0 %v14491_v55  ;;  %v14363_v55 = vor.u32 %v17366_v5, %v14360_v25  ;;  %v14651_v20 = vor.u32 %v17438_v1, %v14648_v59  ;;  %v14447_v34 = vor.u32 %v17387_v39, %v14444_v36  ;;  %v14639_v60 = vor.u32 %v17435_v3, %v14636_v9  ;;  %v17296_v5 = vld [vmem:[%s19956_s26 + $0x1a4] sm:$0xf0]  ;;  %v17293_v53 = vld [vmem:[%s19956_s26 + $0x194] sm:$0xf]  ;;  %v14076_v25 = vld [vmem:[%s19956_s26 + $0x1a8] sm:$0xf0] }
 0x2d4   :  { %6967 = vmatpush.bf16.msrb.mxu1 %v14587_v18  ;;  %v19459_v18 = vadd.f32 %v5587_v10, %v19293_v11  ;;  %v17357_v1 = vld [vmem:[#allocation2 + $0x13b4] sm:$0xf]  ;;  %v17402_v3 = vld [vmem:[#allocation2 + $0x151c] sm:$0xf] }
 0x2d5   :  { %6986 = vmatpush.bf16.msrb.mxu2 %v14111_v27  ;;  %v17390_v27 = vld [vmem:[#allocation2 + $0x14bc] sm:$0xf]  ;;  %v5550_v28 = vpop.f32.mrf.mxu1 }
 0x2d6   :  { %7005 = vmatpush.bf16.msrb.mxu3 %v14207_v61  ;;  %v14459_v54 = vor.u32 %v17390_v27, %v14456_v38  ;;  %v14348_v61 = vld [vmem:[#allocation2 + $0x13ec] sm:$0xf0]  ;;  %v14339_v27 = vor.u32 %v17360_v42, %v14336_v22  ;;  %v17354_v9 = vld [vmem:[#allocation2 + $0x139c] sm:$0xf]  ;;  %v14408_v42 = vld [vmem:[#allocation2 + $0x1464] sm:$0xf0] }
 0x2d7   :  { %7017 = vmatpush.bf16.msra.mxu0 %v14387_v63  ;;  %v14543_v63 = vor.u32 %v17411_v52, %v14540_v23  ;;  %v5569_v17 = vpop.f32.mrf.mxu2  ;;  %v14351_v31 = vor.u32 %v17363_v21, %v14348_v61  ;;  %v19478_v52 = vor.u32 %v17293_v53, %v14076_v25  ;;  %v17429_v23 = vld [vmem:[#allocation2 + $0x15f4] sm:$0xf]  ;;  %v14612_v21 = vld [vmem:[#allocation2 + $0x15fc] sm:$0xf0]  ;;  %v17375_v53 = vld [vmem:[#allocation2 + $0x1444] sm:$0xf] }
 0x2d8   :  { %7036 = vmatpush.bf16.msra.mxu1 %v14483_v40  ;;  %v17408_v40 = vld [vmem:[#allocation2 + $0x154c] sm:$0xf]  ;;  %v14396_v25 = vld [vmem:[#allocation2 + $0x144c] sm:$0xf0] }
 0x2d9   :  { %7055 = vmatpush.bf16.msra.mxu2 %v14579_v12  ;;  %v5551_v12 = vadd.f32 %v5550_v28, %v5532_v46  ;;  %v5588_v62 = vpop.f32.mrf.mxu3  ;;  %v5600_v32 = vpop.f32.mrf.mxu0  ;;  %v17405_v46 = vld [vmem:[#allocation2 + $0x1534] sm:$0xf]  ;;  %v14516_v28 = vld [vmem:[#allocation2 + $0x153c] sm:$0xf0] }
 0x2da   :  { %7074 = vmatpush.bf16.msra.mxu3 %v14675_v24  ;;  %v14528_v24 = vld [vmem:[#allocation2 + $0x1554] sm:$0xf0]  ;;  %6968 = vmatmul.bf16.vlgmr.msrb.gmra.mxu1 %v19478_v52 }
 0x2db   :  { %7018 = vmatpush.bf16.msra.mxu0 %v14375_v57  ;;  %v5570_v11 = vadd.f32 %v5569_v17, %v5551_v12  ;;  %v17432_v57 = vld [vmem:[#allocation2 + $0x160c] sm:$0xf]  ;;  %v14531_v19 = vor.u32 %v17408_v40, %v14528_v24  ;;  %v14324_v12 = vld [vmem:[#allocation2 + $0x13bc] sm:$0xf0]  ;;  %v14615_v40 = vor.u32 %v17429_v23, %v14612_v21  ;;  %v17378_v24 = vld [vmem:[#allocation2 + $0x145c] sm:$0xf] }
 0x2dc   :  { %7037 = vmatpush.bf16.msra.mxu1 %v14471_v4  ;;  %v14627_v10 = vor.u32 %v17432_v57, %v14624_v8  ;;  %v14327_v39 = vor.u32 %v17357_v1, %v14324_v12  ;;  %v14492_v57 = vld [vmem:[#allocation2 + $0x150c] sm:$0xf0]  ;;  %v14411_v8 = vor.u32 %v17378_v24, %v14408_v42  ;;  %v17326_v1 = vld [vmem:[#allocation2 + $0x12b8] sm:$0xf0] }
 0x2dd   :  { %7056 = vmatpush.bf16.msra.mxu2 %v14567_v16  ;;  %v17384_v16 = vld [vmem:[#allocation2 + $0x148c] sm:$0xf]  ;;  %v5619_v4 = vpop.f32.mrf.mxu1  ;;  %v5589_v35 = vadd.f32 %v5588_v62, %v5570_v11  ;;  %v17426_v11 = vld [vmem:[#allocation2 + $0x15dc] sm:$0xf]  ;;  %v14486_v21 = vld [vmem:[#allocation2 + $0x14f0] sm:$0xf] }
 0x2de   :  { %7075 = vmatpush.bf16.msra.mxu3 %v14663_v0  ;;  %v5620_v0 = vadd.f32 %v5619_v4, %v5600_v32  ;;  %v14435_v38 = vor.u32 %v17384_v16, %v14432_v6  ;;  %6987 = vmatmul.bf16.vlgmr.msrb.gmra.mxu2 %v19401_v30  ;;  %v17399_v6 = vld [vmem:[#allocation2 + $0x1504] sm:$0xf]  ;;  %v17350_v12 = vld [vmem:[#allocation2 + $0x1378] sm:$0xf0]  ;;  %v17302_v24 = vld [vmem:[%s19956_s26 + $0x1d4] sm:$0xf0] }
 0x2df   :  { %7019 = vmatpush.bf16.msra.mxu0 %v14363_v55  ;;  %v19474_v59 = vadd.f32 %v5589_v35, %v19300_v33  ;;  %v17381_v55 = vld [vmem:[#allocation2 + $0x1474] sm:$0xf]  ;;  %v5638_v61 = vpop.f32.mrf.mxu2  ;;  %v14504_v33 = vld [vmem:[#allocation2 + $0x1524] sm:$0xf0]  ;;  %7006 = vmatmul.bf16.vlgmr.msrb.gmra.mxu3 %v19403_v37  ;;  %v17351_v35 = vld [vmem:[#allocation2 + $0x1384] sm:$0xf] }
 0x2e0   :  { %7038 = vmatpush.bf16.msra.mxu1 %v14459_v54  ;;  %v14420_v54 = vld [vmem:[#allocation2 + $0x147c] sm:$0xf0]  ;;  %v14507_v16 = vor.u32 %v17402_v3, %v14504_v33  ;;  %v17299_v42 = vld [vmem:[%s19956_s26 + $0x1c4] sm:$0xf] }
 0x2e1   :  { %7057 = vmatpush.bf16.msra.mxu2 %v14555_v48  ;;  %v19476_v48 = vor.u32 %v17296_v5, %v14074_v49  ;;  %v14423_v36 = vor.u32 %v17381_v55, %v14420_v54  ;;  %v5602_v17 = vpop.f32.mrf.mxu0  ;;  %v14390_v49 = vld [vmem:[#allocation2 + $0x1430] sm:$0xf]  ;;  %v17374_v5 = vld [vmem:[#allocation2 + $0x1438] sm:$0xf0] }
 0x2e2   :  { %7076 = vmatpush.bf16.msra.mxu3 %v14651_v20  ;;  %v14519_v20 = vor.u32 %v17405_v46, %v14516_v28  ;;  %v14198_v46 = vld [vmem:[#allocation2 + $0x12b0] sm:$0xf]  ;;  %v14495_v28 = vor.u32 %v17399_v6, %v14492_v57  ;;  %v14391_v55 = vor.u32 %v17374_v5, %v14390_v49  ;;  %v17323_v6 = vld [vmem:[#allocation2 + $0x12a0] sm:$0xf0]  ;;  %v14474_v49 = vld [vmem:[#allocation2 + $0x14d8] sm:$0xf] }
 0x2e3   :  { %7020 = vmatpush.bf16.msra.mxu0 %v14351_v31  ;;  %v5657_v31 = vpop.f32.mrf.mxu3 }
 0x2e4   :  { %7039 = vmatpush.bf16.msra.mxu1 %v14447_v34  ;;  %6949 = vmatmul.bf16.vlgmr.msrb.gmra.mxu0 %v19476_v48  ;;  %v14312_v34 = vld [vmem:[#allocation2 + $0x13a4] sm:$0xf0] }
 0x2e5   :  { %7058 = vmatpush.bf16.msra.mxu2 %v14543_v63  ;;  %v5639_v63 = vadd.f32 %v5638_v61, %v5620_v0  ;;  %v5621_v22 = vpop.f32.mrf.mxu1  ;;  %v14315_v4 = vor.u32 %v17354_v9, %v14312_v34  ;;  %v14378_v9 = vld [vmem:[#allocation2 + $0x1418] sm:$0xf] }
 0x2e6   :  { %7077 = vmatpush.bf16.msra.mxu3 %v14639_v60  ;;  %v14600_v60 = vld [vmem:[#allocation2 + $0x15e4] sm:$0xf0]  ;;  %v5622_v62 = vadd.f32 %v5621_v22, %v5602_v17  ;;  %v14098_v34 = vld [vmem:[%s19956_s26 + $0x1c0] sm:$0xf] }
 0x2e7   :  { %7021 = vmatpush.bf16.msra.mxu0 %v14339_v27  ;;  %v19484_v32 = vadd.f32 %v5657_v31, %v5639_v63  ;;  %v14603_v0 = vor.u32 %v17426_v11, %v14600_v60  ;;  %v17423_v27 = vld [vmem:[#allocation2 + $0x15c4] sm:$0xf]  ;;  %v5640_v54 = vpop.f32.mrf.mxu2  ;;  %v19500_v5 = vor.u32 %v17302_v24, %v14098_v34  ;;  %v14258_v24 = vld [vmem:[#allocation2 + $0x1328] sm:$0xf] }
 0x2e8   :  { %7040 = vmatpush.bf16.msra.mxu1 %v14435_v38  ;;  %v14588_v38 = vld [vmem:[#allocation2 + $0x15cc] sm:$0xf0]  ;;  %v5641_v61 = vadd.f32 %v5640_v54, %v5622_v62  ;;  %v17371_v63 = vld [vmem:[#allocation2 + $0x1420] sm:$0xf0]  ;;  %v14100_v62 = vld [vmem:[%s19956_s26 + $0x1d8] sm:$0xf0] }
 0x2e9   :  { %7059 = vmatpush.bf16.msra.mxu2 %v14531_v19  ;;  %v14300_v19 = vld [vmem:[#allocation2 + $0x138c] sm:$0xf0]  ;;  %v5605_v3 = vpop.f32.mrf.mxu0  ;;  %v14379_v57 = vor.u32 %v17371_v63, %v14378_v9  ;;  %v14462_v54 = vld [vmem:[#allocation2 + $0x14c0] sm:$0xf] }
 0x2ea   :  { %7078 = vmatpush.bf16.msra.mxu3 %v14627_v10  ;;  %v14294_v10 = vld [vmem:[#allocation2 + $0x1370] sm:$0xf]  ;;  %v14303_v23 = vor.u32 %v17351_v35, %v14300_v19  ;;  %v17395_v35 = vld [vmem:[#allocation2 + $0x14e0] sm:$0xf0]  ;;  %v17368_v19 = vld [vmem:[#allocation2 + $0x1408] sm:$0xf0] }
 0x2eb   :  { %7022 = vmatpush.bf16.msra.mxu0 %v14327_v39  ;;  %v14399_v39 = vor.u32 %v17375_v53, %v14396_v25  ;;  %v5659_v33 = vpop.f32.mrf.mxu3  ;;  %v14295_v17 = vor.u32 %v17350_v12, %v14294_v10  ;;  %v19502_v53 = vor.u32 %v17299_v42, %v14100_v62  ;;  %v14270_v12 = vld [vmem:[#allocation2 + $0x1340] sm:$0xf]  ;;  %v17341_v42 = vld [vmem:[#allocation2 + $0x1330] sm:$0xf0]  ;;  %v14342_v62 = vld [vmem:[#allocation2 + $0x13d0] sm:$0xf] }
 0x2ec   :  { %7041 = vmatpush.bf16.msra.mxu1 %v14423_v36  ;;  %v14591_v36 = vor.u32 %v17423_v27, %v14588_v38  ;;  %v19495_v60 = vadd.f32 %v5659_v33, %v5641_v61  ;;  %v14174_v38 = vld [vmem:[#allocation2 + $0x1280] sm:$0xf] }
 0x2ed   :  { %7060 = vmatpush.bf16.msra.mxu2 %v14519_v20  ;;  %v17398_v20 = vld [vmem:[#allocation2 + $0x14f8] sm:$0xf0]  ;;  %v5624_v31 = vpop.f32.mrf.mxu1  ;;  %6973 = vmatmul.bf16.gmra.mxu1 %v19502_v53 }
 0x2ee   :  { %7079 = vmatpush.bf16.msra.mxu3 %v14615_v40  ;;  %v14199_v40 = vor.u32 %v17326_v1, %v14198_v46  ;;  %v14487_v22 = vor.u32 %v17398_v20, %v14486_v21  ;;  %v5625_v11 = vadd.f32 %v5624_v31, %v5605_v3  ;;  %v17320_v46 = vld [vmem:[#allocation2 + $0x1288] sm:$0xf0]  ;;  %6992 = vmatmul.bf16.gmra.mxu2 %v19445_v51 }
 0x2ef   :  { %7023 = vmatpush.bf16.msra.mxu0 %v14315_v4  ;;  %v14282_v4 = vld [vmem:[#allocation2 + $0x1358] sm:$0xf]  ;;  %v5643_v10 = vpop.f32.mrf.mxu2  ;;  %v17392_v21 = vld [vmem:[#allocation2 + $0x14c8] sm:$0xf0]  ;;  %v14175_v33 = vor.u32 %v17320_v46, %v14174_v38  ;;  %7011 = vmatmul.bf16.gmra.mxu3 %v19447_v26  ;;  %v14438_v38 = vld [vmem:[#allocation2 + $0x1490] sm:$0xf] }
 0x2f0   :  { %7042 = vmatpush.bf16.msra.mxu1 %v14411_v8  ;;  %v17347_v8 = vld [vmem:[#allocation2 + $0x1360] sm:$0xf0]  ;;  %v14463_v31 = vor.u32 %v17392_v21, %v14462_v54 }
 0x2f1   :  { %7061 = vmatpush.bf16.msra.mxu2 %v14507_v16  ;;  %v14186_v16 = vld [vmem:[#allocation2 + $0x1298] sm:$0xf]  ;;  %v14283_v27 = vor.u32 %v17347_v8, %v14282_v4  ;;  %v5607_v20 = vpop.f32.mrf.mxu0  ;;  %v14259_v4 = vor.u32 %v17341_v42, %v14258_v24  ;;  %v14150_v8 = vld [vmem:[#allocation2 + $0x1250] sm:$0xf]  ;;  %v14318_v24 = vld [vmem:[#allocation2 + $0x13a0] sm:$0xf] }
 0x2f2   :  { %7080 = vmatpush.bf16.msra.mxu3 %v14603_v0  ;;  %v14366_v0 = vld [vmem:[#allocation2 + $0x1400] sm:$0xf]  ;;  %v14187_v25 = vor.u32 %v17323_v6, %v14186_v16  ;;  %v17362_v16 = vld [vmem:[#allocation2 + $0x13d8] sm:$0xf0] }
 0x2f3   :  { %7024 = vmatpush.bf16.msra.mxu0 %v14303_v23  ;;  %v14367_v1 = vor.u32 %v17368_v19, %v14366_v0  ;;  %v5644_v23 = vadd.f32 %v5643_v10, %v5625_v11  ;;  %v5662_v61 = vpop.f32.mrf.mxu3  ;;  %v17389_v11 = vld [vmem:[#allocation2 + $0x14b0] sm:$0xf0]  ;;  %v14343_v0 = vor.u32 %v17362_v16, %v14342_v62  ;;  %v14126_v62 = vld [vmem:[#allocation2 + $0x1220] sm:$0xf]  ;;  %v17308_v16 = vld [vmem:[#allocation2 + $0x1228] sm:$0xf0] }
 0x2f4   :  { %7043 = vmatpush.bf16.msra.mxu1 %v14399_v39  ;;  %6954 = vmatmul.bf16.gmra.mxu0 %v19500_v5  ;;  %v14354_v39 = vld [vmem:[#allocation2 + $0x13e8] sm:$0xf] }
 0x2f5   :  { %7062 = vmatpush.bf16.msra.mxu2 %v14495_v28  ;;  %v14475_v28 = vor.u32 %v17395_v35, %v14474_v49  ;;  %v5626_v3 = vpop.f32.mrf.mxu1  ;;  %v19507_v63 = vadd.f32 %v5662_v61, %v5644_v23  ;;  %v17314_v49 = vld [vmem:[#allocation2 + $0x1258] sm:$0xf0] }
 0x2f6   :  { %7081 = vmatpush.bf16.msra.mxu3 %v14591_v36  ;;  %v17365_v36 = vld [vmem:[#allocation2 + $0x13f0] sm:$0xf0]  ;;  %v5627_v6 = vadd.f32 %v5626_v3, %v5607_v20  ;;  %v14151_v21 = vor.u32 %v17314_v49, %v14150_v8  ;;  %v17332_v49 = vld [vmem:[#allocation2 + $0x12e8] sm:$0xf0] }
 0x2f7   :  { %7093 = vmatpush.bf16.msrb.mxu0 %v14199_v40  ;;  %v14162_v40 = vld [vmem:[#allocation2 + $0x1268] sm:$0xf]  ;;  %v14355_v34 = vor.u32 %v17365_v36, %v14354_v39  ;;  %v5645_v19 = vpop.f32.mrf.mxu2  ;;  %v14138_v39 = vld [vmem:[#allocation2 + $0x1238] sm:$0xf]  ;;  %v17311_v36 = vld [vmem:[#allocation2 + $0x1240] sm:$0xf0] }
 0x2f8   :  { %7112 = vmatpush.bf16.msrb.mxu1 %v14295_v17  ;;  %v17317_v17 = vld [vmem:[#allocation2 + $0x1270] sm:$0xf0]  ;;  %v5646_v46 = vadd.f32 %v5645_v19, %v5627_v6  ;;  %v14222_v6 = vld [vmem:[#allocation2 + $0x12e0] sm:$0xf] }
 0x2f9   :  { %7131 = vmatpush.bf16.msrb.mxu2 %v14391_v55  ;;  %v17344_v55 = vld [vmem:[#allocation2 + $0x1348] sm:$0xf0]  ;;  %v5676_v10 = vpop.f32.mrf.mxu0 }
 0x2fa   :  { %7150 = vmatpush.bf16.msrb.mxu3 %v14487_v22  ;;  %v14271_v9 = vor.u32 %v17344_v55, %v14270_v12  ;;  %v14450_v22 = vld [vmem:[#allocation2 + $0x14a8] sm:$0xf]  ;;  %v14330_v12 = vld [vmem:[#allocation2 + $0x13b8] sm:$0xf]  ;;  %v17359_v55 = vld [vmem:[#allocation2 + $0x13c0] sm:$0xf0]  ;;  %v5677_v54 = vadd.f32 %v5676_v10, %v19484_v32  ;;  %v14223_v10 = vor.u32 %v17332_v49, %v14222_v6 }
 0x2fb   :  { %7094 = vmatpush.bf16.msrb.mxu0 %v14187_v25  ;;  %v14451_v35 = vor.u32 %v17389_v11, %v14450_v22  ;;  %v14246_v25 = vld [vmem:[#allocation2 + $0x1310] sm:$0xf]  ;;  %v17356_v32 = vld [vmem:[#allocation2 + $0x13a8] sm:$0xf0]  ;;  %v14139_v22 = vor.u32 %v17311_v36, %v14138_v39 }
 0x2fc   :  { %7113 = vmatpush.bf16.msrb.mxu1 %v14283_v27  ;;  %v17338_v27 = vld [vmem:[#allocation2 + $0x1318] sm:$0xf0]  ;;  %v17460_v6 = vld [vmem:[#allocation7 + $0x64] sm:$0xf0] }
 0x2fd   :  { %7132 = vmatpush.bf16.msrb.mxu2 %v14379_v57  ;;  %v14163_v57 = vor.u32 %v17317_v17, %v14162_v40  ;;  %v5695_v23 = vpop.f32.mrf.mxu1  ;;  %v14247_v20 = vor.u32 %v17338_v27, %v14246_v25  ;;  %v14234_v40 = vld [vmem:[#allocation2 + $0x12f8] sm:$0xf]  ;;  %v17335_v17 = vld [vmem:[#allocation2 + $0x1300] sm:$0xf0]  ;;  %v17353_v25 = vld [vmem:[#allocation2 + $0x1390] sm:$0xf0]  ;;  %7044 = vmatmul.bf16.vlgmr.msra.gmra.mxu1 %v19407_v14 }
 0x2fe   :  { %7151 = vmatpush.bf16.msrb.mxu3 %v14475_v28  ;;  %v17386_v28 = vld [vmem:[#allocation2 + $0x1498] sm:$0xf0]  ;;  %v14235_v11 = vor.u32 %v17335_v17, %v14234_v40  ;;  %7063 = vmatmul.bf16.vlgmr.msra.gmra.mxu2 %v19476_v48  ;;  %v14582_v40 = vld [vmem:[#allocation2 + $0x15b0] sm:$0xf] }
 0x2ff   :  { %7095 = vmatpush.bf16.msrb.mxu0 %v14175_v33  ;;  %v14439_v3 = vor.u32 %v17386_v28, %v14438_v38  ;;  %v5696_v33 = vadd.f32 %v5695_v23, %v5677_v54  ;;  %v5714_v8 = vpop.f32.mrf.mxu2  ;;  %v17462_v28 = vld [vmem:[#allocation7 + $0x74] sm:$0xf0]  ;;  %v14114_v54 = vld [vmem:[#allocation2 + $0x1208] sm:$0xf]  ;;  %v17305_v23 = vld [vmem:[#allocation2 + $0x1210] sm:$0xf0]  ;;  %7082 = vmatmul.bf16.vlgmr.msra.gmra.mxu3 %v19478_v52 }
 0x300   :  { %7114 = vmatpush.bf16.msrb.mxu1 %v14271_v9  ;;  %v14331_v9 = vor.u32 %v17359_v55, %v14330_v12  ;;  %v17422_v17 = vld [vmem:[#allocation2 + $0x15b8] sm:$0xf0] }
 0x301   :  { %7133 = vmatpush.bf16.msrb.mxu2 %v14367_v1  ;;  %v5664_v1 = vpop.f32.mrf.mxu3  ;;  %v19514_v42 = vadd.f32 %v5696_v33, %v19311_v13  ;;  %v5678_v19 = vpop.f32.mrf.mxu0  ;;  %v14306_v13 = vld [vmem:[#allocation2 + $0x1388] sm:$0xf]  ;;  %v17377_v33 = vld [vmem:[#allocation2 + $0x1450] sm:$0xf0] }
 0x302   :  { %7152 = vmatpush.bf16.msrb.mxu3 %v14463_v31  ;;  %v19511_v61 = vadd.f32 %v5664_v1, %v5646_v46  ;;  %v14426_v31 = vld [vmem:[#allocation2 + $0x1478] sm:$0xf]  ;;  %v5679_v27 = vadd.f32 %v5678_v19, %v19495_v60  ;;  %v14741_v46 = vld [vmem:[#allocation7 + $0x70] sm:$0xf]  ;;  %v14127_v1 = vor.u32 %v17308_v16, %v14126_v62  ;;  %v14307_v36 = vor.u32 %v17353_v25, %v14306_v13  ;;  %v14402_v60 = vld [vmem:[#allocation2 + $0x1448] sm:$0xf] }
 0x303   :  { %7096 = vmatpush.bf16.msrb.mxu0 %v14163_v57  ;;  %v14733_v16 = vld [vmem:[#allocation7 + $0x60] sm:$0xf]  ;;  %v14666_v13 = vld [vmem:[#allocation2 + $0x1658] sm:$0xf] }
 0x304   :  { %7115 = vmatpush.bf16.msrb.mxu1 %v14259_v4  ;;  %v14319_v4 = vor.u32 %v17356_v32, %v14318_v24  ;;  %7025 = vmatmul.bf16.vlgmr.msra.gmra.mxu0 %v19405_v41  ;;  %v17446_v24 = vld [vmem:[#allocation2 + $0x1678] sm:$0xf0]  ;;  %v14805_v32 = vld [vmem:[#allocation7 + $0xf0] sm:$0xf]  ;;  %v17419_v19 = vld [vmem:[#allocation2 + $0x15a0] sm:$0xf0]  ;;  %v14734_v25 = vor.u32 %v17460_v6, %v14733_v16 }
 0x305   :  { %7134 = vmatpush.bf16.msrb.mxu2 %v14355_v34  ;;  %v17383_v34 = vld [vmem:[#allocation2 + $0x1480] sm:$0xf0]  ;;  %v5697_v38 = vpop.f32.mrf.mxu1 }
 0x306   :  { %7153 = vmatpush.bf16.msrb.mxu3 %v14451_v35  ;;  %v14427_v57 = vor.u32 %v17383_v34, %v14426_v31  ;;  %v14414_v35 = vld [vmem:[#allocation2 + $0x1460] sm:$0xf]  ;;  %v14678_v31 = vld [vmem:[#allocation2 + $0x1670] sm:$0xf] }
 0x307   :  { %7097 = vmatpush.bf16.msrb.mxu0 %v14151_v21  ;;  %v14210_v21 = vld [vmem:[#allocation2 + $0x12c8] sm:$0xf]  ;;  %v14679_v49 = vor.u32 %v17446_v24, %v14678_v31  ;;  %v17474_v31 = vld [vmem:[#allocation7 + $0xd4] sm:$0xf0]  ;;  %v14717_v24 = vld [vmem:[#allocation7 + $0x40] sm:$0xf] }
 0x308   :  { %7116 = vmatpush.bf16.msrb.mxu1 %v14247_v20  ;;  %v5698_v20 = vadd.f32 %v5697_v38, %v5679_v27 }
 0x309   :  { %7135 = vmatpush.bf16.msrb.mxu2 %v14343_v0  ;;  %v17380_v0 = vld [vmem:[#allocation2 + $0x1468] sm:$0xf0]  ;;  %v5733_v55 = vpop.f32.mrf.mxu3 }
 0x30a   :  { %7154 = vmatpush.bf16.msrb.mxu3 %v14439_v3  ;;  %v14415_v12 = vor.u32 %v17380_v0, %v14414_v35  ;;  %v19520_v39 = vadd.f32 %v5733_v55, %v5714_v8  ;;  %v17329_v3 = vld [vmem:[#allocation2 + $0x12d0] sm:$0xf0]  ;;  %v19524_v34 = vadd.f32 %v5698_v20, %v19316_v29  ;;  %v5716_v8 = vpop.f32.mrf.mxu2  ;;  %v5681_v0 = vpop.f32.mrf.mxu0  ;;  %v14570_v29 = vld [vmem:[#allocation2 + $0x1598] sm:$0xf]  ;;  %v17458_v55 = vld [vmem:[#allocation7 + $0x54] sm:$0xf0] }
 0x30b   :  { %7098 = vmatpush.bf16.msrb.mxu0 %v14139_v22  ;;  %v17478_v22 = vld [vmem:[#allocation7 + $0xf4] sm:$0xf0]  ;;  %v14211_v62 = vor.u32 %v17329_v3, %v14210_v21  ;;  %v5682_v27 = vadd.f32 %v5681_v0, %v19507_v63  ;;  %v14571_v21 = vor.u32 %v17419_v19, %v14570_v29  ;;  %v14558_v63 = vld [vmem:[#allocation2 + $0x1580] sm:$0xf]  ;;  %v17416_v3 = vld [vmem:[#allocation2 + $0x1588] sm:$0xf0] }
 0x30c   :  { %7117 = vmatpush.bf16.msrb.mxu1 %v14235_v11  ;;  %v14115_v11 = vor.u32 %v17305_v23, %v14114_v54  ;;  %v14806_v35 = vor.u32 %v17478_v22, %v14805_v32  ;;  %v17456_v32 = vld [vmem:[#allocation7 + $0x44] sm:$0xf0]  ;;  %v14559_v22 = vor.u32 %v17416_v3, %v14558_v63  ;;  %v17437_v0 = vld [vmem:[#allocation2 + $0x1630] sm:$0xf0]  ;;  %v14781_v29 = vld [vmem:[#allocation7 + $0xc0] sm:$0xf] }
 0x30d   :  { %7136 = vmatpush.bf16.msrb.mxu2 %v14331_v9  ;;  %v14742_v9 = vor.u32 %v17462_v28, %v14741_v46  ;;  %v5700_v38 = vpop.f32.mrf.mxu1  ;;  %v17443_v46 = vld [vmem:[#allocation2 + $0x1660] sm:$0xf0]  ;;  %v17472_v19 = vld [vmem:[#allocation7 + $0xc4] sm:$0xf0]  ;;  %7049 = vmatmul.bf16.gmra.mxu1 %v19451_v56  ;;  %v17470_v63 = vld [vmem:[#allocation7 + $0xb4] sm:$0xf0] }
 0x30e   :  { %7155 = vmatpush.bf16.msrb.mxu3 %v14427_v57  ;;  %v14403_v57 = vor.u32 %v17377_v33, %v14402_v60  ;;  %v14797_v28 = vld [vmem:[#allocation7 + $0xe0] sm:$0xf]  ;;  %v5701_v54 = vadd.f32 %v5700_v38, %v5682_v27  ;;  %v14667_v20 = vor.u32 %v17443_v46, %v14666_v13  ;;  %v14654_v60 = vld [vmem:[#allocation2 + $0x1640] sm:$0xf]  ;;  %7068 = vmatmul.bf16.gmra.mxu2 %v19500_v5  ;;  %v17454_v27 = vld [vmem:[#allocation7 + $0x34] sm:$0xf0] }
 0x30f   :  { %7099 = vmatpush.bf16.msrb.mxu0 %v14127_v1  ;;  %v17476_v1 = vld [vmem:[#allocation7 + $0xe4] sm:$0xf0]  ;;  %7087 = vmatmul.bf16.gmra.mxu3 %v19502_v53  ;;  %v14701_v3 = vld [vmem:[#allocation7 + $0x20] sm:$0xf] }
 0x310   :  { %7118 = vmatpush.bf16.msrb.mxu1 %v14223_v10  ;;  %v19530_v33 = vadd.f32 %v5701_v54, %v19323_v50  ;;  %v14718_v50 = vor.u32 %v17456_v32, %v14717_v24  ;;  %v14522_v24 = vld [vmem:[#allocation2 + $0x1538] sm:$0xf]  ;;  %v17407_v32 = vld [vmem:[#allocation2 + $0x1540] sm:$0xf0] }
 0x311   :  { %7137 = vmatpush.bf16.msrb.mxu2 %v14319_v4  ;;  %v14583_v4 = vor.u32 %v17422_v17, %v14582_v40  ;;  %v5735_v10 = vpop.f32.mrf.mxu3  ;;  %v17440_v40 = vld [vmem:[#allocation2 + $0x1648] sm:$0xf0]  ;;  %v14789_v17 = vld [vmem:[#allocation7 + $0xd0] sm:$0xf] }
 0x312   :  { %7156 = vmatpush.bf16.msrb.mxu3 %v14415_v12  ;;  %v14725_v12 = vld [vmem:[#allocation7 + $0x50] sm:$0xf]  ;;  %v19527_v23 = vadd.f32 %v5735_v10, %v5716_v8  ;;  %v14790_v16 = vor.u32 %v17474_v31, %v14789_v17  ;;  %v5683_v6 = vpop.f32.mrf.mxu0  ;;  %v14642_v8 = vld [vmem:[#allocation2 + $0x1628] sm:$0xf]  ;;  %v14534_v10 = vld [vmem:[#allocation2 + $0x1550] sm:$0xf] }
 0x313   :  { %7100 = vmatpush.bf16.msrb.mxu0 %v14115_v11  ;;  %v5719_v11 = vpop.f32.mrf.mxu2 }
 0x314   :  { %7119 = vmatpush.bf16.msrb.mxu1 %v14211_v62  ;;  %v14655_v62 = vor.u32 %v17440_v40, %v14654_v60  ;;  %7030 = vmatmul.bf16.gmra.mxu0 %v19449_v15  ;;  %v17452_v60 = vld [vmem:[#allocation7 + $0x24] sm:$0xf0] }
 0x315   :  { %7138 = vmatpush.bf16.msrb.mxu2 %v14307_v36  ;;  %v14798_v36 = vor.u32 %v17476_v1, %v14797_v28  ;;  %v14643_v1 = vor.u32 %v17437_v0, %v14642_v8  ;;  %v14523_v0 = vor.u32 %v17407_v32, %v14522_v24  ;;  %v14749_v24 = vld [vmem:[#allocation7 + $0x80] sm:$0xf] }
 0x316   :  { %7157 = vmatpush.bf16.msrb.mxu3 %v14403_v57  ;;  %v14546_v57 = vld [vmem:[#allocation2 + $0x1568] sm:$0xf] }
 0x317   :  { %7169 = vmatpush.bf16.msra.mxu0 %v14583_v4  ;;  %v17413_v4 = vld [vmem:[#allocation2 + $0x1570] sm:$0xf0] }
 0x318   :  { %7188 = vmatpush.bf16.msra.mxu1 %v14679_v49  ;;  %v5684_v49 = vadd.f32 %v5683_v6, %v19511_v61  ;;  %v14547_v28 = vor.u32 %v17413_v4, %v14546_v57  ;;  %v14782_v61 = vor.u32 %v17472_v19, %v14781_v29  ;;  %v17468_v6 = vld [vmem:[#allocation7 + $0xa4] sm:$0xf0]  ;;  %v14510_v29 = vld [vmem:[#allocation2 + $0x1520] sm:$0xf] }
 0x319   :  { %8973 = vmatpush.bf16.msra.mxu2 %v14742_v9  ;;  %v14726_v9 = vor.u32 %v17458_v55, %v14725_v12  ;;  %v5738_v13 = vpop.f32.mrf.mxu3  ;;  %v17410_v12 = vld [vmem:[#allocation2 + $0x1558] sm:$0xf0]  ;;  %v14630_v55 = vld [vmem:[#allocation2 + $0x1610] sm:$0xf]  ;;  %v17404_v19 = vld [vmem:[#allocation2 + $0x1528] sm:$0xf0] }
 0x31a   :  { %8986 = vmatpush.bf16.msra.mxu3 %v14806_v35  ;;  %v5702_v35 = vpop.f32.mrf.mxu1  ;;  %v19536_v46 = vadd.f32 %v5738_v13, %v5719_v11  ;;  %v14702_v11 = vor.u32 %v17452_v60, %v14701_v3  ;;  %v17401_v3 = vld [vmem:[#allocation2 + $0x1510] sm:$0xf0] }
 0x31b   :  { %7170 = vmatpush.bf16.msra.mxu0 %v14571_v21  ;;  %v5703_v38 = vadd.f32 %v5702_v35, %v5684_v49  ;;  %v5721_v40 = vpop.f32.mrf.mxu2  ;;  %v17450_v49 = vld [vmem:[#allocation7 + $0x14] sm:$0xf0] }
 0x31c   :  { %7189 = vmatpush.bf16.msra.mxu1 %v14667_v20  ;;  %v17434_v20 = vld [vmem:[#allocation2 + $0x1618] sm:$0xf0] }
 0x31d   :  { %8974 = vmatpush.bf16.msra.mxu2 %v14734_v25  ;;  %v14709_v25 = vld [vmem:[#allocation7 + $0x30] sm:$0xf]  ;;  %v19540_v54 = vadd.f32 %v5703_v38, %v19327_v7  ;;  %v14631_v17 = vor.u32 %v17434_v20, %v14630_v55  ;;  %v5752_v7 = vpop.f32.mrf.mxu0  ;;  %v14606_v38 = vld [vmem:[#allocation2 + $0x15e0] sm:$0xf]  ;;  %v17448_v55 = vld [vmem:[#allocation7 + $0x4] sm:$0xf0]  ;;  %v14511_v20 = vor.u32 %v17404_v19, %v14510_v29  ;;  %7120 = vmatmul.bf16.vlgmr.msrb.gmra.mxu1 %v19403_v37 }
 0x31e   :  { %8987 = vmatpush.bf16.msra.mxu3 %v14798_v36  ;;  %v14710_v21 = vor.u32 %v17454_v27, %v14709_v25  ;;  %v14773_v36 = vld [vmem:[#allocation7 + $0xb0] sm:$0xf]  ;;  %v5753_v4 = vadd.f32 %v5752_v7, %v19520_v39  ;;  %v17466_v39 = vld [vmem:[#allocation7 + $0x94] sm:$0xf0]  ;;  %v17464_v7 = vld [vmem:[#allocation7 + $0x84] sm:$0xf0]  ;;  %7139 = vmatmul.bf16.vlgmr.msrb.gmra.mxu2 %v19405_v41 }
 0x31f   :  { %7171 = vmatpush.bf16.msra.mxu0 %v14559_v22  ;;  %v14774_v31 = vor.u32 %v17470_v63, %v14773_v36  ;;  %v14618_v22 = vld [vmem:[#allocation2 + $0x15f8] sm:$0xf]  ;;  %v17526_v36 = vld [vmem:[#allocation7 + $0x274] sm:$0xf0]  ;;  %v14498_v63 = vld [vmem:[#allocation2 + $0x1508] sm:$0xf]  ;;  %v14750_v37 = vor.u32 %v17464_v7, %v14749_v24  ;;  %7158 = vmatmul.bf16.vlgmr.msrb.gmra.mxu3 %v19407_v14 }
 0x320   :  { %7190 = vmatpush.bf16.msra.mxu1 %v14655_v62  ;;  %v17431_v62 = vld [vmem:[#allocation2 + $0x1600] sm:$0xf0]  ;;  %v17542_v29 = vld [vmem:[#allocation7 + $0x2f4] sm:$0xf0] }
 0x321   :  { %8975 = vmatpush.bf16.msra.mxu2 %v14726_v9  ;;  %v14535_v9 = vor.u32 %v17410_v12, %v14534_v10  ;;  %v5740_v57 = vpop.f32.mrf.mxu3  ;;  %v14619_v25 = vor.u32 %v17431_v62, %v14618_v22  ;;  %v14685_v10 = vld [vmem:[#allocation7] sm:$0xf]  ;;  %v7393_v12 = vld [vmem:[%s19957_s8] sm:$0xff]  ;;  %v14869_v62 = vld [vmem:[#allocation7 + $0x170] sm:$0xf] }
 0x322   :  { %8988 = vmatpush.bf16.msra.mxu3 %v14790_v16  ;;  %v14765_v16 = vld [vmem:[#allocation7 + $0xa0] sm:$0xf]  ;;  %v5771_v8 = vpop.f32.mrf.mxu1  ;;  %v19543_v35 = vadd.f32 %v5740_v57, %v5721_v40  ;;  %7658 = vst [vmem:[#allocation1] ss:$9 sm:$0xff] %v7393_v12  ;;  %v14686_v22 = vor.u32 %v17448_v55, %v14685_v10  ;;  %v17508_v12 = vld [vmem:[#allocation7 + $0x1e4] sm:$0xf0] }
 0x323   :  { %7172 = vmatpush.bf16.msra.mxu0 %v14547_v28  ;;  %v5772_v13 = vadd.f32 %v5771_v8, %v5753_v4  ;;  %v14766_v27 = vor.u32 %v17468_v6, %v14765_v16  ;;  %v17428_v28 = vld [vmem:[#allocation2 + $0x15e8] sm:$0xf0]  ;;  %v5790_v40 = vpop.f32.mrf.mxu2  ;;  %v17494_v16 = vld [vmem:[#allocation7 + $0x174] sm:$0xf0]  ;;  %v14933_v4 = vld [vmem:[#allocation7 + $0x1f0] sm:$0xf] }
 0x324   :  { %7191 = vmatpush.bf16.msra.mxu1 %v14643_v1  ;;  %v14757_v1 = vld [vmem:[#allocation7 + $0x90] sm:$0xf]  ;;  %v14607_v60 = vor.u32 %v17428_v28, %v14606_v38  ;;  %7101 = vmatmul.bf16.vlgmr.msrb.gmra.mxu0 %v19401_v30  ;;  %v17510_v8 = vld [vmem:[#allocation7 + $0x1f4] sm:$0xf0]  ;;  %v14499_v30 = vor.u32 %v17401_v3, %v14498_v63  ;;  %v14989_v19 = vld [vmem:[#allocation7 + $0x260] sm:$0xf]  ;;  %v14870_v41 = vor.u32 %v17494_v16, %v14869_v62 }
 0x325   :  { %8976 = vmatpush.bf16.msra.mxu2 %v14718_v50  ;;  %v14693_v50 = vld [vmem:[#allocation7 + $0x10] sm:$0xf]  ;;  %v5791_v32 = vadd.f32 %v5790_v40, %v5772_v13  ;;  %v17524_v13 = vld [vmem:[#allocation7 + $0x264] sm:$0xf0]  ;;  %v14934_v38 = vor.u32 %v17510_v8, %v14933_v4  ;;  %v14861_v28 = vld [vmem:[#allocation7 + $0x160] sm:$0xf] }
 0x326   :  { %8989 = vmatpush.bf16.msra.mxu3 %v14782_v61  ;;  %v14694_v61 = vor.u32 %v17450_v49, %v14693_v50  ;;  %v15061_v50 = vld [vmem:[#allocation7 + $0x2f0] sm:$0xf]  ;;  %v14925_v10 = vld [vmem:[#allocation7 + $0x1e0] sm:$0xf]  ;;  %v17522_v63 = vld [vmem:[#allocation7 + $0x254] sm:$0xf0] }
 0x327   :  { %7173 = vmatpush.bf16.msra.mxu0 %v14535_v9  ;;  %v14758_v9 = vor.u32 %v17466_v39, %v14757_v1  ;;  %v17492_v1 = vld [vmem:[#allocation7 + $0x164] sm:$0xf0]  ;;  %v14990_v39 = vor.u32 %v17524_v13, %v14989_v19  ;;  %v15053_v55 = vld [vmem:[#allocation7 + $0x2e0] sm:$0xf]  ;;  %v14853_v40 = vld [vmem:[#allocation7 + $0x150] sm:$0xf] }
 0x328   :  { %7192 = vmatpush.bf16.msra.mxu1 %v14631_v17  ;;  %v14594_v17 = vld [vmem:[#allocation2 + $0x15c8] sm:$0xf]  ;;  %v14862_v3 = vor.u32 %v17492_v1, %v14861_v28  ;;  %v17506_v7 = vld [vmem:[#allocation7 + $0x1d4] sm:$0xf0]  ;;  %v15045_v16 = vld [vmem:[#allocation7 + $0x2d0] sm:$0xf] }
 0x329   :  { %8977 = vmatpush.bf16.msra.mxu2 %v14710_v21  ;;  %v14997_v21 = vld [vmem:[#allocation7 + $0x270] sm:$0xf]  ;;  %v17488_v19 = vld [vmem:[#allocation7 + $0x144] sm:$0xf0]  ;;  %v14909_v13 = vld [vmem:[#allocation7 + $0x1c0] sm:$0xf] }
 0x32a   :  { %8990 = vmatpush.bf16.msra.mxu3 %v14774_v31  ;;  %v17425_v31 = vld [vmem:[#allocation2 + $0x15d0] sm:$0xf0]  ;;  %v14998_v6 = vor.u32 %v17526_v36, %v14997_v21  ;;  %v5773_v57 = vpop.f32.mrf.mxu1 }
 0x32b   :  { %7174 = vmatpush.bf16.msra.mxu0 %v14523_v0  ;;  %v5809_v0 = vpop.f32.mrf.mxu3  ;;  %v14981_v36 = vld [vmem:[#allocation7 + $0x250] sm:$0xf]  ;;  %v5792_v14 = vpop.f32.mrf.mxu2 }
 0x32c   :  { %7193 = vmatpush.bf16.msra.mxu1 %v14619_v25  ;;  %v5810_v25 = vadd.f32 %v5809_v0, %v5791_v32  ;;  %v17520_v0 = vld [vmem:[#allocation7 + $0x244] sm:$0xf0] }
 0x32d   :  { %8978 = vmatpush.bf16.msra.mxu2 %v14702_v11  ;;  %v5754_v11 = vpop.f32.mrf.mxu0  ;;  %7125 = vmatmul.bf16.gmra.mxu1 %v19447_v26 }
 0x32e   :  { %8991 = vmatpush.bf16.msra.mxu3 %v14766_v27  ;;  %v5755_v49 = vadd.f32 %v5754_v11, %v19527_v23  ;;  %v14595_v27 = vor.u32 %v17425_v31, %v14594_v17  ;;  %v19554_v23 = vadd.f32 %v5810_v25, %v19347_v44  ;;  %v14982_v31 = vor.u32 %v17522_v63, %v14981_v36  ;;  %v14917_v11 = vld [vmem:[#allocation7 + $0x1d0] sm:$0xf]  ;;  %v17504_v25 = vld [vmem:[#allocation7 + $0x1c4] sm:$0xf0] }
 0x32f   :  { %7175 = vmatpush.bf16.msra.mxu0 %v14511_v20  ;;  %v17540_v20 = vld [vmem:[#allocation7 + $0x2e4] sm:$0xf0]  ;;  %v14901_v36 = vld [vmem:[#allocation7 + $0x1b0] sm:$0xf]  ;;  %7144 = vmatmul.bf16.gmra.mxu2 %v19449_v15 }
 0x330   :  { %7194 = vmatpush.bf16.msra.mxu1 %v14607_v60  ;;  %v5774_v21 = vadd.f32 %v5773_v57, %v5755_v49  ;;  %v14926_v60 = vor.u32 %v17508_v12, %v14925_v10  ;;  %v15054_v17 = vor.u32 %v17540_v20, %v15053_v55  ;;  %v14973_v49 = vld [vmem:[#allocation7 + $0x240] sm:$0xf]  ;;  %v17486_v20 = vld [vmem:[#allocation7 + $0x134] sm:$0xf0]  ;;  %7163 = vmatmul.bf16.gmra.mxu3 %v19451_v56 }
 0x331   :  { %8979 = vmatpush.bf16.msra.mxu2 %v14694_v61  ;;  %v15062_v61 = vor.u32 %v17542_v29, %v15061_v50  ;;  %v14918_v50 = vor.u32 %v17506_v7, %v14917_v11  ;;  %v14845_v29 = vld [vmem:[#allocation7 + $0x140] sm:$0xf]  ;;  %v17500_v7 = vld [vmem:[#allocation7 + $0x1a4] sm:$0xf0] }
 0x332   :  { %8992 = vmatpush.bf16.msra.mxu3 %v14758_v9  ;;  %v5793_v9 = vadd.f32 %v5792_v14, %v5774_v21  ;;  %v5776_v32 = vpop.f32.mrf.mxu1  ;;  %v14846_v28 = vor.u32 %v17488_v19, %v14845_v29  ;;  %v14837_v21 = vld [vmem:[#allocation7 + $0x130] sm:$0xf] }
 0x333   :  { %7176 = vmatpush.bf16.msra.mxu0 %v14499_v30  ;;  %v5811_v62 = vpop.f32.mrf.mxu3  ;;  %v14885_v29 = vld [vmem:[#allocation7 + $0x190] sm:$0xf] }
 0x334   :  { %7195 = vmatpush.bf16.msra.mxu1 %v14595_v27  ;;  %v5812_v4 = vadd.f32 %v5811_v62, %v5793_v9  ;;  %v15037_v27 = vld [vmem:[#allocation7 + $0x2c0] sm:$0xf]  ;;  %7106 = vmatmul.bf16.gmra.mxu0 %v19445_v51  ;;  %v17534_v9 = vld [vmem:[#allocation7 + $0x2b4] sm:$0xf0]  ;;  %v14838_v51 = vor.u32 %v17486_v20, %v14837_v21 }
 0x335   :  { %8980 = vmatpush.bf16.msra.mxu2 %v14686_v22  ;;  %v5757_v44 = vpop.f32.mrf.mxu0  ;;  %v17490_v22 = vld [vmem:[#allocation7 + $0x154] sm:$0xf0]  ;;  %v15021_v62 = vld [vmem:[#allocation7 + $0x2a0] sm:$0xf] }
 0x336   :  { %8993 = vmatpush.bf16.msra.mxu3 %v14750_v37  ;;  %v5758_v24 = vadd.f32 %v5757_v44, %v19536_v46  ;;  %v14854_v8 = vor.u32 %v17490_v22, %v14853_v40  ;;  %v19558_v30 = vadd.f32 %v5812_v4, %v19356_v2  ;;  %v17536_v37 = vld [vmem:[#allocation7 + $0x2c4] sm:$0xf0]  ;;  %v14910_v2 = vor.u32 %v17504_v25, %v14909_v13  ;;  %v14893_v22 = vld [vmem:[#allocation7 + $0x1a0] sm:$0xf]  ;;  %v17498_v25 = vld [vmem:[#allocation7 + $0x194] sm:$0xf0] }
 0x337   :  { %8999 = vmatpush.bf16.msrb.mxu0 %v14870_v41  ;;  %v14974_v41 = vor.u32 %v17520_v0, %v14973_v49  ;;  %v15038_v12 = vor.u32 %v17536_v37, %v15037_v27  ;;  %v14821_v0 = vld [vmem:[#allocation7 + $0x110] sm:$0xf]  ;;  %v17530_v37 = vld [vmem:[#allocation7 + $0x294] sm:$0xf0]  ;;  %v14886_v21 = vor.u32 %v17498_v25, %v14885_v29 }
 0x338   :  { %9012 = vmatpush.bf16.msrb.mxu1 %v14934_v38  ;;  %v5777_v57 = vadd.f32 %v5776_v32, %v5758_v24  ;;  %v5795_v38 = vpop.f32.mrf.mxu2  ;;  %v14829_v24 = vld [vmem:[#allocation7 + $0x120] sm:$0xf]  ;;  %v17484_v32 = vld [vmem:[#allocation7 + $0x124] sm:$0xf0]  ;;  %v15013_v27 = vld [vmem:[#allocation7 + $0x290] sm:$0xf] }
 0x339   :  { %9025 = vmatpush.bf16.msrb.mxu2 %v14998_v6  ;;  %v17538_v6 = vld [vmem:[#allocation7 + $0x2d4] sm:$0xf0]  ;;  %v15014_v20 = vor.u32 %v17530_v37, %v15013_v27  ;;  %v19586_v27 = vld [vmem:[#allocation1 + $0x12] sm:$0xff]  ;;  %v19588_v37 = vld [vmem:[#allocation1 + $0x1b] sm:$0xff] }
 0x33a   :  { %9038 = vmatpush.bf16.msrb.mxu3 %v15062_v61  ;;  %v15046_v46 = vor.u32 %v17538_v6, %v15045_v16  ;;  %v5796_v1 = vadd.f32 %v5795_v38, %v5777_v57  ;;  %v14965_v61 = vld [vmem:[#allocation7 + $0x230] sm:$0xf]  ;;  %v5778_v55 = vpop.f32.mrf.mxu1  ;;  %v17532_v16 = vld [vmem:[#allocation7 + $0x2a4] sm:$0xf0]  ;;  %v14830_v57 = vor.u32 %v17484_v32, %v14829_v24  ;;  %v17606_v24 = vld [vmem:[#allocation7 + $0x4f4] sm:$0xf0] }
 0x33b   :  { %9000 = vmatpush.bf16.msrb.mxu0 %v14862_v3  ;;  %v5814_v14 = vpop.f32.mrf.mxu3  ;;  %v17502_v3 = vld [vmem:[#allocation7 + $0x1b4] sm:$0xf0]  ;;  %v15022_v49 = vor.u32 %v17532_v16, %v15021_v62  ;;  %v17588_v62 = vld [vmem:[#allocation7 + $0x464] sm:$0xf0]  ;;  %v15117_v16 = vld [vmem:[#allocation7 + $0x360] sm:$0xf] }
 0x33c   :  { %9013 = vmatpush.bf16.msrb.mxu1 %v14926_v60  ;;  %v15029_v60 = vld [vmem:[#allocation7 + $0x2b0] sm:$0xf]  ;;  %v5815_v40 = vadd.f32 %v5814_v14, %v5796_v1  ;;  %v14902_v15 = vor.u32 %v17502_v3, %v14901_v36  ;;  %v14941_v1 = vld [vmem:[#allocation7 + $0x200] sm:$0xf]  ;;  %v17496_v3 = vld [vmem:[#allocation7 + $0x184] sm:$0xf0] }
 0x33d   :  { %9026 = vmatpush.bf16.msrb.mxu2 %v14990_v39  ;;  %v17518_v39 = vld [vmem:[#allocation7 + $0x234] sm:$0xf0]  ;;  %v5759_v10 = vpop.f32.mrf.mxu0  ;;  %v14813_v36 = vld [vmem:[#allocation7 + $0x100] sm:$0xf]  ;;  %7196 = vmatmul.bf16.vlgmr.msra.gmra.mxu1 %v19478_v52 }
 0x33e   :  { %9039 = vmatpush.bf16.msrb.mxu3 %v15054_v17  ;;  %v5760_v63 = vadd.f32 %v5759_v10, %v19543_v35  ;;  %v14966_v44 = vor.u32 %v17518_v39, %v14965_v61  ;;  %v14957_v17 = vld [vmem:[#allocation7 + $0x220] sm:$0xf]  ;;  %v19566_v26 = vadd.f32 %v5815_v40, %v19363_v47  ;;  %v15030_v35 = vor.u32 %v17534_v9, %v15029_v60  ;;  %v17512_v10 = vld [vmem:[#allocation7 + $0x204] sm:$0xf0]  ;;  %v19571_v40 = vld [vmem:[#allocation1] sm:$0xff] }
 0x33f   :  { %9001 = vmatpush.bf16.msrb.mxu0 %v14854_v8  ;;  %v14949_v8 = vld [vmem:[#allocation7 + $0x210] sm:$0xf]  ;;  %v14894_v47 = vor.u32 %v17500_v7, %v14893_v22  ;;  %v14877_v14 = vld [vmem:[#allocation7 + $0x180] sm:$0xf]  ;;  %v17528_v9 = vld [vmem:[#allocation7 + $0x284] sm:$0xf0]  ;;  %8981 = vmatmul.bf16.vlgmr.msra.gmra.mxu2 %v19571_v40 }
 0x340   :  { %9014 = vmatpush.bf16.msrb.mxu1 %v14918_v50  ;;  %v5779_v11 = vadd.f32 %v5778_v55, %v5760_v63  ;;  %v5797_v6 = vpop.f32.mrf.mxu2  ;;  %v17514_v50 = vld [vmem:[#allocation7 + $0x214] sm:$0xf0]  ;;  %v17480_v63 = vld [vmem:[#allocation7 + $0x104] sm:$0xf0]  ;;  %v15005_v60 = vld [vmem:[#allocation7 + $0x280] sm:$0xf]  ;;  %v14878_v22 = vor.u32 %v17496_v3, %v14877_v14 }
 0x341   :  { %9027 = vmatpush.bf16.msrb.mxu2 %v14982_v31  ;;  %v17516_v31 = vld [vmem:[#allocation7 + $0x224] sm:$0xf0]  ;;  %v15245_v7 = vld [vmem:[#allocation7 + $0x460] sm:$0xf]  ;;  %v17570_v14 = vld [vmem:[#allocation7 + $0x3d4] sm:$0xf0] }
 0x342   :  { %9040 = vmatpush.bf16.msrb.mxu3 %v15046_v46  ;;  %v14958_v56 = vor.u32 %v17516_v31, %v14957_v17  ;;  %v5798_v4 = vadd.f32 %v5797_v6, %v5779_v11  ;;  %v17482_v46 = vld [vmem:[#allocation7 + $0x114] sm:$0xf0]  ;;  %v15189_v31 = vld [vmem:[#allocation7 + $0x3f0] sm:$0xf] }
 0x343   :  { %9002 = vmatpush.bf16.msrb.mxu0 %v14846_v28  ;;  %v5816_v19 = vpop.f32.mrf.mxu3  ;;  %v6893_v28 = vpop.f32.mrf.mxu1  ;;  %v14822_v39 = vor.u32 %v17482_v46, %v14821_v0  ;;  %v17558_v17 = vld [vmem:[#allocation7 + $0x374] sm:$0xf0]  ;;  %v17572_v0 = vld [vmem:[#allocation7 + $0x3e4] sm:$0xf0] }
 0x344   :  { %9015 = vmatpush.bf16.msrb.mxu1 %v14910_v2  ;;  %v5817_v38 = vadd.f32 %v5816_v19, %v5798_v4  ;;  %v15253_v2 = vld [vmem:[#allocation7 + $0x470] sm:$0xf]  ;;  %7177 = vmatmul.bf16.vlgmr.msra.gmra.mxu0 %v19476_v48  ;;  %v15309_v19 = vld [vmem:[#allocation7 + $0x4e0] sm:$0xf]  ;;  %v19581_v48 = vld [vmem:[#allocation1 + $0x24] sm:$0xff] }
 0x345   :  { %9028 = vmatpush.bf16.msrb.mxu2 %v14974_v41  ;;  %v6874_v13 = vpop.f32.mrf.mxu0  ;;  %v14950_v41 = vor.u32 %v17514_v50, %v14949_v8 }
 0x346   :  { %9041 = vmatpush.bf16.msrb.mxu3 %v15038_v12  ;;  %v6894_v61 = vadd.f32 %v6893_v28, %v6874_v13  ;;  %v17590_v12 = vld [vmem:[#allocation7 + $0x474] sm:$0xf0]  ;;  %v19569_v55 = vadd.f32 %v5817_v38, %v19372_v58  ;;  %v15317_v58 = vld [vmem:[#allocation7 + $0x4f0] sm:$0xf]  ;;  %v17604_v13 = vld [vmem:[#allocation7 + $0x4e4] sm:$0xf0]  ;;  %v15246_v38 = vor.u32 %v17588_v62, %v15245_v7 }
 0x347   :  { %9003 = vmatpush.bf16.msrb.mxu0 %v14838_v51  ;;  %v15125_v51 = vld [vmem:[#allocation7 + $0x370] sm:$0xf]  ;;  %v15254_v32 = vor.u32 %v17590_v12, %v15253_v2  ;;  %v15318_v52 = vor.u32 %v17606_v24, %v15317_v58  ;;  %v7394_v28 = vld [vmem:[%s19957_s8 + $0x8] sm:$0xff]  ;;  %v17586_v2 = vld [vmem:[#allocation7 + $0x454] sm:$0xf0] }
 0x348   :  { %9016 = vmatpush.bf16.msrb.mxu1 %v14902_v15  ;;  %v14814_v15 = vor.u32 %v17480_v63, %v14813_v36  ;;  %v6912_v11 = vpop.f32.mrf.mxu2  ;;  %v15126_v4 = vor.u32 %v17558_v17, %v15125_v51  ;;  %v15310_v36 = vor.u32 %v17604_v13, %v15309_v19  ;;  %v15173_v63 = vld [vmem:[#allocation7 + $0x3d0] sm:$0xf]  ;;  %v15101_v58 = vld [vmem:[#allocation7 + $0x340] sm:$0xf]  ;;  %v17552_v24 = vld [vmem:[#allocation7 + $0x344] sm:$0xf0] }
 0x349   :  { %9029 = vmatpush.bf16.msrb.mxu2 %v14966_v44  ;;  %v14942_v44 = vor.u32 %v17512_v10, %v14941_v1  ;;  %v6913_v6 = vadd.f32 %v6912_v11, %v6894_v61  ;;  %v19595_v1 = vld [vmem:[#allocation1 + $0x36] sm:$0xff]  ;;  %v19597_v61 = vld [vmem:[#allocation1 + $0x3f] sm:$0xff]  ;;  %v15165_v11 = vld [vmem:[#allocation7 + $0x3c0] sm:$0xf] }
 0x34a   :  { %9042 = vmatpush.bf16.msrb.mxu3 %v15030_v35  ;;  %v17574_v35 = vld [vmem:[#allocation7 + $0x3f4] sm:$0xf0]  ;;  %v15237_v10 = vld [vmem:[#allocation7 + $0x450] sm:$0xf]  ;;  %v17568_v7 = vld [vmem:[#allocation7 + $0x3c4] sm:$0xf0] }
 0x34b   :  { %9004 = vmatpush.bf16.msrb.mxu0 %v14830_v57  ;;  %v19575_v57 = vld [vmem:[#allocation1 + $0x9] sm:$0xff]  ;;  %v6931_v50 = vpop.f32.mrf.mxu3  ;;  %v15190_v46 = vor.u32 %v17574_v35, %v15189_v31  ;;  %v19579_v29 = vpop.f32.mrf.mxu1  ;;  %v15238_v3 = vor.u32 %v17586_v2, %v15237_v10  ;;  %v15174_v35 = vor.u32 %v17570_v14, %v15173_v63  ;;  %v17550_v19 = vld [vmem:[#allocation7 + $0x334] sm:$0xf0]  ;;  %v17548_v14 = vld [vmem:[#allocation7 + $0x324] sm:$0xf0] }
 0x34c   :  { %9017 = vmatpush.bf16.msrb.mxu1 %v14894_v47  ;;  %v17556_v47 = vld [vmem:[#allocation7 + $0x364] sm:$0xf0]  ;;  %v19584_v25 = vadd.f32 %v6931_v50, %v6913_v6  ;;  %8994 = vmatmul.bf16.vlgmr.msra.gmra.mxu3 %v19575_v57  ;;  %v15229_v31 = vld [vmem:[#allocation7 + $0x440] sm:$0xf]  ;;  %v15102_v50 = vor.u32 %v17552_v24, %v15101_v58  ;;  %v17598_v10 = vld [vmem:[#allocation7 + $0x4b4] sm:$0xf0] }
 0x34d   :  { %9030 = vmatpush.bf16.msrb.mxu2 %v14958_v56  ;;  %v15006_v56 = vor.u32 %v17528_v9, %v15005_v60  ;;  %v19577_v8 = vpop.f32.mrf.mxu0  ;;  %v15301_v9 = vld [vmem:[#allocation7 + $0x4d0] sm:$0xf]  ;;  %v17600_v6 = vld [vmem:[#allocation7 + $0x4c4] sm:$0xf0]  ;;  %7201 = vmatmul.bf16.gmra.mxu1 %v19502_v53  ;;  %v15085_v63 = vld [vmem:[#allocation7 + $0x320] sm:$0xf] }
 0x34e   :  { %9043 = vmatpush.bf16.msrb.mxu3 %v15022_v49  ;;  %v15181_v49 = vld [vmem:[#allocation7 + $0x3e0] sm:$0xf] }
 0x34f   :  { %9005 = vmatpush.bf16.msrb.mxu0 %v14822_v39  ;;  %v15118_v39 = vor.u32 %v17556_v47, %v15117_v16  ;;  %v15182_v12 = vor.u32 %v17572_v0, %v15181_v49  ;;  %v15221_v47 = vld [vmem:[#allocation7 + $0x430] sm:$0xf]  ;;  %v17582_v49 = vld [vmem:[#allocation7 + $0x434] sm:$0xf0]  ;;  %v15166_v0 = vor.u32 %v17568_v7, %v15165_v11  ;;  %v15277_v58 = vld [vmem:[#allocation7 + $0x4a0] sm:$0xf] }
 0x350   :  { %9018 = vmatpush.bf16.msrb.mxu1 %v14886_v21  ;;  %v15109_v21 = vld [vmem:[#allocation7 + $0x350] sm:$0xf]  ;;  %v19600_v60 = vpop.f32.mrf.mxu2  ;;  %v17578_v11 = vld [vmem:[#allocation7 + $0x414] sm:$0xf0] }
 0x351   :  { %9031 = vmatpush.bf16.msrb.mxu2 %v14950_v41  ;;  %v19590_v41 = vld [vmem:[#allocation1 + $0x2d] sm:$0xff] }
 0x352   :  { %9044 = vmatpush.bf16.msrb.mxu3 %v15014_v20  ;;  %7668 = vst [vmem:[#allocation1] ss:$9 sm:$0xff] %v7394_v28  ;;  %v17554_v20 = vld [vmem:[#allocation7 + $0x354] sm:$0xf0]  ;;  %v15222_v28 = vor.u32 %v17582_v49, %v15221_v47  ;;  %v15269_v47 = vld [vmem:[#allocation7 + $0x490] sm:$0xf] }
 0x353   :  { %9006 = vmatpush.bf16.msrb.mxu0 %v14814_v15  ;;  %v15110_v51 = vor.u32 %v17554_v20, %v15109_v21  ;;  %v19602_v17 = vpop.f32.mrf.mxu3  ;;  %v17584_v15 = vld [vmem:[#allocation7 + $0x444] sm:$0xf0]  ;;  %v6898_v62 = vpop.f32.mrf.mxu1  ;;  %v17594_v49 = vld [vmem:[#allocation7 + $0x494] sm:$0xf0] }
 0x354   :  { %9019 = vmatpush.bf16.msrb.mxu1 %v14878_v22  ;;  %v15230_v16 = vor.u32 %v17584_v15, %v15229_v31  ;;  %v17580_v21 = vld [vmem:[#allocation7 + $0x424] sm:$0xf0]  ;;  %7182 = vmatmul.bf16.gmra.mxu0 %v19500_v5  ;;  %v15149_v31 = vld [vmem:[#allocation7 + $0x3a0] sm:$0xf] }
 0x355   :  { %9032 = vmatpush.bf16.msrb.mxu2 %v14942_v44  ;;  %v17602_v44 = vld [vmem:[#allocation7 + $0x4d4] sm:$0xf0]  ;;  %v6879_v22 = vpop.f32.mrf.mxu0  ;;  %v17564_v15 = vld [vmem:[#allocation7 + $0x3a4] sm:$0xf0] }
 0x356   :  { %9045 = vmatpush.bf16.msrb.mxu3 %v15006_v56  ;;  %v15293_v56 = vld [vmem:[#allocation7 + $0x4c0] sm:$0xf]  ;;  %v17596_v5 = vld [vmem:[#allocation7 + $0x4a4] sm:$0xf0]  ;;  %v15150_v7 = vor.u32 %v17564_v15, %v15149_v31  ;;  %v15381_v15 = vld [vmem:[#allocation7 + $0x570] sm:$0xf] }
 0x357   :  { %9051 = vmatpush.bf16.msra.mxu0 %v15126_v4  ;;  %v6899_v4 = vadd.f32 %v6898_v62, %v6879_v22  ;;  %v15294_v13 = vor.u32 %v17600_v6, %v15293_v56  ;;  %v15205_v22 = vld [vmem:[#allocation7 + $0x410] sm:$0xf]  ;;  %v15278_v56 = vor.u32 %v17596_v5, %v15277_v58  ;;  %v17592_v31 = vld [vmem:[#allocation7 + $0x484] sm:$0xf0]  ;;  %v7251_v58 = vlaneseq }
 0x358   :  { %9064 = vmatpush.bf16.msra.mxu1 %v15190_v46  ;;  %v15093_v46 = vld [vmem:[#allocation7 + $0x330] sm:$0xf]  ;;  %v6917_v20 = vpop.f32.mrf.mxu2  ;;  %9033 = vmatmul.bf16.vlgmr.msrb.gmra.mxu2 %v19581_v48 }
 0x359   :  { %9077 = vmatpush.bf16.msra.mxu2 %v15254_v32  ;;  %v15302_v32 = vor.u32 %v17602_v44, %v15301_v9  ;;  %v15094_v2 = vor.u32 %v17550_v19, %v15093_v46  ;;  %v15077_v62 = vld [vmem:[#allocation7 + $0x310] sm:$0xf]  ;;  %v15197_v46 = vld [vmem:[#allocation7 + $0x400] sm:$0xf]  ;;  %v17576_v19 = vld [vmem:[#allocation7 + $0x404] sm:$0xf0] }
 0x35a   :  { %9090 = vmatpush.bf16.msra.mxu3 %v15318_v52  ;;  %v15157_v52 = vld [vmem:[#allocation7 + $0x3b0] sm:$0xf] }
 0x35b   :  { %9052 = vmatpush.bf16.msra.mxu0 %v15118_v39  ;;  %v15285_v39 = vld [vmem:[#allocation7 + $0x4b0] sm:$0xf]  ;;  %v19609_v53 = vpop.f32.mrf.mxu1 }
 0x35c   :  { %9065 = vmatpush.bf16.msra.mxu1 %v15182_v12  ;;  %v15213_v12 = vld [vmem:[#allocation7 + $0x420] sm:$0xf]  ;;  %v15286_v9 = vor.u32 %v17598_v10, %v15285_v39  ;;  %9046 = vmatmul.bf16.vlgmr.msrb.gmra.mxu3 %v19590_v41  ;;  %v15141_v6 = vld [vmem:[#allocation7 + $0x390] sm:$0xf]  ;;  %v17544_v10 = vld [vmem:[#allocation7 + $0x304] sm:$0xf0] }
 0x35d   :  { %9078 = vmatpush.bf16.msra.mxu2 %v15246_v38  ;;  %v17566_v38 = vld [vmem:[#allocation7 + $0x3b4] sm:$0xf0]  ;;  %v19606_v44 = vpop.f32.mrf.mxu0  ;;  %v15069_v39 = vld [vmem:[#allocation7 + $0x300] sm:$0xf]  ;;  %9020 = vmatmul.bf16.vlgmr.msrb.gmra.mxu1 %v19588_v37 }
 0x35e   :  { %9091 = vmatpush.bf16.msra.mxu3 %v15310_v36  ;;  %v15158_v36 = vor.u32 %v17566_v38, %v15157_v52 }
 0x35f   :  { %9053 = vmatpush.bf16.msra.mxu0 %v15110_v51  ;;  %v6936_v51 = vpop.f32.mrf.mxu3 }
 0x360   :  { %9066 = vmatpush.bf16.msra.mxu1 %v15174_v35  ;;  %v15214_v35 = vor.u32 %v17580_v21, %v15213_v12  ;;  %v19614_v52 = vpop.f32.mrf.mxu2 }
 0x361   :  { %9079 = vmatpush.bf16.msra.mxu2 %v15238_v3  ;;  %v6918_v3 = vadd.f32 %v6917_v20, %v6899_v4  ;;  %v17562_v4 = vld [vmem:[#allocation7 + $0x394] sm:$0xf0]  ;;  %v15133_v20 = vld [vmem:[#allocation7 + $0x380] sm:$0xf] }
 0x362   :  { %9092 = vmatpush.bf16.msra.mxu3 %v15302_v32  ;;  %v15086_v32 = vor.u32 %v17548_v14, %v15085_v63  ;;  %v15142_v38 = vor.u32 %v17562_v4, %v15141_v6  ;;  %v15261_v63 = vld [vmem:[#allocation7 + $0x480] sm:$0xf]  ;;  %v6896_v14 = vadd.f32 %v19579_v29, %v19577_v8  ;;  %v17670_v29 = vld [vmem:[#allocation7 + $0x6f4] sm:$0xf0]  ;;  %v19622_v6 = vld [vmem:[#allocation5] sm:$0x7] }
 0x363   :  { %9054 = vmatpush.bf16.msra.mxu0 %v15102_v50  ;;  %v19611_v24 = vadd.f32 %v6936_v51, %v6918_v3  ;;  %v15206_v50 = vor.u32 %v17578_v11, %v15205_v22  ;;  %v15198_v51 = vor.u32 %v17576_v19, %v15197_v46  ;;  %v15445_v22 = vld [vmem:[#allocation7 + $0x5f0] sm:$0xf]  ;;  %v17638_v11 = vld [vmem:[#allocation7 + $0x5f4] sm:$0xf0]  ;;  %v15262_v4 = vor.u32 %v17592_v31, %v15261_v63  ;;  %v17620_v46 = vld [vmem:[#allocation7 + $0x564] sm:$0xf0] }
 0x364   :  { %9067 = vmatpush.bf16.msra.mxu1 %v15166_v0  ;;  %v7252_v19 = vshrl.u32 %v7251_v58, 7  ;;  %9007 = vmatmul.bf16.vlgmr.msrb.gmra.mxu0 %v19586_v27 }
 0x365   :  { %9080 = vmatpush.bf16.msra.mxu2 %v15230_v16  ;;  %v17546_v16 = vld [vmem:[#allocation7 + $0x314] sm:$0xf0]  ;;  %v6950_v21 = vpop.f32.mrf.mxu0 }
 0x366   :  { %9093 = vmatpush.bf16.msra.mxu3 %v15294_v13  ;;  %v15078_v0 = vor.u32 %v17546_v16, %v15077_v62  ;;  %v15509_v13 = vld [vmem:[#allocation7 + $0x670] sm:$0xf]  ;;  %v6951_v3 = vadd.f32 %v6950_v21, %v19584_v25  ;;  %v6915_v62 = vadd.f32 %v19600_v60, %v6896_v14  ;;  %v17652_v25 = vld [vmem:[#allocation7 + $0x664] sm:$0xf0] }
 0x367   :  { %9055 = vmatpush.bf16.msra.mxu0 %v15094_v2  ;;  %v15270_v2 = vor.u32 %v17594_v49, %v15269_v47  ;;  %v19616_v12 = vpop.f32.mrf.mxu3  ;;  %v15446_v49 = vor.u32 %v17638_v11, %v15445_v22  ;;  %v15493_v21 = vld [vmem:[#allocation7 + $0x650] sm:$0xf] }
 0x368   :  { %9068 = vmatpush.bf16.msra.mxu1 %v15158_v36  ;;  %v17560_v36 = vld [vmem:[#allocation7 + $0x384] sm:$0xf0] }
 0x369   :  { %9081 = vmatpush.bf16.msra.mxu2 %v15222_v28  ;;  %v17654_v28 = vld [vmem:[#allocation7 + $0x674] sm:$0xf0]  ;;  %v15134_v8 = vor.u32 %v17560_v36, %v15133_v20  ;;  %v19630_v36 = vperm.slane %v19622_v6, 0 }
 0x36a   :  { %9094 = vmatpush.bf16.msra.mxu3 %v15286_v9  ;;  %v6969_v9 = vpop.f32.mrf.mxu1  ;;  %v15510_v5 = vor.u32 %v17654_v28, %v15509_v13  ;;  %v17636_v28 = vld [vmem:[#allocation7 + $0x5e4] sm:$0xf0]  ;;  %v17650_v20 = vld [vmem:[#allocation7 + $0x654] sm:$0xf0] }
 0x36b   :  { %9056 = vmatpush.bf16.msra.mxu0 %v15086_v32  ;;  %v15070_v32 = vor.u32 %v17544_v10, %v15069_v39  ;;  %v6970_v16 = vadd.f32 %v6969_v9, %v6951_v3  ;;  %v15565_v39 = vld [vmem:[#allocation7 + $0x6e0] sm:$0xf]  ;;  %v6934_v10 = vadd.f32 %v19602_v17, %v6915_v62  ;;  %v7669_v9 = vld [vmem:[#allocation1] sm:$0xff]  ;;  %v15494_v11 = vor.u32 %v17650_v20, %v15493_v21 }
 0x36c   :  { %9069 = vmatpush.bf16.msra.mxu1 %v15150_v7  ;;  %v15573_v7 = vld [vmem:[#allocation7 + $0x6f0] sm:$0xf]  ;;  %v17634_v62 = vld [vmem:[#allocation7 + $0x5d4] sm:$0xf0]  ;;  %v18469_v20 = vmov 0.0  }
 0x36d   :  { %9082 = vmatpush.bf16.msra.mxu2 %v15214_v35  ;;  %v17622_v35 = vld [vmem:[#allocation7 + $0x574] sm:$0xf0]  ;;  %v15574_v60 = vor.u32 %v17670_v29, %v15573_v7  ;;  %v6952_v14 = vpop.f32.mrf.mxu0  ;;  %v15429_v7 = vld [vmem:[#allocation7 + $0x5d0] sm:$0xf] }
 0x36e   :  { %9095 = vmatpush.bf16.msra.mxu3 %v15278_v56  ;;  %v15501_v56 = vld [vmem:[#allocation7 + $0x660] sm:$0xf]  ;;  %v15382_v47 = vor.u32 %v17622_v35, %v15381_v15  ;;  %v6953_v31 = vadd.f32 %v6952_v14, %v6934_v10  ;;  %v19633_v35 = vadd.s32 8, %v7252_v19  ;;  %v17666_v29 = vld [vmem:[#allocation7 + $0x6d4] sm:$0xf0] }
 0x36f   :  { %9057 = vmatpush.bf16.msra.mxu0 %v15078_v0  ;;  %v15373_v0 = vld [vmem:[#allocation7 + $0x560] sm:$0xf]  ;;  %v15502_v13 = vor.u32 %v17652_v25, %v15501_v56  ;;  %v7007_v3 = vpop.f32.mrf.mxu3  ;;  %v17648_v25 = vld [vmem:[#allocation7 + $0x644] sm:$0xf0]  ;;  %v17646_v21 = vld [vmem:[#allocation7 + $0x634] sm:$0xf0] }
 0x370   :  { %9070 = vmatpush.bf16.msra.mxu1 %v15142_v38  ;;  %v15437_v38 = vld [vmem:[#allocation7 + $0x5e0] sm:$0xf]  ;;  %v15374_v63 = vor.u32 %v17620_v46, %v15373_v0  ;;  %vm7255_vm0 = vcmp.le.s32.totalorder %v19633_v35, 13  ;;  %v17616_v46 = vld [vmem:[#allocation7 + $0x544] sm:$0xf0]  ;;  %vm7261_vm1 = vcmp.le.s32.totalorder %v19633_v35, 12 }
 0x371   :  { %9083 = vmatpush.bf16.msra.mxu2 %v15206_v50  ;;  %v19625_v50 = vadd.f32 %v6970_v16, %v19415_v45  ;;  %v6988_v45 = vpop.f32.mrf.mxu2  ;;  %v15438_v17 = vor.u32 %v17636_v28, %v15437_v38  ;;  %v15557_v16 = vld [vmem:[#allocation7 + $0x6d0] sm:$0xf]  ;;  %v15485_v56 = vld [vmem:[#allocation7 + $0x640] sm:$0xf]  ;;  %v17632_v38 = vld [vmem:[#allocation7 + $0x5c4] sm:$0xf0] }
 0x372   :  { %9096 = vmatpush.bf16.msra.mxu3 %v15270_v2  ;;  %v17668_v2 = vld [vmem:[#allocation7 + $0x6e4] sm:$0xf0]  ;;  %v6971_v15 = vpop.f32.mrf.mxu1  ;;  %v19635_v58 = vadd.f32 %v7007_v3, %v6988_v45  ;;  %v15357_v0 = vld [vmem:[#allocation7 + $0x540] sm:$0xf]  ;;  %v15558_v19 = vor.u32 %v17666_v29, %v15557_v16  ;;  %v15541_v16 = vld [vmem:[#allocation7 + $0x6b0] sm:$0xf] }
 0x373   :  { %9058 = vmatpush.bf16.msra.mxu0 %v15070_v32  ;;  %v17618_v32 = vld [vmem:[#allocation7 + $0x554] sm:$0xf0]  ;;  %v15566_v22 = vor.u32 %v17668_v2, %v15565_v39  ;;  %v15549_v28 = vld [vmem:[#allocation7 + $0x6c0] sm:$0xf]  ;;  %v7227_v39 = vadd.f32 %v19630_v36, %v19625_v50  ;;  %v15477_v2 = vld [vmem:[#allocation7 + $0x630] sm:$0xf]  ;;  %v15358_v14 = vor.u32 %v17616_v46, %v15357_v0  ;;  %v6901_v50 = vadd.f32 %v19609_v53, %v19606_v44 }
 0x374   :  { %9071 = vmatpush.bf16.msra.mxu1 %v15134_v8  ;;  %v6972_v8 = vadd.f32 %v6971_v15, %v6953_v31  ;;  %vm7267_vm3 = vcmp.le.s32.totalorder %v19633_v35, 11 }
 0x375   :  { %9084 = vmatpush.bf16.msra.mxu2 %v15198_v51  ;;  %v7670_v51 = vld [vmem:[#allocation1 + $0x9] sm:$0xff]  ;;  %v6955_v3 = vpop.f32.mrf.mxu0  ;;  %v6920_v29 = vadd.f32 %v19614_v52, %v6901_v50 }
 0x376   :  { %9097 = vmatpush.bf16.msra.mxu3 %v15262_v4  ;;  %9059 = vmatmul.bf16.vlgmr.msra.gmra.mxu0 %v19595_v1 }
 0x377   :  { %9103 = vmatpush.bf16.msrb.mxu0 %v15382_v47  ;;  %v7210_v47 = vadd.f32 %v6972_v8, %v19443_v43  ;;  %v17664_v43 = vld [vmem:[#allocation7 + $0x6c4] sm:$0xf0]  ;;  %v17662_v8 = vld [vmem:[#allocation7 + $0x6b4] sm:$0xf0]  ;;  %9072 = vmatmul.bf16.vlgmr.msra.gmra.mxu1 %v19597_v61 }
 0x378   :  { %9116 = vmatpush.bf16.msrb.mxu1 %v15446_v49  ;;  %9085 = vmatmul.bf16.vlgmr.msra.gmra.mxu2 %v7669_v9  ;;  %v15430_v49 = vor.u32 %v17634_v62, %v15429_v7  ;;  %v19649_v9 = vpop.f32.mrf.mxu3  ;;  %v15550_v7 = vor.u32 %v17664_v43, %v15549_v28  ;;  %v15478_v62 = vor.u32 %v17646_v21, %v15477_v2 }
 0x379   :  { %9129 = vmatpush.bf16.msrb.mxu2 %v15510_v5  ;;  %v15365_v5 = vld [vmem:[#allocation7 + $0x550] sm:$0xf]  ;;  %9098 = vmatmul.bf16.vlgmr.msra.gmra.mxu3 %v7670_v51  ;;  %v7230_v10 = vadd.f32 %v19630_v36, %v7210_v47  ;;  %v19642_v45 = vpop.f32.mrf.mxu2  ;;  %v15542_v52 = vor.u32 %v17662_v8, %v15541_v16  ;;  %v6939_v43 = vadd.f32 %v19616_v12, %v6920_v29  ;;  %v17658_v16 = vld [vmem:[#allocation7 + $0x694] sm:$0xf0] }
 0x37a   :  { %9142 = vmatpush.bf16.msrb.mxu3 %v15574_v60  ;;  %v15366_v4 = vor.u32 %v17618_v32, %v15365_v5  ;;  %v15486_v60 = vor.u32 %v17648_v25, %v15485_v56  ;;  %v15349_v51 = vld [vmem:[#allocation7 + $0x530] sm:$0xf]  ;;  %v6956_v5 = vadd.f32 %v6955_v3, %v19611_v24  ;;  %v6974_v32 = vpop.f32.mrf.mxu1  ;;  %v7239_v56 = vmax.f32 %v7227_v39, 0.0  ;;  %v15469_v25 = vld [vmem:[#allocation7 + $0x620] sm:$0xf] }
 0x37b   :  { %9104 = vmatpush.bf16.msrb.mxu0 %v15374_v63  ;;  %v19647_v63 = vsel %vm7255_vm0, 1.0, %v18469_v20  ;;  %v7242_v31 = vmax.f32 %v7230_v10, 0.0  ;;  %v15341_v24 = vld [vmem:[#allocation7 + $0x520] sm:$0xf]  ;;  %v17660_v10 = vld [vmem:[#allocation7 + $0x6a4] sm:$0xf0] }
 0x37c   :  { %9117 = vmatpush.bf16.msrb.mxu1 %v15438_v17  ;;  %v17614_v17 = vld [vmem:[#allocation7 + $0x534] sm:$0xf0]  ;;  %v6975_v53 = vadd.f32 %v6974_v32, %v6956_v5  ;;  %v15533_v39 = vld [vmem:[#allocation7 + $0x6a0] sm:$0xf]  ;;  %v15461_v3 = vld [vmem:[#allocation7 + $0x610] sm:$0xf] }
 0x37d   :  { %9130 = vmatpush.bf16.msrb.mxu2 %v15502_v13  ;;  %v15421_v13 = vld [vmem:[#allocation7 + $0x5c0] sm:$0xf]  ;;  %v7275_v44 = vmul.f32 %v19647_v63, %v7242_v31  ;;  %v15350_v47 = vor.u32 %v17614_v17, %v15349_v51  ;;  %v17642_v51 = vld [vmem:[#allocation7 + $0x614] sm:$0xf0]  ;;  %v6957_v50 = vpop.f32.mrf.mxu0  ;;  %v15333_v31 = vld [vmem:[#allocation7 + $0x510] sm:$0xf]  ;;  %v15534_v8 = vor.u32 %v17660_v10, %v15533_v39 }
 0x37e   :  { %9143 = vmatpush.bf16.msrb.mxu3 %v15566_v22  ;;  %v15422_v15 = vor.u32 %v17632_v38, %v15421_v13  ;;  %v15413_v22 = vld [vmem:[#allocation7 + $0x5b0] sm:$0xf]  ;;  %v15405_v13 = vld [vmem:[#allocation7 + $0x5a0] sm:$0xf]  ;;  %v17628_v38 = vld [vmem:[#allocation7 + $0x5a4] sm:$0xf0]  ;;  %v6958_v12 = vadd.f32 %v6957_v50, %v6939_v43 }
 0x37f   :  { %9105 = vmatpush.bf16.msrb.mxu0 %v15366_v4  ;;  %v17644_v4 = vld [vmem:[#allocation7 + $0x624] sm:$0xf0]  ;;  %v7278_v0 = vmax.f32 %v7239_v56, %v7275_v44  ;;  %v7299_v46 = vadd.f32 %v7275_v44, %v7239_v56  ;;  %v15406_v17 = vor.u32 %v17628_v38, %v15405_v13  ;;  %v15397_v5 = vld [vmem:[#allocation7 + $0x590] sm:$0xf]  ;;  %v15462_v56 = vor.u32 %v17642_v51, %v15461_v3  ;;  %v15453_v44 = vld [vmem:[#allocation7 + $0x600] sm:$0xf] }
 0x380   :  { %9118 = vmatpush.bf16.msrb.mxu1 %v15430_v49  ;;  %v15470_v28 = vor.u32 %v17644_v4, %v15469_v25  ;;  %v7012_v29 = vpop.f32.mrf.mxu3  ;;  %v17461_v25 = vld [vmem:[#allocation7 + $0x74] sm:$0xf]  ;;  %v17608_v38 = vld [vmem:[#allocation7 + $0x504] sm:$0xf0]  ;;  %v15389_v43 = vld [vmem:[#allocation7 + $0x580] sm:$0xf] }
 0x381   :  { %9131 = vmatpush.bf16.msrb.mxu2 %v15494_v11  ;;  %v17630_v11 = vld [vmem:[#allocation7 + $0x5b4] sm:$0xf0]  ;;  %v7279_v2 = vrot.slane %v7278_v0, 4  ;;  %v7300_v21 = vrot.slane %v7299_v46, 4  ;;  %v15637_v3 = vld [vmem:[#allocation7 + $0x770] sm:$0xf] }
 0x382   :  { %9144 = vmatpush.bf16.msrb.mxu3 %v15558_v19  ;;  %v15414_v49 = vor.u32 %v17630_v11, %v15413_v22  ;;  %v19657_v19 = vadd.f32 %v6975_v53, %v19459_v18  ;;  %v6976_v11 = vpop.f32.mrf.mxu1  ;;  %v17640_v53 = vld [vmem:[#allocation7 + $0x604] sm:$0xf0]  ;;  %v17686_v50 = vld [vmem:[#allocation7 + $0x774] sm:$0xf0] }
 0x383   :  { %9106 = vmatpush.bf16.msrb.mxu0 %v15358_v14  ;;  %v6993_v14 = vpop.f32.mrf.mxu2  ;;  %v7280_v32 = vmax.f32 %v7278_v0, %v7279_v2  ;;  %v7301_v22 = vadd.f32 %v7300_v21, %v7299_v46  ;;  %v15517_v2 = vld [vmem:[#allocation7 + $0x680] sm:$0xf]  ;;  %v17656_v21 = vld [vmem:[#allocation7 + $0x684] sm:$0xf0]  ;;  %v15454_v51 = vor.u32 %v17640_v53, %v15453_v44  ;;  %v17459_v53 = vld [vmem:[#allocation7 + $0x64] sm:$0xf] }
 0x384   :  { %9119 = vmatpush.bf16.msrb.mxu1 %v15422_v15  ;;  %v17610_v15 = vld [vmem:[#allocation7 + $0x514] sm:$0xf0]  ;;  %v19662_v0 = vadd.f32 %v7012_v29, %v6993_v14 }
 0x385   :  { %9132 = vmatpush.bf16.msrb.mxu2 %v15486_v60  ;;  %v17612_v60 = vld [vmem:[#allocation7 + $0x524] sm:$0xf0]  ;;  %v7281_v4 = vrot.slane %v7280_v32, 2  ;;  %v15334_v46 = vor.u32 %v17610_v15, %v15333_v31  ;;  %v17702_v31 = vld [vmem:[#allocation7 + $0x7f4] sm:$0xf0] }
 0x386   :  { %9145 = vmatpush.bf16.msrb.mxu3 %v15550_v7  ;;  %v15342_v18 = vor.u32 %v17612_v60, %v15341_v24  ;;  %v17626_v7 = vld [vmem:[#allocation7 + $0x594] sm:$0xf0]  ;;  %v7302_v24 = vrot.slane %v7301_v22, 2  ;;  %v6977_v60 = vadd.f32 %v6976_v11, %v6958_v12  ;;  %v15701_v12 = vld [vmem:[#allocation7 + $0x7f0] sm:$0xf] }
 0x387   :  { %9107 = vmatpush.bf16.msrb.mxu0 %v15350_v47  ;;  %v14743_v47 = vld [vmem:[#allocation7 + $0x78] sm:$0xf0]  ;;  %v15398_v13 = vor.u32 %v17626_v7, %v15397_v5  ;;  %v7233_v5 = vadd.f32 %v19630_v36, %v19657_v19 }
 0x388   :  { %9120 = vmatpush.bf16.msrb.mxu1 %v15414_v49  ;;  %v19664_v49 = vld [vmem:[#allocation7 + $0x500] sm:$0xf]  ;;  %v7303_v39 = vadd.f32 %v7302_v24, %v7301_v22  ;;  %v7216_v10 = vadd.f32 %v6977_v60, %v19474_v59  ;;  %v17477_v59 = vld [vmem:[#allocation7 + $0xf4] sm:$0xf]  ;;  %v14807_v22 = vld [vmem:[#allocation7 + $0xf8] sm:$0xf0] }
 0x389   :  { %9133 = vmatpush.bf16.msrb.mxu2 %v15478_v62  ;;  %v15525_v62 = vld [vmem:[#allocation7 + $0x690] sm:$0xf]  ;;  %v15326_v7 = vor.u32 %v17608_v38, %v19664_v49  ;;  %v14810_v24 = vor.u32 %v17477_v59, %v14807_v22  ;;  %v14735_v60 = vld [vmem:[#allocation7 + $0x68] sm:$0xf0]  ;;  %v17684_v49 = vld [vmem:[#allocation7 + $0x764] sm:$0xf0] }
 0x38a   :  { %9146 = vmatpush.bf16.msrb.mxu3 %v15542_v52  ;;  %v17624_v52 = vld [vmem:[#allocation7 + $0x584] sm:$0xf0]  ;;  %v15526_v14 = vor.u32 %v17658_v16, %v15525_v62  ;;  %v7304_v15 = vrot.slane %v7303_v39, 1  ;;  %v7026_v62 = vpop.f32.mrf.mxu0  ;;  %v7045_v19 = vpop.f32.mrf.mxu1 }
 0x38b   :  { %9108 = vmatpush.bf16.msrb.mxu0 %v15342_v18  ;;  %v19670_v18 = vpop.f32.mrf.mxu2  ;;  %v7027_v44 = vadd.f32 %v7026_v62, %v19635_v58  ;;  %v7671_v58 = vld [vmem:[#allocation1 + $0x12] sm:$0xff] }
 0x38c   :  { %9121 = vmatpush.bf16.msrb.mxu1 %v15406_v17  ;;  %v14746_v17 = vor.u32 %v17461_v25, %v14743_v47  ;;  %v7305_v16 = vadd.f32 %v7304_v15, %v7303_v39  ;;  %v15638_v25 = vor.u32 %v17686_v50, %v15637_v3  ;;  %v15629_v47 = vld [vmem:[#allocation7 + $0x760] sm:$0xf]  ;;  %v14738_v50 = vor.u32 %v17459_v53, %v14735_v60  ;;  %v17457_v15 = vld [vmem:[#allocation7 + $0x54] sm:$0xf]  ;;  %v14791_v53 = vld [vmem:[#allocation7 + $0xd8] sm:$0xf0] }
 0x38d   :  { %9134 = vmatpush.bf16.msrb.mxu2 %v15470_v28  ;;  %v7282_v28 = vmax.f32 %v7280_v32, %v7281_v4  ;;  %v7236_v32 = vadd.f32 %v19630_v36, %v7216_v10  ;;  %v19674_v36 = vpop.f32.mrf.mxu3  ;;  %v15702_v4 = vor.u32 %v17702_v31, %v15701_v12  ;;  %v15693_v39 = vld [vmem:[#allocation7 + $0x7e0] sm:$0xf]  ;;  %v7672_v31 = vld [vmem:[#allocation1 + $0x1b] sm:$0xff] }
 0x38e   :  { %9147 = vmatpush.bf16.msrb.mxu3 %v15534_v8  ;;  %v15390_v8 = vor.u32 %v17624_v52, %v15389_v43  ;;  %v7320_v38 = vmul.f32 0.071428575, %v7305_v16  ;;  %v7245_v43 = vmax.f32 %v7233_v5, 0.0  ;;  %v7673_v52 = vld [vmem:[#allocation1 + $0x24] sm:$0xff]  ;;  %v7674_v12 = vld [vmem:[#allocation1 + $0x2d] sm:$0xff] }
 0x38f   :  { %v7283_v11 = vrot.slane %v7282_v28, 1  ;;  %v7248_v29 = vmax.f32 %v7236_v32, 0.0  ;;  %9109 = vmatpush.bf16.msrb.mxu0 %v15334_v46  ;;  %v14727_v5 = vld [vmem:[#allocation7 + $0x58] sm:$0xf0]  ;;  %v15621_v32 = vld [vmem:[#allocation7 + $0x750] sm:$0xf] }
 0x390   :  { %9122 = vmatpush.bf16.msrb.mxu1 %v15398_v13  ;;  %v7046_v13 = vadd.f32 %v7045_v19, %v7027_v44  ;;  %v17698_v16 = vld [vmem:[#allocation7 + $0x7d4] sm:$0xf0]  ;;  %v17473_v19 = vld [vmem:[#allocation7 + $0xd4] sm:$0xf] }
 0x391   :  { %9135 = vmatpush.bf16.msrb.mxu2 %v15462_v56  ;;  %v15518_v56 = vor.u32 %v17656_v21, %v15517_v2  ;;  %v7329_v46 = vmul.f32 %v19647_v63, %v7248_v29  ;;  %v7284_v10 = vmax.f32 %v7282_v28, %v7283_v11  ;;  %v17700_v2 = vld [vmem:[#allocation7 + $0x7e4] sm:$0xf0]  ;;  %v17475_v21 = vld [vmem:[#allocation7 + $0xe4] sm:$0xf]  ;;  %v15630_v63 = vor.u32 %v17684_v49, %v15629_v47 }
 0x392   :  { %9148 = vmatpush.bf16.msrb.mxu3 %v15526_v14  ;;  %v14799_v14 = vld [vmem:[#allocation7 + $0xe8] sm:$0xf0]  ;;  %v15694_v11 = vor.u32 %v17700_v2, %v15693_v39  ;;  %v7010_v29 = vadd.f32 %v19649_v9, %v19642_v45  ;;  %v7028_v44 = vpop.f32.mrf.mxu0  ;;  %v15613_v9 = vld [vmem:[#allocation7 + $0x740] sm:$0xf]  ;;  %v14794_v39 = vor.u32 %v17473_v19, %v14791_v53  ;;  %v19683_v53 = vperm.slane %v19622_v6, 1 }
 0x393   :  { %v7353_v3 = vadd.f32 %v7329_v46, %v7245_v43  ;;  %9110 = vmatpush.bf16.msrb.mxu0 %v15326_v7  ;;  %v19677_v59 = vadd.f32 %v7320_v38, %v7284_v10  ;;  %v14802_v62 = vor.u32 %v17475_v21, %v14799_v14  ;;  %v7064_v7 = vpop.f32.mrf.mxu2  ;;  %v14719_v45 = vld [vmem:[#allocation7 + $0x48] sm:$0xf0]  ;;  %v17680_v10 = vld [vmem:[#allocation7 + $0x744] sm:$0xf0]  ;;  %v15677_v2 = vld [vmem:[#allocation7 + $0x7c0] sm:$0xf] }
 0x394   :  { %9123 = vmatpush.bf16.msrb.mxu1 %v15390_v8  ;;  %v15685_v8 = vld [vmem:[#allocation7 + $0x7d0] sm:$0xf]  ;;  %v7029_v47 = vadd.f32 %v7028_v44, %v7010_v29  ;;  %v17696_v21 = vld [vmem:[#allocation7 + $0x7c4] sm:$0xf0]  ;;  %v17471_v14 = vld [vmem:[#allocation7 + $0xc4] sm:$0xf] }
 0x395   :  { %9136 = vmatpush.bf16.msrb.mxu2 %v15454_v51  ;;  %v7332_v51 = vmax.f32 %v7245_v43, %v7329_v46  ;;  %v7354_v22 = vrot.slane %v7353_v3, 4  ;;  %v7083_v49 = vpop.f32.mrf.mxu3  ;;  %v15686_v43 = vor.u32 %v17698_v16, %v15685_v8  ;;  %v17455_v46 = vld [vmem:[#allocation7 + $0x44] sm:$0xf]  ;;  %v15669_v16 = vld [vmem:[#allocation7 + $0x7b0] sm:$0xf] }
 0x396   :  { %9149 = vmatpush.bf16.msrb.mxu3 %v15518_v56  ;;  %9111 = vmatmul.bf16.vlgmr.msrb.gmra.mxu0 %v7671_v58  ;;  %v7065_v56 = vadd.f32 %v7064_v7, %v7046_v13  ;;  %v17694_v29 = vld [vmem:[#allocation7 + $0x7b4] sm:$0xf0]  ;;  %v17469_v44 = vld [vmem:[#allocation7 + $0xb4] sm:$0xf] }
 0x397   :  { %9155 = vmatpush.bf16.msra.mxu0 %v15638_v25  ;;  %v7333_v28 = vrot.slane %v7332_v51, 4  ;;  %v7355_v60 = vadd.f32 %v7354_v22, %v7353_v3  ;;  %9124 = vmatmul.bf16.vlgmr.msrb.gmra.mxu1 %v7672_v31  ;;  %v14722_v31 = vor.u32 %v17455_v46, %v14719_v45  ;;  %v14703_v46 = vld [vmem:[#allocation7 + $0x28] sm:$0xf0]  ;;  %v15597_v45 = vld [vmem:[#allocation7 + $0x720] sm:$0xf] }
 0x398   :  { %9168 = vmatpush.bf16.msra.mxu1 %v15702_v4  ;;  %9137 = vmatmul.bf16.vlgmr.msrb.gmra.mxu2 %v7673_v52  ;;  %v14730_v4 = vor.u32 %v17457_v15, %v14727_v5  ;;  %v7084_v58 = vadd.f32 %v7083_v49, %v7065_v56  ;;  %v17453_v15 = vld [vmem:[#allocation7 + $0x34] sm:$0xf]  ;;  %v15614_v5 = vor.u32 %v17680_v10, %v15613_v9  ;;  %v17676_v9 = vld [vmem:[#allocation7 + $0x724] sm:$0xf0] }
 0x399   :  { %9181 = vmatpush.bf16.msra.mxu2 %v14746_v17  ;;  %v17682_v17 = vld [vmem:[#allocation7 + $0x754] sm:$0xf0]  ;;  %v7334_v25 = vmax.f32 %v7332_v51, %v7333_v28  ;;  %9150 = vmatmul.bf16.vlgmr.msrb.gmra.mxu3 %v7674_v12  ;;  %v7356_v13 = vrot.slane %v7355_v60, 2  ;;  %v14783_v51 = vld [vmem:[#allocation7 + $0xc8] sm:$0xf0] }
 0x39a   :  { %9194 = vmatpush.bf16.msra.mxu3 %v14810_v24  ;;  %v7047_v24 = vpop.f32.mrf.mxu1  ;;  %v15622_v38 = vor.u32 %v17682_v17, %v15621_v32  ;;  %v7208_v12 = vadd.f32 %v7084_v58, %v19514_v42  ;;  %v14711_v32 = vld [vmem:[#allocation7 + $0x38] sm:$0xf0]  ;;  %v15605_v17 = vld [vmem:[#allocation7 + $0x730] sm:$0xf]  ;;  %v17678_v28 = vld [vmem:[#allocation7 + $0x734] sm:$0xf0]  ;;  %v14786_v7 = vor.u32 %v17471_v14, %v14783_v51 }
 0x39b   :  { %9156 = vmatpush.bf16.msra.mxu0 %v15630_v63  ;;  %v7335_v52 = vrot.slane %v7334_v25, 2  ;;  %v7048_v63 = vadd.f32 %v7047_v24, %v7029_v47  ;;  %v7066_v8 = vpop.f32.mrf.mxu2  ;;  %v14775_v42 = vld [vmem:[#allocation7 + $0xb8] sm:$0xf0]  ;;  %v17692_v10 = vld [vmem:[#allocation7 + $0x7a4] sm:$0xf0] }
 0x39c   :  { %9169 = vmatpush.bf16.msra.mxu1 %v15694_v11  ;;  %v14778_v58 = vor.u32 %v17469_v44, %v14775_v42  ;;  %v14767_v14 = vld [vmem:[#allocation7 + $0xa8] sm:$0xf0] }
 0x39d   :  { %9182 = vmatpush.bf16.msra.mxu2 %v14738_v50  ;;  %v7336_v3 = vmax.f32 %v7334_v25, %v7335_v52  ;;  %v7357_v50 = vadd.f32 %v7356_v13, %v7355_v60  ;;  %v7067_v56 = vadd.f32 %v7066_v8, %v7048_v63  ;;  %v14714_v25 = vor.u32 %v17453_v15, %v14711_v32  ;;  %v7031_v60 = vpop.f32.mrf.mxu0  ;;  %v7085_v49 = vpop.f32.mrf.mxu3  ;;  %v17674_v32 = vld [vmem:[#allocation7 + $0x714] sm:$0xf0] }
 0x39e   :  { %9195 = vmatpush.bf16.msra.mxu3 %v14802_v62  ;;  %v15678_v62 = vor.u32 %v17696_v21, %v15677_v2  ;;  %v7032_v24 = vadd.f32 %v7031_v60, %v19662_v0  ;;  %v17467_v21 = vld [vmem:[#allocation7 + $0xa4] sm:$0xf]  ;;  %v14687_v60 = vld [vmem:[#allocation7 + $0x8] sm:$0xf0] }
 0x39f   :  { %9157 = vmatpush.bf16.msra.mxu0 %v15622_v38  ;;  %v7337_v22 = vrot.slane %v7336_v3, 1  ;;  %v7358_v11 = vrot.slane %v7357_v50, 1  ;;  %v15606_v38 = vor.u32 %v17678_v28, %v15605_v17  ;;  %v7086_v6 = vadd.f32 %v7085_v49, %v7067_v56  ;;  %v15653_v17 = vld [vmem:[#allocation7 + $0x790] sm:$0xf] }
 0x3a0   :  { %9170 = vmatpush.bf16.msra.mxu1 %v15686_v43  ;;  %v15670_v43 = vor.u32 %v17694_v29, %v15669_v16  ;;  %v7228_v28 = vadd.f32 %v19683_v53, %v7208_v12  ;;  %v14759_v16 = vld [vmem:[#allocation7 + $0x98] sm:$0xf0]  ;;  %v17447_v29 = vld [vmem:[#allocation7 + $0x4] sm:$0xf]  ;;  %v7015_v12 = vadd.f32 %v19674_v36, %v19670_v18 }
 0x3a1   :  { %9183 = vmatpush.bf16.msra.mxu2 %v14730_v4  ;;  %v7359_v19 = vadd.f32 %v7358_v11, %v7357_v50  ;;  %v17451_v4 = vld [vmem:[#allocation7 + $0x24] sm:$0xf]  ;;  %v7338_v52 = vmax.f32 %v7336_v3, %v7337_v22  ;;  %v7211_v0 = vadd.f32 %v7086_v6, %v19524_v34  ;;  %v17449_v50 = vld [vmem:[#allocation7 + $0x14] sm:$0xf]  ;;  %v15598_v3 = vor.u32 %v17676_v9, %v15597_v45  ;;  %v17690_v34 = vld [vmem:[#allocation7 + $0x794] sm:$0xf0] }
 0x3a2   :  { %9196 = vmatpush.bf16.msra.mxu3 %v14794_v39  ;;  %v7050_v47 = vpop.f32.mrf.mxu1  ;;  %v15661_v39 = vld [vmem:[#allocation7 + $0x7a0] sm:$0xf]  ;;  %v14706_v51 = vor.u32 %v17451_v4, %v14703_v46  ;;  %v14770_v11 = vor.u32 %v17467_v21, %v14767_v14  ;;  %v17525_v4 = vld [vmem:[#allocation7 + $0x274] sm:$0xf]  ;;  %v15654_v49 = vor.u32 %v17690_v34, %v15653_v17  ;;  %v17672_v46 = vld [vmem:[#allocation7 + $0x704] sm:$0xf0] }
 0x3a3   :  { %9158 = vmatpush.bf16.msra.mxu0 %v15614_v5  ;;  %v7374_v13 = vmul.f32 0.071428575, %v7359_v19  ;;  %v7051_v2 = vadd.f32 %v7050_v47, %v7032_v24  ;;  %v15662_v63 = vor.u32 %v17692_v10, %v15661_v39  ;;  %v15589_v5 = vld [vmem:[#allocation7 + $0x710] sm:$0xf]  ;;  %v7231_v22 = vadd.f32 %v19683_v53, %v7211_v0  ;;  %v7069_v8 = vpop.f32.mrf.mxu2  ;;  %v15645_v6 = vld [vmem:[#allocation7 + $0x780] sm:$0xf] }
 0x3a4   :  { %9171 = vmatpush.bf16.msra.mxu1 %v15678_v62  ;;  %v17465_v62 = vld [vmem:[#allocation7 + $0x94] sm:$0xf]  ;;  %v15590_v47 = vor.u32 %v17674_v32, %v15589_v5  ;;  %v7240_v9 = vmax.f32 %v7228_v28, 0.0  ;;  %v17463_v10 = vld [vmem:[#allocation7 + $0x84] sm:$0xf] }
 0x3a5   :  { %9184 = vmatpush.bf16.msra.mxu2 %v14722_v31  ;;  %v14695_v31 = vld [vmem:[#allocation7 + $0x18] sm:$0xf0]  ;;  %v7377_v15 = vadd.f32 %v7374_v13, %v7338_v52  ;;  %v7243_v44 = vmax.f32 %v7231_v22, 0.0  ;;  %v7070_v42 = vadd.f32 %v7069_v8, %v7051_v2  ;;  %v7088_v52 = vpop.f32.mrf.mxu3  ;;  %v14762_v13 = vor.u32 %v17465_v62, %v14759_v16  ;;  %v14751_v2 = vld [vmem:[#allocation7 + $0x88] sm:$0xf0] }
 0x3a6   :  { %9197 = vmatpush.bf16.msra.mxu3 %v14786_v7  ;;  %v19693_v7 = vsel %vm7261_vm1, 1.0, %v18469_v20  ;;  %v14698_v19 = vor.u32 %v17449_v50, %v14695_v31  ;;  %v17493_v21 = vld [vmem:[#allocation7 + $0x174] sm:$0xf]  ;;  %v14935_v31 = vld [vmem:[#allocation7 + $0x1f8] sm:$0xf0]  ;;  %v14754_v34 = vor.u32 %v17463_v10, %v14751_v2 }
 0x3a7   :  { %9159 = vmatpush.bf16.msra.mxu0 %v15606_v38  ;;  %v7383_v56 = vrot.slane %v7377_v15, 7  ;;  %v14999_v38 = vld [vmem:[#allocation7 + $0x278] sm:$0xf0]  ;;  %v7276_v18 = vmul.f32 %v19693_v7, %v7243_v44  ;;  %v7089_v39 = vadd.f32 %v7088_v52, %v7070_v42  ;;  %v17509_v50 = vld [vmem:[#allocation7 + $0x1f4] sm:$0xf] }
 0x3a8   :  { %9172 = vmatpush.bf16.msra.mxu1 %v15670_v43  ;;  %v15581_v43 = vld [vmem:[#allocation7 + $0x700] sm:$0xf]  ;;  %v17541_v32 = vld [vmem:[#allocation7 + $0x2f4] sm:$0xf]  ;;  %v15063_v17 = vld [vmem:[#allocation7 + $0x2f8] sm:$0xf0] }
 0x3a9   :  { %9185 = vmatpush.bf16.msra.mxu2 %v14714_v25  ;;  %v7033_v25 = vpop.f32.mrf.mxu0  ;;  %v19699_v45 = vsel %vm7389_vm2, %v19677_v59, %v7383_v56  ;;  %v7285_v14 = vmax.f32 %v7240_v9, %v7276_v18  ;;  %v7306_v0 = vadd.f32 %v7276_v18, %v7240_v9  ;;  %v14871_v59 = vld [vmem:[#allocation7 + $0x178] sm:$0xf0]  ;;  %v19703_v15 = vadd.f32 %v7089_v39, %v19530_v33  ;;  %v17523_v62 = vld [vmem:[#allocation7 + $0x264] sm:$0xf]  ;;  %v14991_v8 = vld [vmem:[#allocation7 + $0x268] sm:$0xf0] }
 0x3aa   :  { %9198 = vmatpush.bf16.msra.mxu3 %v14778_v58  ;;  %v7052_v24 = vpop.f32.mrf.mxu1  ;;  %v7034_v36 = vadd.f32 %v7033_v25, %v7015_v12  ;;  %v17688_v58 = vld [vmem:[#allocation7 + $0x784] sm:$0xf0]  ;;  %v14874_v16 = vor.u32 %v17493_v21, %v14871_v59  ;;  %v17491_v33 = vld [vmem:[#allocation7 + $0x164] sm:$0xf]  ;;  %v15055_v9 = vld [vmem:[#allocation7 + $0x2e8] sm:$0xf0] }
 0x3ab   :  { %9160 = vmatpush.bf16.msra.mxu0 %v15598_v3  ;;  %v15002_v3 = vor.u32 %v17525_v4, %v14999_v38  ;;  %v15646_v5 = vor.u32 %v17688_v58, %v15645_v6  ;;  %v7286_v28 = vrot.slane %v7285_v14, 4  ;;  %v7307_v22 = vrot.slane %v7306_v0, 4  ;;  %v7071_v56 = vpop.f32.mrf.mxu2  ;;  %v7675_v12 = vld [vmem:[#allocation1 + $0x36] sm:$0xff]  ;;  %v17521_v6 = vld [vmem:[#allocation7 + $0x254] sm:$0xf] }
 0x3ac   :  { %9173 = vmatpush.bf16.msra.mxu1 %v15662_v63  ;;  %v15582_v63 = vor.u32 %v17672_v46, %v15581_v43  ;;  %v14863_v4 = vld [vmem:[#allocation7 + $0x168] sm:$0xf0]  ;;  %v7676_v43 = vld [vmem:[#allocation1 + $0x3f] sm:$0xff]  ;;  %v17539_v46 = vld [vmem:[#allocation7 + $0x2e4] sm:$0xf] }
 0x3ad   :  { %9186 = vmatpush.bf16.msra.mxu2 %v14706_v51  ;;  %v14690_v51 = vor.u32 %v17447_v29, %v14687_v60  ;;  %v14938_v29 = vor.u32 %v17509_v50, %v14935_v31  ;;  %v7287_v44 = vmax.f32 %v7285_v14, %v7286_v28  ;;  %v7308_v42 = vadd.f32 %v7307_v22, %v7306_v0  ;;  %v14927_v38 = vld [vmem:[#allocation7 + $0x1e8] sm:$0xf0]  ;;  %v7090_v52 = vpop.f32.mrf.mxu3  ;;  %v14983_v58 = vld [vmem:[#allocation7 + $0x258] sm:$0xf0]  ;;  %v17489_v21 = vld [vmem:[#allocation7 + $0x154] sm:$0xf] }
 0x3ae   :  { %9199 = vmatpush.bf16.msra.mxu3 %v14770_v11  ;;  %v7053_v11 = vadd.f32 %v7052_v24, %v7034_v36  ;;  %v14994_v24 = vor.u32 %v17523_v62, %v14991_v8  ;;  %v14866_v10 = vor.u32 %v17491_v33, %v14863_v4  ;;  %v14855_v14 = vld [vmem:[#allocation7 + $0x158] sm:$0xf0]  ;;  %v15058_v59 = vor.u32 %v17539_v46, %v15055_v9  ;;  %v17505_v50 = vld [vmem:[#allocation7 + $0x1d4] sm:$0xf] }
 0x3af   :  { %9161 = vmatpush.bf16.msra.mxu0 %v15590_v47  ;;  %v17507_v47 = vld [vmem:[#allocation7 + $0x1e4] sm:$0xf]  ;;  %v7288_v18 = vrot.slane %v7287_v44, 2  ;;  %v7309_v36 = vrot.slane %v7308_v42, 2  ;;  %v14919_v31 = vld [vmem:[#allocation7 + $0x1d8] sm:$0xf0]  ;;  %v14858_v22 = vor.u32 %v17489_v21, %v14855_v14  ;;  %v7234_v62 = vadd.f32 %v19683_v53, %v19703_v15 }
 0x3b0   :  { %9174 = vmatpush.bf16.msra.mxu1 %v15654_v49  ;;  %v7072_v25 = vadd.f32 %v7071_v56, %v7053_v11  ;;  %v14930_v2 = vor.u32 %v17507_v47, %v14927_v38  ;;  %v17519_v11 = vld [vmem:[#allocation7 + $0x244] sm:$0xf]  ;;  %v14847_v56 = vld [vmem:[#allocation7 + $0x148] sm:$0xf0] }
 0x3b1   :  { %9187 = vmatpush.bf16.msra.mxu2 %v14698_v19  ;;  %v15066_v19 = vor.u32 %v17541_v32, %v15063_v17  ;;  %v7102_v60 = vpop.f32.mrf.mxu0  ;;  %v7289_v0 = vmax.f32 %v7287_v44, %v7288_v18  ;;  %v15047_v32 = vld [vmem:[#allocation7 + $0x2d8] sm:$0xf0]  ;;  %v7246_v46 = vmax.f32 %v7234_v62, 0.0 }
 0x3b2   :  { %9200 = vmatpush.bf16.msra.mxu3 %v14762_v13  ;;  %v7121_v49 = vpop.f32.mrf.mxu1  ;;  %v7091_v39 = vadd.f32 %v7090_v52, %v7072_v25  ;;  %v17485_v52 = vld [vmem:[#allocation7 + $0x134] sm:$0xf] }
 0x3b3   :  { %9162 = vmatpush.bf16.msra.mxu0 %v15582_v63  ;;  %v7122_v13 = vadd.f32 %v7121_v49, %v7102_v60  ;;  %v14986_v63 = vor.u32 %v17521_v6, %v14983_v58  ;;  %v7290_v17 = vrot.slane %v7289_v0, 1  ;;  %v15039_v60 = vld [vmem:[#allocation7 + $0x2c8] sm:$0xf0]  ;;  %v17517_v49 = vld [vmem:[#allocation7 + $0x234] sm:$0xf] }
 0x3b4   :  { %9175 = vmatpush.bf16.msra.mxu1 %v15646_v5  ;;  %v17537_v5 = vld [vmem:[#allocation7 + $0x2d4] sm:$0xf]  ;;  %v14839_v6 = vld [vmem:[#allocation7 + $0x138] sm:$0xf0] }
 0x3b5   :  { %9188 = vmatpush.bf16.msra.mxu2 %v14690_v51  ;;  %v7310_v51 = vadd.f32 %v7309_v36, %v7308_v42  ;;  %v15050_v33 = vor.u32 %v17537_v5, %v15047_v32  ;;  %v7291_v4 = vmax.f32 %v7289_v0, %v7290_v17  ;;  %v7159_v38 = vpop.f32.mrf.mxu3  ;;  %v17501_v58 = vld [vmem:[#allocation7 + $0x1b4] sm:$0xf]  ;;  %v17483_v32 = vld [vmem:[#allocation7 + $0x124] sm:$0xf]  ;;  %v14831_v17 = vld [vmem:[#allocation7 + $0x128] sm:$0xf0] }
 0x3b6   :  { %9201 = vmatpush.bf16.msra.mxu3 %v14754_v34  ;;  %9163 = vmatmul.bf16.vlgmr.msra.gmra.mxu0 %v7675_v12  ;;  %v14975_v34 = vld [vmem:[#allocation7 + $0x248] sm:$0xf0]  ;;  %v17533_v0 = vld [vmem:[#allocation7 + $0x2b4] sm:$0xf] }
 0x3b7   :  { %9207 = vmatpush.bf16.msrb.mxu0 %v14874_v16  ;;  %9176 = vmatmul.bf16.vlgmr.msra.gmra.mxu1 %v7676_v43  ;;  %v7311_v28 = vrot.slane %v7310_v51, 1  ;;  %v7140_v16 = vpop.f32.mrf.mxu2  ;;  %v14978_v25 = vor.u32 %v17519_v11, %v14975_v34  ;;  %v14967_v43 = vld [vmem:[#allocation7 + $0x238] sm:$0xf0]  ;;  %v14895_v11 = vld [vmem:[#allocation7 + $0x1a8] sm:$0xf0] }
 0x3b8   :  { %9220 = vmatpush.bf16.msrb.mxu1 %v14938_v29  ;;  %9189 = vmatmul.bf16.vlgmr.msra.gmra.mxu2 %v19571_v40  ;;  %v17487_v29 = vld [vmem:[#allocation7 + $0x144] sm:$0xf]  ;;  %v7141_v44 = vadd.f32 %v7140_v16, %v7122_v13  ;;  %v14970_v14 = vor.u32 %v17517_v49, %v14967_v43  ;;  %v17529_v49 = vld [vmem:[#allocation7 + $0x294] sm:$0xf] }
 0x3b9   :  { %9233 = vmatpush.bf16.msrb.mxu2 %v15002_v3  ;;  %v7217_v3 = vadd.f32 %v7091_v39, %v19540_v54  ;;  %9202 = vmatmul.bf16.vlgmr.msra.gmra.mxu3 %v19575_v57  ;;  %v14922_v54 = vor.u32 %v17505_v50, %v14919_v31  ;;  %v7312_v12 = vadd.f32 %v7311_v28, %v7310_v51  ;;  %v19711_v42 = vpop.f32.mrf.mxu0  ;;  %v17503_v40 = vld [vmem:[#allocation7 + $0x1c4] sm:$0xf]  ;;  %v14903_v39 = vld [vmem:[#allocation7 + $0x1b8] sm:$0xf0] }
 0x3ba   :  { %9246 = vmatpush.bf16.msrb.mxu3 %v15066_v19  ;;  %v14911_v19 = vld [vmem:[#allocation7 + $0x1c8] sm:$0xf0]  ;;  %v19713_v15 = vpop.f32.mrf.mxu1  ;;  %v19716_v18 = vadd.f32 %v7159_v38, %v7141_v44  ;;  %v15031_v51 = vld [vmem:[#allocation7 + $0x2b8] sm:$0xf0]  ;;  %v17531_v16 = vld [vmem:[#allocation7 + $0x2a4] sm:$0xf] }
 0x3bb   :  { %v7237_v8 = vadd.f32 %v19683_v53, %v7217_v3  ;;  %9208 = vmatpush.bf16.msrb.mxu0 %v14866_v10  ;;  %v17535_v53 = vld [vmem:[#allocation7 + $0x2c4] sm:$0xf]  ;;  %v7321_v47 = vmul.f32 0.07692308, %v7312_v12  ;;  %v14914_v36 = vor.u32 %v17503_v40, %v14911_v19  ;;  %v14842_v3 = vor.u32 %v17485_v52, %v14839_v6  ;;  %v17513_v44 = vld [vmem:[#allocation7 + $0x214] sm:$0xf] }
 0x3bc   :  { %9221 = vmatpush.bf16.msrb.mxu1 %v14930_v2  ;;  %v15042_v13 = vor.u32 %v17535_v53, %v15039_v60  ;;  %v15034_v28 = vor.u32 %v17533_v0, %v15031_v51  ;;  %v14951_v40 = vld [vmem:[#allocation7 + $0x218] sm:$0xf0]  ;;  %v17481_v60 = vld [vmem:[#allocation7 + $0x114] sm:$0xf]  ;;  %v17511_v52 = vld [vmem:[#allocation7 + $0x204] sm:$0xf] }
 0x3bd   :  { %9234 = vmatpush.bf16.msrb.mxu2 %v14994_v24  ;;  %v7249_v57 = vmax.f32 %v7237_v8, 0.0  ;;  %v14850_v24 = vor.u32 %v17487_v29, %v14847_v56  ;;  %v19718_v10 = vadd.f32 %v7321_v47, %v7291_v4  ;;  %v15023_v29 = vld [vmem:[#allocation7 + $0x2a8] sm:$0xf0]  ;;  %v19722_v12 = vpop.f32.mrf.mxu3  ;;  %v14823_v4 = vld [vmem:[#allocation7 + $0x118] sm:$0xf0] }
 0x3be   :  { %9247 = vmatpush.bf16.msrb.mxu3 %v15058_v59  ;;  %v14959_v59 = vld [vmem:[#allocation7 + $0x228] sm:$0xf0]  ;;  %v15026_v47 = vor.u32 %v17531_v16, %v15023_v29  ;;  %v17497_v38 = vld [vmem:[#allocation7 + $0x194] sm:$0xf] }
 0x3bf   :  { %v7330_v9 = vmul.f32 %v19693_v7, %v7249_v57  ;;  %9209 = vmatpush.bf16.msrb.mxu0 %v14858_v22  ;;  %v17515_v7 = vld [vmem:[#allocation7 + $0x224] sm:$0xf]  ;;  %v19720_v5 = vpop.f32.mrf.mxu2  ;;  %v17589_v6 = vld [vmem:[#allocation7 + $0x474] sm:$0xf]  ;;  %v14815_v51 = vld [vmem:[#allocation7 + $0x108] sm:$0xf0] }
 0x3c0   :  { %9222 = vmatpush.bf16.msrb.mxu1 %v14922_v54  ;;  %v17499_v22 = vld [vmem:[#allocation7 + $0x1a4] sm:$0xf]  ;;  %v14962_v8 = vor.u32 %v17515_v7, %v14959_v59 }
 0x3c1   :  { %9235 = vmatpush.bf16.msrb.mxu2 %v14986_v63  ;;  %v7339_v2 = vmax.f32 %v7246_v46, %v7330_v9  ;;  %v7360_v21 = vadd.f32 %v7330_v9, %v7246_v46  ;;  %v14906_v63 = vor.u32 %v17501_v58, %v14903_v39  ;;  %v7107_v54 = vpop.f32.mrf.mxu0  ;;  %v14898_v53 = vor.u32 %v17499_v22, %v14895_v11  ;;  %v15255_v58 = vld [vmem:[#allocation7 + $0x478] sm:$0xf0]  ;;  %v17479_v39 = vld [vmem:[#allocation7 + $0x104] sm:$0xf]  ;;  %v17557_v11 = vld [vmem:[#allocation7 + $0x374] sm:$0xf] }
 0x3c2   :  { %9248 = vmatpush.bf16.msrb.mxu3 %v15050_v33  ;;  %v7126_v56 = vpop.f32.mrf.mxu1  ;;  %v14834_v33 = vor.u32 %v17483_v32, %v14831_v17  ;;  %v14954_v9 = vor.u32 %v17513_v44, %v14951_v40  ;;  %v17495_v7 = vld [vmem:[#allocation7 + $0x184] sm:$0xf]  ;;  %v15258_v16 = vor.u32 %v17589_v6, %v15255_v58  ;;  %v14818_v29 = vor.u32 %v17479_v39, %v14815_v51  ;;  %v15319_v44 = vld [vmem:[#allocation7 + $0x4f8] sm:$0xf0]  ;;  %v15311_v6 = vld [vmem:[#allocation7 + $0x4e8] sm:$0xf0] }
 0x3c3   :  { %v7340_v50 = vrot.slane %v7339_v2, 4  ;;  %v7361_v31 = vrot.slane %v7360_v21, 4  ;;  %9210 = vmatpush.bf16.msrb.mxu0 %v14850_v24  ;;  %v14887_v24 = vld [vmem:[#allocation7 + $0x198] sm:$0xf0]  ;;  %v17585_v58 = vld [vmem:[#allocation7 + $0x454] sm:$0xf] }
 0x3c4   :  { %9223 = vmatpush.bf16.msrb.mxu1 %v14914_v36  ;;  %v15015_v36 = vld [vmem:[#allocation7 + $0x298] sm:$0xf0]  ;;  %v14890_v0 = vor.u32 %v17497_v38, %v14887_v24 }
 0x3c5   :  { %9236 = vmatpush.bf16.msrb.mxu2 %v14978_v25  ;;  %v7341_v34 = vmax.f32 %v7339_v2, %v7340_v50  ;;  %v7362_v62 = vadd.f32 %v7361_v31, %v7360_v21  ;;  %v7127_v25 = vadd.f32 %v7126_v56, %v7107_v54  ;;  %v15018_v59 = vor.u32 %v17529_v49, %v15015_v36  ;;  %v14879_v31 = vld [vmem:[#allocation7 + $0x188] sm:$0xf0]  ;;  %v7164_v54 = vpop.f32.mrf.mxu3  ;;  %v15191_v56 = vld [vmem:[#allocation7 + $0x3f8] sm:$0xf0]  ;;  %v17555_v49 = vld [vmem:[#allocation7 + $0x364] sm:$0xf] }
 0x3c6   :  { %9249 = vmatpush.bf16.msrb.mxu3 %v15042_v13  ;;  %v14943_v13 = vld [vmem:[#allocation7 + $0x208] sm:$0xf0]  ;;  %v15239_v39 = vld [vmem:[#allocation7 + $0x458] sm:$0xf0] }
 0x3c7   :  { %v7342_v19 = vrot.slane %v7341_v34, 2  ;;  %v7363_v57 = vrot.slane %v7362_v62, 2  ;;  %9211 = vmatpush.bf16.msrb.mxu0 %v14842_v3  ;;  %v7145_v50 = vpop.f32.mrf.mxu2  ;;  %v17527_v3 = vld [vmem:[#allocation7 + $0x284] sm:$0xf] }
 0x3c8   :  { %9224 = vmatpush.bf16.msrb.mxu1 %v14906_v63  ;;  %v15007_v63 = vld [vmem:[#allocation7 + $0x288] sm:$0xf0]  ;;  %v7146_v17 = vadd.f32 %v7145_v50, %v7127_v25  ;;  %v14882_v25 = vor.u32 %v17495_v7, %v14879_v31  ;;  %v15111_v7 = vld [vmem:[#allocation7 + $0x358] sm:$0xf0] }
 0x3c9   :  { %9237 = vmatpush.bf16.msrb.mxu2 %v14970_v14  ;;  %v7343_v43 = vmax.f32 %v7341_v34, %v7342_v19  ;;  %v7364_v46 = vadd.f32 %v7363_v57, %v7362_v62  ;;  %v14826_v14 = vor.u32 %v17481_v60, %v14823_v4  ;;  %v19724_v22 = vpop.f32.mrf.mxu0  ;;  %v15127_v34 = vld [vmem:[#allocation7 + $0x378] sm:$0xf0]  ;;  %v17573_v62 = vld [vmem:[#allocation7 + $0x3f4] sm:$0xf]  ;;  %v15247_v60 = vld [vmem:[#allocation7 + $0x468] sm:$0xf0]  ;;  %v15010_v4 = vor.u32 %v17527_v3, %v15007_v63 }
 0x3ca   :  { %9250 = vmatpush.bf16.msrb.mxu3 %v15034_v28  ;;  %v14946_v28 = vor.u32 %v17511_v52, %v14943_v13  ;;  %v19728_v57 = vadd.f32 %v7164_v54, %v7146_v17  ;;  %v15194_v38 = vor.u32 %v17573_v62, %v15191_v56  ;;  %v15183_v52 = vld [vmem:[#allocation7 + $0x3e8] sm:$0xf0]  ;;  %v17603_v13 = vld [vmem:[#allocation7 + $0x4e4] sm:$0xf]  ;;  %v15175_v50 = vld [vmem:[#allocation7 + $0x3d8] sm:$0xf0] }
 0x3cb   :  { %v7344_v2 = vrot.slane %v7343_v43, 1  ;;  %v7365_v21 = vrot.slane %v7364_v46, 1  ;;  %9212 = vmatpush.bf16.msrb.mxu0 %v14834_v33  ;;  %v17605_v33 = vld [vmem:[#allocation7 + $0x4f4] sm:$0xf]  ;;  %v15314_v51 = vor.u32 %v17603_v13, %v15311_v6  ;;  %v17583_v54 = vld [vmem:[#allocation7 + $0x444] sm:$0xf] }
 0x3cc   :  { %9225 = vmatpush.bf16.msrb.mxu1 %v14898_v53  ;;  %v17587_v53 = vld [vmem:[#allocation7 + $0x464] sm:$0xf]  ;;  %v15322_v24 = vor.u32 %v17605_v33, %v15319_v44  ;;  %v17601_v17 = vld [vmem:[#allocation7 + $0x4d4] sm:$0xf]  ;;  %v19743_v56 = vld [vmem:[#allocation8] sm:$0x3] }
 0x3cd   :  { %9238 = vmatpush.bf16.msrb.mxu2 %v14962_v8  ;;  %v7366_v32 = vadd.f32 %v7365_v21, %v7364_v46  ;;  %v19726_v8 = vpop.f32.mrf.mxu1  ;;  %v7345_v40 = vmax.f32 %v7343_v43, %v7344_v2  ;;  %v15119_v46 = vld [vmem:[#allocation7 + $0x368] sm:$0xf0]  ;;  %v15250_v43 = vor.u32 %v17587_v53, %v15247_v60  ;;  %v17551_v33 = vld [vmem:[#allocation7 + $0x344] sm:$0xf]  ;;  %v17581_v53 = vld [vmem:[#allocation7 + $0x434] sm:$0xf] }
 0x3ce   :  { %9251 = vmatpush.bf16.msrb.mxu3 %v15026_v47  ;;  %v15130_v47 = vor.u32 %v17557_v11, %v15127_v34  ;;  %v15122_v21 = vor.u32 %v17555_v49, %v15119_v46  ;;  %v7124_v11 = vadd.f32 %v19713_v15, %v19711_v42  ;;  %v19746_v42 = vpop.f32.mrf.mxu3  ;;  %v15103_v44 = vld [vmem:[#allocation7 + $0x348] sm:$0xf0]  ;;  %v15223_v60 = vld [vmem:[#allocation7 + $0x438] sm:$0xf0]  ;;  %v17549_v49 = vld [vmem:[#allocation7 + $0x334] sm:$0xf] }
 0x3cf   :  { %v7375_v19 = vmul.f32 0.07692308, %v7366_v32  ;;  %9213 = vmatpush.bf16.msrb.mxu0 %v14826_v14  ;;  %v17553_v14 = vld [vmem:[#allocation7 + $0x354] sm:$0xf]  ;;  %v19734_v3 = vpop.f32.mrf.mxu2  ;;  %v15242_v32 = vor.u32 %v17585_v58, %v15239_v39  ;;  %v15095_v46 = vld [vmem:[#allocation7 + $0x338] sm:$0xf0] }
 0x3d0   :  { %9226 = vmatpush.bf16.msrb.mxu1 %v14890_v0  ;;  %v15287_v13 = vld [vmem:[#allocation7 + $0x4b8] sm:$0xf0] }
 0x3d1   :  { %9239 = vmatpush.bf16.msrb.mxu2 %v14954_v9  ;;  %v17571_v9 = vld [vmem:[#allocation7 + $0x3e4] sm:$0xf]  ;;  %v7378_v36 = vadd.f32 %v7375_v19, %v7345_v40  ;;  %v7178_v63 = vpop.f32.mrf.mxu0  ;;  %v15167_v40 = vld [vmem:[#allocation7 + $0x3c8] sm:$0xf0] }
 0x3d2   :  { %9252 = vmatpush.bf16.msrb.mxu3 %v15018_v59  ;;  %v15186_v0 = vor.u32 %v17571_v9, %v15183_v52  ;;  %v17569_v59 = vld [vmem:[#allocation7 + $0x3d4] sm:$0xf]  ;;  %v7179_v34 = vadd.f32 %v7178_v63, %v19716_v18  ;;  %v17599_v19 = vld [vmem:[#allocation7 + $0x4c4] sm:$0xf]  ;;  %v15159_v52 = vld [vmem:[#allocation7 + $0x3b8] sm:$0xf0] }
 0x3d3   :  { %9214 = vmatpush.bf16.msrb.mxu0 %v14818_v29  ;;  %v7384_v2 = vrot.slane %v7378_v36, 7  ;;  %v15178_v29 = vor.u32 %v17569_v59, %v15175_v50  ;;  %v17565_v9 = vld [vmem:[#allocation7 + $0x3b4] sm:$0xf]  ;;  %v15087_v59 = vld [vmem:[#allocation7 + $0x328] sm:$0xf0] }
 0x3d4   :  { %9227 = vmatpush.bf16.msrb.mxu1 %v14882_v25  ;;  %v15295_v25 = vld [vmem:[#allocation7 + $0x4c8] sm:$0xf0]  ;;  %v15162_v63 = vor.u32 %v17565_v9, %v15159_v52 }
 0x3d5   :  { %9240 = vmatpush.bf16.msrb.mxu2 %v14946_v28  ;;  %v19732_v31 = vsel %vm7389_vm2, %v19718_v10, %v7384_v2  ;;  %v15303_v28 = vld [vmem:[#allocation7 + $0x4d8] sm:$0xf0]  ;;  %v7197_v62 = vpop.f32.mrf.mxu1  ;;  %v15114_v10 = vor.u32 %v17553_v14, %v15111_v7  ;;  %v17579_v2 = vld [vmem:[#allocation7 + $0x424] sm:$0xf]  ;;  %v15071_v52 = vld [vmem:[#allocation7 + $0x308] sm:$0xf0] }
 0x3d6   :  { %9253 = vmatpush.bf16.msrb.mxu3 %v15010_v4  ;;  %9215 = vmatmul.bf16.vlgmr.msrb.gmra.mxu0 %v19586_v27  ;;  %v7143_v27 = vadd.f32 %v19720_v5, %v7124_v11  ;;  %v7198_v15 = vadd.f32 %v7197_v62, %v7179_v34  ;;  %v15306_v18 = vor.u32 %v17601_v17, %v15303_v28  ;;  %v7653_v5 = vperm.slane %v19743_v56, 0  ;;  %v17547_v7 = vld [vmem:[#allocation7 + $0x324] sm:$0xf]  ;;  %v15151_v28 = vld [vmem:[#allocation7 + $0x3a8] sm:$0xf0]  ;;  %v8995_v11 = vpop.f32.mrf.mxu3 }
 0x3d7   :  { %9259 = vmatpush.bf16.msra.mxu0 %v15130_v47  ;;  %9228 = vmatmul.bf16.vlgmr.msrb.gmra.mxu1 %v19588_v37  ;;  %v15106_v4 = vor.u32 %v17551_v33, %v15103_v44  ;;  %v8982_v6 = vpop.f32.mrf.mxu2  ;;  %v17563_v17 = vld [vmem:[#allocation7 + $0x3a4] sm:$0xf]  ;;  %v15090_v35 = vor.u32 %v17547_v7, %v15087_v59  ;;  %v17545_v33 = vld [vmem:[#allocation7 + $0x314] sm:$0xf]  ;;  %v15079_v44 = vld [vmem:[#allocation7 + $0x318] sm:$0xf0] }
 0x3d8   :  { %9272 = vmatpush.bf16.msra.mxu1 %v15194_v38  ;;  %9241 = vmatmul.bf16.vlgmr.msrb.gmra.mxu2 %v19581_v48  ;;  %v17567_v48 = vld [vmem:[#allocation7 + $0x3c4] sm:$0xf]  ;;  %v7209_v37 = vadd.f32 %v7198_v15, %v19554_v23  ;;  %v7162_v47 = vadd.f32 %v19722_v12, %v7143_v27  ;;  %v17597_v23 = vld [vmem:[#allocation7 + $0x4b4] sm:$0xf]  ;;  %v8983_v14 = vadd.f32 %v8982_v6, %v7653_v5  ;;  %v17983_v12 = vld [vmem:[#allocation5] sm:$0x7] }
 0x3d9   :  { %9285 = vmatpush.bf16.msra.mxu2 %v15258_v16  ;;  %v15231_v16 = vld [vmem:[#allocation7 + $0x448] sm:$0xf0]  ;;  %9254 = vmatmul.bf16.vlgmr.msrb.gmra.mxu3 %v19590_v41  ;;  %v15170_v38 = vor.u32 %v17567_v48, %v15167_v40  ;;  %v7180_v36 = vpop.f32.mrf.mxu0  ;;  %v17595_v62 = vld [vmem:[#allocation7 + $0x4a4] sm:$0xf]  ;;  %v15207_v27 = vld [vmem:[#allocation7 + $0x418] sm:$0xf0] }
 0x3da   :  { %9298 = vmatpush.bf16.msra.mxu3 %v15322_v24  ;;  %v15234_v41 = vor.u32 %v17583_v54, %v15231_v16  ;;  %v15298_v24 = vor.u32 %v17599_v19, %v15295_v25  ;;  %v7181_v58 = vadd.f32 %v7180_v36, %v7162_v47  ;;  %v15279_v54 = vld [vmem:[#allocation7 + $0x4a8] sm:$0xf0]  ;;  %v19754_v16 = vadd.f32 %v8995_v11, %v8983_v14  ;;  %v17561_v19 = vld [vmem:[#allocation7 + $0x394] sm:$0xf]  ;;  %v15143_v25 = vld [vmem:[#allocation7 + $0x398] sm:$0xf0] }
 0x3db   :  { %9260 = vmatpush.bf16.msra.mxu0 %v15122_v21  ;;  %v15215_v21 = vld [vmem:[#allocation7 + $0x428] sm:$0xf0]  ;;  %v19758_v15 = vsel %vm7267_vm3, 1.0, %v18469_v20  ;;  %v15282_v40 = vor.u32 %v17595_v62, %v15279_v54  ;;  %v17575_v20 = vld [vmem:[#allocation7 + $0x404] sm:$0xf]  ;;  %v15082_v36 = vor.u32 %v17545_v33, %v15079_v44 }
 0x3dc   :  { %9273 = vmatpush.bf16.msra.mxu1 %v15186_v0  ;;  %v19751_v0 = vperm.slane %v17983_v12, 2  ;;  %v15218_v34 = vor.u32 %v17579_v2, %v15215_v21  ;;  %v15199_v5 = vld [vmem:[#allocation7 + $0x408] sm:$0xf0]  ;;  %v17591_v21 = vld [vmem:[#allocation7 + $0x484] sm:$0xf] }
 0x3dd   :  { %9286 = vmatpush.bf16.msra.mxu2 %v15250_v43  ;;  %v15226_v43 = vor.u32 %v17581_v53, %v15223_v60  ;;  %v7199_v39 = vpop.f32.mrf.mxu1  ;;  %v15271_v60 = vld [vmem:[#allocation7 + $0x498] sm:$0xf0]  ;;  %v15135_v2 = vld [vmem:[#allocation7 + $0x388] sm:$0xf0]  ;;  %v17651_v54 = vld [vmem:[#allocation7 + $0x664] sm:$0xf] }
 0x3de   :  { %9299 = vmatpush.bf16.msra.mxu3 %v15314_v51  ;;  %v15098_v51 = vor.u32 %v17549_v49, %v15095_v46  ;;  %v7200_v50 = vadd.f32 %v7199_v39, %v7181_v58  ;;  %v7229_v48 = vadd.f32 %v19751_v0, %v7209_v37  ;;  %v17653_v49 = vld [vmem:[#allocation7 + $0x674] sm:$0xf]  ;;  %v15511_v46 = vld [vmem:[#allocation7 + $0x678] sm:$0xf0]  ;;  %v7129_v37 = vadd.f32 %v19726_v8, %v19724_v22  ;;  %v8997_v14 = vpop.f32.mrf.mxu3 }
 0x3df   :  { %9261 = vmatpush.bf16.msra.mxu0 %v15114_v10  ;;  %v15146_v58 = vor.u32 %v17561_v19, %v15143_v25  ;;  %v15202_v8 = vor.u32 %v17575_v20, %v15199_v5  ;;  %v15383_v7 = vld [vmem:[#allocation7 + $0x578] sm:$0xf0]  ;;  %v15439_v5 = vld [vmem:[#allocation7 + $0x5e8] sm:$0xf0]  ;;  %v17665_v14 = vld [vmem:[#allocation7 + $0x6d4] sm:$0xf] }
 0x3e0   :  { %9274 = vmatpush.bf16.msra.mxu1 %v15178_v29  ;;  %v7212_v10 = vadd.f32 %v7200_v50, %v19558_v30  ;;  %v17577_v29 = vld [vmem:[#allocation7 + $0x414] sm:$0xf]  ;;  %v7148_v12 = vadd.f32 %v19734_v3, %v7129_v37  ;;  %v15575_v62 = vld [vmem:[#allocation7 + $0x6f8] sm:$0xf0]  ;;  %v15503_v3 = vld [vmem:[#allocation7 + $0x668] sm:$0xf0] }
 0x3e1   :  { %9287 = vmatpush.bf16.msra.mxu2 %v15242_v32  ;;  %v15290_v32 = vor.u32 %v17597_v23, %v15287_v13  ;;  %v17593_v30 = vld [vmem:[#allocation7 + $0x494] sm:$0xf]  ;;  %v15210_v53 = vor.u32 %v17577_v29, %v15207_v27  ;;  %v17559_v23 = vld [vmem:[#allocation7 + $0x384] sm:$0xf]  ;;  %v7241_v13 = vmax.f32 %v7229_v48, 0.0  ;;  %v15506_v20 = vor.u32 %v17651_v54, %v15503_v3 }
 0x3e2   :  { %9300 = vmatpush.bf16.msra.mxu3 %v15306_v18  ;;  %v15154_v18 = vor.u32 %v17563_v17, %v15151_v28  ;;  %v15274_v39 = vor.u32 %v17593_v30, %v15271_v60  ;;  %v15447_v17 = vld [vmem:[#allocation7 + $0x5f8] sm:$0xf0]  ;;  %v17669_v28 = vld [vmem:[#allocation7 + $0x6f4] sm:$0xf]  ;;  %v15138_v27 = vor.u32 %v17559_v23, %v15135_v2  ;;  %v17619_v48 = vld [vmem:[#allocation7 + $0x564] sm:$0xf] }
 0x3e3   :  { %9262 = vmatpush.bf16.msra.mxu0 %v15106_v4  ;;  %v8984_v4 = vpop.f32.mrf.mxu2  ;;  %v15578_v30 = vor.u32 %v17669_v28, %v15575_v62  ;;  %v17617_v23 = vld [vmem:[#allocation7 + $0x554] sm:$0xf]  ;;  %v17615_v28 = vld [vmem:[#allocation7 + $0x544] sm:$0xf] }
 0x3e4   :  { %9275 = vmatpush.bf16.msra.mxu1 %v15170_v38  ;;  %v7183_v38 = vpop.f32.mrf.mxu0  ;;  %v17667_v4 = vld [vmem:[#allocation7 + $0x6e4] sm:$0xf]  ;;  %v17633_v2 = vld [vmem:[#allocation7 + $0x5d4] sm:$0xf] }
 0x3e5   :  { %9288 = vmatpush.bf16.msra.mxu2 %v15234_v41  ;;  %v7232_v41 = vadd.f32 %v19751_v0, %v7212_v10  ;;  %v7184_v9 = vadd.f32 %v7183_v38, %v19728_v57  ;;  %v15263_v57 = vld [vmem:[#allocation7 + $0x488] sm:$0xf0]  ;;  %v17649_v38 = vld [vmem:[#allocation7 + $0x654] sm:$0xf] }
 0x3e6   :  { %9301 = vmatpush.bf16.msra.mxu3 %v15298_v24  ;;  %v7202_v24 = vpop.f32.mrf.mxu1 }
 0x3e7   :  { %9263 = vmatpush.bf16.msra.mxu0 %v15098_v51  ;;  %v7244_v47 = vmax.f32 %v7232_v41, 0.0  ;;  %v7203_v22 = vadd.f32 %v7202_v24, %v7184_v9  ;;  %v17621_v51 = vld [vmem:[#allocation7 + $0x574] sm:$0xf]  ;;  %v15375_v41 = vld [vmem:[#allocation7 + $0x568] sm:$0xf0]  ;;  %v19773_v9 = vpop.f32.mrf.mxu3 }
 0x3e8   :  { %9276 = vmatpush.bf16.msra.mxu1 %v15162_v63  ;;  %v15514_v63 = vor.u32 %v17653_v49, %v15511_v46  ;;  %v15386_v33 = vor.u32 %v17621_v51, %v15383_v7  ;;  %v15495_v24 = vld [vmem:[#allocation7 + $0x658] sm:$0xf0]  ;;  %v15378_v37 = vor.u32 %v17619_v48, %v15375_v41  ;;  %v15487_v51 = vld [vmem:[#allocation7 + $0x648] sm:$0xf0] }
 0x3e9   :  { %9289 = vmatpush.bf16.msra.mxu2 %v15226_v43  ;;  %v17543_v43 = vld [vmem:[#allocation7 + $0x304] sm:$0xf]  ;;  %v7277_v6 = vmul.f32 %v19758_v15, %v7244_v47  ;;  %v19768_v11 = vadd.f32 %v7203_v22, %v19566_v26  ;;  %v15567_v47 = vld [vmem:[#allocation7 + $0x6e8] sm:$0xf0]  ;;  %v17984_v22 = vld [vmem:[#allocation1] sm:$0xff] }
 0x3ea   :  { %9302 = vmatpush.bf16.msra.mxu3 %v15290_v32  ;;  %v17637_v32 = vld [vmem:[#allocation7 + $0x5f4] sm:$0xf]  ;;  %v17635_v26 = vld [vmem:[#allocation7 + $0x5e4] sm:$0xf] }
 0x3eb   :  { %9264 = vmatpush.bf16.msra.mxu0 %v15090_v35  ;;  %v7292_v59 = vmax.f32 %v7241_v13, %v7277_v6  ;;  %v7313_v50 = vadd.f32 %v7277_v6, %v7241_v13  ;;  %v15266_v35 = vor.u32 %v17591_v21, %v15263_v57  ;;  %v15450_v44 = vor.u32 %v17637_v32, %v15447_v17  ;;  %v15367_v13 = vld [vmem:[#allocation7 + $0x558] sm:$0xf0]  ;;  %v17647_v57 = vld [vmem:[#allocation7 + $0x644] sm:$0xf] }
 0x3ec   :  { %9277 = vmatpush.bf16.msra.mxu1 %v15154_v18  ;;  %v7167_v18 = vadd.f32 %v19746_v42, %v7148_v12  ;;  %v15431_v21 = vld [vmem:[#allocation7 + $0x5d8] sm:$0xf0]  ;;  %v7235_v32 = vadd.f32 %v19751_v0, %v19768_v11 }
 0x3ed   :  { %9290 = vmatpush.bf16.msra.mxu2 %v15218_v34  ;;  %v15074_v34 = vor.u32 %v17543_v43, %v15071_v52  ;;  %v7293_v10 = vrot.slane %v7292_v59, 4  ;;  %v7314_v29 = vrot.slane %v7313_v50, 4  ;;  %v15442_v43 = vor.u32 %v17635_v26, %v15439_v5  ;;  %v15351_v5 = vld [vmem:[#allocation7 + $0x538] sm:$0xf0] }
 0x3ee   :  { %9303 = vmatpush.bf16.msra.mxu3 %v15282_v40  ;;  %v19771_v40 = vpop.f32.mrf.mxu2  ;;  %v7204_v60 = vpop.f32.mrf.mxu1  ;;  %v15570_v52 = vor.u32 %v17667_v4, %v15567_v47  ;;  %v17629_v47 = vld [vmem:[#allocation7 + $0x5b4] sm:$0xf] }
 0x3ef   :  { %9265 = vmatpush.bf16.msra.mxu0 %v15082_v36  ;;  %v7294_v19 = vmax.f32 %v7292_v59, %v7293_v10  ;;  %v7315_v25 = vadd.f32 %v7314_v29, %v7313_v50  ;;  %v17985_v50 = vld [vmem:[#allocation1 + $0x9] sm:$0xff]  ;;  %v15490_v29 = vor.u32 %v17647_v57, %v15487_v51 }
 0x3f0   :  { %9278 = vmatpush.bf16.msra.mxu1 %v15146_v58 }
 0x3f1   :  { %9291 = vmatpush.bf16.msra.mxu2 %v15210_v53  ;;  %v7185_v53 = vpop.f32.mrf.mxu0  ;;  %v7295_v49 = vrot.slane %v7294_v19, 2  ;;  %v7316_v46 = vrot.slane %v7315_v25, 2 }
 0x3f2   :  { %9304 = vmatpush.bf16.msra.mxu3 %v15274_v39  ;;  %v7186_v42 = vadd.f32 %v7185_v53, %v7167_v18  ;;  %v15498_v39 = vor.u32 %v17649_v38, %v15495_v24  ;;  %v17661_v38 = vld [vmem:[#allocation7 + $0x6b4] sm:$0xf] }
 0x3f3   :  { %9266 = vmatpush.bf16.msra.mxu0 %v15074_v34  ;;  %v7296_v6 = vmax.f32 %v7294_v19, %v7295_v49  ;;  %v7317_v58 = vadd.f32 %v7316_v46, %v7315_v25  ;;  %v17631_v34 = vld [vmem:[#allocation7 + $0x5c4] sm:$0xf]  ;;  %v9049_v19 = vpop.f32.mrf.mxu3  ;;  %v7247_v25 = vmax.f32 %v7235_v32, 0.0 }
 0x3f4   :  { %9279 = vmatpush.bf16.msra.mxu1 %v15138_v27  ;;  %v7205_v36 = vadd.f32 %v7204_v60, %v7186_v42  ;;  %v15423_v27 = vld [vmem:[#allocation7 + $0x5c8] sm:$0xf0]  ;;  %v15415_v42 = vld [vmem:[#allocation7 + $0x5b8] sm:$0xf0] }
 0x3f5   :  { %9292 = vmatpush.bf16.msra.mxu2 %v15202_v8  ;;  %v15559_v8 = vld [vmem:[#allocation7 + $0x6d8] sm:$0xf0]  ;;  %v7297_v7 = vrot.slane %v7296_v6, 1  ;;  %v7318_v59 = vrot.slane %v7317_v58, 1  ;;  %v15426_v60 = vor.u32 %v17631_v34, %v15423_v27  ;;  %v17609_v34 = vld [vmem:[#allocation7 + $0x514] sm:$0xf] }
 0x3f6   :  { %9305 = vmatpush.bf16.msra.mxu3 %v15266_v35  ;;  %v7218_v12 = vadd.f32 %v7205_v36, %v19569_v55  ;;  %9267 = vmatmul.bf16.vlgmr.msra.gmra.mxu0 %v19595_v1  ;;  %v15434_v55 = vor.u32 %v17633_v2, %v15431_v21  ;;  %v15359_v1 = vld [vmem:[#allocation7 + $0x548] sm:$0xf0]  ;;  %v9036_v62 = vpop.f32.mrf.mxu2  ;;  %v15562_v3 = vor.u32 %v17665_v14, %v15559_v8  ;;  %v17643_v36 = vld [vmem:[#allocation7 + $0x624] sm:$0xf]  ;;  %v17657_v27 = vld [vmem:[#allocation7 + $0x694] sm:$0xf] }
 0x3f7   :  { %9311 = vmatpush.bf16.msrb.mxu0 %v15386_v33  ;;  %9280 = vmatmul.bf16.vlgmr.msra.gmra.mxu1 %v19597_v61  ;;  %v7319_v54 = vadd.f32 %v7318_v59, %v7317_v58  ;;  %v17663_v61 = vld [vmem:[#allocation7 + $0x6c4] sm:$0xf]  ;;  %v15551_v35 = vld [vmem:[#allocation7 + $0x6c8] sm:$0xf0]  ;;  %v17645_v33 = vld [vmem:[#allocation7 + $0x634] sm:$0xf]  ;;  %v7298_v48 = vmax.f32 %v7296_v6, %v7297_v7  ;;  %v15362_v26 = vor.u32 %v17615_v28, %v15359_v1 }
 0x3f8   :  { %9324 = vmatpush.bf16.msrb.mxu1 %v15450_v44  ;;  %9293 = vmatmul.bf16.vlgmr.msra.gmra.mxu2 %v17984_v22  ;;  %v7238_v17 = vadd.f32 %v19751_v0, %v7218_v12  ;;  %v9021_v0 = vpop.f32.mrf.mxu1  ;;  %v15479_v44 = vld [vmem:[#allocation7 + $0x638] sm:$0xf0]  ;;  %v15554_v4 = vor.u32 %v17663_v61, %v15551_v35  ;;  %v15418_v58 = vor.u32 %v17629_v47, %v15415_v42  ;;  %v15343_v2 = vld [vmem:[#allocation7 + $0x528] sm:$0xf0]  ;;  %v17627_v22 = vld [vmem:[#allocation7 + $0x5a4] sm:$0xf] }
 0x3f9   :  { %9337 = vmatpush.bf16.msrb.mxu2 %v15514_v63  ;;  %9306 = vmatmul.bf16.vlgmr.msra.gmra.mxu3 %v17985_v50  ;;  %v15370_v63 = vor.u32 %v17617_v23, %v15367_v13  ;;  %v9008_v10 = vpop.f32.mrf.mxu0  ;;  %v7322_v41 = vmul.f32 0.083333336, %v7319_v54  ;;  %v17659_v8 = vld [vmem:[#allocation7 + $0x6a4] sm:$0xf]  ;;  %v15535_v59 = vld [vmem:[#allocation7 + $0x6a8] sm:$0xf0] }
 0x3fa   :  { %9350 = vmatpush.bf16.msrb.mxu3 %v15578_v30  ;;  %v7250_v18 = vmax.f32 %v7238_v17, 0.0  ;;  %v9009_v11 = vadd.f32 %v9008_v10, %v19754_v16  ;;  %v15482_v16 = vor.u32 %v17645_v33, %v15479_v44  ;;  %v17641_v50 = vld [vmem:[#allocation7 + $0x614] sm:$0xf]  ;;  %v15335_v62 = vld [vmem:[#allocation7 + $0x518] sm:$0xf0]  ;;  %v15538_v54 = vor.u32 %v17659_v8, %v15535_v59 }
 0x3fb   :  { %9312 = vmatpush.bf16.msrb.mxu0 %v15378_v37  ;;  %v19783_v24 = vadd.f32 %v7322_v41, %v7298_v48  ;;  %v17625_v10 = vld [vmem:[#allocation7 + $0x594] sm:$0xf]  ;;  %v15338_v48 = vor.u32 %v17609_v34, %v15335_v62  ;;  %v15327_v19 = vld [vmem:[#allocation7 + $0x508] sm:$0xf0]  ;;  %v17655_v47 = vld [vmem:[#allocation7 + $0x684] sm:$0xf] }
 0x3fc   :  { %9325 = vmatpush.bf16.msrb.mxu1 %v15442_v43  ;;  %v7331_v30 = vmul.f32 %v19758_v15, %v7250_v18  ;;  %v9022_v53 = vadd.f32 %v9021_v0, %v9009_v11  ;;  %v15543_v15 = vld [vmem:[#allocation7 + $0x6b8] sm:$0xf0]  ;;  %v15471_v43 = vld [vmem:[#allocation7 + $0x628] sm:$0xf0]  ;;  %v19787_v17 = vpop.f32.mrf.mxu3  ;;  %v17639_v11 = vld [vmem:[#allocation7 + $0x604] sm:$0xf] }
 0x3fd   :  { %9338 = vmatpush.bf16.msrb.mxu2 %v15506_v20  ;;  %v17613_v20 = vld [vmem:[#allocation7 + $0x534] sm:$0xf]  ;;  %v15546_v21 = vor.u32 %v17661_v38, %v15543_v15  ;;  %v15474_v12 = vor.u32 %v17643_v36, %v15471_v43  ;;  %v15527_v18 = vld [vmem:[#allocation7 + $0x698] sm:$0xf0]  ;;  %v15455_v0 = vld [vmem:[#allocation7 + $0x608] sm:$0xf0] }
 0x3fe   :  { %9351 = vmatpush.bf16.msrb.mxu3 %v15570_v52  ;;  %v7346_v49 = vmax.f32 %v7247_v25, %v7331_v30  ;;  %v7367_v46 = vadd.f32 %v7331_v30, %v7247_v25  ;;  %v9035_v37 = vadd.f32 %v19771_v40, %v9022_v53  ;;  %v15354_v52 = vor.u32 %v17613_v20, %v15351_v5  ;;  %v15407_v40 = vld [vmem:[#allocation7 + $0x5a8] sm:$0xf0]  ;;  %v9086_v32 = vpop.f32.mrf.mxu2  ;;  %v17685_v38 = vld [vmem:[#allocation7 + $0x774] sm:$0xf]  ;;  %v15703_v15 = vld [vmem:[#allocation7 + $0x7f8] sm:$0xf0] }
 0x3ff   :  { %9313 = vmatpush.bf16.msrb.mxu0 %v15370_v63  ;;  %v15463_v63 = vld [vmem:[#allocation7 + $0x618] sm:$0xf0]  ;;  %v15410_v1 = vor.u32 %v17627_v22, %v15407_v40  ;;  %v15530_v25 = vor.u32 %v17657_v27, %v15527_v18  ;;  %v15458_v53 = vor.u32 %v17639_v11, %v15455_v0  ;;  %v15391_v20 = vld [vmem:[#allocation7 + $0x588] sm:$0xf0]  ;;  %v17699_v40 = vld [vmem:[#allocation7 + $0x7e4] sm:$0xf] }
 0x400   :  { %9326 = vmatpush.bf16.msrb.mxu1 %v15434_v55  ;;  %v7347_v23 = vrot.slane %v7346_v49, 4  ;;  %v7368_v13 = vrot.slane %v7367_v46, 4  ;;  %v9048_v6 = vadd.f32 %v19773_v9, %v9035_v37  ;;  %v9023_v7 = vpop.f32.mrf.mxu1  ;;  %v15519_v42 = vld [vmem:[#allocation7 + $0x688] sm:$0xf0]  ;;  %v17701_v37 = vld [vmem:[#allocation7 + $0x7f4] sm:$0xf] }
 0x401   :  { %9339 = vmatpush.bf16.msrb.mxu2 %v15498_v39  ;;  %v17611_v39 = vld [vmem:[#allocation7 + $0x524] sm:$0xf]  ;;  %v9010_v14 = vpop.f32.mrf.mxu0  ;;  %v15631_v22 = vld [vmem:[#allocation7 + $0x768] sm:$0xf0]  ;;  %v17986_v7 = vld [vmem:[#allocation1 + $0x24] sm:$0xff] }
 0x402   :  { %9352 = vmatpush.bf16.msrb.mxu3 %v15562_v3  ;;  %v7348_v57 = vmax.f32 %v7346_v49, %v7347_v23  ;;  %v7369_v51 = vadd.f32 %v7368_v13, %v7367_v46  ;;  %v15346_v28 = vor.u32 %v17611_v39, %v15343_v2  ;;  %v15466_v3 = vor.u32 %v17641_v50, %v15463_v63  ;;  %v15639_v46 = vld [vmem:[#allocation7 + $0x778] sm:$0xf0]  ;;  %v17683_v14 = vld [vmem:[#allocation7 + $0x764] sm:$0xf]  ;;  %v15695_v8 = vld [vmem:[#allocation7 + $0x7e8] sm:$0xf0] }
 0x403   :  { %9314 = vmatpush.bf16.msrb.mxu0 %v15362_v26  ;;  %v17607_v26 = vld [vmem:[#allocation7 + $0x504] sm:$0xf]  ;;  %v15522_v39 = vor.u32 %v17655_v47, %v15519_v42  ;;  %v15642_v2 = vor.u32 %v17685_v38, %v15639_v46  ;;  %v15634_v50 = vor.u32 %v17683_v14, %v15631_v22  ;;  %v15698_v63 = vor.u32 %v17699_v40, %v15695_v8  ;;  %v17697_v34 = vld [vmem:[#allocation7 + $0x7d4] sm:$0xf]  ;;  %v15687_v62 = vld [vmem:[#allocation7 + $0x7d8] sm:$0xf0] }
 0x404   :  { %9327 = vmatpush.bf16.msrb.mxu1 %v15426_v60  ;;  %v7349_v9 = vrot.slane %v7348_v57, 2  ;;  %v7370_v55 = vrot.slane %v7369_v51, 2  ;;  %v17623_v60 = vld [vmem:[#allocation7 + $0x584] sm:$0xf]  ;;  %v15330_v49 = vor.u32 %v17607_v26, %v15327_v19  ;;  %v9101_v43 = vpop.f32.mrf.mxu3  ;;  %v15615_v27 = vld [vmem:[#allocation7 + $0x748] sm:$0xf0] }
 0x405   :  { %9340 = vmatpush.bf16.msrb.mxu2 %v15490_v29  ;;  %v15399_v29 = vld [vmem:[#allocation7 + $0x598] sm:$0xf0]  ;;  %v17677_v0 = vld [vmem:[#allocation7 + $0x734] sm:$0xf]  ;;  %v17990_v40 = vld [vmem:[#allocation1 + $0x36] sm:$0xff] }
 0x406   :  { %9353 = vmatpush.bf16.msrb.mxu3 %v15554_v4  ;;  %v7350_v61 = vmax.f32 %v7348_v57, %v7349_v9  ;;  %v7371_v35 = vadd.f32 %v7370_v55, %v7369_v51  ;;  %v15402_v41 = vor.u32 %v17625_v10, %v15399_v29  ;;  %v9088_v36 = vpop.f32.mrf.mxu2  ;;  %v17681_v9 = vld [vmem:[#allocation7 + $0x754] sm:$0xf]  ;;  %v15690_v10 = vor.u32 %v17697_v34, %v15687_v62  ;;  %v17679_v29 = vld [vmem:[#allocation7 + $0x744] sm:$0xf]  ;;  %v15655_v43 = vld [vmem:[#allocation7 + $0x798] sm:$0xf0] }
 0x407   :  { %9315 = vmatpush.bf16.msrb.mxu0 %v15354_v52  ;;  %v15618_v18 = vor.u32 %v17679_v29, %v15615_v27  ;;  %v17689_v36 = vld [vmem:[#allocation7 + $0x794] sm:$0xf] }
 0x408   :  { %9328 = vmatpush.bf16.msrb.mxu1 %v15418_v58  ;;  %v7351_v33 = vrot.slane %v7350_v61, 1  ;;  %v7372_v44 = vrot.slane %v7371_v35, 1  ;;  %v15394_v58 = vor.u32 %v17623_v60, %v15391_v20  ;;  %v15599_v60 = vld [vmem:[#allocation7 + $0x728] sm:$0xf0]  ;;  %v17691_v20 = vld [vmem:[#allocation7 + $0x7a4] sm:$0xf] }
 0x409   :  { %9341 = vmatpush.bf16.msrb.mxu2 %v15482_v16  ;;  %v9060_v30 = vpop.f32.mrf.mxu0  ;;  %v9073_v16 = vpop.f32.mrf.mxu1  ;;  %v17991_v8 = vld [vmem:[#allocation1 + $0x3f] sm:$0xff] }
 0x40a   :  { %9354 = vmatpush.bf16.msrb.mxu3 %v15546_v21  ;;  %v7373_v5 = vadd.f32 %v7372_v44, %v7371_v35  ;;  %v9061_v4 = vadd.f32 %v9060_v30, %v9048_v6  ;;  %v7352_v52 = vmax.f32 %v7350_v61, %v7351_v33  ;;  %v15706_v21 = vor.u32 %v17701_v37, %v15703_v15  ;;  %v17695_v61 = vld [vmem:[#allocation7 + $0x7c4] sm:$0xf]  ;;  %v15679_v35 = vld [vmem:[#allocation7 + $0x7c8] sm:$0xf0]  ;;  %v15607_v44 = vld [vmem:[#allocation7 + $0x738] sm:$0xf0] }
 0x40b   :  { %9316 = vmatpush.bf16.msrb.mxu0 %v15346_v28  ;;  %v17987_v28 = vld [vmem:[#allocation1 + $0x12] sm:$0xff]  ;;  %v15682_v11 = vor.u32 %v17695_v61, %v15679_v35  ;;  %v15591_v15 = vld [vmem:[#allocation7 + $0x718] sm:$0xf0] }
 0x40c   :  { %9329 = vmatpush.bf16.msrb.mxu1 %v15410_v1  ;;  %v7376_v23 = vmul.f32 0.083333336, %v7373_v5  ;;  %v9074_v13 = vadd.f32 %v9073_v16, %v9061_v4  ;;  %v17988_v1 = vld [vmem:[#allocation1 + $0x1b] sm:$0xff] }
 0x40d   :  { %9342 = vmatpush.bf16.msrb.mxu2 %v15474_v12  ;;  %v15663_v5 = vld [vmem:[#allocation7 + $0x7a8] sm:$0xf0] }
 0x40e   :  { %9355 = vmatpush.bf16.msrb.mxu3 %v15538_v54  ;;  %v9087_v6 = vadd.f32 %v9086_v32, %v9074_v13  ;;  %v7379_v12 = vadd.f32 %v7376_v23, %v7352_v52  ;;  %v17989_v54 = vld [vmem:[#allocation1 + $0x2d] sm:$0xff]  ;;  %v15666_v38 = vor.u32 %v17691_v20, %v15663_v5  ;;  %v15658_v13 = vor.u32 %v17689_v36, %v15655_v43 }
 0x40f   :  { %9317 = vmatpush.bf16.msrb.mxu0 %v15338_v48  ;;  %v17693_v48 = vld [vmem:[#allocation7 + $0x7b4] sm:$0xf] }
 0x410   :  { %9330 = vmatpush.bf16.msrb.mxu1 %v15402_v41  ;;  %v9100_v57 = vadd.f32 %v19787_v17, %v9087_v6  ;;  %v7385_v51 = vrot.slane %v7379_v12, 7  ;;  %v15623_v17 = vld [vmem:[#allocation7 + $0x758] sm:$0xf0]  ;;  %v17687_v6 = vld [vmem:[#allocation7 + $0x784] sm:$0xf] }
 0x411   :  { %9343 = vmatpush.bf16.msrb.mxu2 %v15466_v3  ;;  %v9062_v59 = vpop.f32.mrf.mxu0  ;;  %v9075_v32 = vpop.f32.mrf.mxu1  ;;  %v15626_v3 = vor.u32 %v17681_v9, %v15623_v17  ;;  %v15671_v41 = vld [vmem:[#allocation7 + $0x7b8] sm:$0xf0] }
 0x412   :  { %9356 = vmatpush.bf16.msrb.mxu3 %v15530_v25  ;;  %v19792_v55 = vsel %vm7389_vm2, %v19783_v24, %v7385_v51  ;;  %v15610_v25 = vor.u32 %v17677_v0, %v15607_v44  ;;  %v15674_v30 = vor.u32 %v17693_v48, %v15671_v41 }
 0x413   :  { %9318 = vmatpush.bf16.msrb.mxu0 %v15330_v49  ;;  %v17673_v49 = vld [vmem:[#allocation7 + $0x714] sm:$0xf] }
 0x414   :  { %9331 = vmatpush.bf16.msrb.mxu1 %v15394_v58  ;;  %v15594_v23 = vor.u32 %v17673_v49, %v15591_v15  ;;  %v17671_v58 = vld [vmem:[#allocation7 + $0x704] sm:$0xf] }
 0x415   :  { %9344 = vmatpush.bf16.msrb.mxu2 %v15458_v53  ;;  %v17675_v53 = vld [vmem:[#allocation7 + $0x724] sm:$0xf] }
 0x416   :  { %9357 = vmatpush.bf16.msrb.mxu3 %v15522_v39  ;;  %9319 = vmatmul.bf16.vlgmr.msrb.gmra.mxu0 %v17987_v28  ;;  %v15602_v42 = vor.u32 %v17675_v53, %v15599_v60  ;;  %v15583_v39 = vld [vmem:[#allocation7 + $0x708] sm:$0xf0] }
 0x417   :  { %9363 = vmatpush.bf16.msra.mxu0 %v15642_v2  ;;  %9332 = vmatmul.bf16.vlgmr.msrb.gmra.mxu1 %v17988_v1  ;;  %v15647_v2 = vld [vmem:[#allocation7 + $0x788] sm:$0xf0]  ;;  %v15586_v12 = vor.u32 %v17671_v58, %v15583_v39 }
 0x418   :  { %9345 = vmatmul.bf16.vlgmr.msrb.gmra.mxu2 %v17986_v7  ;;  %9376 = vmatpush.bf16.msra.mxu1 %v15706_v21  ;;  %v15650_v22 = vor.u32 %v17687_v6, %v15647_v2 }
 0x419   :  { %9358 = vmatmul.bf16.vlgmr.msrb.gmra.mxu3 %v17989_v54  ;;  %v9112_v24 = vpop.f32.mrf.mxu0  ;;  %v9125_v26 = vpop.f32.mrf.mxu1 }
 0x41a   :  { %v9113_v33 = vadd.f32 %v9112_v24, %v9100_v57 }
 0x41b   :  { %9364 = vmatpush.bf16.msra.mxu0 %v15634_v50  ;;  %v9138_v4 = vpop.f32.mrf.mxu2  ;;  %v7654_v50 = vperm.slane %v19743_v56, 1 }
 0x41c   :  { %9377 = vmatpush.bf16.msra.mxu1 %v15698_v63  ;;  %v9126_v19 = vadd.f32 %v9125_v26, %v9113_v33  ;;  %v9151_v47 = vpop.f32.mrf.mxu3 }
 0x41e   :  { %v9139_v16 = vadd.f32 %v9138_v4, %v9126_v19 }
 0x41f   :  { %9365 = vmatpush.bf16.msra.mxu0 %v15626_v3 }
 0x420   :  { %9378 = vmatpush.bf16.msra.mxu1 %v15690_v10  ;;  %v9152_v37 = vadd.f32 %v9151_v47, %v9139_v16 }
 0x421   :  { %v9114_v46 = vpop.f32.mrf.mxu0  ;;  %v9127_v52 = vpop.f32.mrf.mxu1 }
 0x423   :  { %9366 = vmatpush.bf16.msra.mxu0 %v15618_v18  ;;  %v9140_v21 = vpop.f32.mrf.mxu2 }
 0x424   :  { %9379 = vmatpush.bf16.msra.mxu1 %v15682_v11  ;;  %v9153_v14 = vpop.f32.mrf.mxu3 }
 0x427   :  { %9367 = vmatpush.bf16.msra.mxu0 %v15610_v25 }
 0x428   :  { %9380 = vmatpush.bf16.msra.mxu1 %v15674_v30 }
 0x42b   :  { %9368 = vmatpush.bf16.msra.mxu0 %v15602_v42 }
 0x42c   :  { %9381 = vmatpush.bf16.msra.mxu1 %v15666_v38 }
 0x42f   :  { %9369 = vmatpush.bf16.msra.mxu0 %v15594_v23 }
 0x430   :  { %9382 = vmatpush.bf16.msra.mxu1 %v15658_v13 }
 0x433   :  { %9370 = vmatpush.bf16.msra.mxu0 %v15586_v12  ;;  %v9164_v57 = vpop.f32.mrf.mxu0 }
 0x434   :  { %9383 = vmatpush.bf16.msra.mxu1 %v15650_v22  ;;  %v9165_v51 = vadd.f32 %v9164_v57, %v9152_v37  ;;  %v9177_v7 = vpop.f32.mrf.mxu1 }
 0x436   :  { %9371 = vmatmul.bf16.vlgmr.msra.gmra.mxu0 %v17990_v40  ;;  %v9178_v59 = vadd.f32 %v9177_v7, %v9165_v51  ;;  %v18470_v51 = vmov 256.0  }
 0x437   :  { %9384 = vmatmul.bf16.vlgmr.msra.gmra.mxu1 %v17991_v8  ;;  %17973 = vrcp.f32 %v18470_v51  ;;  %v17843_v51 = vld [vmem:[#allocation14 + $0x164] sm:$0xf] }
 0x438   :  { %v9391_v58 = vmul.f32 0.01, %v9178_v59  ;;  %vm9389_vm4 = vcmp.gt.f32.partialorder %v9178_v59, 0.0 }
 0x43a   :  { %v19795_v21 = vsel %vm9389_vm4, %v9178_v59, %v9391_v58 }
 0x43b   :  { %v9166_v63 = vpop.f32.mrf.mxu0  ;;  %v9190_v32 = vpop.f32.mrf.mxu2  ;;  %v9396_v40 = vsel %vm9395_vm6, %v19795_v21, 0.0 }
 0x43c   :  { %v9179_v9 = vpop.f32.mrf.mxu1  ;;  %v9191_v28 = vadd.f32 %v9190_v32, %v7654_v50  ;;  %v9203_v1 = vpop.f32.mrf.mxu3  ;;  %v15821_v63 = vld [vmem:[#allocation14 + $0xe0] sm:$0xf]  ;;  %v17829_v32 = vld [vmem:[#allocation14 + $0xec] sm:$0xf0] }
 0x43d   :  { %v19803_v7 = vpop.eup %17973  ;;  %v15949_v9 = vld [vmem:[#allocation14 + $0x1e0] sm:$0xf] }
 0x43e   :  { %v9204_v17 = vadd.f32 %v9203_v1, %v9191_v28  ;;  %v9402_v59 = vmul.f32 256.0, %v19803_v7  ;;  %v15822_v28 = vor.u32 %v17829_v32, %v15821_v63  ;;  %v17861_v1 = vld [vmem:[#allocation14 + $0x1ec] sm:$0xf0]  ;;  %vm9406_vm7 = vweird.f32 %v19803_v7 }
 0x440   :  { %v9403_v50 = vsub.f32 1.0, %v9402_v59  ;;  %9933 = vmatpush.bf16.msra.mxu2 %v15822_v28  ;;  %v15887_v59 = vld [vmem:[#allocation14 + $0x170] sm:$0xf0]  ;;  %v15741_v28 = vld [vmem:[#allocation14 + $0x40] sm:$0xf] }
 0x443   :  { %v9192_v34 = vpop.f32.mrf.mxu2 }
 0x444   :  { %v9205_v62 = vpop.f32.mrf.mxu3  ;;  %v15823_v34 = vld [vmem:[#allocation14 + $0xf0] sm:$0xf0] }
 0x445   :  { %v15950_v62 = vor.u32 %v17861_v1, %v15949_v9  ;;  %v17809_v1 = vld [vmem:[#allocation14 + $0x4c] sm:$0xf0] }
 0x447   :  { %9946 = vmatpush.bf16.msra.mxu3 %v15950_v62  ;;  %v17841_v62 = vld [vmem:[#allocation14 + $0x14c] sm:$0xf0] }
 0x453   :  { %v9216_v54 = vpop.f32.mrf.mxu0 }
 0x454   :  { %v9217_v3 = vadd.f32 %v9216_v54, %v9204_v17  ;;  %v9229_v10 = vpop.f32.mrf.mxu1  ;;  %v17827_v17 = vld [vmem:[#allocation14 + $0xe4] sm:$0xf] }
 0x455   :  { %v15826_v54 = vor.u32 %v17827_v17, %v15823_v34  ;;  %v15869_v17 = vld [vmem:[#allocation14 + $0x140] sm:$0xf]  ;;  %v15890_v34 = vor.u32 %v17843_v51, %v15887_v59  ;;  %v17860_v51 = vld [vmem:[#allocation14 + $0x1ec] sm:$0xf] }
 0x456   :  { %v9230_v29 = vadd.f32 %v9229_v10, %v9217_v3  ;;  %v17859_v3 = vld [vmem:[#allocation14 + $0x1e4] sm:$0xf]  ;;  %v15951_v10 = vld [vmem:[#allocation14 + $0x1f0] sm:$0xf0] }
 0x457   :  { %9959 = vmatpush.bf16.msrb.mxu0 %v15826_v54  ;;  %v17807_v54 = vld [vmem:[#allocation14 + $0x44] sm:$0xf] }
 0x45b   :  { %v9242_v27 = vpop.f32.mrf.mxu2  ;;  %v9218_v24 = vpop.f32.mrf.mxu0 }
 0x45c   :  { %v9255_v61 = vpop.f32.mrf.mxu3  ;;  %v9243_v35 = vadd.f32 %v9242_v27, %v9230_v29  ;;  %v9231_v11 = vpop.f32.mrf.mxu1  ;;  %v15805_v29 = vld [vmem:[#allocation14 + $0xc0] sm:$0xf]  ;;  %v15954_v27 = vor.u32 %v17859_v3, %v15951_v10  ;;  %v17857_v24 = vld [vmem:[#allocation14 + $0x1cc] sm:$0xf0]  ;;  %v15743_v3 = vld [vmem:[#allocation14 + $0x50] sm:$0xf0] }
 0x45d   :  { %v17839_v10 = vld [vmem:[#allocation14 + $0x144] sm:$0xf] }
 0x45e   :  { %v9256_v18 = vadd.f32 %v9255_v61, %v9243_v35  ;;  %v17825_v61 = vld [vmem:[#allocation14 + $0xcc] sm:$0xf0]  ;;  %v15933_v35 = vld [vmem:[#allocation14 + $0x1c0] sm:$0xf]  ;;  %9972 = vmatpush.bf16.msrb.mxu1 %v15954_v27  ;;  %v15742_v27 = vor.u32 %v17809_v1, %v15741_v28  ;;  %v15941_v1 = vld [vmem:[#allocation14 + $0x1c8] sm:$0xf] }
 0x45f   :  { %v15934_v11 = vor.u32 %v17857_v24, %v15933_v35  ;;  %v15870_v35 = vor.u32 %v17841_v62, %v15869_v17  ;;  %v15746_v24 = vor.u32 %v17807_v54, %v15743_v3  ;;  %v17858_v17 = vld [vmem:[#allocation14 + $0x1d4] sm:$0xf0]  ;;  %v15815_v54 = vld [vmem:[#allocation14 + $0xd8] sm:$0xf0]  ;;  %v17856_v3 = vld [vmem:[#allocation14 + $0x1cc] sm:$0xf] }
 0x460   :  { %v15942_v62 = vor.u32 %v17858_v17, %v15941_v1  ;;  %v17806_v1 = vld [vmem:[#allocation14 + $0x34] sm:$0xf0]  ;;  %v15861_v17 = vld [vmem:[#allocation14 + $0x128] sm:$0xf] }
 0x461   :  { %9947 = vmatpush.bf16.msra.mxu3 %v15934_v11  ;;  %v17805_v11 = vld [vmem:[#allocation14 + $0x2c] sm:$0xf0] }
 0x463   :  { %v9244_v0 = vpop.f32.mrf.mxu2 }
 0x464   :  { %v9257_v56 = vpop.f32.mrf.mxu3  ;;  %v17823_v0 = vld [vmem:[#allocation14 + $0xc4] sm:$0xf] }
 0x465   :  { %v15807_v56 = vld [vmem:[#allocation14 + $0xd0] sm:$0xf0] }
 0x473   :  { %v9268_v33 = vpop.f32.mrf.mxu0 }
 0x474   :  { %v9281_v44 = vpop.f32.mrf.mxu1  ;;  %v9269_v20 = vadd.f32 %v9268_v33, %v9256_v18  ;;  %v15806_v18 = vor.u32 %v17825_v61, %v15805_v29  ;;  %v17855_v33 = vld [vmem:[#allocation14 + $0x1c4] sm:$0xf]  ;;  %v15871_v29 = vld [vmem:[#allocation14 + $0x150] sm:$0xf0] }
 0x476   :  { %v9282_v4 = vadd.f32 %v9281_v44, %v9269_v20  ;;  %v15810_v44 = vor.u32 %v17823_v0, %v15807_v56  ;;  %9934 = vmatpush.bf16.msra.mxu2 %v15806_v18  ;;  %v15791_v20 = vld [vmem:[#allocation14 + $0xb0] sm:$0xf0]  ;;  %v15725_v18 = vld [vmem:[#allocation14 + $0x20] sm:$0xf]  ;;  %v15874_v56 = vor.u32 %v17839_v10, %v15871_v29  ;;  %v15943_v10 = vld [vmem:[#allocation14 + $0x1d8] sm:$0xf0] }
 0x477   :  { %v15853_v0 = vld [vmem:[#allocation14 + $0x120] sm:$0xf] }
 0x478   :  { %9960 = vmatpush.bf16.msrb.mxu0 %v15810_v44  ;;  %v17803_v44 = vld [vmem:[#allocation14 + $0x24] sm:$0xf] }
 0x47b   :  { %v9294_v48 = vpop.f32.mrf.mxu2  ;;  %v9270_v26 = vpop.f32.mrf.mxu0 }
 0x47c   :  { %v9307_v41 = vpop.f32.mrf.mxu3  ;;  %v9283_v19 = vpop.f32.mrf.mxu1  ;;  %v9295_v38 = vadd.f32 %v9294_v48, %v9282_v4  ;;  %v15935_v48 = vld [vmem:[#allocation14 + $0x1d0] sm:$0xf0]  ;;  %v17821_v26 = vld [vmem:[#allocation14 + $0xac] sm:$0xf0] }
 0x47d   :  { %v15938_v19 = vor.u32 %v17855_v33, %v15935_v48  ;;  %v15919_v4 = vld [vmem:[#allocation14 + $0x1b0] sm:$0xf0]  ;;  %v17837_v33 = vld [vmem:[#allocation14 + $0x12c] sm:$0xf0] }
 0x47e   :  { %v9308_v46 = vadd.f32 %v9307_v41, %v9295_v38  ;;  %v15789_v41 = vld [vmem:[#allocation14 + $0xa0] sm:$0xf]  ;;  %v17817_v38 = vld [vmem:[#allocation14 + $0x8c] sm:$0xf0]  ;;  %v15727_v48 = vld [vmem:[#allocation14 + $0x30] sm:$0xf0] }
 0x47f   :  { %9973 = vmatpush.bf16.msrb.mxu1 %v15938_v19  ;;  %v15855_v19 = vld [vmem:[#allocation14 + $0x130] sm:$0xf0] }
 0x483   :  { %v9296_v25 = vpop.f32.mrf.mxu2 }
 0x484   :  { %v9309_v30 = vpop.f32.mrf.mxu3  ;;  %v15917_v25 = vld [vmem:[#allocation14 + $0x1a0] sm:$0xf] }
 0x485   :  { %v17853_v30 = vld [vmem:[#allocation14 + $0x1ac] sm:$0xf0] }
 0x493   :  { %v9320_v53 = vpop.f32.mrf.mxu0 }
 0x494   :  { %v9333_v60 = vpop.f32.mrf.mxu1  ;;  %v9321_v15 = vadd.f32 %v9320_v53, %v9308_v46  ;;  %v17819_v53 = vld [vmem:[#allocation14 + $0xa4] sm:$0xf] }
 0x496   :  { %v9334_v36 = vadd.f32 %v9333_v60, %v9321_v15  ;;  %v15790_v60 = vor.u32 %v17821_v26, %v15789_v41  ;;  %v17815_v15 = vld [vmem:[#allocation14 + $0x84] sm:$0xf] }
 0x497   :  { %v17835_v26 = vld [vmem:[#allocation14 + $0x124] sm:$0xf] }
 0x498   :  { %9935 = vmatpush.bf16.msra.mxu2 %v15790_v60 }
 0x49b   :  { %v9346_v5 = vpop.f32.mrf.mxu2  ;;  %v9322_v47 = vpop.f32.mrf.mxu0 }
 0x49c   :  { %v9359_v16 = vpop.f32.mrf.mxu3  ;;  %v9335_v42 = vpop.f32.mrf.mxu1  ;;  %v9347_v43 = vadd.f32 %v9346_v5, %v9334_v36  ;;  %v17851_v5 = vld [vmem:[#allocation14 + $0x1a4] sm:$0xf]  ;;  %v15794_v47 = vor.u32 %v17819_v53, %v15791_v20  ;;  %v15775_v36 = vld [vmem:[#allocation14 + $0x90] sm:$0xf0]  ;;  %v15730_v53 = vor.u32 %v17803_v44, %v15727_v48 }
 0x49d   :  { %v15773_v42 = vld [vmem:[#allocation14 + $0x80] sm:$0xf]  ;;  %v15922_v46 = vor.u32 %v17851_v5, %v15919_v4  ;;  %v15858_v5 = vor.u32 %v17835_v26, %v15855_v19  ;;  %v15927_v26 = vld [vmem:[#allocation14 + $0x1b8] sm:$0xf0] }
 0x49e   :  { %v9360_v52 = vadd.f32 %v9359_v16, %v9347_v43  ;;  %v15918_v16 = vor.u32 %v17853_v30, %v15917_v25  ;;  %v17847_v43 = vld [vmem:[#allocation14 + $0x184] sm:$0xf]  ;;  %9961 = vmatpush.bf16.msrb.mxu0 %v15794_v47  ;;  %v15854_v30 = vor.u32 %v17837_v33, %v15853_v0  ;;  %v17854_v0 = vld [vmem:[#allocation14 + $0x1b4] sm:$0xf0]  ;;  %v15799_v33 = vld [vmem:[#allocation14 + $0xb8] sm:$0xf0] }
 0x49f   :  { %9974 = vmatpush.bf16.msrb.mxu1 %v15922_v46 }
 0x4a0   :  { %9948 = vmatpush.bf16.msra.mxu3 %v15918_v16 }
 0x4a3   :  { %v9348_v49 = vpop.f32.mrf.mxu2 }
 0x4a4   :  { %v9361_v37 = vpop.f32.mrf.mxu3  ;;  %v15901_v49 = vld [vmem:[#allocation14 + $0x180] sm:$0xf] }
 0x4a5   :  { %v17849_v37 = vld [vmem:[#allocation14 + $0x18c] sm:$0xf0] }
 0x4a6   :  { %v15902_v58 = vor.u32 %v17849_v37, %v15901_v49  ;;  %v15837_v49 = vld [vmem:[#allocation14 + $0x100] sm:$0xf]  ;;  %v17833_v37 = vld [vmem:[#allocation14 + $0x10c] sm:$0xf0] }
 0x4a8   :  { %9949 = vmatpush.bf16.msra.mxu3 %v15902_v58  ;;  %v15829_v58 = vld [vmem:[#allocation14 + $0xe8] sm:$0xf] }
 0x4b3   :  { %v9372_v23 = vpop.f32.mrf.mxu0 }
 0x4b4   :  { %v9385_v13 = vpop.f32.mrf.mxu1  ;;  %v9373_v39 = vadd.f32 %v9372_v23, %v9360_v52  ;;  %v15903_v52 = vld [vmem:[#allocation14 + $0x190] sm:$0xf0]  ;;  %v15774_v23 = vor.u32 %v17817_v38, %v15773_v42  ;;  %v17801_v38 = vld [vmem:[#allocation14 + $0xc] sm:$0xf0] }
 0x4b6   :  { %v9386_v6 = vadd.f32 %v9385_v13, %v9373_v39  ;;  %v9404_v13 = vmul.f32 %v19803_v7, %v9403_v50  ;;  %v15778_v39 = vor.u32 %v17815_v15, %v15775_v36  ;;  %9936 = vmatpush.bf16.msra.mxu2 %v15774_v23  ;;  %v17799_v15 = vld [vmem:[#allocation14 + $0x4] sm:$0xf]  ;;  %v15711_v36 = vld [vmem:[#allocation14 + $0x10] sm:$0xf0] }
 0x4b7   :  { %v17831_v23 = vld [vmem:[#allocation14 + $0x104] sm:$0xf] }
 0x4b8   :  { %v9392_v2 = vmul.f32 0.01, %v9386_v6  ;;  %vm9390_vm5 = vcmp.gt.f32.partialorder %v9386_v6, 0.0  ;;  %v9405_v32 = vadd.f32 %v19803_v7, %v9404_v13  ;;  %9962 = vmatpush.bf16.msrb.mxu0 %v15778_v39  ;;  %v15839_v13 = vld [vmem:[#allocation14 + $0x110] sm:$0xf0] }
 0x4b9   :  { %v15842_v39 = vor.u32 %v17831_v23, %v15839_v13 }
 0x4ba   :  { %v19797_v14 = vsel %vm9390_vm5, %v9386_v6, %v9392_v2  ;;  %v15757_v6 = vld [vmem:[#allocation14 + $0x60] sm:$0xf]  ;;  %v17813_v2 = vld [vmem:[#allocation14 + $0x6c] sm:$0xf0]  ;;  %v19810_v61 = vsel %vm9406_vm7, %v19803_v7, %v9405_v32  ;;  %v15726_v7 = vor.u32 %v17805_v11, %v15725_v18  ;;  %v15813_v32 = vld [vmem:[#allocation14 + $0xc8] sm:$0xf] }
 0x4bb   :  { %v9374_v12 = vpop.f32.mrf.mxu0  ;;  %v9397_v8 = vsel %vm9395_vm6, %v19797_v14, 0.0  ;;  %v15758_v63 = vor.u32 %v17813_v2, %v15757_v6  ;;  %v17830_v6 = vld [vmem:[#allocation14 + $0xf4] sm:$0xf0]  ;;  %v15957_v2 = vld [vmem:[#allocation14 + $0x1e8] sm:$0xf] }
 0x4bc   :  { %v9387_v22 = vpop.f32.mrf.mxu1  ;;  %v9398_v57 = vadd.f32 %v9397_v8, %v9396_v40  ;;  %v15885_v12 = vld [vmem:[#allocation14 + $0x160] sm:$0xf]  ;;  %v17845_v40 = vld [vmem:[#allocation14 + $0x16c] sm:$0xf0]  ;;  %v17811_v8 = vld [vmem:[#allocation14 + $0x64] sm:$0xf] }
 0x4bd   :  { %v15906_v22 = vor.u32 %v17847_v43, %v15903_v52  ;;  %v15886_v50 = vor.u32 %v17845_v40, %v15885_v12  ;;  %9937 = vmatpush.bf16.msra.mxu2 %v15758_v63  ;;  %v15838_v43 = vor.u32 %v17833_v37, %v15837_v49  ;;  %v15714_v52 = vor.u32 %v17799_v15, %v15711_v36  ;;  %v17862_v12 = vld [vmem:[#allocation14 + $0x1f4] sm:$0xf0]  ;;  %v15959_v63 = vld [vmem:[#allocation14 + $0x1f8] sm:$0xf0]  ;;  %v15925_v18 = vld [vmem:[#allocation14 + $0x1a8] sm:$0xf] }
 0x4be   :  { %9399 = vadd.xlane.f32.xlu0 %v9398_v57  ;;  %v15759_v57 = vld [vmem:[#allocation14 + $0x70] sm:$0xf0]  ;;  %v15958_v40 = vor.u32 %v17862_v12, %v15957_v2  ;;  %v15926_v44 = vor.u32 %v17854_v0, %v15925_v18  ;;  %v15765_v49 = vld [vmem:[#allocation14 + $0x68] sm:$0xf]  ;;  %v17846_v36 = vld [vmem:[#allocation14 + $0x174] sm:$0xf0] }
 0x4bf   :  { %v15762_v9 = vor.u32 %v17811_v8, %v15759_v57  ;;  %9975 = vmatpush.bf16.msrb.mxu1 %v15906_v22  ;;  %9950 = vmatpush.bf16.msra.mxu3 %v15886_v50  ;;  %v15830_v22 = vor.u32 %v17830_v6, %v15829_v58  ;;  %v17828_v8 = vld [vmem:[#allocation14 + $0xec] sm:$0xf]  ;;  %v15831_v57 = vld [vmem:[#allocation14 + $0xf8] sm:$0xf0]  ;;  %v17826_v50 = vld [vmem:[#allocation14 + $0xd4] sm:$0xf0] }
 0x4c0   :  { %v15834_v59 = vor.u32 %v17828_v8, %v15831_v57  ;;  %v15814_v28 = vor.u32 %v17826_v50, %v15813_v32  ;;  %v15893_v37 = vld [vmem:[#allocation14 + $0x168] sm:$0xf]  ;;  %v17844_v58 = vld [vmem:[#allocation14 + $0x16c] sm:$0xf]  ;;  %v17810_v12 = vld [vmem:[#allocation14 + $0x54] sm:$0xf0] }
 0x4c1   :  { %9963 = vmatpush.bf16.msrb.mxu0 %v15762_v9  ;;  %9938 = vmatpush.bf16.msra.mxu2 %v15742_v27  ;;  %v15962_v9 = vor.u32 %v17860_v51, %v15959_v63  ;;  %v15946_v27 = vor.u32 %v17856_v3, %v15943_v10  ;;  %v15894_v23 = vor.u32 %v17846_v36, %v15893_v37  ;;  %v15749_v2 = vld [vmem:[#allocation14 + $0x48] sm:$0xf]  ;;  %v17842_v8 = vld [vmem:[#allocation14 + $0x154] sm:$0xf0]  ;;  %v17808_v57 = vld [vmem:[#allocation14 + $0x4c] sm:$0xf] }
 0x4c2   :  { %v15751_v51 = vld [vmem:[#allocation14 + $0x58] sm:$0xf0]  ;;  %v17840_v32 = vld [vmem:[#allocation14 + $0x14c] sm:$0xf]  ;;  %v15845_v0 = vld [vmem:[#allocation14 + $0x108] sm:$0xf] }
 0x4c3   :  { %9976 = vmatpush.bf16.msrb.mxu1 %v15890_v34  ;;  %9951 = vmatpush.bf16.msra.mxu3 %v15870_v35  ;;  %v17824_v34 = vld [vmem:[#allocation14 + $0xcc] sm:$0xf]  ;;  %v15797_v35 = vld [vmem:[#allocation14 + $0xa8] sm:$0xf]  ;;  %v15754_v63 = vor.u32 %v17808_v57, %v15751_v51  ;;  %v15879_v50 = vld [vmem:[#allocation14 + $0x158] sm:$0xf0] }
 0x4c4   :  { %v15818_v29 = vor.u32 %v17824_v34, %v15815_v54  ;;  %v17804_v54 = vld [vmem:[#allocation14 + $0x2c] sm:$0xf]  ;;  %v15735_v3 = vld [vmem:[#allocation14 + $0x38] sm:$0xf0]  ;;  %v17797_v57 = vld [vmem:[#allocation13 + $0x2ec] sm:$0xf0] }
 0x4c5   :  { %9964 = vmatpush.bf16.msrb.mxu0 %v15746_v24  ;;  %9939 = vmatpush.bf16.msra.mxu2 %v15726_v7  ;;  %v17822_v24 = vld [vmem:[#allocation14 + $0xb4] sm:$0xf0]  ;;  %v17731_v51 = vld [vmem:[#allocation13 + $0xe4] sm:$0xf] }
 0x4c6   :  { %v15798_v11 = vor.u32 %v17822_v24, %v15797_v35  ;;  %v17818_v7 = vld [vmem:[#allocation14 + $0x94] sm:$0xf0]  ;;  %v15863_v35 = vld [vmem:[#allocation14 + $0x138] sm:$0xf0]  ;;  %v15717_v24 = vld [vmem:[#allocation14 + $0x8] sm:$0xf] }
 0x4c7   :  { %9977 = vmatpush.bf16.msrb.mxu1 %v15874_v56  ;;  %9952 = vmatpush.bf16.msra.mxu3 %v15854_v30  ;;  %v17820_v56 = vld [vmem:[#allocation14 + $0xac] sm:$0xf]  ;;  %v15909_v30 = vld [vmem:[#allocation14 + $0x188] sm:$0xf] }
 0x4c8   :  { %v15802_v48 = vor.u32 %v17820_v56, %v15799_v33  ;;  %v17834_v56 = vld [vmem:[#allocation14 + $0x114] sm:$0xf0]  ;;  %v17800_v33 = vld [vmem:[#allocation14 + $0xc] sm:$0xf] }
 0x4c9   :  { %9965 = vmatpush.bf16.msrb.mxu0 %v15730_v53 }
 0x4cb   :  { %9978 = vmatpush.bf16.msrb.mxu1 %v15858_v5  ;;  %9953 = vmatpush.bf16.msra.mxu3 %v15838_v43  ;;  %v17850_v5 = vld [vmem:[#allocation14 + $0x194] sm:$0xf0]  ;;  %v17812_v43 = vld [vmem:[#allocation14 + $0x6c] sm:$0xf] }
 0x4cd   :  { %9966 = vmatpush.bf16.msrb.mxu0 %v15714_v52  ;;  %v15767_v52 = vld [vmem:[#allocation14 + $0x78] sm:$0xf0] }
 0x4ce   :  { %v15770_v13 = vor.u32 %v17812_v43, %v15767_v52 }
 0x4cf   :  { %9979 = vmatpush.bf16.msrb.mxu1 %v15842_v39  ;;  %9998 = vmatpush.bf16.msrb.mxu3 %v15958_v40  ;;  %v15895_v39 = vld [vmem:[#allocation14 + $0x178] sm:$0xf0]  ;;  %v15750_v40 = vor.u32 %v17810_v12, %v15749_v2  ;;  %v16205_v2 = vld [vmem:[#allocation13 + $0x1e0] sm:$0xf]  ;;  %v17765_v12 = vld [vmem:[#allocation13 + $0x1ec] sm:$0xf0] }
 0x4d0   :  { %v15898_v6 = vor.u32 %v17844_v58, %v15895_v39  ;;  %v16077_v39 = vld [vmem:[#allocation13 + $0xe0] sm:$0xf] }
 0x4d1   :  { %10011 = vmatpush.bf16.msra.mxu0 %v15834_v59 }
 0x4d3   :  { %10024 = vmatpush.bf16.msra.mxu1 %v15962_v9  ;;  %9999 = vmatpush.bf16.msrb.mxu3 %v15942_v62  ;;  %v15882_v9 = vor.u32 %v17840_v32, %v15879_v50  ;;  %v17838_v62 = vld [vmem:[#allocation14 + $0x134] sm:$0xf0]  ;;  %v16061_v50 = vld [vmem:[#allocation13 + $0xc0] sm:$0xf] }
 0x4d4   :  { %v15862_v10 = vor.u32 %v17838_v62, %v15861_v17  ;;  %v16189_v17 = vld [vmem:[#allocation13 + $0x1c0] sm:$0xf] }
 0x4d5   :  { %10012 = vmatpush.bf16.msra.mxu0 %v15818_v29  ;;  %v15738_v29 = vor.u32 %v17804_v54, %v15735_v3  ;;  %v16317_v62 = vld [vmem:[#allocation13 + $0x2c0] sm:$0xf]  ;;  %v17793_v54 = vld [vmem:[#allocation13 + $0x2cc] sm:$0xf0]  ;;  %v17727_v3 = vld [vmem:[#allocation13 + $0xc4] sm:$0xf] }
 0x4d7   :  { %10025 = vmatpush.bf16.msra.mxu1 %v15946_v27  ;;  %10000 = vmatpush.bf16.msrb.mxu3 %v15926_v44  ;;  %v17836_v27 = vld [vmem:[#allocation14 + $0x12c] sm:$0xf]  ;;  %v15719_v44 = vld [vmem:[#allocation14 + $0x18] sm:$0xf0] }
 0x4d8   :  { %v15866_v18 = vor.u32 %v17836_v27, %v15863_v35  ;;  %v16045_v35 = vld [vmem:[#allocation13 + $0xa0] sm:$0xf] }
 0x4d9   :  { %10013 = vmatpush.bf16.msra.mxu0 %v15802_v48  ;;  %v17832_v48 = vld [vmem:[#allocation14 + $0x10c] sm:$0xf] }
 0x531   :  { %v9400_v41 = vpop.xlane.xlu0 %9399 }
 0x532   :  { %v9408_v25 = vmul.f32 %v19810_v61, %v9400_v41  ;;  %v17852_v41 = vld [vmem:[#allocation14 + $0x1ac] sm:$0xf] }
 0x533   :  { %v15930_v19 = vor.u32 %v17852_v41, %v15927_v26  ;;  %v15846_v26 = vor.u32 %v17834_v56, %v15845_v0  ;;  %v16173_v0 = vld [vmem:[#allocation13 + $0x1a0] sm:$0xf]  ;;  %v17757_v56 = vld [vmem:[#allocation13 + $0x1ac] sm:$0xf0] }
 0x534   :  { %v19814_v60 = vsub.f32 %v19795_v21, %v9408_v25  ;;  %v19817_v20 = vsub.f32 %v19797_v14, %v9408_v25  ;;  %v15709_v14 = vld [vmem:[#allocation14] sm:$0xf]  ;;  %v15781_v25 = vld [vmem:[#allocation14 + $0x88] sm:$0xf] }
 0x535   :  { %v15710_v46 = vor.u32 %v17801_v38, %v15709_v14  ;;  %v15782_v53 = vor.u32 %v17818_v7, %v15781_v25  ;;  %v15911_v14 = vld [vmem:[#allocation14 + $0x198] sm:$0xf0]  ;;  %10026 = vmatpush.bf16.msra.mxu1 %v15930_v19  ;;  %v15722_v25 = vor.u32 %v17800_v33, %v15719_v44  ;;  %v16301_v33 = vld [vmem:[#allocation13 + $0x2a0] sm:$0xf]  ;;  %v17789_v44 = vld [vmem:[#allocation13 + $0x2ac] sm:$0xf0] }
 0x536   :  { %v9411_v4 = vmul.f32 %v19814_v60, %v19814_v60  ;;  %v9412_v16 = vmul.f32 %v19817_v20, %v19817_v20  ;;  %v15847_v19 = vld [vmem:[#allocation14 + $0x118] sm:$0xf0] }
 0x537   :  { %9940 = vmatpush.bf16.msra.mxu2 %v15710_v46  ;;  %v17814_v46 = vld [vmem:[#allocation14 + $0x74] sm:$0xf0]  ;;  %v15850_v7 = vor.u32 %v17832_v48, %v15847_v19  ;;  %v17723_v48 = vld [vmem:[#allocation13 + $0xa4] sm:$0xf]  ;;  %v16174_v19 = vor.u32 %v17757_v56, %v16173_v0 }
 0x538   :  { %v9413_v47 = vsel %vm9395_vm6, %v9411_v4, 0.0  ;;  %v9414_v42 = vsel %vm9395_vm6, %v9412_v16, 0.0  ;;  %v17816_v4 = vld [vmem:[#allocation14 + $0x8c] sm:$0xf]  ;;  %v15783_v16 = vld [vmem:[#allocation14 + $0x98] sm:$0xf0]  ;;  %v15766_v15 = vor.u32 %v17814_v46, %v15765_v49 }
 0x539   :  { %v9415_v21 = vadd.f32 %v9414_v42, %v9413_v47  ;;  %v15910_v47 = vor.u32 %v17850_v5, %v15909_v30  ;;  %v15786_v42 = vor.u32 %v17816_v4, %v15783_v16  ;;  %v9440_v49 = vld [vmem:[#allocation11] sm:$0x3] }
 0x53a   :  { %v9442_v52 = vperm.slane %v9440_v49, 0 }
 0x53b   :  { %9416 = vadd.xlane.f32.xlu0 %v9415_v21  ;;  %9985 = vmatpush.bf16.msrb.mxu2 %v15830_v22  ;;  %v17848_v21 = vld [vmem:[#allocation14 + $0x18c] sm:$0xf]  ;;  %v15877_v22 = vld [vmem:[#allocation14 + $0x148] sm:$0xf] }
 0x53c   :  { %v15914_v38 = vor.u32 %v17848_v21, %v15911_v14  ;;  %10001 = vmatpush.bf16.msrb.mxu3 %v15910_v47  ;;  %10014 = vmatpush.bf16.msra.mxu0 %v15786_v42  ;;  %v15878_v59 = vor.u32 %v17842_v8, %v15877_v22  ;;  %v9432_v21 = vld [vmem:[#allocation10] sm:$0x3]  ;;  %v16333_v22 = vld [vmem:[#allocation13 + $0x2e0] sm:$0xf] }
 0x53d   :  { %v9434_v46 = vperm.slane %v9432_v21, 0  ;;  %v9435_v37 = vperm.slane %v9432_v21, 1  ;;  %v16031_v21 = vld [vmem:[#allocation13 + $0x90] sm:$0xf0] }
 0x53e   :  { %10027 = vmatpush.bf16.msra.mxu1 %v15914_v38 }
 0x53f   :  { %9986 = vmatpush.bf16.msrb.mxu2 %v15814_v28  ;;  %v15733_v28 = vld [vmem:[#allocation14 + $0x28] sm:$0xf] }
 0x540   :  { %10002 = vmatpush.bf16.msrb.mxu3 %v15894_v23  ;;  %10015 = vmatpush.bf16.msra.mxu0 %v15770_v13  ;;  %v15734_v34 = vor.u32 %v17806_v1, %v15733_v28  ;;  %v9443_v23 = vperm.slane %v9440_v49, 1  ;;  %v16334_v28 = vor.u32 %v17797_v57, %v16333_v22  ;;  %v16013_v49 = vld [vmem:[#allocation13 + $0x60] sm:$0xf]  ;;  %v17745_v57 = vld [vmem:[#allocation13 + $0x14c] sm:$0xf0] }
 0x542   :  { %10028 = vmatpush.bf16.msra.mxu1 %v15898_v6  ;;  %v17733_v6 = vld [vmem:[#allocation13 + $0xec] sm:$0xf0] }
 0x543   :  { %9987 = vmatpush.bf16.msrb.mxu2 %v15798_v11  ;;  %v17802_v11 = vld [vmem:[#allocation14 + $0x14] sm:$0xf0] }
 0x544   :  { %10003 = vmatpush.bf16.msrb.mxu3 %v15878_v59  ;;  %10016 = vmatpush.bf16.msra.mxu0 %v15754_v63  ;;  %v15718_v41 = vor.u32 %v17802_v11, %v15717_v24  ;;  %v16079_v59 = vld [vmem:[#allocation13 + $0xf0] sm:$0xf0]  ;;  %v17725_v24 = vld [vmem:[#allocation13 + $0xac] sm:$0xf0] }
 0x545   :  { %v16082_v1 = vor.u32 %v17731_v51, %v16079_v59  ;;  %v16253_v51 = vld [vmem:[#allocation13 + $0x240] sm:$0xf]  ;;  %v17777_v59 = vld [vmem:[#allocation13 + $0x24c] sm:$0xf0] }
 0x546   :  { %10029 = vmatpush.bf16.msra.mxu1 %v15882_v9  ;;  %v17729_v9 = vld [vmem:[#allocation13 + $0xcc] sm:$0xf0] }
 0x547   :  { %9988 = vmatpush.bf16.msrb.mxu2 %v15782_v53 }
 0x548   :  { %10004 = vmatpush.bf16.msrb.mxu3 %v15862_v10  ;;  %10017 = vmatpush.bf16.msra.mxu0 %v15738_v29  ;;  %v16063_v10 = vld [vmem:[#allocation13 + $0xd0] sm:$0xf0]  ;;  %v16062_v29 = vor.u32 %v17729_v9, %v16061_v50 }
 0x549   :  { %v16066_v11 = vor.u32 %v17727_v3, %v16063_v10  ;;  %v16237_v3 = vld [vmem:[#allocation13 + $0x220] sm:$0xf]  ;;  %v17773_v10 = vld [vmem:[#allocation13 + $0x22c] sm:$0xf0] }
 0x54a   :  { %10030 = vmatpush.bf16.msra.mxu1 %v15866_v18  ;;  %v16318_v18 = vor.u32 %v17793_v54, %v16317_v62  ;;  %v16109_v62 = vld [vmem:[#allocation13 + $0x120] sm:$0xf]  ;;  %v17741_v54 = vld [vmem:[#allocation13 + $0x12c] sm:$0xf0]  ;;  %v16238_v0 = vor.u32 %v17773_v10, %v16237_v3  ;;  %v16037_v3 = vld [vmem:[#allocation13 + $0x88] sm:$0xf] }
 0x54b   :  { %9989 = vmatpush.bf16.msrb.mxu2 %v15766_v15  ;;  %v17722_v10 = vld [vmem:[#allocation13 + $0x94] sm:$0xf0] }
 0x54c   :  { %10005 = vmatpush.bf16.msrb.mxu3 %v15846_v26  ;;  %10018 = vmatpush.bf16.msra.mxu0 %v15722_v25  ;;  %v16046_v26 = vor.u32 %v17725_v24, %v16045_v35  ;;  %v16029_v25 = vld [vmem:[#allocation13 + $0x80] sm:$0xf]  ;;  %v17705_v24 = vld [vmem:[#allocation13 + $0xc] sm:$0xf0] }
 0x54d   :  { %v15965_v35 = vld [vmem:[#allocation13] sm:$0xf] }
 0x54e   :  { %10031 = vmatpush.bf16.msra.mxu1 %v15850_v7  ;;  %v17721_v7 = vld [vmem:[#allocation13 + $0x8c] sm:$0xf0] }
 0x54f   :  { %9990 = vmatpush.bf16.msrb.mxu2 %v15750_v40 }
 0x553   :  { %9991 = vmatpush.bf16.msrb.mxu2 %v15734_v34  ;;  %v17761_v34 = vld [vmem:[#allocation13 + $0x1cc] sm:$0xf0] }
 0x554   :  { %v16190_v27 = vor.u32 %v17761_v34, %v16189_v17  ;;  %v16254_v17 = vor.u32 %v17777_v59, %v16253_v51  ;;  %v16303_v59 = vld [vmem:[#allocation13 + $0x2b0] sm:$0xf0] }
 0x557   :  { %9992 = vmatpush.bf16.msrb.mxu2 %v15718_v41  ;;  %v16047_v41 = vld [vmem:[#allocation13 + $0xb0] sm:$0xf0] }
 0x5ae   :  { %v9417_v30 = vpop.xlane.xlu0 %9416 }
 0x5af   :  { %v9418_v53 = vmul.f32 %v9417_v30, %v19810_v61  ;;  %v16302_v30 = vor.u32 %v17789_v44, %v16301_v33  ;;  %v16221_v33 = vld [vmem:[#allocation13 + $0x200] sm:$0xf]  ;;  %v17769_v44 = vld [vmem:[#allocation13 + $0x20c] sm:$0xf0] }
 0x5b1   :  { %v9419_v5 = vadd.f32 1e-05, %v9418_v53  ;;  %v16050_v53 = vor.u32 %v17723_v48, %v16047_v41  ;;  %v17703_v48 = vld [vmem:[#allocation13 + $0x4] sm:$0xf]  ;;  %v15967_v41 = vld [vmem:[#allocation13 + $0x10] sm:$0xf0] }
 0x5b3   :  { %17975 = vrsqrt.f32 %v9419_v5  ;;  %vm9426_vm9 = vweird.f32 %v9419_v5 }
 0x5b9   :  { %v17976_v4 = vpop.eup %17975 }
 0x5ba   :  { %v9421_v16 = vmul.f32 %v17976_v4, %v9419_v5  ;;  %vm9427_vm8 = vweird.f32 %v17976_v4  ;;  %v16157_v5 = vld [vmem:[#allocation13 + $0x180] sm:$0xf] }
 0x5bb   :  { %vm9428_vm10 = vmor %vm9426_vm9, %vm9427_vm8 }
 0x5bc   :  { %v9422_v47 = vmul.f32 %v17976_v4, %v9421_v16  ;;  %v16285_v16 = vld [vmem:[#allocation13 + $0x280] sm:$0xf] }
 0x5be   :  { %v9423_v42 = vmul.f32 0.5, %v9422_v47  ;;  %v17785_v47 = vld [vmem:[#allocation13 + $0x28c] sm:$0xf0] }
 0x5c0   :  { %v9424_v14 = vsub.f32 1.5, %v9423_v42  ;;  %v17719_v42 = vld [vmem:[#allocation13 + $0x84] sm:$0xf] }
 0x5c2   :  { %v9425_v38 = vmul.f32 %v17976_v4, %v9424_v14  ;;  %v16030_v14 = vor.u32 %v17721_v7, %v16029_v25  ;;  %v17795_v25 = vld [vmem:[#allocation13 + $0x2e4] sm:$0xf]  ;;  %v16335_v7 = vld [vmem:[#allocation13 + $0x2f0] sm:$0xf0] }
 0x5c4   :  { %v9429_v15 = vsel %vm9428_vm10, %v17976_v4, %v9425_v38  ;;  %v17753_v4 = vld [vmem:[#allocation13 + $0x18c] sm:$0xf0] }
 0x5c5   :  { %v9430_v36 = vmul.f32 %v9429_v15, %v19814_v60  ;;  %v9431_v43 = vmul.f32 %v9429_v15, %v19817_v20  ;;  %v16078_v60 = vor.u32 %v17733_v6, %v16077_v39  ;;  %v16206_v20 = vor.u32 %v17765_v12, %v16205_v2  ;;  %v15997_v2 = vld [vmem:[#allocation13 + $0x40] sm:$0xf]  ;;  %v17713_v12 = vld [vmem:[#allocation13 + $0x4c] sm:$0xf0] }
 0x5c6   :  { %v16158_v38 = vor.u32 %v17753_v4, %v16157_v5  ;;  %v16034_v15 = vor.u32 %v17719_v42, %v16031_v21  ;;  %v15998_v50 = vor.u32 %v17713_v12, %v15997_v2  ;;  %v17734_v4 = vld [vmem:[#allocation13 + $0xf4] sm:$0xf0]  ;;  %v16222_v42 = vor.u32 %v17769_v44, %v16221_v33  ;;  %v16021_v33 = vld [vmem:[#allocation13 + $0x68] sm:$0xf] }
 0x5c7   :  { %v9438_v13 = vmul.f32 %v9434_v46, %v9430_v36  ;;  %v9439_v58 = vmul.f32 %v9435_v37, %v9431_v43  ;;  %v17717_v46 = vld [vmem:[#allocation13 + $0x6c] sm:$0xf0]  ;;  %v16286_v37 = vor.u32 %v17785_v47, %v16285_v16  ;;  %v16141_v36 = vld [vmem:[#allocation13 + $0x160] sm:$0xf]  ;;  %v16213_v16 = vld [vmem:[#allocation13 + $0x1e8] sm:$0xf]  ;;  %v15970_v21 = vor.u32 %v17703_v48, %v15967_v41 }
 0x5c8   :  { %v17749_v43 = vld [vmem:[#allocation13 + $0x16c] sm:$0xf0]  ;;  %v16014_v39 = vor.u32 %v17717_v46, %v16013_v49  ;;  %v17766_v47 = vld [vmem:[#allocation13 + $0x1f4] sm:$0xf0]  ;;  %v17759_v49 = vld [vmem:[#allocation13 + $0x1c4] sm:$0xf] }
 0x5c9   :  { %v9446_v40 = vadd.f32 %v9442_v52, %v9438_v13  ;;  %v9447_v8 = vadd.f32 %v9443_v23, %v9439_v58  ;;  %v16269_v52 = vld [vmem:[#allocation13 + $0x260] sm:$0xf]  ;;  %v17781_v23 = vld [vmem:[#allocation13 + $0x26c] sm:$0xf0]  ;;  %v17715_v13 = vld [vmem:[#allocation13 + $0x64] sm:$0xf]  ;;  %v16142_v6 = vor.u32 %v17749_v43, %v16141_v36 }
 0x5ca   :  { %v16015_v58 = vld [vmem:[#allocation13 + $0x70] sm:$0xf0]  ;;  %v16270_v22 = vor.u32 %v17781_v23, %v16269_v52  ;;  %v17791_v36 = vld [vmem:[#allocation13 + $0x2c4] sm:$0xf]  ;;  %v16069_v52 = vld [vmem:[#allocation13 + $0xc8] sm:$0xf] }
 0x5cb   :  { %v19828_v63 = vpack.c.bf16 %v9446_v40, %v9446_v40  ;;  %v19830_v32 = vpack.c.bf16 %v9447_v8, %v9447_v8  ;;  %v16018_v40 = vor.u32 %v17715_v13, %v16015_v58  ;;  %v16125_v8 = vld [vmem:[#allocation13 + $0x140] sm:$0xf]  ;;  %v16191_v46 = vld [vmem:[#allocation13 + $0x1d0] sm:$0xf0]  ;;  %v17730_v23 = vld [vmem:[#allocation13 + $0xd4] sm:$0xf0] }
 0x5cc   :  { %v16126_v9 = vor.u32 %v17745_v57, %v16125_v8  ;;  %v16319_v43 = vld [vmem:[#allocation13 + $0x2d0] sm:$0xf0]  ;;  %v16197_v13 = vld [vmem:[#allocation13 + $0x1c8] sm:$0xf]  ;;  %v17762_v58 = vld [vmem:[#allocation13 + $0x1d4] sm:$0xf0]  ;;  %v16194_v2 = vor.u32 %v17759_v49, %v16191_v46  ;;  %v19850_v8 = vpack.c.bf16 %v19792_v55, %v19792_v55  ;;  %v16070_v57 = vor.u32 %v17730_v23, %v16069_v52 }
 0x5cd   :  { %9941 = vmatmul.bf16.vlgmr.msra.gmra.mxu2 %v19828_v63  ;;  %9954 = vmatmul.bf16.vlgmr.msra.gmra.mxu3 %v19830_v32  ;;  %v16322_v12 = vor.u32 %v17791_v36, %v16319_v43  ;;  %v16198_v51 = vor.u32 %v17762_v58, %v16197_v13  ;;  %v17718_v44 = vld [vmem:[#allocation13 + $0x74] sm:$0xf0]  ;;  %v16149_v48 = vld [vmem:[#allocation13 + $0x168] sm:$0xf]  ;;  %v17739_v49 = vld [vmem:[#allocation13 + $0x124] sm:$0xf] }
 0x5ce   :  { %9967 = vmatmul.bf16.vlgmr.msrb.gmra.mxu0 %v19828_v63  ;;  %9980 = vmatmul.bf16.vlgmr.msrb.gmra.mxu1 %v19830_v32  ;;  %v17750_v41 = vld [vmem:[#allocation13 + $0x174] sm:$0xf0]  ;;  %v16111_v46 = vld [vmem:[#allocation13 + $0x130] sm:$0xf0]  ;;  %v17771_v36 = vld [vmem:[#allocation13 + $0x224] sm:$0xf] }
 0x5cf   :  { %10517 = vmatpush.bf16.msra.mxu2 %v16078_v60  ;;  %10530 = vmatpush.bf16.msra.mxu3 %v16206_v20  ;;  %v17711_v60 = vld [vmem:[#allocation13 + $0x44] sm:$0xf]  ;;  %v15999_v20 = vld [vmem:[#allocation13 + $0x50] sm:$0xf0]  ;;  %v15989_v52 = vld [vmem:[#allocation13 + $0x28] sm:$0xf] }
 0x5d0   :  { %10543 = vmatpush.bf16.msrb.mxu0 %v16334_v28  ;;  %10556 = vmatpush.bf16.msrb.mxu1 %v16082_v1  ;;  %v15981_v28 = vld [vmem:[#allocation13 + $0x20] sm:$0xf]  ;;  %v17709_v1 = vld [vmem:[#allocation13 + $0x2c] sm:$0xf0]  ;;  %v16002_v34 = vor.u32 %v17711_v60, %v15999_v20  ;;  %v16053_v60 = vld [vmem:[#allocation13 + $0xa8] sm:$0xf] }
 0x5d1   :  { %v16181_v20 = vld [vmem:[#allocation13 + $0x1a8] sm:$0xf]  ;;  %v16239_v43 = vld [vmem:[#allocation13 + $0x230] sm:$0xf0]  ;;  %v17710_v23 = vld [vmem:[#allocation13 + $0x34] sm:$0xf0] }
 0x5d2   :  { %v16117_v13 = vld [vmem:[#allocation13 + $0x128] sm:$0xf]  ;;  %v17742_v58 = vld [vmem:[#allocation13 + $0x134] sm:$0xf0] }
 0x5d3   :  { %10518 = vmatpush.bf16.msra.mxu2 %v16062_v29  ;;  %10531 = vmatpush.bf16.msra.mxu3 %v16190_v27  ;;  %v17707_v29 = vld [vmem:[#allocation13 + $0x24] sm:$0xf]  ;;  %v15983_v27 = vld [vmem:[#allocation13 + $0x30] sm:$0xf0] }
 0x5d4   :  { %10544 = vmatpush.bf16.msrb.mxu0 %v16318_v18  ;;  %10557 = vmatpush.bf16.msrb.mxu1 %v16066_v11  ;;  %v16093_v18 = vld [vmem:[#allocation13 + $0x100] sm:$0xf]  ;;  %v17737_v11 = vld [vmem:[#allocation13 + $0x10c] sm:$0xf0]  ;;  %v15986_v56 = vor.u32 %v17707_v29, %v15983_v27  ;;  %v16165_v29 = vld [vmem:[#allocation13 + $0x188] sm:$0xf] }
 0x5d5   :  { %v16094_v5 = vor.u32 %v17737_v11, %v16093_v18  ;;  %v17754_v27 = vld [vmem:[#allocation13 + $0x194] sm:$0xf0]  ;;  %v16038_v18 = vor.u32 %v17722_v10, %v16037_v3  ;;  %v17796_v3 = vld [vmem:[#allocation13 + $0x2ec] sm:$0xf]  ;;  %v16343_v10 = vld [vmem:[#allocation13 + $0x2f8] sm:$0xf0] }
 0x5d6   :  { %v16166_v11 = vor.u32 %v17754_v27, %v16165_v29 }
 0x5d7   :  { %10519 = vmatpush.bf16.msra.mxu2 %v16046_v26  ;;  %10532 = vmatpush.bf16.msra.mxu3 %v16174_v19  ;;  %v17763_v26 = vld [vmem:[#allocation13 + $0x1e4] sm:$0xf]  ;;  %v16207_v19 = vld [vmem:[#allocation13 + $0x1f0] sm:$0xf0] }
 0x5d8   :  { %10545 = vmatpush.bf16.msrb.mxu0 %v16302_v30  ;;  %10558 = vmatpush.bf16.msrb.mxu1 %v16050_v53  ;;  %v16085_v30 = vld [vmem:[#allocation13 + $0xe8] sm:$0xf]  ;;  %v15966_v53 = vor.u32 %v17705_v24, %v15965_v35  ;;  %v16143_v24 = vld [vmem:[#allocation13 + $0x170] sm:$0xf0] }
 0x5db   :  { %10520 = vmatpush.bf16.msra.mxu2 %v16030_v14  ;;  %10533 = vmatpush.bf16.msra.mxu3 %v16158_v38  ;;  %v16210_v14 = vor.u32 %v17763_v26, %v16207_v19  ;;  %v16338_v38 = vor.u32 %v17795_v25, %v16335_v7  ;;  %v17743_v25 = vld [vmem:[#allocation13 + $0x144] sm:$0xf]  ;;  %v16127_v7 = vld [vmem:[#allocation13 + $0x150] sm:$0xf0] }
 0x5dc   :  { %10546 = vmatpush.bf16.msrb.mxu0 %v16286_v37  ;;  %10559 = vmatpush.bf16.msrb.mxu1 %v16034_v15  ;;  %v16086_v37 = vor.u32 %v17734_v4, %v16085_v30  ;;  %v16214_v15 = vor.u32 %v17766_v47, %v16213_v16  ;;  %v16022_v30 = vor.u32 %v17718_v44, %v16021_v33  ;;  %v16255_v4 = vld [vmem:[#allocation13 + $0x250] sm:$0xf0]  ;;  %v16005_v16 = vld [vmem:[#allocation13 + $0x48] sm:$0xf]  ;;  %v17714_v47 = vld [vmem:[#allocation13 + $0x54] sm:$0xf0] }
 0x5dd   :  { %9993 = vmatmul.bf16.vlgmr.msrb.gmra.mxu2 %v19828_v63  ;;  %10006 = vmatmul.bf16.vlgmr.msrb.gmra.mxu3 %v19830_v32  ;;  %v17760_v33 = vld [vmem:[#allocation13 + $0x1cc] sm:$0xf]  ;;  %v16199_v44 = vld [vmem:[#allocation13 + $0x1d8] sm:$0xf0] }
 0x5de   :  { %10019 = vmatmul.bf16.vlgmr.msra.gmra.mxu0 %v19828_v63  ;;  %10032 = vmatmul.bf16.vlgmr.msra.gmra.mxu1 %v19830_v32  ;;  %v15982_v63 = vor.u32 %v17709_v1, %v15981_v28  ;;  %v16110_v32 = vor.u32 %v17741_v54, %v16109_v62  ;;  %v17751_v28 = vld [vmem:[#allocation13 + $0x184] sm:$0xf]  ;;  %v16159_v1 = vld [vmem:[#allocation13 + $0x190] sm:$0xf0] }
 0x5df   :  { %10521 = vmatpush.bf16.msra.mxu2 %v16014_v39  ;;  %10534 = vmatpush.bf16.msra.mxu3 %v16142_v6  ;;  %v19842_v39 = vpack.c.bf16 %v19699_v45, %v19699_v45  ;;  %v19846_v6 = vpack.c.bf16 %v19732_v31, %v19732_v31  ;;  %v17787_v45 = vld [vmem:[#allocation13 + $0x2a4] sm:$0xf]  ;;  %v17726_v31 = vld [vmem:[#allocation13 + $0xb4] sm:$0xf0]  ;;  %v16287_v54 = vld [vmem:[#allocation13 + $0x290] sm:$0xf0]  ;;  %v16162_v35 = vor.u32 %v17751_v28, %v16159_v1 }
 0x5e0   :  { %10547 = vmatpush.bf16.msrb.mxu0 %v16270_v22  ;;  %10560 = vmatpush.bf16.msrb.mxu1 %v16018_v40  ;;  %v17755_v22 = vld [vmem:[#allocation13 + $0x1a4] sm:$0xf]  ;;  %v16175_v40 = vld [vmem:[#allocation13 + $0x1b0] sm:$0xf0]  ;;  %v17732_v28 = vld [vmem:[#allocation13 + $0xec] sm:$0xf] }
 0x5e1   :  { %v16178_v55 = vor.u32 %v17755_v22, %v16175_v40  ;;  %v17783_v62 = vld [vmem:[#allocation13 + $0x284] sm:$0xf]  ;;  %v16242_v22 = vor.u32 %v17771_v36, %v16239_v43  ;;  %v16095_v40 = vld [vmem:[#allocation13 + $0x110] sm:$0xf0]  ;;  %v16087_v1 = vld [vmem:[#allocation13 + $0xf8] sm:$0xf0] }
 0x5e2   :  { %v17720_v36 = vld [vmem:[#allocation13 + $0x8c] sm:$0xf]  ;;  %v16039_v43 = vld [vmem:[#allocation13 + $0x98] sm:$0xf0] }
 0x5e3   :  { %10522 = vmatpush.bf16.msra.mxu2 %v15998_v50  ;;  %10535 = vmatpush.bf16.msra.mxu3 %v16126_v9  ;;  %v17758_v50 = vld [vmem:[#allocation13 + $0x1b4] sm:$0xf0]  ;;  %v16306_v9 = vor.u32 %v17787_v45, %v16303_v59  ;;  %v15990_v45 = vor.u32 %v17710_v23, %v15989_v52  ;;  %v16118_v59 = vor.u32 %v17742_v58, %v16117_v13  ;;  %v17752_v52 = vld [vmem:[#allocation13 + $0x18c] sm:$0xf]  ;;  %v16167_v23 = vld [vmem:[#allocation13 + $0x198] sm:$0xf0] }
 0x5e4   :  { %10548 = vmatpush.bf16.msrb.mxu0 %v16254_v17  ;;  %10561 = vmatpush.bf16.msrb.mxu1 %v16002_v34  ;;  %v16054_v17 = vor.u32 %v17726_v31, %v16053_v60  ;;  %v16182_v34 = vor.u32 %v17758_v50, %v16181_v20  ;;  %v15973_v60 = vld [vmem:[#allocation13 + $0x8] sm:$0xf]  ;;  %v17706_v31 = vld [vmem:[#allocation13 + $0x14] sm:$0xf0]  ;;  %v17784_v13 = vld [vmem:[#allocation13 + $0x28c] sm:$0xf] }
 0x5e5   :  { %v16101_v20 = vld [vmem:[#allocation13 + $0x108] sm:$0xf]  ;;  %v17738_v50 = vld [vmem:[#allocation13 + $0x114] sm:$0xf0]  ;;  %v15974_v29 = vor.u32 %v17706_v31, %v15973_v60  ;;  %v16295_v58 = vld [vmem:[#allocation13 + $0x298] sm:$0xf0] }
 0x5e6   :  { %v16102_v27 = vor.u32 %v17738_v50, %v16101_v20  ;;  %v17748_v60 = vld [vmem:[#allocation13 + $0x16c] sm:$0xf]  ;;  %v16151_v31 = vld [vmem:[#allocation13 + $0x178] sm:$0xf0] }
 0x5e7   :  { %10523 = vmatpush.bf16.msra.mxu2 %v15982_v63  ;;  %10536 = vmatpush.bf16.msra.mxu3 %v16110_v32  ;;  %v16290_v63 = vor.u32 %v17783_v62, %v16287_v54  ;;  %v17747_v32 = vld [vmem:[#allocation13 + $0x164] sm:$0xf]  ;;  %v16215_v54 = vld [vmem:[#allocation13 + $0x1f8] sm:$0xf0]  ;;  %v17780_v20 = vld [vmem:[#allocation13 + $0x26c] sm:$0xf] }
 0x5e8   :  { %10549 = vmatpush.bf16.msrb.mxu0 %v16238_v0  ;;  %10562 = vmatpush.bf16.msrb.mxu1 %v15986_v56  ;;  %v17779_v0 = vld [vmem:[#allocation13 + $0x264] sm:$0xf]  ;;  %v16271_v56 = vld [vmem:[#allocation13 + $0x270] sm:$0xf0]  ;;  %v16146_v26 = vor.u32 %v17747_v32, %v16143_v24  ;;  %v16325_v32 = vld [vmem:[#allocation13 + $0x2c8] sm:$0xf] }
 0x5e9   :  { %v16274_v19 = vor.u32 %v17779_v0, %v16271_v56  ;;  %v17794_v24 = vld [vmem:[#allocation13 + $0x2d4] sm:$0xf0]  ;;  %v17728_v0 = vld [vmem:[#allocation13 + $0xcc] sm:$0xf]  ;;  %v16071_v56 = vld [vmem:[#allocation13 + $0xd8] sm:$0xf0] }
 0x5ea   :  { %v16279_v50 = vld [vmem:[#allocation13 + $0x278] sm:$0xf0] }
 0x5eb   :  { %10524 = vmatpush.bf16.msra.mxu2 %v15966_v53  ;;  %10537 = vmatpush.bf16.msra.mxu3 %v16094_v5  ;;  %v16150_v53 = vor.u32 %v17750_v41, %v16149_v48  ;;  %v17775_v5 = vld [vmem:[#allocation13 + $0x244] sm:$0xf]  ;;  %v17792_v48 = vld [vmem:[#allocation13 + $0x2cc] sm:$0xf]  ;;  %v16327_v41 = vld [vmem:[#allocation13 + $0x2d8] sm:$0xf0] }
 0x5ec   :  { %10550 = vmatpush.bf16.msrb.mxu0 %v16222_v42  ;;  %10563 = vmatpush.bf16.msrb.mxu1 %v15970_v21  ;;  %v16133_v42 = vld [vmem:[#allocation13 + $0x148] sm:$0xf]  ;;  %v17746_v21 = vld [vmem:[#allocation13 + $0x154] sm:$0xf0] }
 0x5ee   :  { %10525 = vmatmul.bf16.vlgmr.msra.gmra.mxu2 %v19842_v39  ;;  %10538 = vmatmul.bf16.vlgmr.msra.gmra.mxu3 %v19846_v6 }
 0x5ef   :  { %10569 = vmatpush.bf16.msrb.mxu2 %v16210_v14  ;;  %10582 = vmatpush.bf16.msrb.mxu3 %v16338_v38  ;;  %v16130_v14 = vor.u32 %v17743_v25, %v16127_v7  ;;  %v16258_v38 = vor.u32 %v17775_v5, %v16255_v4  ;;  %v16309_v25 = vld [vmem:[#allocation13 + $0x2a8] sm:$0xf]  ;;  %v17790_v7 = vld [vmem:[#allocation13 + $0x2b4] sm:$0xf0]  ;;  %v17724_v5 = vld [vmem:[#allocation13 + $0xac] sm:$0xf] }
 0x5f0   :  { %10595 = vmatpush.bf16.msra.mxu0 %v16086_v37  ;;  %10608 = vmatpush.bf16.msra.mxu1 %v16214_v15  ;;  %v16006_v37 = vor.u32 %v17714_v47, %v16005_v16  ;;  %v16134_v15 = vor.u32 %v17746_v21, %v16133_v42  ;;  %v16055_v4 = vld [vmem:[#allocation13 + $0xb8] sm:$0xf0]  ;;  %v17756_v16 = vld [vmem:[#allocation13 + $0x1ac] sm:$0xf] }
 0x5f1   :  { %10551 = vmatmul.bf16.vlgmr.msrb.gmra.mxu0 %v19850_v8  ;;  %10564 = vmatmul.bf16.vlgmr.msrb.gmra.mxu1 %v19842_v39  ;;  %v16183_v47 = vld [vmem:[#allocation13 + $0x1b8] sm:$0xf0]  ;;  %v17788_v42 = vld [vmem:[#allocation13 + $0x2ac] sm:$0xf] }
 0x5f2   :  { %v16311_v21 = vld [vmem:[#allocation13 + $0x2b8] sm:$0xf0] }
 0x5f3   :  { %10570 = vmatpush.bf16.msrb.mxu2 %v16194_v2  ;;  %10583 = vmatpush.bf16.msrb.mxu3 %v16322_v12  ;;  %v17735_v2 = vld [vmem:[#allocation13 + $0x104] sm:$0xf]  ;;  %v16114_v12 = vor.u32 %v17739_v49, %v16111_v46  ;;  %v16293_v49 = vld [vmem:[#allocation13 + $0x288] sm:$0xf]  ;;  %v17786_v46 = vld [vmem:[#allocation13 + $0x294] sm:$0xf0] }
 0x5f4   :  { %10596 = vmatpush.bf16.msra.mxu0 %v16070_v57  ;;  %10609 = vmatpush.bf16.msra.mxu1 %v16198_v51  ;;  %v17767_v57 = vld [vmem:[#allocation13 + $0x204] sm:$0xf]  ;;  %v16223_v51 = vld [vmem:[#allocation13 + $0x210] sm:$0xf0] }
 0x5f5   :  { %v16226_v62 = vor.u32 %v17767_v57, %v16223_v51  ;;  %v16170_v57 = vor.u32 %v17752_v52, %v16167_v23  ;;  %v16298_v51 = vor.u32 %v17784_v13, %v16295_v58 }
 0x5f7   :  { %10571 = vmatpush.bf16.msrb.mxu2 %v16178_v55  ;;  %10584 = vmatpush.bf16.msrb.mxu3 %v16306_v9  ;;  %v16341_v55 = vld [vmem:[#allocation13 + $0x2e8] sm:$0xf]  ;;  %v17798_v9 = vld [vmem:[#allocation13 + $0x2f4] sm:$0xf0] }
 0x5f8   :  { %10597 = vmatpush.bf16.msra.mxu0 %v16054_v17  ;;  %10610 = vmatpush.bf16.msra.mxu1 %v16182_v34  ;;  %v17764_v17 = vld [vmem:[#allocation13 + $0x1ec] sm:$0xf]  ;;  %v16098_v34 = vor.u32 %v17735_v2, %v16095_v40  ;;  %v16294_v2 = vor.u32 %v17786_v46, %v16293_v49  ;;  %v17782_v40 = vld [vmem:[#allocation13 + $0x274] sm:$0xf0] }
 0x5fb   :  { %10572 = vmatpush.bf16.msrb.mxu2 %v16162_v35  ;;  %10585 = vmatpush.bf16.msrb.mxu3 %v16290_v63  ;;  %v16342_v35 = vor.u32 %v17798_v9, %v16341_v55  ;;  %v16090_v63 = vor.u32 %v17732_v28, %v16087_v1  ;;  %v16261_v28 = vld [vmem:[#allocation13 + $0x248] sm:$0xf]  ;;  %v17778_v1 = vld [vmem:[#allocation13 + $0x254] sm:$0xf0] }
 0x5fc   :  { %10598 = vmatpush.bf16.msra.mxu0 %v16038_v18  ;;  %10611 = vmatpush.bf16.msra.mxu1 %v16166_v11  ;;  %v16218_v18 = vor.u32 %v17764_v17, %v16215_v54  ;;  %v16346_v11 = vor.u32 %v17796_v3, %v16343_v10  ;;  %v16154_v17 = vor.u32 %v17748_v60, %v16151_v31  ;;  %v16007_v54 = vld [vmem:[#allocation13 + $0x58] sm:$0xf0]  ;;  %v17744_v3 = vld [vmem:[#allocation13 + $0x14c] sm:$0xf] }
 0x5fd   :  { %v16135_v10 = vld [vmem:[#allocation13 + $0x158] sm:$0xf0] }
 0x5ff   :  { %10573 = vmatpush.bf16.msrb.mxu2 %v16146_v26  ;;  %10586 = vmatpush.bf16.msrb.mxu3 %v16274_v19  ;;  %v16326_v26 = vor.u32 %v17794_v24, %v16325_v32  ;;  %v16074_v19 = vor.u32 %v17728_v0, %v16071_v56  ;;  %v16245_v32 = vld [vmem:[#allocation13 + $0x228] sm:$0xf]  ;;  %v17774_v24 = vld [vmem:[#allocation13 + $0x234] sm:$0xf0]  ;;  %v17708_v0 = vld [vmem:[#allocation13 + $0x2c] sm:$0xf] }
 0x600   :  { %10599 = vmatpush.bf16.msra.mxu0 %v16022_v30  ;;  %10612 = vmatpush.bf16.msra.mxu1 %v16150_v53  ;;  %v16202_v30 = vor.u32 %v17760_v33, %v16199_v44  ;;  %v16330_v53 = vor.u32 %v17792_v48, %v16327_v41  ;;  %v15991_v56 = vld [vmem:[#allocation13 + $0x38] sm:$0xf0]  ;;  %v17740_v33 = vld [vmem:[#allocation13 + $0x12c] sm:$0xf] }
 0x601   :  { %v16119_v44 = vld [vmem:[#allocation13 + $0x138] sm:$0xf0]  ;;  %v17772_v48 = vld [vmem:[#allocation13 + $0x22c] sm:$0xf] }
 0x602   :  { %v16247_v41 = vld [vmem:[#allocation13 + $0x238] sm:$0xf0] }
 0x603   :  { %10574 = vmatpush.bf16.msrb.mxu2 %v16130_v14  ;;  %10587 = vmatpush.bf16.msrb.mxu3 %v16258_v38  ;;  %v16310_v14 = vor.u32 %v17790_v7, %v16309_v25  ;;  %v16058_v38 = vor.u32 %v17724_v5, %v16055_v4  ;;  %v16229_v25 = vld [vmem:[#allocation13 + $0x208] sm:$0xf]  ;;  %v17770_v7 = vld [vmem:[#allocation13 + $0x214] sm:$0xf0]  ;;  %v17704_v5 = vld [vmem:[#allocation13 + $0xc] sm:$0xf] }
 0x604   :  { %10600 = vmatpush.bf16.msra.mxu0 %v16006_v37  ;;  %10613 = vmatpush.bf16.msra.mxu1 %v16134_v15  ;;  %v16186_v37 = vor.u32 %v17756_v16, %v16183_v47  ;;  %v16314_v15 = vor.u32 %v17788_v42, %v16311_v21  ;;  %v15975_v4 = vld [vmem:[#allocation13 + $0x18] sm:$0xf0]  ;;  %v17736_v16 = vld [vmem:[#allocation13 + $0x10c] sm:$0xf] }
 0x605   :  { %v16103_v47 = vld [vmem:[#allocation13 + $0x118] sm:$0xf0]  ;;  %v17768_v42 = vld [vmem:[#allocation13 + $0x20c] sm:$0xf] }
 0x606   :  { %v16231_v21 = vld [vmem:[#allocation13 + $0x218] sm:$0xf0]  ;;  %v16106_v49 = vor.u32 %v17736_v16, %v16103_v47 }
 0x607   :  { %10575 = vmatpush.bf16.msrb.mxu2 %v16114_v12  ;;  %10588 = vmatpush.bf16.msrb.mxu3 %v16242_v22  ;;  %v16042_v12 = vor.u32 %v17720_v36, %v16039_v43  ;;  %v16277_v22 = vld [vmem:[#allocation13 + $0x268] sm:$0xf]  ;;  %v16234_v46 = vor.u32 %v17768_v42, %v16231_v21 }
 0x608   :  { %10601 = vmatpush.bf16.msra.mxu0 %v15990_v45  ;;  %10614 = vmatpush.bf16.msra.mxu1 %v16118_v59  ;;  %v17716_v45 = vld [vmem:[#allocation13 + $0x6c] sm:$0xf]  ;;  %v16023_v59 = vld [vmem:[#allocation13 + $0x78] sm:$0xf0]  ;;  %v16278_v55 = vor.u32 %v17782_v40, %v16277_v22 }
 0x609   :  { %v16026_v9 = vor.u32 %v17716_v45, %v16023_v59 }
 0x60b   :  { %10576 = vmatpush.bf16.msrb.mxu2 %v16098_v34  ;;  %10589 = vmatpush.bf16.msrb.mxu3 %v16226_v62  ;;  %v16282_v34 = vor.u32 %v17780_v20, %v16279_v50  ;;  %v17712_v62 = vld [vmem:[#allocation13 + $0x4c] sm:$0xf] }
 0x60c   :  { %10602 = vmatpush.bf16.msra.mxu0 %v15974_v29  ;;  %10615 = vmatpush.bf16.msra.mxu1 %v16102_v27  ;;  %v17776_v29 = vld [vmem:[#allocation13 + $0x24c] sm:$0xf]  ;;  %v16263_v27 = vld [vmem:[#allocation13 + $0x258] sm:$0xf0] }
 0x60e   :  { %10577 = vmatmul.bf16.vlgmr.msrb.gmra.mxu2 %v19846_v6  ;;  %10590 = vmatmul.bf16.vlgmr.msrb.gmra.mxu3 %v19850_v8 }
 0x60f   :  { %10621 = vmatpush.bf16.msra.mxu2 %v16342_v35  ;;  %10634 = vmatpush.bf16.msra.mxu3 %v16090_v63  ;;  %v16262_v35 = vor.u32 %v17778_v1, %v16261_v28  ;;  %v16010_v63 = vor.u32 %v17712_v62, %v16007_v54 }
 0x610   :  { %10647 = vmatpush.bf16.msrb.mxu0 %v16218_v18  ;;  %10660 = vmatpush.bf16.msrb.mxu1 %v16346_v11  ;;  %v16138_v18 = vor.u32 %v17744_v3, %v16135_v10  ;;  %v16266_v11 = vor.u32 %v17776_v29, %v16263_v27 }
 0x611   :  { %10603 = vmatmul.bf16.vlgmr.msra.gmra.mxu0 %v19842_v39  ;;  %10616 = vmatmul.bf16.vlgmr.msra.gmra.mxu1 %v19846_v6 }
 0x613   :  { %10622 = vmatpush.bf16.msra.mxu2 %v16326_v26  ;;  %10635 = vmatpush.bf16.msra.mxu3 %v16074_v19  ;;  %v16246_v26 = vor.u32 %v17774_v24, %v16245_v32  ;;  %v15994_v19 = vor.u32 %v17708_v0, %v15991_v56  ;;  %v10673_v0 = vld [vmem:[#allocation16] sm:$0xf] }
 0x614   :  { %10648 = vmatpush.bf16.msrb.mxu0 %v16202_v30  ;;  %10661 = vmatpush.bf16.msrb.mxu1 %v16330_v53  ;;  %v16122_v30 = vor.u32 %v17740_v33, %v16119_v44  ;;  %v16250_v53 = vor.u32 %v17772_v48, %v16247_v41  ;;  %v10676_v33 = vperm.slane %v10673_v0, 1  ;;  %v10675_v44 = vperm.slane %v10673_v0, 0 }
 0x617   :  { %10623 = vmatpush.bf16.msra.mxu2 %v16310_v14  ;;  %10636 = vmatpush.bf16.msra.mxu3 %v16058_v38  ;;  %v16230_v14 = vor.u32 %v17770_v7, %v16229_v25  ;;  %v15978_v38 = vor.u32 %v17704_v5, %v15975_v4 }
 0x618   :  { %10649 = vmatpush.bf16.msrb.mxu0 %v16186_v37  ;;  %10662 = vmatpush.bf16.msrb.mxu1 %v16314_v15 }
 0x61b   :  { %10624 = vmatpush.bf16.msra.mxu2 %v16294_v2  ;;  %10637 = vmatpush.bf16.msra.mxu3 %v16042_v12 }
 0x61c   :  { %10650 = vmatpush.bf16.msrb.mxu0 %v16170_v57  ;;  %10663 = vmatpush.bf16.msrb.mxu1 %v16298_v51 }
 0x61f   :  { %10625 = vmatpush.bf16.msra.mxu2 %v16278_v55  ;;  %10638 = vmatpush.bf16.msra.mxu3 %v16026_v9 }
 0x620   :  { %10651 = vmatpush.bf16.msrb.mxu0 %v16154_v17  ;;  %10664 = vmatpush.bf16.msrb.mxu1 %v16282_v34 }
 0x623   :  { %10626 = vmatpush.bf16.msra.mxu2 %v16262_v35  ;;  %10639 = vmatpush.bf16.msra.mxu3 %v16010_v63 }
 0x624   :  { %10652 = vmatpush.bf16.msrb.mxu0 %v16138_v18  ;;  %10665 = vmatpush.bf16.msrb.mxu1 %v16266_v11 }
 0x627   :  { %10627 = vmatpush.bf16.msra.mxu2 %v16246_v26  ;;  %10640 = vmatpush.bf16.msra.mxu3 %v15994_v19 }
 0x628   :  { %10653 = vmatpush.bf16.msrb.mxu0 %v16122_v30  ;;  %10666 = vmatpush.bf16.msrb.mxu1 %v16250_v53  ;;  %v10677_v53 = vperm.slane %v10673_v0, 2 }
 0x62b   :  { %10628 = vmatpush.bf16.msra.mxu2 %v16230_v14  ;;  %10641 = vmatpush.bf16.msra.mxu3 %v15978_v38 }
 0x62c   :  { %10654 = vmatpush.bf16.msrb.mxu0 %v16106_v49  ;;  %10667 = vmatpush.bf16.msrb.mxu1 %v16234_v46  ;;  %v10678_v46 = vperm.slane %v10673_v0, 3  ;;  %v16589_v0 = vld [vmem:[#allocation20 + $0x1e0] sm:$0xf] }
 0x62e   :  { %10629 = vmatmul.bf16.vlgmr.msra.gmra.mxu2 %v19850_v8  ;;  %10642 = vmatmul.bf16.vlgmr.msra.gmra.mxu3 %v19842_v39 }
 0x62f   :  { %10655 = vmatmul.bf16.vlgmr.msrb.gmra.mxu0 %v19846_v6  ;;  %10668 = vmatmul.bf16.vlgmr.msrb.gmra.mxu1 %v19850_v8 }
 0x64b   :  { %v9968_v37 = vpop.f32.mrf.mxu0  ;;  %v9981_v15 = vpop.f32.mrf.mxu1 }
 0x64c   :  { %v9982_v36 = vadd.f32 %v9981_v15, %v9968_v37 }
 0x650   :  { %v9942_v43 = vpop.f32.mrf.mxu2  ;;  %v9955_v52 = vpop.f32.mrf.mxu3 }
 0x651   :  { %v9956_v23 = vadd.f32 %v9955_v52, %v9942_v43 }
 0x653   :  { %v9970_v13 = vpop.f32.mrf.mxu0  ;;  %v9983_v58 = vpop.f32.mrf.mxu1 }
 0x658   :  { %v9944_v2 = vpop.f32.mrf.mxu2  ;;  %v9957_v12 = vpop.f32.mrf.mxu3 }
 0x65b   :  { %v10020_v22 = vpop.f32.mrf.mxu0  ;;  %v10033_v40 = vpop.f32.mrf.mxu1 }
 0x65c   :  { %v10034_v57 = vadd.f32 %v10033_v40, %v10020_v22 }
 0x660   :  { %v9994_v51 = vpop.f32.mrf.mxu2  ;;  %v10007_v45 = vpop.f32.mrf.mxu3 }
 0x661   :  { %v10008_v39 = vadd.f32 %v10007_v45, %v9994_v51 }
 0x663   :  { %v10022_v59 = vpop.f32.mrf.mxu0  ;;  %v10035_v6 = vpop.f32.mrf.mxu1 }
 0x664   :  { %v18471_v6 = vmov 512.0  }
 0x665   :  { %17977 = vrcp.f32 %v18471_v6 }
 0x668   :  { %v9996_v60 = vpop.f32.mrf.mxu2  ;;  %v10009_v8 = vpop.f32.mrf.mxu3 }
 0x66b   :  { %v19880_v60 = vpop.eup %17977 }
 0x66c   :  { %v10709_v8 = vmul.f32 512.0, %v19880_v60  ;;  %vm10713_vm15 = vweird.f32 %v19880_v60 }
 0x66e   :  { %v10552_v31 = vpop.f32.mrf.mxu0  ;;  %v10565_v20 = vpop.f32.mrf.mxu1 }
 0x66f   :  { %v10566_v18 = vadd.f32 %v10565_v20, %v9982_v36  ;;  %v16405_v20 = vld [vmem:[#allocation20 + $0x70] sm:$0xf] }
 0x671   :  { %v10526_v50 = vpop.f32.mrf.mxu2  ;;  %v10539_v55 = vpop.f32.mrf.mxu3 }
 0x672   :  { %v10527_v9 = vadd.f32 %v10526_v50, %v9956_v23  ;;  %v17878_v50 = vld [vmem:[#allocation20 + $0x74] sm:$0xf0] }
 0x674   :  { %v10540_v28 = vadd.f32 %v10539_v55, %v10527_v9  ;;  %v16469_v55 = vld [vmem:[#allocation20 + $0xf0] sm:$0xf]  ;;  %v16406_v9 = vor.u32 %v17878_v50, %v16405_v20 }
 0x676   :  { %v10554_v1 = vpop.f32.mrf.mxu0  ;;  %v10567_v17 = vpop.f32.mrf.mxu1  ;;  %v10553_v34 = vadd.f32 %v10552_v31, %v10540_v28  ;;  %v10710_v31 = vsub.f32 1.0, %v10709_v8  ;;  %v17894_v28 = vld [vmem:[#allocation20 + $0xf4] sm:$0xf0]  ;;  %11171 = vmatpush.bf16.msrb.mxu2 %v16406_v9 }
 0x677   :  { %v16533_v1 = vld [vmem:[#allocation20 + $0x170] sm:$0xf]  ;;  %v17910_v17 = vld [vmem:[#allocation20 + $0x174] sm:$0xf0] }
 0x678   :  { %v10683_v25 = vadd.f32 %v10675_v44, %v10553_v34  ;;  %v16470_v34 = vor.u32 %v17894_v28, %v16469_v55  ;;  %v16389_v44 = vld [vmem:[#allocation20 + $0x50] sm:$0xf] }
 0x679   :  { %v10528_v62 = vpop.f32.mrf.mxu2  ;;  %v10541_v54 = vpop.f32.mrf.mxu3 }
 0x67a   :  { %v10691_v16 = vmul.f32 0.01, %v10683_v25  ;;  %vm10687_vm12 = vcmp.gt.f32.partialorder %v10683_v25, 0.0  ;;  %v16534_v62 = vor.u32 %v17910_v17, %v16533_v1  ;;  %v16597_v54 = vld [vmem:[#allocation20 + $0x1f0] sm:$0xf]  ;;  %11184 = vmatpush.bf16.msrb.mxu3 %v16470_v34 }
 0x67b   :  { %v16373_v1 = vld [vmem:[#allocation20 + $0x30] sm:$0xf]  ;;  %v17870_v17 = vld [vmem:[#allocation20 + $0x34] sm:$0xf0] }
 0x67c   :  { %v19866_v43 = vsel %vm10687_vm12, %v10683_v25, %v10691_v16  ;;  %11197 = vmatpush.bf16.msra.mxu0 %v16534_v62  ;;  %v16517_v25 = vld [vmem:[#allocation20 + $0x150] sm:$0xf]  ;;  %v16374_v62 = vor.u32 %v17870_v17, %v16373_v1  ;;  %v16599_v1 = vld [vmem:[#allocation20 + $0x1f8] sm:$0xf0]  ;;  %v17875_v17 = vld [vmem:[#allocation20 + $0x64] sm:$0xf] }
 0x67d   :  { %v10699_v12 = vsel %vm9395_vm6, %v19866_v43, 0.0  ;;  %v16437_v34 = vld [vmem:[#allocation20 + $0xb0] sm:$0xf] }
 0x68e   :  { %v10604_v3 = vpop.f32.mrf.mxu0  ;;  %v10617_v10 = vpop.f32.mrf.mxu1 }
 0x68f   :  { %v10605_v48 = vadd.f32 %v10604_v3, %v10008_v39  ;;  %v17926_v3 = vld [vmem:[#allocation20 + $0x1f4] sm:$0xf0] }
 0x691   :  { %v10578_v29 = vpop.f32.mrf.mxu2  ;;  %v10591_v27 = vpop.f32.mrf.mxu3  ;;  %v10618_v7 = vadd.f32 %v10617_v10, %v10605_v48  ;;  %v16397_v10 = vld [vmem:[#allocation20 + $0x60] sm:$0xf]  ;;  %v17874_v48 = vld [vmem:[#allocation20 + $0x54] sm:$0xf0] }
 0x692   :  { %v10579_v11 = vadd.f32 %v10578_v29, %v10566_v18  ;;  %v16598_v29 = vor.u32 %v17926_v3, %v16597_v54  ;;  %v16525_v18 = vld [vmem:[#allocation20 + $0x160] sm:$0xf]  ;;  %v17886_v54 = vld [vmem:[#allocation20 + $0xb4] sm:$0xf0]  ;;  %v16501_v3 = vld [vmem:[#allocation20 + $0x130] sm:$0xf] }
 0x694   :  { %v10592_v56 = vadd.f32 %v10591_v27, %v10579_v11  ;;  %v17876_v27 = vld [vmem:[#allocation20 + $0x64] sm:$0xf0]  ;;  %11210 = vmatpush.bf16.msra.mxu1 %v16598_v29  ;;  %v16438_v29 = vor.u32 %v17886_v54, %v16437_v34  ;;  %v16399_v34 = vld [vmem:[#allocation20 + $0x68] sm:$0xf0] }
 0x695   :  { %v17908_v11 = vld [vmem:[#allocation20 + $0x164] sm:$0xf0]  ;;  %v16402_v54 = vor.u32 %v17875_v17, %v16399_v34 }
 0x696   :  { %v10606_v35 = vpop.f32.mrf.mxu0  ;;  %v10619_v63 = vpop.f32.mrf.mxu1  ;;  %v10684_v41 = vadd.f32 %v10676_v33, %v10592_v56  ;;  %v16526_v56 = vor.u32 %v17908_v11, %v16525_v18  ;;  %v17924_v33 = vld [vmem:[#allocation20 + $0x1e4] sm:$0xf0]  ;;  %v16429_v11 = vld [vmem:[#allocation20 + $0xa0] sm:$0xf] }
 0x697   :  { %v16461_v35 = vld [vmem:[#allocation20 + $0xe0] sm:$0xf]  ;;  %v17892_v63 = vld [vmem:[#allocation20 + $0xe4] sm:$0xf0] }
 0x698   :  { %v10692_v30 = vmul.f32 0.01, %v10684_v41  ;;  %vm10688_vm11 = vcmp.gt.f32.partialorder %v10684_v41, 0.0  ;;  %11198 = vmatpush.bf16.msra.mxu0 %v16526_v56  ;;  %v17868_v18 = vld [vmem:[#allocation20 + $0x24] sm:$0xf0] }
 0x699   :  { %v10580_v32 = vpop.f32.mrf.mxu2  ;;  %v10593_v24 = vpop.f32.mrf.mxu3  ;;  %v17884_v56 = vld [vmem:[#allocation20 + $0xa4] sm:$0xf0] }
 0x69a   :  { %v19864_v37 = vsel %vm10688_vm11, %v10684_v41, %v10692_v30  ;;  %v16398_v32 = vor.u32 %v17876_v27, %v16397_v10  ;;  %v16462_v24 = vor.u32 %v17892_v63, %v16461_v35  ;;  %v16590_v41 = vor.u32 %v17924_v33, %v16589_v0  ;;  %v17906_v30 = vld [vmem:[#allocation20 + $0x154] sm:$0xf0]  ;;  %v16565_v35 = vld [vmem:[#allocation20 + $0x1b0] sm:$0xf]  ;;  %v16493_v33 = vld [vmem:[#allocation20 + $0x120] sm:$0xf] }
 0x69b   :  { %v10700_v52 = vsel %vm9395_vm6, %v19864_v37, 0.0  ;;  %v17902_v10 = vld [vmem:[#allocation20 + $0x134] sm:$0xf0] }
 0x69c   :  { %11172 = vmatpush.bf16.msrb.mxu2 %v16398_v32  ;;  %11185 = vmatpush.bf16.msrb.mxu3 %v16462_v24  ;;  %v16502_v27 = vor.u32 %v17902_v10, %v16501_v3  ;;  %v17918_v63 = vld [vmem:[#allocation20 + $0x1b4] sm:$0xf0]  ;;  %v16365_v24 = vld [vmem:[#allocation20 + $0x20] sm:$0xf]  ;;  %v17891_v3 = vld [vmem:[#allocation20 + $0xe4] sm:$0xf] }
 0x69d   :  { %11211 = vmatpush.bf16.msra.mxu1 %v16590_v41  ;;  %v16566_v32 = vor.u32 %v17918_v63, %v16565_v35  ;;  %v16366_v0 = vor.u32 %v17868_v18, %v16365_v24  ;;  %v16463_v10 = vld [vmem:[#allocation20 + $0xe8] sm:$0xf0]  ;;  %v17923_v63 = vld [vmem:[#allocation20 + $0x1e4] sm:$0xf] }
 0x69e   :  { %v16527_v35 = vld [vmem:[#allocation20 + $0x168] sm:$0xf0] }
 0x6ac   :  { %v10656_v26 = vpop.f32.mrf.mxu0  ;;  %v10669_v19 = vpop.f32.mrf.mxu1 }
 0x6b1   :  { %v10630_v5 = vpop.f32.mrf.mxu2  ;;  %v10643_v4 = vpop.f32.mrf.mxu3 }
 0x6b2   :  { %v10631_v47 = vadd.f32 %v10630_v5, %v10618_v7  ;;  %v10644_v42 = vadd.f32 %v10643_v4, %v10034_v57  ;;  %v10701_v57 = vadd.f32 %v10700_v52, %v10699_v12  ;;  %v16390_v7 = vor.u32 %v17874_v48, %v16389_v44  ;;  %v17922_v5 = vld [vmem:[#allocation20 + $0x1d4] sm:$0xf0]  ;;  %v17920_v52 = vld [vmem:[#allocation20 + $0x1c4] sm:$0xf0] }
 0x6b3   :  { %v10711_v4 = vmul.f32 %v19880_v60, %v10710_v31  ;;  %v17900_v44 = vld [vmem:[#allocation20 + $0x124] sm:$0xf0]  ;;  %v16430_v48 = vor.u32 %v17884_v56, %v16429_v11  ;;  %v17873_v11 = vld [vmem:[#allocation20 + $0x54] sm:$0xf] }
 0x6b4   :  { %v10685_v21 = vadd.f32 %v10677_v53, %v10631_v47  ;;  %v10657_v14 = vadd.f32 %v10656_v26, %v10644_v42  ;;  %v10658_v38 = vpop.f32.mrf.mxu0  ;;  %v10671_v49 = vpop.f32.mrf.mxu1  ;;  %v16453_v26 = vld [vmem:[#allocation20 + $0xd0] sm:$0xf]  ;;  %v16518_v47 = vor.u32 %v17906_v30, %v16517_v25  ;;  %v16381_v42 = vld [vmem:[#allocation20 + $0x40] sm:$0xf]  ;;  %11173 = vmatpush.bf16.msrb.mxu2 %v16390_v7  ;;  %v16494_v41 = vor.u32 %v17900_v44, %v16493_v33  ;;  %v17866_v30 = vld [vmem:[#allocation20 + $0x14] sm:$0xf0] }
 0x6b5   :  { %v16581_v53 = vld [vmem:[#allocation20 + $0x1d0] sm:$0xf]  ;;  %v17888_v49 = vld [vmem:[#allocation20 + $0xc4] sm:$0xf0]  ;;  %v17889_v56 = vld [vmem:[#allocation20 + $0xd4] sm:$0xf] }
 0x6b6   :  { %v10693_v15 = vmul.f32 0.01, %v10685_v21  ;;  %v10670_v36 = vadd.f32 %v10669_v19, %v10657_v14  ;;  %vm10689_vm13 = vcmp.gt.f32.partialorder %v10685_v21, 0.0  ;;  %v17890_v19 = vld [vmem:[#allocation20 + $0xd4] sm:$0xf0]  ;;  %v16582_v38 = vor.u32 %v17922_v5, %v16581_v53  ;;  %11199 = vmatpush.bf16.msra.mxu0 %v16518_v47 }
 0x6b7   :  { %v16454_v16 = vor.u32 %v17890_v19, %v16453_v26  ;;  %v16445_v14 = vld [vmem:[#allocation20 + $0xc0] sm:$0xf]  ;;  %v17916_v19 = vld [vmem:[#allocation20 + $0x1a4] sm:$0xf0]  ;;  %v16357_v7 = vld [vmem:[#allocation20 + $0x10] sm:$0xf] }
 0x6b8   :  { %v10686_v23 = vadd.f32 %v10678_v46, %v10670_v36  ;;  %v19870_v13 = vsel %vm10689_vm13, %v10685_v21, %v10693_v15  ;;  %v17872_v21 = vld [vmem:[#allocation20 + $0x44] sm:$0xf0]  ;;  %v16509_v46 = vld [vmem:[#allocation20 + $0x140] sm:$0xf]  ;;  %11212 = vmatpush.bf16.msra.mxu1 %v16582_v38  ;;  %v16421_v53 = vld [vmem:[#allocation20 + $0x90] sm:$0xf]  ;;  %v16358_v5 = vor.u32 %v17866_v30, %v16357_v7 }
 0x6b9   :  { %v10632_v58 = vpop.f32.mrf.mxu2  ;;  %v10645_v2 = vpop.f32.mrf.mxu3  ;;  %v10702_v22 = vsel %vm9395_vm6, %v19870_v13, 0.0  ;;  %v17904_v15 = vld [vmem:[#allocation20 + $0x144] sm:$0xf0]  ;;  %v16573_v36 = vld [vmem:[#allocation20 + $0x1c0] sm:$0xf]  ;;  %11186 = vmatpush.bf16.msrb.mxu3 %v16454_v16 }
 0x6ba   :  { %vm10690_vm14 = vcmp.gt.f32.partialorder %v10686_v23, 0.0  ;;  %v10694_v40 = vmul.f32 0.01, %v10686_v23  ;;  %v10703_v45 = vadd.f32 %v10702_v22, %v10701_v57  ;;  %v10712_v58 = vadd.f32 %v19880_v60, %v10711_v4  ;;  %v16557_v26 = vld [vmem:[#allocation20 + $0x1a0] sm:$0xf] }
 0x6bb   :  { %v16446_v2 = vor.u32 %v17888_v49, %v16445_v14  ;;  %v16510_v12 = vor.u32 %v17904_v15, %v16509_v46  ;;  %v16574_v22 = vor.u32 %v17920_v52, %v16573_v36  ;;  %v16558_v25 = vor.u32 %v17916_v19, %v16557_v26  ;;  %v17882_v4 = vld [vmem:[#allocation20 + $0x94] sm:$0xf0]  ;;  %v16485_v16 = vld [vmem:[#allocation20 + $0x110] sm:$0xf]  ;;  %v16349_v46 = vld [vmem:[#allocation20] sm:$0xf] }
 0x6bc   :  { %v19876_v51 = vsel %vm10690_vm14, %v10686_v23, %v10694_v40  ;;  %v16382_v23 = vor.u32 %v17872_v21, %v16381_v42  ;;  %v19887_v40 = vsel %vm10713_vm15, %v19880_v60, %v10712_v58  ;;  %v17898_v47 = vld [vmem:[#allocation20 + $0x114] sm:$0xf0]  ;;  %v16422_v42 = vor.u32 %v17882_v4, %v16421_v53  ;;  %v16549_v14 = vld [vmem:[#allocation20 + $0x190] sm:$0xf]  ;;  %v17864_v15 = vld [vmem:[#allocation20 + $0x4] sm:$0xf0] }
 0x6bd   :  { %v10704_v39 = vsel %vm9395_vm6, %v19876_v51, 0.0  ;;  %11187 = vmatpush.bf16.msrb.mxu3 %v16446_v2  ;;  %11200 = vmatpush.bf16.msra.mxu0 %v16510_v12  ;;  %v16486_v21 = vor.u32 %v17898_v47, %v16485_v16  ;;  %v17914_v38 = vld [vmem:[#allocation20 + $0x194] sm:$0xf0]  ;;  %v16413_v36 = vld [vmem:[#allocation20 + $0x80] sm:$0xf]  ;;  %v16350_v52 = vor.u32 %v17864_v15, %v16349_v46 }
 0x6be   :  { %v10705_v59 = vadd.f32 %v10704_v39, %v10703_v45  ;;  %11174 = vmatpush.bf16.msrb.mxu2 %v16382_v23  ;;  %11213 = vmatpush.bf16.msra.mxu1 %v16574_v22  ;;  %v16550_v49 = vor.u32 %v17914_v38, %v16549_v14  ;;  %v17880_v23 = vld [vmem:[#allocation20 + $0x84] sm:$0xf0]  ;;  %v16477_v58 = vld [vmem:[#allocation20 + $0x100] sm:$0xf]  ;;  %v16455_v44 = vld [vmem:[#allocation20 + $0xd8] sm:$0xf0] }
 0x6bf   :  { %v17896_v2 = vld [vmem:[#allocation20 + $0x104] sm:$0xf0]  ;;  %v16414_v12 = vor.u32 %v17880_v23, %v16413_v36  ;;  %v16458_v26 = vor.u32 %v17889_v56, %v16455_v44  ;;  %v16583_v7 = vld [vmem:[#allocation20 + $0x1d8] sm:$0xf0]  ;;  %v17871_v30 = vld [vmem:[#allocation20 + $0x44] sm:$0xf] }
 0x6c0   :  { %10706 = vadd.xlane.f32.xlu1 %v10705_v59  ;;  %v16478_v22 = vor.u32 %v17896_v2, %v16477_v58  ;;  %v17887_v4 = vld [vmem:[#allocation20 + $0xc4] sm:$0xf]  ;;  %v16447_v16 = vld [vmem:[#allocation20 + $0xc8] sm:$0xf0]  ;;  %v17869_v36 = vld [vmem:[#allocation20 + $0x34] sm:$0xf] }
 0x6c1   :  { %11188 = vmatpush.bf16.msrb.mxu3 %v16438_v29  ;;  %11201 = vmatpush.bf16.msra.mxu0 %v16502_v27  ;;  %v17907_v29 = vld [vmem:[#allocation20 + $0x164] sm:$0xf]  ;;  %v16466_v27 = vor.u32 %v17891_v3, %v16463_v10  ;;  %v16450_v38 = vor.u32 %v17887_v4, %v16447_v16  ;;  %v17885_v58 = vld [vmem:[#allocation20 + $0xb4] sm:$0xf]  ;;  %v16439_v2 = vld [vmem:[#allocation20 + $0xb8] sm:$0xf0] }
 0x6c2   :  { %11175 = vmatpush.bf16.msrb.mxu2 %v16374_v62  ;;  %11214 = vmatpush.bf16.msra.mxu1 %v16566_v32  ;;  %v16591_v32 = vld [vmem:[#allocation20 + $0x1e8] sm:$0xf0]  ;;  %v16530_v24 = vor.u32 %v17907_v29, %v16527_v35  ;;  %v17903_v47 = vld [vmem:[#allocation20 + $0x144] sm:$0xf]  ;;  %v17865_v10 = vld [vmem:[#allocation20 + $0x14] sm:$0xf] }
 0x6c3   :  { %v16594_v18 = vor.u32 %v17923_v63, %v16591_v32  ;;  %v17881_v29 = vld [vmem:[#allocation20 + $0x94] sm:$0xf]  ;;  %v16423_v35 = vld [vmem:[#allocation20 + $0x98] sm:$0xf0]  ;;  %v17863_v56 = vld [vmem:[#allocation20 + $0x4] sm:$0xf] }
 0x6c4   :  { %v17897_v63 = vld [vmem:[#allocation20 + $0x114] sm:$0xf]  ;;  %v16487_v32 = vld [vmem:[#allocation20 + $0x118] sm:$0xf0]  ;;  %v16351_v44 = vld [vmem:[#allocation20 + $0x8] sm:$0xf0] }
 0x6c5   :  { %11189 = vmatpush.bf16.msrb.mxu3 %v16430_v48  ;;  %11202 = vmatpush.bf16.msra.mxu0 %v16494_v41  ;;  %v17905_v48 = vld [vmem:[#allocation20 + $0x154] sm:$0xf]  ;;  %v16519_v41 = vld [vmem:[#allocation20 + $0x158] sm:$0xf0] }
 0x6c6   :  { %11176 = vmatpush.bf16.msrb.mxu2 %v16366_v0  ;;  %11215 = vmatpush.bf16.msra.mxu1 %v16558_v25  ;;  %v16391_v0 = vld [vmem:[#allocation20 + $0x58] sm:$0xf0]  ;;  %v16522_v19 = vor.u32 %v17905_v48, %v16519_v41  ;;  %v17921_v25 = vld [vmem:[#allocation20 + $0x1d4] sm:$0xf]  ;;  %v17879_v48 = vld [vmem:[#allocation20 + $0x84] sm:$0xf] }
 0x6c7   :  { %v16394_v33 = vor.u32 %v17873_v11, %v16391_v0  ;;  %v16586_v53 = vor.u32 %v17921_v25, %v16583_v7  ;;  %v16426_v0 = vor.u32 %v17881_v29, %v16423_v35  ;;  %v16415_v41 = vld [vmem:[#allocation20 + $0x88] sm:$0xf0]  ;;  %v17911_v7 = vld [vmem:[#allocation20 + $0x184] sm:$0xf] }
 0x6c8   :  { %v16479_v25 = vld [vmem:[#allocation20 + $0x108] sm:$0xf0]  ;;  %v16418_v4 = vor.u32 %v17879_v48, %v16415_v41 }
 0x6c9   :  { %11190 = vmatpush.bf16.msrb.mxu3 %v16422_v42  ;;  %11203 = vmatpush.bf16.msra.mxu0 %v16486_v21  ;;  %v16511_v42 = vld [vmem:[#allocation20 + $0x148] sm:$0xf0]  ;;  %v17919_v21 = vld [vmem:[#allocation20 + $0x1c4] sm:$0xf] }
 0x6ca   :  { %11177 = vmatpush.bf16.msrb.mxu2 %v16358_v5  ;;  %11216 = vmatpush.bf16.msra.mxu1 %v16550_v49  ;;  %v16383_v5 = vld [vmem:[#allocation20 + $0x48] sm:$0xf0]  ;;  %v16514_v46 = vor.u32 %v17903_v47, %v16511_v42 }
 0x6cb   :  { %v16386_v14 = vor.u32 %v17871_v30, %v16383_v5  ;;  %v16575_v49 = vld [vmem:[#allocation20 + $0x1c8] sm:$0xf0]  ;;  %v16354_v5 = vor.u32 %v17863_v56, %v16351_v44 }
 0x6cc   :  { %v16578_v15 = vor.u32 %v17919_v21, %v16575_v49  ;;  %v16543_v30 = vld [vmem:[#allocation20 + $0x188] sm:$0xf0] }
 0x6cd   :  { %11191 = vmatpush.bf16.msrb.mxu3 %v16414_v12  ;;  %11204 = vmatpush.bf16.msra.mxu0 %v16478_v22  ;;  %v17901_v12 = vld [vmem:[#allocation20 + $0x134] sm:$0xf]  ;;  %v16546_v42 = vor.u32 %v17911_v7, %v16543_v30 }
 0x6ce   :  { %11178 = vmatpush.bf16.msrb.mxu2 %v16350_v52  ;;  %v16375_v52 = vld [vmem:[#allocation20 + $0x38] sm:$0xf0] }
 0x6cf   :  { %v16378_v23 = vor.u32 %v17869_v36, %v16375_v52 }
 0x733   :  { %v10707_v57 = vpop.xlane.xlu1 %10706 }
 0x734   :  { %v10715_v45 = vmul.f32 %v19887_v40, %v10707_v57  ;;  %v16541_v57 = vld [vmem:[#allocation20 + $0x180] sm:$0xf] }
 0x736   :  { %v19891_v39 = vsub.f32 %v19866_v43, %v10715_v45  ;;  %v19894_v59 = vsub.f32 %v19864_v37, %v10715_v45  ;;  %v19897_v6 = vsub.f32 %v19870_v13, %v10715_v45  ;;  %v19900_v8 = vsub.f32 %v19876_v51, %v10715_v45  ;;  %v17912_v45 = vld [vmem:[#allocation20 + $0x184] sm:$0xf0] }
 0x738   :  { %v10720_v60 = vmul.f32 %v19891_v39, %v19891_v39  ;;  %v10721_v31 = vmul.f32 %v19894_v59, %v19894_v59  ;;  %v10722_v20 = vmul.f32 %v19897_v6, %v19897_v6  ;;  %v10723_v43 = vmul.f32 %v19900_v8, %v19900_v8 }
 0x73a   :  { %v10724_v37 = vsel %vm9395_vm6, %v10720_v60, 0.0  ;;  %v10725_v13 = vsel %vm9395_vm6, %v10721_v31, 0.0  ;;  %v10727_v51 = vsel %vm9395_vm6, %v10722_v20, 0.0  ;;  %v10729_v9 = vsel %vm9395_vm6, %v10723_v43, 0.0  ;;  %v17877_v60 = vld [vmem:[#allocation20 + $0x74] sm:$0xf] }
 0x73b   :  { %v10726_v50 = vadd.f32 %v10725_v13, %v10724_v37  ;;  %v16542_v31 = vor.u32 %v17912_v45, %v16541_v57  ;;  %v16407_v20 = vld [vmem:[#allocation20 + $0x78] sm:$0xf0]  ;;  %v17893_v43 = vld [vmem:[#allocation20 + $0xf4] sm:$0xf]  ;;  %v16442_v57 = vor.u32 %v17885_v58, %v16439_v2 }
 0x73c   :  { %v16471_v37 = vld [vmem:[#allocation20 + $0xf8] sm:$0xf0]  ;;  %v16410_v13 = vor.u32 %v17877_v60, %v16407_v20  ;;  %v17917_v60 = vld [vmem:[#allocation20 + $0x1b4] sm:$0xf] }
 0x73d   :  { %v10728_v55 = vadd.f32 %v10727_v51, %v10726_v50  ;;  %v16474_v50 = vor.u32 %v17893_v43, %v16471_v37  ;;  %v17909_v51 = vld [vmem:[#allocation20 + $0x174] sm:$0xf]  ;;  %11217 = vmatpush.bf16.msra.mxu1 %v16542_v31  ;;  %v16503_v45 = vld [vmem:[#allocation20 + $0x138] sm:$0xf0] }
 0x73e   :  { %11223 = vmatpush.bf16.msra.mxu2 %v16410_v13  ;;  %v16567_v31 = vld [vmem:[#allocation20 + $0x1b8] sm:$0xf0]  ;;  %v16506_v43 = vor.u32 %v17901_v12, %v16503_v45  ;;  %v17867_v13 = vld [vmem:[#allocation20 + $0x24] sm:$0xf] }
 0x73f   :  { %v10730_v28 = vadd.f32 %v10729_v9, %v10728_v55  ;;  %v16535_v55 = vld [vmem:[#allocation20 + $0x178] sm:$0xf0]  ;;  %v17925_v9 = vld [vmem:[#allocation20 + $0x1f4] sm:$0xf]  ;;  %11236 = vmatpush.bf16.msra.mxu3 %v16474_v50  ;;  %v16570_v37 = vor.u32 %v17917_v60, %v16567_v31  ;;  %v16367_v50 = vld [vmem:[#allocation20 + $0x28] sm:$0xf0] }
 0x740   :  { %v16602_v62 = vor.u32 %v17925_v9, %v16599_v1  ;;  %v17899_v9 = vld [vmem:[#allocation20 + $0x124] sm:$0xf]  ;;  %v16370_v17 = vor.u32 %v17867_v13, %v16367_v50 }
 0x741   :  { %10731 = vadd.xlane.f32.xlu1 %v10730_v28  ;;  %v16538_v28 = vor.u32 %v17909_v51, %v16535_v55  ;;  %v17883_v51 = vld [vmem:[#allocation20 + $0xa4] sm:$0xf]  ;;  %v16431_v55 = vld [vmem:[#allocation20 + $0xa8] sm:$0xf0] }
 0x742   :  { %11262 = vmatpush.bf16.msrb.mxu1 %v16602_v62  ;;  %11224 = vmatpush.bf16.msra.mxu2 %v16402_v54  ;;  %v16434_v34 = vor.u32 %v17883_v51, %v16431_v55  ;;  %v17915_v62 = vld [vmem:[#allocation20 + $0x1a4] sm:$0xf]  ;;  %v16559_v54 = vld [vmem:[#allocation20 + $0x1a8] sm:$0xf0] }
 0x743   :  { %11249 = vmatpush.bf16.msrb.mxu0 %v16538_v28  ;;  %11237 = vmatpush.bf16.msra.mxu3 %v16466_v27  ;;  %v16495_v28 = vld [vmem:[#allocation20 + $0x128] sm:$0xf0]  ;;  %v16562_v27 = vor.u32 %v17915_v62, %v16559_v54 }
 0x744   :  { %v16498_v3 = vor.u32 %v17899_v9, %v16495_v28 }
 0x746   :  { %11263 = vmatpush.bf16.msrb.mxu1 %v16594_v18  ;;  %11225 = vmatpush.bf16.msra.mxu2 %v16394_v33  ;;  %v16551_v18 = vld [vmem:[#allocation20 + $0x198] sm:$0xf0]  ;;  %v16490_v33 = vor.u32 %v17897_v63, %v16487_v32 }
 0x747   :  { %11250 = vmatpush.bf16.msrb.mxu0 %v16530_v24  ;;  %11238 = vmatpush.bf16.msra.mxu3 %v16458_v26  ;;  %v17913_v24 = vld [vmem:[#allocation20 + $0x194] sm:$0xf] }
 0x748   :  { %v16554_v26 = vor.u32 %v17913_v24, %v16551_v18 }
 0x74a   :  { %11264 = vmatpush.bf16.msrb.mxu1 %v16586_v53  ;;  %11226 = vmatpush.bf16.msra.mxu2 %v16386_v14 }
 0x74b   :  { %11251 = vmatpush.bf16.msrb.mxu0 %v16522_v19  ;;  %11239 = vmatpush.bf16.msra.mxu3 %v16450_v38  ;;  %v17895_v19 = vld [vmem:[#allocation20 + $0x104] sm:$0xf]  ;;  %v10749_v38 = vld [vmem:[#allocation17] sm:$0xf] }
 0x74c   :  { %v16482_v47 = vor.u32 %v17895_v19, %v16479_v25  ;;  %v10751_v36 = vperm.slane %v10749_v38, 0  ;;  %v10753_v58 = vperm.slane %v10749_v38, 2  ;;  %v10754_v2 = vperm.slane %v10749_v38, 3 }
 0x74e   :  { %11265 = vmatpush.bf16.msrb.mxu1 %v16578_v15  ;;  %11227 = vmatpush.bf16.msra.mxu2 %v16378_v23  ;;  %v10752_v23 = vperm.slane %v10749_v38, 1  ;;  %v17934_v38 = vld [vmem:[#allocation26 + $0x38] sm:$0xff] }
 0x74f   :  { %11252 = vmatpush.bf16.msrb.mxu0 %v16514_v46  ;;  %11240 = vmatpush.bf16.msra.mxu3 %v16442_v57  ;;  %v10763_v46 = vld [vmem:[#allocation19] sm:$0xf] }
 0x750   :  { %v10765_v52 = vperm.slane %v10763_v46, 0  ;;  %v10767_v57 = vperm.slane %v10763_v46, 2  ;;  %v10768_v45 = vperm.slane %v10763_v46, 3 }
 0x752   :  { %11266 = vmatpush.bf16.msrb.mxu1 %v16570_v37  ;;  %11228 = vmatpush.bf16.msra.mxu2 %v16370_v17 }
 0x753   :  { %11253 = vmatpush.bf16.msrb.mxu0 %v16506_v43  ;;  %11241 = vmatpush.bf16.msra.mxu3 %v16434_v34 }
 0x756   :  { %11267 = vmatpush.bf16.msrb.mxu1 %v16562_v27 }
 0x757   :  { %11254 = vmatpush.bf16.msrb.mxu0 %v16498_v3  ;;  %11242 = vmatpush.bf16.msra.mxu3 %v16426_v0 }
 0x75a   :  { %11268 = vmatpush.bf16.msrb.mxu1 %v16554_v26 }
 0x75b   :  { %11255 = vmatpush.bf16.msrb.mxu0 %v16490_v33  ;;  %11243 = vmatpush.bf16.msra.mxu3 %v16418_v4 }
 0x75e   :  { %11269 = vmatpush.bf16.msrb.mxu1 %v16546_v42 }
 0x75f   :  { %11256 = vmatpush.bf16.msrb.mxu0 %v16482_v47 }
 0x7b4   :  { %v10732_v22 = vpop.xlane.xlu1 %10731 }
 0x7b5   :  { %v10733_v20 = vmul.f32 %v10732_v22, %v19887_v40  ;;  %v16359_v40 = vld [vmem:[#allocation20 + $0x18] sm:$0xf0]  ;;  %v10766_v22 = vperm.slane %v10763_v46, 1 }
 0x7b6   :  { %v16362_v11 = vor.u32 %v17865_v10, %v16359_v40 }
 0x7b7   :  { %v10734_v1 = vadd.f32 1e-05, %v10733_v20 }
 0x7b8   :  { %11229 = vmatpush.bf16.msra.mxu2 %v16362_v11 }
 0x7b9   :  { %17979 = vrsqrt.f32 %v10734_v1  ;;  %vm10741_vm1 = vweird.f32 %v10734_v1 }
 0x7bc   :  { %11230 = vmatpush.bf16.msra.mxu2 %v16354_v5 }
 0x7bf   :  { %v17980_v53 = vpop.eup %17979 }
 0x7c0   :  { %v10736_v16 = vmul.f32 %v17980_v53, %v10734_v1  ;;  %vm10742_vm0 = vweird.f32 %v17980_v53 }
 0x7c1   :  { %vm10743_vm2 = vmor %vm10741_vm1, %vm10742_vm0 }
 0x7c2   :  { %v10737_v21 = vmul.f32 %v17980_v53, %v10736_v16 }
 0x7c4   :  { %v10738_v14 = vmul.f32 0.5, %v10737_v21 }
 0x7c6   :  { %v10739_v49 = vsub.f32 1.5, %v10738_v14 }
 0x7c8   :  { %v10740_v15 = vmul.f32 %v17980_v53, %v10739_v49  ;;  %v17942_v49 = vld [vmem:[#allocation26 + $0x78] sm:$0xff] }
 0x7ca   :  { %v10744_v12 = vsel %vm10743_vm2, %v17980_v53, %v10740_v15 }
 0x7cb   :  { %v10745_v60 = vmul.f32 %v10744_v12, %v19891_v39  ;;  %v10746_v31 = vmul.f32 %v10744_v12, %v19894_v59  ;;  %v10747_v20 = vmul.f32 %v10744_v12, %v19897_v6  ;;  %v10748_v43 = vmul.f32 %v10744_v12, %v19900_v8  ;;  %v10845_v6 = vld [vmem:[#allocation22] sm:$0x3] }
 0x7cc   :  { %v10847_v10 = vperm.slane %v10845_v6, 0  ;;  %v10848_v0 = vperm.slane %v10845_v6, 1 }
 0x7cd   :  { %v10759_v37 = vmul.f32 %v10751_v36, %v10745_v60  ;;  %v10760_v13 = vmul.f32 %v10752_v23, %v10746_v31  ;;  %v10761_v50 = vmul.f32 %v10753_v58, %v10747_v20  ;;  %v10762_v51 = vmul.f32 %v10754_v2, %v10748_v43  ;;  %v17932_v60 = vld [vmem:[#allocation26 + $0x28] sm:$0xff]  ;;  %v17931_v20 = vld [vmem:[#allocation26 + $0x20] sm:$0xff] }
 0x7ce   :  { %v17940_v31 = vld [vmem:[#allocation26 + $0x68] sm:$0xff]  ;;  %v17939_v43 = vld [vmem:[#allocation26 + $0x60] sm:$0xff] }
 0x7cf   :  { %v10773_v55 = vadd.f32 %v10765_v52, %v10759_v37  ;;  %v10774_v9 = vadd.f32 %v10766_v22, %v10760_v13  ;;  %v10775_v28 = vadd.f32 %v10767_v57, %v10761_v50  ;;  %v10776_v1 = vadd.f32 %v10768_v45, %v10762_v51  ;;  %v17933_v57 = vld [vmem:[#allocation26 + $0x30] sm:$0xff]  ;;  %v17930_v37 = vld [vmem:[#allocation26 + $0x18] sm:$0xff] }
 0x7d0   :  { %v17941_v45 = vld [vmem:[#allocation26 + $0x70] sm:$0xff]  ;;  %v17938_v13 = vld [vmem:[#allocation26 + $0x58] sm:$0xff] }
 0x7d1   :  { %v10777_v17 = vpack.c.bf16 %v10773_v55, %v10773_v55  ;;  %v10778_v34 = vpack.c.bf16 %v10774_v9, %v10774_v9  ;;  %v10779_v62 = vpack.c.bf16 %v10775_v28, %v10775_v28  ;;  %v10780_v54 = vpack.c.bf16 %v10776_v1, %v10776_v1  ;;  %v17929_v50 = vld [vmem:[#allocation26 + $0x10] sm:$0xff]  ;;  %v17928_v55 = vld [vmem:[#allocation26 + $0x8] sm:$0xff]  ;;  %v17927_v28 = vld [vmem:[#allocation26] sm:$0xff] }
 0x7d2   :  { %v17937_v51 = vld [vmem:[#allocation26 + $0x50] sm:$0xff]  ;;  %v17936_v9 = vld [vmem:[#allocation26 + $0x48] sm:$0xff]  ;;  %v17935_v1 = vld [vmem:[#allocation26 + $0x40] sm:$0xff] }
 0x7d3   :  { %11179 = vmatmul.bf16.vlgmr.msrb.gmra.mxu2 %v10777_v17  ;;  %11192 = vmatmul.bf16.vlgmr.msrb.gmra.mxu3 %v10778_v34 }
 0x7d4   :  { %11205 = vmatmul.bf16.vlgmr.msra.gmra.mxu0 %v10779_v62  ;;  %11218 = vmatmul.bf16.vlgmr.msra.gmra.mxu1 %v10780_v54 }
 0x7d5   :  { %11460 = vmatpush.bf16.msrb.mxu2 %v17934_v38  ;;  %11473 = vmatpush.bf16.msrb.mxu3 %v17942_v49 }
 0x7d9   :  { %11461 = vmatpush.bf16.msrb.mxu2 %v17933_v57  ;;  %11474 = vmatpush.bf16.msrb.mxu3 %v17941_v45 }
 0x7dd   :  { %11462 = vmatpush.bf16.msrb.mxu2 %v17932_v60  ;;  %11475 = vmatpush.bf16.msrb.mxu3 %v17940_v31 }
 0x7e1   :  { %11463 = vmatpush.bf16.msrb.mxu2 %v17931_v20  ;;  %11476 = vmatpush.bf16.msrb.mxu3 %v17939_v43 }
 0x7e3   :  { %11231 = vmatmul.bf16.vlgmr.msra.gmra.mxu2 %v10777_v17  ;;  %11244 = vmatmul.bf16.vlgmr.msra.gmra.mxu3 %v10778_v34 }
 0x7e4   :  { %11257 = vmatmul.bf16.vlgmr.msrb.gmra.mxu0 %v10779_v62  ;;  %11270 = vmatmul.bf16.vlgmr.msrb.gmra.mxu1 %v10780_v54 }
 0x7e5   :  { %11464 = vmatpush.bf16.msrb.mxu2 %v17930_v37  ;;  %11477 = vmatpush.bf16.msrb.mxu3 %v17938_v13 }
 0x7e9   :  { %11465 = vmatpush.bf16.msrb.mxu2 %v17929_v50  ;;  %11478 = vmatpush.bf16.msrb.mxu3 %v17937_v51 }
 0x7ed   :  { %11466 = vmatpush.bf16.msrb.mxu2 %v17928_v55  ;;  %11479 = vmatpush.bf16.msrb.mxu3 %v17936_v9 }
 0x7f1   :  { %11467 = vmatpush.bf16.msrb.mxu2 %v17927_v28  ;;  %11480 = vmatpush.bf16.msrb.mxu3 %v17935_v1 }
 0x851   :  { %v11206_v39 = vpop.f32.mrf.mxu0  ;;  %v11219_v59 = vpop.f32.mrf.mxu1 }
 0x856   :  { %v11180_v8 = vpop.f32.mrf.mxu2  ;;  %v11193_v3 = vpop.f32.mrf.mxu3 }
 0x857   :  { %v11181_v27 = vadd.f32 %v11180_v8, %v10847_v10  ;;  %v11310_v8 = vld [vmem:[#allocation23] sm:$0x3] }
 0x859   :  { %v11208_v40 = vpop.f32.mrf.mxu0  ;;  %v11221_v29 = vpop.f32.mrf.mxu1  ;;  %v11194_v32 = vadd.f32 %v11193_v3, %v11181_v27  ;;  %v11313_v27 = vperm.slane %v11310_v8, 1 }
 0x85a   :  { %v11318_v40 = vld [vmem:[#allocation25] sm:$0x3]  ;;  %v11312_v29 = vperm.slane %v11310_v8, 0 }
 0x85b   :  { %v11207_v11 = vadd.f32 %v11206_v39, %v11194_v32 }
 0x85d   :  { %v11220_v44 = vadd.f32 %v11219_v59, %v11207_v11 }
 0x85e   :  { %v11182_v35 = vpop.f32.mrf.mxu2  ;;  %v11195_v63 = vpop.f32.mrf.mxu3 }
 0x85f   :  { %v11277_v7 = vmul.f32 0.01, %v11220_v44  ;;  %vm11275_vm3 = vcmp.gt.f32.partialorder %v11220_v44, 0.0 }
 0x861   :  { %v11258_v24 = vpop.f32.mrf.mxu0  ;;  %v11271_v18 = vpop.f32.mrf.mxu1  ;;  %v11279_v16 = vsel %vm11275_vm3, %v11220_v44, %v11277_v7 }
 0x862   :  { %v11281_v42 = vsel %vm9395_vm6, %v11279_v16, 0.0 }
 0x866   :  { %v11232_v56 = vpop.f32.mrf.mxu2  ;;  %v11245_v33 = vpop.f32.mrf.mxu3 }
 0x867   :  { %v11233_v48 = vadd.f32 %v11232_v56, %v10848_v0 }
 0x869   :  { %v11246_v41 = vadd.f32 %v11245_v33, %v11233_v48  ;;  %v11260_v26 = vpop.f32.mrf.mxu0  ;;  %v11273_v19 = vpop.f32.mrf.mxu1  ;;  %v17972_v48 = vld [vmem:[#allocation28] ss:$0 sm:$0xff] }
 0x86b   :  { %v11259_v25 = vadd.f32 %v11258_v24, %v11246_v41  ;;  %v11320_v24 = vperm.slane %v11318_v40, 0 }
 0x86d   :  { %v11272_v30 = vadd.f32 %v11271_v18, %v11259_v25 }
 0x86e   :  { %v11234_v53 = vpop.f32.mrf.mxu2  ;;  %v11247_v5 = vpop.f32.mrf.mxu3 }
 0x86f   :  { %vm11276_vm4 = vcmp.gt.f32.partialorder %v11272_v30, 0.0  ;;  %v11278_v4 = vmul.f32 0.01, %v11272_v30 }
 0x871   :  { %v11280_v47 = vsel %vm11276_vm4, %v11272_v30, %v11278_v4 }
 0x872   :  { %v11282_v21 = vsel %vm9395_vm6, %v11280_v47, 0.0 }
 0x873   :  { %v11283_v14 = vadd.f32 %v11282_v21, %v11281_v42 }
 0x875   :  { %11284 = vadd.xlane.f32.xlu2 %v11283_v14 }
 0x8e8   :  { %v11285_v46 = vpop.xlane.xlu2 %11284 }
 0x8e9   :  { %v11286_v15 = vmul.f32 %v11285_v46, %v19810_v61 }
 0x8eb   :  { %v11287_v36 = vsub.f32 %v11279_v16, %v11286_v15  ;;  %v11288_v52 = vsub.f32 %v11280_v47, %v11286_v15 }
 0x8ed   :  { %v11289_v23 = vmul.f32 %v11287_v36, %v11287_v36  ;;  %v11290_v58 = vmul.f32 %v11288_v52, %v11288_v52 }
 0x8ef   :  { %v11291_v2 = vsel %vm9395_vm6, %v11289_v23, 0.0  ;;  %v11292_v12 = vsel %vm9395_vm6, %v11290_v58, 0.0 }
 0x8f0   :  { %v11293_v22 = vadd.f32 %v11292_v12, %v11291_v2 }
 0x8f2   :  { %11294 = vadd.xlane.f32.xlu2 %v11293_v22 }
 0x965   :  { %v11295_v17 = vpop.xlane.xlu2 %11294 }
 0x966   :  { %v11296_v34 = vmul.f32 %v11295_v17, %v19810_v61  ;;  %v11321_v61 = vperm.slane %v11318_v40, 1 }
 0x968   :  { %v11297_v62 = vadd.f32 1e-05, %v11296_v34 }
 0x96a   :  { %17981 = vrsqrt.f32 %v11297_v62  ;;  %vm11304_vm6 = vweird.f32 %v11297_v62 }
 0x970   :  { %v17982_v54 = vpop.eup %17981 }
 0x971   :  { %v11299_v39 = vmul.f32 %v17982_v54, %v11297_v62  ;;  %vm11305_vm5 = vweird.f32 %v17982_v54 }
 0x972   :  { %vm11306_vm7 = vmor %vm11304_vm6, %vm11305_vm5 }
 0x973   :  { %v11300_v59 = vmul.f32 %v17982_v54, %v11299_v39 }
 0x975   :  { %v11301_v6 = vmul.f32 0.5, %v11300_v59 }
 0x977   :  { %v11302_v3 = vsub.f32 1.5, %v11301_v6 }
 0x979   :  { %v11303_v10 = vmul.f32 %v17982_v54, %v11302_v3 }
 0x97b   :  { %v11307_v35 = vsel %vm11306_vm7, %v17982_v54, %v11303_v10 }
 0x97c   :  { %v11308_v63 = vmul.f32 %v11307_v35, %v11287_v36  ;;  %v11309_v32 = vmul.f32 %v11307_v35, %v11288_v52 }
 0x97e   :  { %v11316_v18 = vmul.f32 %v11312_v29, %v11308_v63  ;;  %v11317_v11 = vmul.f32 %v11313_v27, %v11309_v32 }
 0x980   :  { %v11324_v0 = vadd.f32 %v11320_v24, %v11316_v18  ;;  %v11325_v56 = vadd.f32 %v11321_v61, %v11317_v11 }
 0x982   :  { %v11326_v33 = vpack.c.bf16 %v11324_v0, %v11324_v0  ;;  %v11327_v44 = vpack.c.bf16 %v11325_v56, %v11325_v56 }
 0x984   :  { %11468 = vmatmul.bf16.vlgmr.msrb.gmra.mxu2 %v11326_v33  ;;  %11481 = vmatmul.bf16.vlgmr.msrb.gmra.mxu3 %v11327_v44 }
 0xa07   :  { %v11469_v41 = vpop.f32.mrf.mxu2  ;;  %v11482_v26 = vpop.f32.mrf.mxu3 }
 0xa08   :  { %v11470_v19 = vadd.f32 %v17972_v48, %v11469_v41 }
 0xa0a   :  { %v11483_v25 = vadd.f32 %v11482_v26, %v11470_v19 }
 0xa0c   :  { %11486 = vst [vmem:[#allocation29] sm:$0x3] %v11483_v25 }
 0xa0d   :  { %11497 = dma.vmem_to_hbm [thread:$0]  %s11493_s21, 32, %s11495_s10, [#allocation4]  }
 0xa0f   :  { %v11471_v7 = vpop.f32.mrf.mxu2  ;;  %v11484_v30 = vpop.f32.mrf.mxu3 }
 0xa10   :  { %18442 = dma.done.wait [#allocation4], 32  }
 0xa11   :  { %18443 = vsyncadd [#allocation4], 4294967264 }
 0xa12   :  { %11502 = vsyncpa [#allocation3], 1 }
 0xa13   :  { %11503 = vsyncpa [#allocation6], 1 }
 0xa14   :  { %11504 = vsyncpa [#allocation9], 1 }
 0xa15   :  { %11505 = vsyncpa [#allocation12], 1 }
 0xa16   :  { %11506 = vsyncpa [#allocation15], 1 }
 0xa17   :  { %11507 = vsyncpa [#allocation18], 1 }
 0xa18   :  { %11508 = vsyncpa [#allocation21], 1 }
 0xa19   :  { %11509 = vsyncpa [#allocation24], 1 }
 0xa1a   :  { %11510 = vsyncpa [#allocation27], 1 }
 0xa1b   :  { %11511 = vsyncpa [#allocation4], 1 }

</bundles_post_ra>
